<compile_context>
chip_gen: v7x
topology: tpu7x:2x2x1
jax: 0.10.0
libtpu: 0.0.40
codegen_flags: <defaults>
</compile_context>

<pallas_src>
import jax
import jax.numpy as jnp
from jax.experimental import pallas as pl
from jax.experimental.pallas import tpu as pltpu

_BN_EPS = 1e-5


def _default_compute_dtype():
    """bf16 matmul path on v6e/v7x, f32 elsewhere (v5e has no bf16 VPU/EUP)."""
    try:
        kind = jax.devices()[0].device_kind.lower()
    except Exception:
        return jnp.float32
    if "v6" in kind or "v7" in kind:
        return jnp.bfloat16
    return jnp.float32


# ---------------------------------------------------------------------------
# Fused Inception kernel (built per static module structure)
# ---------------------------------------------------------------------------

def _build_kernel(*, H, W, Cin, head_cols, tails, branch_cout, out_offs,
                  pool_cout, n_tail, compute_dtype):
    HW = H * W

    def kernel(*refs):
        # inputs: x, head_w, head_ss, (w, ss) per tail layer, pool_w, pool_ss
        x_ref = refs[0]
        head_w_ref, head_ss_ref = refs[1], refs[2]
        tail_refs = [(refs[3 + 2 * t], refs[4 + 2 * t]) for t in range(n_tail)]
        pool_w_ref, pool_ss_ref = refs[3 + 2 * n_tail], refs[4 + 2 * n_tail]
        o_ref = refs[5 + 2 * n_tail]
        pad_ref = refs[6 + 2 * n_tail]      # VMEM scratch: padded feature map
        patch_ref = refs[7 + 2 * n_tail]    # VMEM scratch: im2col patch matrix

        xv = x_ref[0]                        # (H, W, Cin), compute dtype
        x_flat = xv.reshape(HW, Cin)

        def epilogue(y, ss_ref, relu):
            y = y * ss_ref[0, :] + ss_ref[1, :]          # folded BN, f32
            return jnp.maximum(y, 0.0) if relu else y

        def conv_spatial(h_f32, cin, k, w_ref):
            """KxK same-padded conv via one im2col matmul. h_f32: (HW, cin) f32."""
            p = (k - 1) // 2
            pad_ref[...] = jnp.zeros(pad_ref.shape, pad_ref.dtype)
            pad_ref[p:p + H, p:p + W, :cin] = h_f32.reshape(H, W, cin)
            for dh in range(k):                          # static taps -> unrolled
                for dw in range(k):
                    t = dh * k + dw
                    patch_ref[:, t * cin:(t + 1) * cin] = (
                        pad_ref[dh:dh + H, dw:dw + W, :cin].reshape(HW, cin))
            kk = k * k * cin
            lhs = patch_ref[:, :kk].astype(compute_dtype)
            return jnp.dot(lhs, w_ref[...], preferred_element_type=jnp.float32)

        # ---- fused 1x1 heads: one MXU matmul for every 1x1 first layer on x ----
        y0 = jnp.dot(x_flat, head_w_ref[...], preferred_element_type=jnp.float32)
        y0 = epilogue(y0, head_ss_ref, relu=True)

        branch_h = [None, None, None]
        for (b, col, cout) in head_cols:
            branch_h[b] = y0[:, col:col + cout]

        # ---- remaining layers per conv branch -> write its output channel slice
        ti = 0
        for b in range(3):
            h = branch_h[b]
            if h is None:
                h = x_flat.astype(jnp.float32)
            for (k, cin, cout) in tails[b]:
                w_ref, ss_ref = tail_refs[ti]
                ti += 1
                if k == 1:
                    y = jnp.dot(h.astype(compute_dtype), w_ref[...],
                                preferred_element_type=jnp.float32)
                else:
                    y = conv_spatial(h, cin, k, w_ref)
                h = epilogue(y, ss_ref, relu=True)
            off, c = out_offs[b], branch_cout[b]
            o_ref[0, :, :, off:off + c] = h.reshape(H, W, c).astype(o_ref.dtype)

        # ---- pool branch: 3x3/s1/p1 max-pool fused with its 1x1 conv (+bias) ----
        pad_ref[...] = jnp.full(pad_ref.shape, -jnp.inf, pad_ref.dtype)
        pad_ref[1:1 + H, 1:1 + W, :Cin] = xv.astype(pad_ref.dtype)
        m = pad_ref[0:H, 0:W, :Cin]
        for dh in range(3):
            for dw in range(3):
                if dh == 0 and dw == 0:
                    continue
                m = jnp.maximum(m, pad_ref[dh:dh + H, dw:dw + W, :Cin])
        y = jnp.dot(m.reshape(HW, Cin).astype(compute_dtype), pool_w_ref[...],
                    preferred_element_type=jnp.float32)
        y = epilogue(y, pool_ss_ref, relu=False)
        off = out_offs[3]
        o_ref[0, :, :, off:off + pool_cout] = (
            y.reshape(H, W, pool_cout).astype(o_ref.dtype))

    return kernel


# ---------------------------------------------------------------------------
# Wrapper: pack weights, build specs, single pallas_call
# ---------------------------------------------------------------------------

def _pack_conv_bn(layer, compute_dtype):
    kh, kw, cin, cout = layer["w"].shape
    w2 = layer["w"].reshape(kh * kw * cin, cout).astype(compute_dtype)
    ss = jnp.stack([layer["scale"], layer["shift"]]).astype(jnp.float32)
    return dict(k=kh, cin=cin, cout=cout, w=w2, ss=ss)


def inception_forward(x_nchw, params, compute_dtype=None):
    if compute_dtype is None:
        compute_dtype = _default_compute_dtype()

    x = jnp.transpose(x_nchw, (0, 2, 3, 1)).astype(compute_dtype)   # NCHW->NHWC
    N, H, W, Cin = x.shape

    branches = [params["conv1"], params["conv3"], params["conv5"]]
    packed = [[_pack_conv_bn(l, compute_dtype) for l in br] for br in branches]

    # Fuse every 1x1 first layer (acting on x) into one matmul.
    head_parts, head_cols, tails = [], [], []
    col = 0
    for b in range(3):
        if packed[b][0]["k"] == 1:
            p0 = packed[b][0]
            head_parts.append(p0)
            head_cols.append((b, col, p0["cout"]))
            col += p0["cout"]
            tails.append(tuple((l["k"], l["cin"], l["cout"]) for l in packed[b][1:]))
        else:
            tails.append(tuple((l["k"], l["cin"], l["cout"]) for l in packed[b]))
    head_w = jnp.concatenate([p["w"] for p in head_parts], axis=1)
    head_ss = jnp.concatenate([p["ss"] for p in head_parts], axis=1)

    tail_packed = []
    for b in range(3):
        start = 1 if packed[b][0]["k"] == 1 else 0
        tail_packed.extend(packed[b][start:])
    tail_arrays = []
    for l in tail_packed:
        tail_arrays.extend([l["w"], l["ss"]])
    n_tail = len(tail_packed)

    branch_cout = tuple(packed[b][-1]["cout"] for b in range(3))
    pool = params["pool"]
    pool_cout = pool["w"].shape[-1]
    pool_w = pool["w"].reshape(Cin, pool_cout).astype(compute_dtype)
    pool_ss = jnp.stack([pool["scale"], pool["shift"]]).astype(jnp.float32)

    oc = sum(branch_cout) + pool_cout
    out_offs = (0, branch_cout[0], branch_cout[0] + branch_cout[1],
                branch_cout[0] + branch_cout[1] + branch_cout[2])

    # Scratch sizing (VMEM only): padded feature map + im2col patch matrix.
    spatial = [(l["k"], l["cin"]) for br in packed for l in br if l["k"] > 1]
    pmax = max([1] + [(k - 1) // 2 for k, _ in spatial])   # >=1 for the max-pool
    cmax = max([Cin] + [c for _, c in spatial])
    kmax = max([Cin] + [k * k * c for k, c in spatial])

    kernel = _build_kernel(
        H=H, W=W, Cin=Cin, head_cols=tuple(head_cols), tails=tuple(tails),
        branch_cout=branch_cout, out_offs=out_offs, pool_cout=pool_cout,
        n_tail=n_tail, compute_dtype=compute_dtype)

    def full_spec(arr):
        return pl.BlockSpec(arr.shape, lambda n: (0,) * arr.ndim)

    in_arrays = [x, head_w, head_ss, *tail_arrays, pool_w, pool_ss]
    in_specs = [pl.BlockSpec((1, H, W, Cin), lambda n: (n, 0, 0, 0))]
    in_specs += [full_spec(a) for a in in_arrays[1:]]

    out = pl.pallas_call(
        kernel,
        out_shape=jax.ShapeDtypeStruct((N, H, W, oc), jnp.float32),
        grid=(N,),
        in_specs=in_specs,
        out_specs=pl.BlockSpec((1, H, W, oc), lambda n: (n, 0, 0, 0)),
        scratch_shapes=[
            pltpu.VMEM((H + 2 * pmax, W + 2 * pmax, cmax), jnp.float32),
            pltpu.VMEM((H * W, kmax), jnp.float32),
        ],
        compiler_params=pltpu.CompilerParams(
            dimension_semantics=("parallel",)),
    )(*in_arrays)

    return jnp.transpose(out, (0, 3, 1, 2))                # NHWC -> NCHW


# ---------------------------------------------------------------------------
# Deterministic parameter construction (mirrors InceptionModule.__init__)
# ---------------------------------------------------------------------------

def _init_conv_bn(key, cin, cout, k):
    """Conv2d(cin,cout,k,pad=(k-1)//2) + BatchNorm2d(cout) + ReLU, BN folded."""
    kw_, kb, kg, kbeta, km, kv = jax.random.split(key, 6)
    bound = 1.0 / (cin * k * k) ** 0.5
    w = jax.random.uniform(kw_, (k, k, cin, cout), jnp.float32, -bound, bound)
    b = jax.random.uniform(kb, (cout,), jnp.float32, -bound, bound)
    gamma = jax.random.uniform(kg, (cout,), jnp.float32, 0.5, 1.5)
    beta = jax.random.uniform(kbeta, (cout,), jnp.float32, -0.5, 0.5)
    mean = jax.random.uniform(km, (cout,), jnp.float32, -0.1, 0.1)
    var = jax.random.uniform(kv, (cout,), jnp.float32, 0.5, 1.5)
    scale = gamma / jnp.sqrt(var + _BN_EPS)
    shift = beta + (b - mean) * scale
    return dict(w=w, scale=scale, shift=shift)


def _init_bottleneck(key, mode, cin, cout, k, alpha):
    if mode == 1:
        return [_init_conv_bn(key, cin, cout, k)]
    elif mode == 2:
        ka, kb = jax.random.split(key)
        return [_init_conv_bn(ka, cin, cout // alpha, 1),
                _init_conv_bn(kb, cout // alpha, cout, k)]
    else:  # mode == 3
        ka, kb, kc = jax.random.split(key, 3)
        return [_init_conv_bn(ka, cin, cout // alpha, 1),
                _init_conv_bn(kb, cout // alpha, cout // alpha, k),
                _init_conv_bn(kc, cout // alpha, cout, 1)]


def init_inception(key, mode, input_channels, output_channels, alpha):
    assert output_channels % (8 * alpha) == 0
    assert isinstance(mode, int) and 1 <= mode <= 3
    k1, k3, k5, kp = jax.random.split(key, 4)
    conv1 = [_init_conv_bn(k1, input_channels, output_channels // 4, 1)]
    conv3 = _init_bottleneck(k3, mode, input_channels, output_channels // 2, 3, alpha)
    conv5 = _init_bottleneck(k5, mode, input_channels, output_channels // 8, 5, alpha)
    # pool branch: MaxPool2d(3,1,1) -> plain Conv2d 1x1 with bias (no BN/ReLU)
    kw_, kb = jax.random.split(kp)
    cout8 = output_channels // 8
    bound = 1.0 / input_channels ** 0.5
    w = jax.random.uniform(kw_, (1, 1, input_channels, cout8), jnp.float32,
                           -bound, bound)
    b = jax.random.uniform(kb, (cout8,), jnp.float32, -bound, bound)
    pool = dict(w=w, scale=jnp.ones((cout8,), jnp.float32), shift=b)
    return dict(conv1=conv1, conv3=conv3, conv5=conv5, pool=pool)


if __name__ == "__main__":
    key = jax.random.PRNGKey(0)
    pkey, xkey = jax.random.split(key)

    mode, input_channels, output_channels, alpha = 1, 4, 16, 2
    params = init_inception(pkey, mode, input_channels, output_channels, alpha)

    x = jax.random.normal(xkey, (2, input_channels, 16, 16), jnp.float32)  # NCHW
    y = jax.jit(lambda a: inception_forward(a, params))(x)
    jax.block_until_ready(y)
    assert y.shape == (2, output_channels, 16, 16), y.shape
    print("KERNEL_OK")
</pallas_src>

<mosaic_0001>
module attributes {stable_mosaic.version = 11 : i64} {
  func.func @kernel(%arg0: i32, %arg1: memref<1x16x16x4xf32, #tpu.memory_space<vmem>>, %arg2: memref<4x4xf32, #tpu.memory_space<vmem>>, %arg3: memref<2x4xf32, #tpu.memory_space<vmem>>, %arg4: memref<36x8xf32, #tpu.memory_space<vmem>>, %arg5: memref<2x8xf32, #tpu.memory_space<vmem>>, %arg6: memref<100x2xf32, #tpu.memory_space<vmem>>, %arg7: memref<2x2xf32, #tpu.memory_space<vmem>>, %arg8: memref<4x2xf32, #tpu.memory_space<vmem>>, %arg9: memref<2x2xf32, #tpu.memory_space<vmem>>, %arg10: memref<1x16x16x16xf32, #tpu.memory_space<vmem>>, %arg11: memref<20x20x4xf32, #tpu.memory_space<vmem>>, %arg12: memref<256x100xf32, #tpu.memory_space<vmem>>) attributes {dimension_semantics = [#tpu.dimension_semantics<parallel>], iteration_bounds = array<i64: 2>, scalar_prefetch = 0 : i64, scratch_operands = 2 : i64, tpu.core_type = #tpu.core_type<tc>, window_params = [{transform_indices = @transform_0, window_bounds = array<i64: 1, 16, 16, 4>}, {pipeline_mode = #tpu.pipeline_mode<synchronous>, transform_indices = @transform_1, window_bounds = array<i64: 4, 4>}, {pipeline_mode = #tpu.pipeline_mode<synchronous>, transform_indices = @transform_2, window_bounds = array<i64: 2, 4>}, {pipeline_mode = #tpu.pipeline_mode<synchronous>, transform_indices = @transform_3, window_bounds = array<i64: 36, 8>}, {pipeline_mode = #tpu.pipeline_mode<synchronous>, transform_indices = @transform_4, window_bounds = array<i64: 2, 8>}, {pipeline_mode = #tpu.pipeline_mode<synchronous>, transform_indices = @transform_5, window_bounds = array<i64: 100, 2>}, {pipeline_mode = #tpu.pipeline_mode<synchronous>, transform_indices = @transform_6, window_bounds = array<i64: 2, 2>}, {pipeline_mode = #tpu.pipeline_mode<synchronous>, transform_indices = @transform_7, window_bounds = array<i64: 4, 2>}, {pipeline_mode = #tpu.pipeline_mode<synchronous>, transform_indices = @transform_8, window_bounds = array<i64: 2, 2>}, {transform_indices = @transform_9, window_bounds = array<i64: 1, 16, 16, 16>}]} {
    %c0 = arith.constant 0 : index
    %c0_0 = arith.constant 0 : index
    %c0_1 = arith.constant 0 : index
    %c0_2 = arith.constant 0 : index
    %0 = vector.load %arg1[%c0, %c0_0, %c0_1, %c0_2] : memref<1x16x16x4xf32, #tpu.memory_space<vmem>>, vector<1x16x16x4xf32>
    %1 = vector.shape_cast %0 : vector<1x16x16x4xf32> to vector<16x16x4xf32>
    %2 = vector.shape_cast %1 : vector<16x16x4xf32> to vector<256x4xf32>
    %c0_3 = arith.constant 0 : index
    %c0_4 = arith.constant 0 : index
    %3 = vector.load %arg2[%c0_3, %c0_4] : memref<4x4xf32, #tpu.memory_space<vmem>>, vector<4x4xf32>
    %cst = arith.constant dense<0.000000e+00> : vector<256x4xf32>
    %4 = tpu.matmul %2, %3, %cst {dimension_numbers = #tpu.dot_dimension_numbers<[1], [0], [0], [1], [0, 0, 1, 1], [], []>} : vector<256x4xf32>, vector<4x4xf32>, vector<256x4xf32> -> vector<256x4xf32>
    %c0_5 = arith.constant 0 : index
    %c0_6 = arith.constant 0 : index
    %5 = vector.load %arg3[%c0_5, %c0_6] : memref<2x4xf32, #tpu.memory_space<vmem>>, vector<1x4xf32>
    %6 = vector.shape_cast %5 : vector<1x4xf32> to vector<4xf32>
    %7 = vector.shape_cast %6 : vector<4xf32> to vector<1x4xf32>
    %8 = vector.broadcast %7 : vector<1x4xf32> to vector<256x4xf32>
    %9 = arith.mulf %4, %8 : vector<256x4xf32>
    %c1 = arith.constant 1 : index
    %c0_7 = arith.constant 0 : index
    %10 = vector.load %arg3[%c1, %c0_7] : memref<2x4xf32, #tpu.memory_space<vmem>>, vector<1x4xf32>
    %11 = vector.shape_cast %10 : vector<1x4xf32> to vector<4xf32>
    %12 = vector.shape_cast %11 : vector<4xf32> to vector<1x4xf32>
    %13 = vector.broadcast %12 : vector<1x4xf32> to vector<256x4xf32>
    %14 = arith.addf %9, %13 : vector<256x4xf32>
    %cst_8 = arith.constant 0.000000e+00 : f32
    %15 = vector.broadcast %cst_8 : f32 to vector<256x4xf32>
    %16 = arith.maximumf %14, %15 : vector<256x4xf32>
    %17 = vector.shape_cast %16 : vector<256x4xf32> to vector<16x16x4xf32>
    %c0_9 = arith.constant 0 : index
    %c0_10 = arith.constant 0 : index
    %c0_11 = arith.constant 0 : index
    %c0_12 = arith.constant 0 : index
    %18 = vector.load %arg10[%c0_9, %c0_10, %c0_11, %c0_12] : memref<1x16x16x16xf32, #tpu.memory_space<vmem>>, vector<1x16x16x4xf32>
    %19 = vector.shape_cast %18 : vector<1x16x16x4xf32> to vector<16x16x4xf32>
    %20 = vector.shape_cast %17 : vector<16x16x4xf32> to vector<1x16x16x4xf32>
    tpu.vector_store %arg10[%c0_9, %c0_10, %c0_11, %c0_12], %20 {strides = array<i32>} : memref<1x16x16x16xf32, #tpu.memory_space<vmem>>, vector<1x16x16x4xf32>,
    %cst_13 = arith.constant 0.000000e+00 : f32
    %21 = vector.broadcast %cst_13 : f32 to vector<20x20x4xf32>
    %c0_14 = arith.constant 0 : index
    %c0_15 = arith.constant 0 : index
    %c0_16 = arith.constant 0 : index
    %22 = vector.load %arg11[%c0_14, %c0_15, %c0_16] : memref<20x20x4xf32, #tpu.memory_space<vmem>>, vector<20x20x4xf32>
    tpu.vector_store %arg11[%c0_14, %c0_15, %c0_16], %21 {strides = array<i32>} : memref<20x20x4xf32, #tpu.memory_space<vmem>>, vector<20x20x4xf32>,
    %23 = vector.shape_cast %2 : vector<256x4xf32> to vector<16x16x4xf32>
    %c1_17 = arith.constant 1 : index
    %c1_18 = arith.constant 1 : index
    %c0_19 = arith.constant 0 : index
    %24 = vector.load %arg11[%c1_17, %c1_18, %c0_19] : memref<20x20x4xf32, #tpu.memory_space<vmem>>, vector<16x16x4xf32>
    tpu.vector_store %arg11[%c1_17, %c1_18, %c0_19], %23 {strides = array<i32>} : memref<20x20x4xf32, #tpu.memory_space<vmem>>, vector<16x16x4xf32>,
    %c0_20 = arith.constant 0 : index
    %c0_21 = arith.constant 0 : index
    %c0_22 = arith.constant 0 : index
    %25 = vector.load %arg11[%c0_20, %c0_21, %c0_22] : memref<20x20x4xf32, #tpu.memory_space<vmem>>, vector<16x16x4xf32>
    %26 = vector.shape_cast %25 : vector<16x16x4xf32> to vector<256x4xf32>
    %c0_23 = arith.constant 0 : index
    %c0_24 = arith.constant 0 : index
    %27 = vector.load %arg12[%c0_23, %c0_24] : memref<256x100xf32, #tpu.memory_space<vmem>>, vector<256x4xf32>
    tpu.vector_store %arg12[%c0_23, %c0_24], %26 {strides = array<i32>} : memref<256x100xf32, #tpu.memory_space<vmem>>, vector<256x4xf32>,
    %c0_25 = arith.constant 0 : index
    %c1_26 = arith.constant 1 : index
    %c0_27 = arith.constant 0 : index
    %28 = vector.load %arg11[%c0_25, %c1_26, %c0_27] : memref<20x20x4xf32, #tpu.memory_space<vmem>>, vector<16x16x4xf32>
    %29 = vector.shape_cast %28 : vector<16x16x4xf32> to vector<256x4xf32>
    %c0_28 = arith.constant 0 : index
    %c4 = arith.constant 4 : index
    %30 = vector.load %arg12[%c0_28, %c4] : memref<256x100xf32, #tpu.memory_space<vmem>>, vector<256x4xf32>
    tpu.vector_store %arg12[%c0_28, %c4], %29 {strides = array<i32>} : memref<256x100xf32, #tpu.memory_space<vmem>>, vector<256x4xf32>,
    %c0_29 = arith.constant 0 : index
    %c2 = arith.constant 2 : index
    %c0_30 = arith.constant 0 : index
    %31 = vector.load %arg11[%c0_29, %c2, %c0_30] : memref<20x20x4xf32, #tpu.memory_space<vmem>>, vector<16x16x4xf32>
    %32 = vector.shape_cast %31 : vector<16x16x4xf32> to vector<256x4xf32>
    %c0_31 = arith.constant 0 : index
    %c8 = arith.constant 8 : index
    %33 = vector.load %arg12[%c0_31, %c8] : memref<256x100xf32, #tpu.memory_space<vmem>>, vector<256x4xf32>
    tpu.vector_store %arg12[%c0_31, %c8], %32 {strides = array<i32>} : memref<256x100xf32, #tpu.memory_space<vmem>>, vector<256x4xf32>,
    %c1_32 = arith.constant 1 : index
    %c0_33 = arith.constant 0 : index
    %c0_34 = arith.constant 0 : index
    %34 = vector.load %arg11[%c1_32, %c0_33, %c0_34] : memref<20x20x4xf32, #tpu.memory_space<vmem>>, vector<16x16x4xf32>
    %35 = vector.shape_cast %34 : vector<16x16x4xf32> to vector<256x4xf32>
    %c0_35 = arith.constant 0 : index
    %c12 = arith.constant 12 : index
    %36 = vector.load %arg12[%c0_35, %c12] : memref<256x100xf32, #tpu.memory_space<vmem>>, vector<256x4xf32>
    tpu.vector_store %arg12[%c0_35, %c12], %35 {strides = array<i32>} : memref<256x100xf32, #tpu.memory_space<vmem>>, vector<256x4xf32>,
    %c1_36 = arith.constant 1 : index
    %c1_37 = arith.constant 1 : index
    %c0_38 = arith.constant 0 : index
    %37 = vector.load %arg11[%c1_36, %c1_37, %c0_38] : memref<20x20x4xf32, #tpu.memory_space<vmem>>, vector<16x16x4xf32>
    %38 = vector.shape_cast %37 : vector<16x16x4xf32> to vector<256x4xf32>
    %c0_39 = arith.constant 0 : index
    %c16 = arith.constant 16 : index
    %39 = vector.load %arg12[%c0_39, %c16] : memref<256x100xf32, #tpu.memory_space<vmem>>, vector<256x4xf32>
    tpu.vector_store %arg12[%c0_39, %c16], %38 {strides = array<i32>} : memref<256x100xf32, #tpu.memory_space<vmem>>, vector<256x4xf32>,
    %c1_40 = arith.constant 1 : index
    %c2_41 = arith.constant 2 : index
    %c0_42 = arith.constant 0 : index
    %40 = vector.load %arg11[%c1_40, %c2_41, %c0_42] : memref<20x20x4xf32, #tpu.memory_space<vmem>>, vector<16x16x4xf32>
    %41 = vector.shape_cast %40 : vector<16x16x4xf32> to vector<256x4xf32>
    %c0_43 = arith.constant 0 : index
    %c20 = arith.constant 20 : index
    %42 = vector.load %arg12[%c0_43, %c20] : memref<256x100xf32, #tpu.memory_space<vmem>>, vector<256x4xf32>
    tpu.vector_store %arg12[%c0_43, %c20], %41 {strides = array<i32>} : memref<256x100xf32, #tpu.memory_space<vmem>>, vector<256x4xf32>,
    %c2_44 = arith.constant 2 : index
    %c0_45 = arith.constant 0 : index
    %c0_46 = arith.constant 0 : index
    %43 = vector.load %arg11[%c2_44, %c0_45, %c0_46] : memref<20x20x4xf32, #tpu.memory_space<vmem>>, vector<16x16x4xf32>
    %44 = vector.shape_cast %43 : vector<16x16x4xf32> to vector<256x4xf32>
    %c0_47 = arith.constant 0 : index
    %c24 = arith.constant 24 : index
    %45 = vector.load %arg12[%c0_47, %c24] : memref<256x100xf32, #tpu.memory_space<vmem>>, vector<256x4xf32>
    tpu.vector_store %arg12[%c0_47, %c24], %44 {strides = array<i32>} : memref<256x100xf32, #tpu.memory_space<vmem>>, vector<256x4xf32>,
    %c2_48 = arith.constant 2 : index
    %c1_49 = arith.constant 1 : index
    %c0_50 = arith.constant 0 : index
    %46 = vector.load %arg11[%c2_48, %c1_49, %c0_50] : memref<20x20x4xf32, #tpu.memory_space<vmem>>, vector<16x16x4xf32>
    %47 = vector.shape_cast %46 : vector<16x16x4xf32> to vector<256x4xf32>
    %c0_51 = arith.constant 0 : index
    %c28 = arith.constant 28 : index
    %48 = vector.load %arg12[%c0_51, %c28] : memref<256x100xf32, #tpu.memory_space<vmem>>, vector<256x4xf32>
    tpu.vector_store %arg12[%c0_51, %c28], %47 {strides = array<i32>} : memref<256x100xf32, #tpu.memory_space<vmem>>, vector<256x4xf32>,
    %c2_52 = arith.constant 2 : index
    %c2_53 = arith.constant 2 : index
    %c0_54 = arith.constant 0 : index
    %49 = vector.load %arg11[%c2_52, %c2_53, %c0_54] : memref<20x20x4xf32, #tpu.memory_space<vmem>>, vector<16x16x4xf32>
    %50 = vector.shape_cast %49 : vector<16x16x4xf32> to vector<256x4xf32>
    %c0_55 = arith.constant 0 : index
    %c32 = arith.constant 32 : index
    %51 = vector.load %arg12[%c0_55, %c32] : memref<256x100xf32, #tpu.memory_space<vmem>>, vector<256x4xf32>
    tpu.vector_store %arg12[%c0_55, %c32], %50 {strides = array<i32>} : memref<256x100xf32, #tpu.memory_space<vmem>>, vector<256x4xf32>,
    %c0_56 = arith.constant 0 : index
    %c0_57 = arith.constant 0 : index
    %52 = vector.load %arg12[%c0_56, %c0_57] : memref<256x100xf32, #tpu.memory_space<vmem>>, vector<256x36xf32>
    %c0_58 = arith.constant 0 : index
    %c0_59 = arith.constant 0 : index
    %53 = vector.load %arg4[%c0_58, %c0_59] : memref<36x8xf32, #tpu.memory_space<vmem>>, vector<36x8xf32>
    %cst_60 = arith.constant dense<0.000000e+00> : vector<256x8xf32>
    %54 = tpu.matmul %52, %53, %cst_60 {dimension_numbers = #tpu.dot_dimension_numbers<[1], [0], [0], [1], [0, 0, 1, 1], [], []>} : vector<256x36xf32>, vector<36x8xf32>, vector<256x8xf32> -> vector<256x8xf32>
    %c0_61 = arith.constant 0 : index
    %c0_62 = arith.constant 0 : index
    %55 = vector.load %arg5[%c0_61, %c0_62] : memref<2x8xf32, #tpu.memory_space<vmem>>, vector<1x8xf32>
    %56 = vector.shape_cast %55 : vector<1x8xf32> to vector<8xf32>
    %57 = vector.shape_cast %56 : vector<8xf32> to vector<1x8xf32>
    %58 = vector.broadcast %57 : vector<1x8xf32> to vector<256x8xf32>
    %59 = arith.mulf %54, %58 : vector<256x8xf32>
    %c1_63 = arith.constant 1 : index
    %c0_64 = arith.constant 0 : index
    %60 = vector.load %arg5[%c1_63, %c0_64] : memref<2x8xf32, #tpu.memory_space<vmem>>, vector<1x8xf32>
    %61 = vector.shape_cast %60 : vector<1x8xf32> to vector<8xf32>
    %62 = vector.shape_cast %61 : vector<8xf32> to vector<1x8xf32>
    %63 = vector.broadcast %62 : vector<1x8xf32> to vector<256x8xf32>
    %64 = arith.addf %59, %63 : vector<256x8xf32>
    %cst_65 = arith.constant 0.000000e+00 : f32
    %65 = vector.broadcast %cst_65 : f32 to vector<256x8xf32>
    %66 = arith.maximumf %64, %65 : vector<256x8xf32>
    %67 = vector.shape_cast %66 : vector<256x8xf32> to vector<16x16x8xf32>
    %c0_66 = arith.constant 0 : index
    %c0_67 = arith.constant 0 : index
    %c0_68 = arith.constant 0 : index
    %c4_69 = arith.constant 4 : index
    %68 = vector.load %arg10[%c0_66, %c0_67, %c0_68, %c4_69] : memref<1x16x16x16xf32, #tpu.memory_space<vmem>>, vector<1x16x16x8xf32>
    %69 = vector.shape_cast %68 : vector<1x16x16x8xf32> to vector<16x16x8xf32>
    %70 = vector.shape_cast %67 : vector<16x16x8xf32> to vector<1x16x16x8xf32>
    tpu.vector_store %arg10[%c0_66, %c0_67, %c0_68, %c4_69], %70 {strides = array<i32>} : memref<1x16x16x16xf32, #tpu.memory_space<vmem>>, vector<1x16x16x8xf32>,
    %cst_70 = arith.constant 0.000000e+00 : f32
    %71 = vector.broadcast %cst_70 : f32 to vector<20x20x4xf32>
    %c0_71 = arith.constant 0 : index
    %c0_72 = arith.constant 0 : index
    %c0_73 = arith.constant 0 : index
    %72 = vector.load %arg11[%c0_71, %c0_72, %c0_73] : memref<20x20x4xf32, #tpu.memory_space<vmem>>, vector<20x20x4xf32>
    tpu.vector_store %arg11[%c0_71, %c0_72, %c0_73], %71 {strides = array<i32>} : memref<20x20x4xf32, #tpu.memory_space<vmem>>, vector<20x20x4xf32>,
    %73 = vector.shape_cast %2 : vector<256x4xf32> to vector<16x16x4xf32>
    %c2_74 = arith.constant 2 : index
    %c2_75 = arith.constant 2 : index
    %c0_76 = arith.constant 0 : index
    %74 = vector.load %arg11[%c2_74, %c2_75, %c0_76] : memref<20x20x4xf32, #tpu.memory_space<vmem>>, vector<16x16x4xf32>
    tpu.vector_store %arg11[%c2_74, %c2_75, %c0_76], %73 {strides = array<i32>} : memref<20x20x4xf32, #tpu.memory_space<vmem>>, vector<16x16x4xf32>,
    %c0_77 = arith.constant 0 : index
    %c0_78 = arith.constant 0 : index
    %c0_79 = arith.constant 0 : index
    %75 = vector.load %arg11[%c0_77, %c0_78, %c0_79] : memref<20x20x4xf32, #tpu.memory_space<vmem>>, vector<16x16x4xf32>
    %76 = vector.shape_cast %75 : vector<16x16x4xf32> to vector<256x4xf32>
    %c0_80 = arith.constant 0 : index
    %c0_81 = arith.constant 0 : index
    %77 = vector.load %arg12[%c0_80, %c0_81] : memref<256x100xf32, #tpu.memory_space<vmem>>, vector<256x4xf32>
    tpu.vector_store %arg12[%c0_80, %c0_81], %76 {strides = array<i32>} : memref<256x100xf32, #tpu.memory_space<vmem>>, vector<256x4xf32>,
    %c0_82 = arith.constant 0 : index
    %c1_83 = arith.constant 1 : index
    %c0_84 = arith.constant 0 : index
    %78 = vector.load %arg11[%c0_82, %c1_83, %c0_84] : memref<20x20x4xf32, #tpu.memory_space<vmem>>, vector<16x16x4xf32>
    %79 = vector.shape_cast %78 : vector<16x16x4xf32> to vector<256x4xf32>
    %c0_85 = arith.constant 0 : index
    %c4_86 = arith.constant 4 : index
    %80 = vector.load %arg12[%c0_85, %c4_86] : memref<256x100xf32, #tpu.memory_space<vmem>>, vector<256x4xf32>
    tpu.vector_store %arg12[%c0_85, %c4_86], %79 {strides = array<i32>} : memref<256x100xf32, #tpu.memory_space<vmem>>, vector<256x4xf32>,
    %c0_87 = arith.constant 0 : index
    %c2_88 = arith.constant 2 : index
    %c0_89 = arith.constant 0 : index
    %81 = vector.load %arg11[%c0_87, %c2_88, %c0_89] : memref<20x20x4xf32, #tpu.memory_space<vmem>>, vector<16x16x4xf32>
    %82 = vector.shape_cast %81 : vector<16x16x4xf32> to vector<256x4xf32>
    %c0_90 = arith.constant 0 : index
    %c8_91 = arith.constant 8 : index
    %83 = vector.load %arg12[%c0_90, %c8_91] : memref<256x100xf32, #tpu.memory_space<vmem>>, vector<256x4xf32>
    tpu.vector_store %arg12[%c0_90, %c8_91], %82 {strides = array<i32>} : memref<256x100xf32, #tpu.memory_space<vmem>>, vector<256x4xf32>,
    %c0_92 = arith.constant 0 : index
    %c3 = arith.constant 3 : index
    %c0_93 = arith.constant 0 : index
    %84 = vector.load %arg11[%c0_92, %c3, %c0_93] : memref<20x20x4xf32, #tpu.memory_space<vmem>>, vector<16x16x4xf32>
    %85 = vector.shape_cast %84 : vector<16x16x4xf32> to vector<256x4xf32>
    %c0_94 = arith.constant 0 : index
    %c12_95 = arith.constant 12 : index
    %86 = vector.load %arg12[%c0_94, %c12_95] : memref<256x100xf32, #tpu.memory_space<vmem>>, vector<256x4xf32>
    tpu.vector_store %arg12[%c0_94, %c12_95], %85 {strides = array<i32>} : memref<256x100xf32, #tpu.memory_space<vmem>>, vector<256x4xf32>,
    %c0_96 = arith.constant 0 : index
    %c4_97 = arith.constant 4 : index
    %c0_98 = arith.constant 0 : index
    %87 = vector.load %arg11[%c0_96, %c4_97, %c0_98] : memref<20x20x4xf32, #tpu.memory_space<vmem>>, vector<16x16x4xf32>
    %88 = vector.shape_cast %87 : vector<16x16x4xf32> to vector<256x4xf32>
    %c0_99 = arith.constant 0 : index
    %c16_100 = arith.constant 16 : index
    %89 = vector.load %arg12[%c0_99, %c16_100] : memref<256x100xf32, #tpu.memory_space<vmem>>, vector<256x4xf32>
    tpu.vector_store %arg12[%c0_99, %c16_100], %88 {strides = array<i32>} : memref<256x100xf32, #tpu.memory_space<vmem>>, vector<256x4xf32>,
    %c1_101 = arith.constant 1 : index
    %c0_102 = arith.constant 0 : index
    %c0_103 = arith.constant 0 : index
    %90 = vector.load %arg11[%c1_101, %c0_102, %c0_103] : memref<20x20x4xf32, #tpu.memory_space<vmem>>, vector<16x16x4xf32>
    %91 = vector.shape_cast %90 : vector<16x16x4xf32> to vector<256x4xf32>
    %c0_104 = arith.constant 0 : index
    %c20_105 = arith.constant 20 : index
    %92 = vector.load %arg12[%c0_104, %c20_105] : memref<256x100xf32, #tpu.memory_space<vmem>>, vector<256x4xf32>
    tpu.vector_store %arg12[%c0_104, %c20_105], %91 {strides = array<i32>} : memref<256x100xf32, #tpu.memory_space<vmem>>, vector<256x4xf32>,
    %c1_106 = arith.constant 1 : index
    %c1_107 = arith.constant 1 : index
    %c0_108 = arith.constant 0 : index
    %93 = vector.load %arg11[%c1_106, %c1_107, %c0_108] : memref<20x20x4xf32, #tpu.memory_space<vmem>>, vector<16x16x4xf32>
    %94 = vector.shape_cast %93 : vector<16x16x4xf32> to vector<256x4xf32>
    %c0_109 = arith.constant 0 : index
    %c24_110 = arith.constant 24 : index
    %95 = vector.load %arg12[%c0_109, %c24_110] : memref<256x100xf32, #tpu.memory_space<vmem>>, vector<256x4xf32>
    tpu.vector_store %arg12[%c0_109, %c24_110], %94 {strides = array<i32>} : memref<256x100xf32, #tpu.memory_space<vmem>>, vector<256x4xf32>,
    %c1_111 = arith.constant 1 : index
    %c2_112 = arith.constant 2 : index
    %c0_113 = arith.constant 0 : index
    %96 = vector.load %arg11[%c1_111, %c2_112, %c0_113] : memref<20x20x4xf32, #tpu.memory_space<vmem>>, vector<16x16x4xf32>
    %97 = vector.shape_cast %96 : vector<16x16x4xf32> to vector<256x4xf32>
    %c0_114 = arith.constant 0 : index
    %c28_115 = arith.constant 28 : index
    %98 = vector.load %arg12[%c0_114, %c28_115] : memref<256x100xf32, #tpu.memory_space<vmem>>, vector<256x4xf32>
    tpu.vector_store %arg12[%c0_114, %c28_115], %97 {strides = array<i32>} : memref<256x100xf32, #tpu.memory_space<vmem>>, vector<256x4xf32>,
    %c1_116 = arith.constant 1 : index
    %c3_117 = arith.constant 3 : index
    %c0_118 = arith.constant 0 : index
    %99 = vector.load %arg11[%c1_116, %c3_117, %c0_118] : memref<20x20x4xf32, #tpu.memory_space<vmem>>, vector<16x16x4xf32>
    %100 = vector.shape_cast %99 : vector<16x16x4xf32> to vector<256x4xf32>
    %c0_119 = arith.constant 0 : index
    %c32_120 = arith.constant 32 : index
    %101 = vector.load %arg12[%c0_119, %c32_120] : memref<256x100xf32, #tpu.memory_space<vmem>>, vector<256x4xf32>
    tpu.vector_store %arg12[%c0_119, %c32_120], %100 {strides = array<i32>} : memref<256x100xf32, #tpu.memory_space<vmem>>, vector<256x4xf32>,
    %c1_121 = arith.constant 1 : index
    %c4_122 = arith.constant 4 : index
    %c0_123 = arith.constant 0 : index
    %102 = vector.load %arg11[%c1_121, %c4_122, %c0_123] : memref<20x20x4xf32, #tpu.memory_space<vmem>>, vector<16x16x4xf32>
    %103 = vector.shape_cast %102 : vector<16x16x4xf32> to vector<256x4xf32>
    %c0_124 = arith.constant 0 : index
    %c36 = arith.constant 36 : index
    %104 = vector.load %arg12[%c0_124, %c36] : memref<256x100xf32, #tpu.memory_space<vmem>>, vector<256x4xf32>
    tpu.vector_store %arg12[%c0_124, %c36], %103 {strides = array<i32>} : memref<256x100xf32, #tpu.memory_space<vmem>>, vector<256x4xf32>,
    %c2_125 = arith.constant 2 : index
    %c0_126 = arith.constant 0 : index
    %c0_127 = arith.constant 0 : index
    %105 = vector.load %arg11[%c2_125, %c0_126, %c0_127] : memref<20x20x4xf32, #tpu.memory_space<vmem>>, vector<16x16x4xf32>
    %106 = vector.shape_cast %105 : vector<16x16x4xf32> to vector<256x4xf32>
    %c0_128 = arith.constant 0 : index
    %c40 = arith.constant 40 : index
    %107 = vector.load %arg12[%c0_128, %c40] : memref<256x100xf32, #tpu.memory_space<vmem>>, vector<256x4xf32>
    tpu.vector_store %arg12[%c0_128, %c40], %106 {strides = array<i32>} : memref<256x100xf32, #tpu.memory_space<vmem>>, vector<256x4xf32>,
    %c2_129 = arith.constant 2 : index
    %c1_130 = arith.constant 1 : index
    %c0_131 = arith.constant 0 : index
    %108 = vector.load %arg11[%c2_129, %c1_130, %c0_131] : memref<20x20x4xf32, #tpu.memory_space<vmem>>, vector<16x16x4xf32>
    %109 = vector.shape_cast %108 : vector<16x16x4xf32> to vector<256x4xf32>
    %c0_132 = arith.constant 0 : index
    %c44 = arith.constant 44 : index
    %110 = vector.load %arg12[%c0_132, %c44] : memref<256x100xf32, #tpu.memory_space<vmem>>, vector<256x4xf32>
    tpu.vector_store %arg12[%c0_132, %c44], %109 {strides = array<i32>} : memref<256x100xf32, #tpu.memory_space<vmem>>, vector<256x4xf32>,
    %c2_133 = arith.constant 2 : index
    %c2_134 = arith.constant 2 : index
    %c0_135 = arith.constant 0 : index
    %111 = vector.load %arg11[%c2_133, %c2_134, %c0_135] : memref<20x20x4xf32, #tpu.memory_space<vmem>>, vector<16x16x4xf32>
    %112 = vector.shape_cast %111 : vector<16x16x4xf32> to vector<256x4xf32>
    %c0_136 = arith.constant 0 : index
    %c48 = arith.constant 48 : index
    %113 = vector.load %arg12[%c0_136, %c48] : memref<256x100xf32, #tpu.memory_space<vmem>>, vector<256x4xf32>
    tpu.vector_store %arg12[%c0_136, %c48], %112 {strides = array<i32>} : memref<256x100xf32, #tpu.memory_space<vmem>>, vector<256x4xf32>,
    %c2_137 = arith.constant 2 : index
    %c3_138 = arith.constant 3 : index
    %c0_139 = arith.constant 0 : index
    %114 = vector.load %arg11[%c2_137, %c3_138, %c0_139] : memref<20x20x4xf32, #tpu.memory_space<vmem>>, vector<16x16x4xf32>
    %115 = vector.shape_cast %114 : vector<16x16x4xf32> to vector<256x4xf32>
    %c0_140 = arith.constant 0 : index
    %c52 = arith.constant 52 : index
    %116 = vector.load %arg12[%c0_140, %c52] : memref<256x100xf32, #tpu.memory_space<vmem>>, vector<256x4xf32>
    tpu.vector_store %arg12[%c0_140, %c52], %115 {strides = array<i32>} : memref<256x100xf32, #tpu.memory_space<vmem>>, vector<256x4xf32>,
    %c2_141 = arith.constant 2 : index
    %c4_142 = arith.constant 4 : index
    %c0_143 = arith.constant 0 : index
    %117 = vector.load %arg11[%c2_141, %c4_142, %c0_143] : memref<20x20x4xf32, #tpu.memory_space<vmem>>, vector<16x16x4xf32>
    %118 = vector.shape_cast %117 : vector<16x16x4xf32> to vector<256x4xf32>
    %c0_144 = arith.constant 0 : index
    %c56 = arith.constant 56 : index
    %119 = vector.load %arg12[%c0_144, %c56] : memref<256x100xf32, #tpu.memory_space<vmem>>, vector<256x4xf32>
    tpu.vector_store %arg12[%c0_144, %c56], %118 {strides = array<i32>} : memref<256x100xf32, #tpu.memory_space<vmem>>, vector<256x4xf32>,
    %c3_145 = arith.constant 3 : index
    %c0_146 = arith.constant 0 : index
    %c0_147 = arith.constant 0 : index
    %120 = vector.load %arg11[%c3_145, %c0_146, %c0_147] : memref<20x20x4xf32, #tpu.memory_space<vmem>>, vector<16x16x4xf32>
    %121 = vector.shape_cast %120 : vector<16x16x4xf32> to vector<256x4xf32>
    %c0_148 = arith.constant 0 : index
    %c60 = arith.constant 60 : index
    %122 = vector.load %arg12[%c0_148, %c60] : memref<256x100xf32, #tpu.memory_space<vmem>>, vector<256x4xf32>
    tpu.vector_store %arg12[%c0_148, %c60], %121 {strides = array<i32>} : memref<256x100xf32, #tpu.memory_space<vmem>>, vector<256x4xf32>,
    %c3_149 = arith.constant 3 : index
    %c1_150 = arith.constant 1 : index
    %c0_151 = arith.constant 0 : index
    %123 = vector.load %arg11[%c3_149, %c1_150, %c0_151] : memref<20x20x4xf32, #tpu.memory_space<vmem>>, vector<16x16x4xf32>
    %124 = vector.shape_cast %123 : vector<16x16x4xf32> to vector<256x4xf32>
    %c0_152 = arith.constant 0 : index
    %c64 = arith.constant 64 : index
    %125 = vector.load %arg12[%c0_152, %c64] : memref<256x100xf32, #tpu.memory_space<vmem>>, vector<256x4xf32>
    tpu.vector_store %arg12[%c0_152, %c64], %124 {strides = array<i32>} : memref<256x100xf32, #tpu.memory_space<vmem>>, vector<256x4xf32>,
    %c3_153 = arith.constant 3 : index
    %c2_154 = arith.constant 2 : index
    %c0_155 = arith.constant 0 : index
    %126 = vector.load %arg11[%c3_153, %c2_154, %c0_155] : memref<20x20x4xf32, #tpu.memory_space<vmem>>, vector<16x16x4xf32>
    %127 = vector.shape_cast %126 : vector<16x16x4xf32> to vector<256x4xf32>
    %c0_156 = arith.constant 0 : index
    %c68 = arith.constant 68 : index
    %128 = vector.load %arg12[%c0_156, %c68] : memref<256x100xf32, #tpu.memory_space<vmem>>, vector<256x4xf32>
    tpu.vector_store %arg12[%c0_156, %c68], %127 {strides = array<i32>} : memref<256x100xf32, #tpu.memory_space<vmem>>, vector<256x4xf32>,
    %c3_157 = arith.constant 3 : index
    %c3_158 = arith.constant 3 : index
    %c0_159 = arith.constant 0 : index
    %129 = vector.load %arg11[%c3_157, %c3_158, %c0_159] : memref<20x20x4xf32, #tpu.memory_space<vmem>>, vector<16x16x4xf32>
    %130 = vector.shape_cast %129 : vector<16x16x4xf32> to vector<256x4xf32>
    %c0_160 = arith.constant 0 : index
    %c72 = arith.constant 72 : index
    %131 = vector.load %arg12[%c0_160, %c72] : memref<256x100xf32, #tpu.memory_space<vmem>>, vector<256x4xf32>
    tpu.vector_store %arg12[%c0_160, %c72], %130 {strides = array<i32>} : memref<256x100xf32, #tpu.memory_space<vmem>>, vector<256x4xf32>,
    %c3_161 = arith.constant 3 : index
    %c4_162 = arith.constant 4 : index
    %c0_163 = arith.constant 0 : index
    %132 = vector.load %arg11[%c3_161, %c4_162, %c0_163] : memref<20x20x4xf32, #tpu.memory_space<vmem>>, vector<16x16x4xf32>
    %133 = vector.shape_cast %132 : vector<16x16x4xf32> to vector<256x4xf32>
    %c0_164 = arith.constant 0 : index
    %c76 = arith.constant 76 : index
    %134 = vector.load %arg12[%c0_164, %c76] : memref<256x100xf32, #tpu.memory_space<vmem>>, vector<256x4xf32>
    tpu.vector_store %arg12[%c0_164, %c76], %133 {strides = array<i32>} : memref<256x100xf32, #tpu.memory_space<vmem>>, vector<256x4xf32>,
    %c4_165 = arith.constant 4 : index
    %c0_166 = arith.constant 0 : index
    %c0_167 = arith.constant 0 : index
    %135 = vector.load %arg11[%c4_165, %c0_166, %c0_167] : memref<20x20x4xf32, #tpu.memory_space<vmem>>, vector<16x16x4xf32>
    %136 = vector.shape_cast %135 : vector<16x16x4xf32> to vector<256x4xf32>
    %c0_168 = arith.constant 0 : index
    %c80 = arith.constant 80 : index
    %137 = vector.load %arg12[%c0_168, %c80] : memref<256x100xf32, #tpu.memory_space<vmem>>, vector<256x4xf32>
    tpu.vector_store %arg12[%c0_168, %c80], %136 {strides = array<i32>} : memref<256x100xf32, #tpu.memory_space<vmem>>, vector<256x4xf32>,
    %c4_169 = arith.constant 4 : index
    %c1_170 = arith.constant 1 : index
    %c0_171 = arith.constant 0 : index
    %138 = vector.load %arg11[%c4_169, %c1_170, %c0_171] : memref<20x20x4xf32, #tpu.memory_space<vmem>>, vector<16x16x4xf32>
    %139 = vector.shape_cast %138 : vector<16x16x4xf32> to vector<256x4xf32>
    %c0_172 = arith.constant 0 : index
    %c84 = arith.constant 84 : index
    %140 = vector.load %arg12[%c0_172, %c84] : memref<256x100xf32, #tpu.memory_space<vmem>>, vector<256x4xf32>
    tpu.vector_store %arg12[%c0_172, %c84], %139 {strides = array<i32>} : memref<256x100xf32, #tpu.memory_space<vmem>>, vector<256x4xf32>,
    %c4_173 = arith.constant 4 : index
    %c2_174 = arith.constant 2 : index
    %c0_175 = arith.constant 0 : index
    %141 = vector.load %arg11[%c4_173, %c2_174, %c0_175] : memref<20x20x4xf32, #tpu.memory_space<vmem>>, vector<16x16x4xf32>
    %142 = vector.shape_cast %141 : vector<16x16x4xf32> to vector<256x4xf32>
    %c0_176 = arith.constant 0 : index
    %c88 = arith.constant 88 : index
    %143 = vector.load %arg12[%c0_176, %c88] : memref<256x100xf32, #tpu.memory_space<vmem>>, vector<256x4xf32>
    tpu.vector_store %arg12[%c0_176, %c88], %142 {strides = array<i32>} : memref<256x100xf32, #tpu.memory_space<vmem>>, vector<256x4xf32>,
    %c4_177 = arith.constant 4 : index
    %c3_178 = arith.constant 3 : index
    %c0_179 = arith.constant 0 : index
    %144 = vector.load %arg11[%c4_177, %c3_178, %c0_179] : memref<20x20x4xf32, #tpu.memory_space<vmem>>, vector<16x16x4xf32>
    %145 = vector.shape_cast %144 : vector<16x16x4xf32> to vector<256x4xf32>
    %c0_180 = arith.constant 0 : index
    %c92 = arith.constant 92 : index
    %146 = vector.load %arg12[%c0_180, %c92] : memref<256x100xf32, #tpu.memory_space<vmem>>, vector<256x4xf32>
    tpu.vector_store %arg12[%c0_180, %c92], %145 {strides = array<i32>} : memref<256x100xf32, #tpu.memory_space<vmem>>, vector<256x4xf32>,
    %c4_181 = arith.constant 4 : index
    %c4_182 = arith.constant 4 : index
    %c0_183 = arith.constant 0 : index
    %147 = vector.load %arg11[%c4_181, %c4_182, %c0_183] : memref<20x20x4xf32, #tpu.memory_space<vmem>>, vector<16x16x4xf32>
    %148 = vector.shape_cast %147 : vector<16x16x4xf32> to vector<256x4xf32>
    %c0_184 = arith.constant 0 : index
    %c96 = arith.constant 96 : index
    %149 = vector.load %arg12[%c0_184, %c96] : memref<256x100xf32, #tpu.memory_space<vmem>>, vector<256x4xf32>
    tpu.vector_store %arg12[%c0_184, %c96], %148 {strides = array<i32>} : memref<256x100xf32, #tpu.memory_space<vmem>>, vector<256x4xf32>,
    %c0_185 = arith.constant 0 : index
    %c0_186 = arith.constant 0 : index
    %150 = vector.load %arg12[%c0_185, %c0_186] : memref<256x100xf32, #tpu.memory_space<vmem>>, vector<256x100xf32>
    %c0_187 = arith.constant 0 : index
    %c0_188 = arith.constant 0 : index
    %151 = vector.load %arg6[%c0_187, %c0_188] : memref<100x2xf32, #tpu.memory_space<vmem>>, vector<100x2xf32>
    %cst_189 = arith.constant dense<0.000000e+00> : vector<256x2xf32>
    %152 = tpu.matmul %150, %151, %cst_189 {dimension_numbers = #tpu.dot_dimension_numbers<[1], [0], [0], [1], [0, 0, 1, 1], [], []>} : vector<256x100xf32>, vector<100x2xf32>, vector<256x2xf32> -> vector<256x2xf32>
    %c0_190 = arith.constant 0 : index
    %c0_191 = arith.constant 0 : index
    %153 = vector.load %arg7[%c0_190, %c0_191] : memref<2x2xf32, #tpu.memory_space<vmem>>, vector<1x2xf32>
    %154 = vector.shape_cast %153 : vector<1x2xf32> to vector<2xf32>
    %155 = vector.shape_cast %154 : vector<2xf32> to vector<1x2xf32>
    %156 = vector.broadcast %155 : vector<1x2xf32> to vector<256x2xf32>
    %157 = arith.mulf %152, %156 : vector<256x2xf32>
    %c1_192 = arith.constant 1 : index
    %c0_193 = arith.constant 0 : index
    %158 = vector.load %arg7[%c1_192, %c0_193] : memref<2x2xf32, #tpu.memory_space<vmem>>, vector<1x2xf32>
    %159 = vector.shape_cast %158 : vector<1x2xf32> to vector<2xf32>
    %160 = vector.shape_cast %159 : vector<2xf32> to vector<1x2xf32>
    %161 = vector.broadcast %160 : vector<1x2xf32> to vector<256x2xf32>
    %162 = arith.addf %157, %161 : vector<256x2xf32>
    %cst_194 = arith.constant 0.000000e+00 : f32
    %163 = vector.broadcast %cst_194 : f32 to vector<256x2xf32>
    %164 = arith.maximumf %162, %163 : vector<256x2xf32>
    %165 = vector.shape_cast %164 : vector<256x2xf32> to vector<16x16x2xf32>
    %c0_195 = arith.constant 0 : index
    %c0_196 = arith.constant 0 : index
    %c0_197 = arith.constant 0 : index
    %c12_198 = arith.constant 12 : index
    %166 = vector.load %arg10[%c0_195, %c0_196, %c0_197, %c12_198] : memref<1x16x16x16xf32, #tpu.memory_space<vmem>>, vector<1x16x16x2xf32>
    %167 = vector.shape_cast %166 : vector<1x16x16x2xf32> to vector<16x16x2xf32>
    %168 = vector.shape_cast %165 : vector<16x16x2xf32> to vector<1x16x16x2xf32>
    tpu.vector_store %arg10[%c0_195, %c0_196, %c0_197, %c12_198], %168 {strides = array<i32>} : memref<1x16x16x16xf32, #tpu.memory_space<vmem>>, vector<1x16x16x2xf32>,
    %cst_199 = arith.constant 0xFF800000 : f32
    %169 = vector.broadcast %cst_199 : f32 to vector<20x20x4xf32>
    %c0_200 = arith.constant 0 : index
    %c0_201 = arith.constant 0 : index
    %c0_202 = arith.constant 0 : index
    %170 = vector.load %arg11[%c0_200, %c0_201, %c0_202] : memref<20x20x4xf32, #tpu.memory_space<vmem>>, vector<20x20x4xf32>
    tpu.vector_store %arg11[%c0_200, %c0_201, %c0_202], %169 {strides = array<i32>} : memref<20x20x4xf32, #tpu.memory_space<vmem>>, vector<20x20x4xf32>,
    %c1_203 = arith.constant 1 : index
    %c1_204 = arith.constant 1 : index
    %c0_205 = arith.constant 0 : index
    %171 = vector.load %arg11[%c1_203, %c1_204, %c0_205] : memref<20x20x4xf32, #tpu.memory_space<vmem>>, vector<16x16x4xf32>
    tpu.vector_store %arg11[%c1_203, %c1_204, %c0_205], %1 {strides = array<i32>} : memref<20x20x4xf32, #tpu.memory_space<vmem>>, vector<16x16x4xf32>,
    %c0_206 = arith.constant 0 : index
    %c0_207 = arith.constant 0 : index
    %c0_208 = arith.constant 0 : index
    %172 = vector.load %arg11[%c0_206, %c0_207, %c0_208] : memref<20x20x4xf32, #tpu.memory_space<vmem>>, vector<16x16x4xf32>
    %c0_209 = arith.constant 0 : index
    %c1_210 = arith.constant 1 : index
    %c0_211 = arith.constant 0 : index
    %173 = vector.load %arg11[%c0_209, %c1_210, %c0_211] : memref<20x20x4xf32, #tpu.memory_space<vmem>>, vector<16x16x4xf32>
    %174 = arith.maximumf %172, %173 : vector<16x16x4xf32>
    %c0_212 = arith.constant 0 : index
    %c2_213 = arith.constant 2 : index
    %c0_214 = arith.constant 0 : index
    %175 = vector.load %arg11[%c0_212, %c2_213, %c0_214] : memref<20x20x4xf32, #tpu.memory_space<vmem>>, vector<16x16x4xf32>
    %176 = arith.maximumf %174, %175 : vector<16x16x4xf32>
    %c1_215 = arith.constant 1 : index
    %c0_216 = arith.constant 0 : index
    %c0_217 = arith.constant 0 : index
    %177 = vector.load %arg11[%c1_215, %c0_216, %c0_217] : memref<20x20x4xf32, #tpu.memory_space<vmem>>, vector<16x16x4xf32>
    %178 = arith.maximumf %176, %177 : vector<16x16x4xf32>
    %c1_218 = arith.constant 1 : index
    %c1_219 = arith.constant 1 : index
    %c0_220 = arith.constant 0 : index
    %179 = vector.load %arg11[%c1_218, %c1_219, %c0_220] : memref<20x20x4xf32, #tpu.memory_space<vmem>>, vector<16x16x4xf32>
    %180 = arith.maximumf %178, %179 : vector<16x16x4xf32>
    %c1_221 = arith.constant 1 : index
    %c2_222 = arith.constant 2 : index
    %c0_223 = arith.constant 0 : index
    %181 = vector.load %arg11[%c1_221, %c2_222, %c0_223] : memref<20x20x4xf32, #tpu.memory_space<vmem>>, vector<16x16x4xf32>
    %182 = arith.maximumf %180, %181 : vector<16x16x4xf32>
    %c2_224 = arith.constant 2 : index
    %c0_225 = arith.constant 0 : index
    %c0_226 = arith.constant 0 : index
    %183 = vector.load %arg11[%c2_224, %c0_225, %c0_226] : memref<20x20x4xf32, #tpu.memory_space<vmem>>, vector<16x16x4xf32>
    %184 = arith.maximumf %182, %183 : vector<16x16x4xf32>
    %c2_227 = arith.constant 2 : index
    %c1_228 = arith.constant 1 : index
    %c0_229 = arith.constant 0 : index
    %185 = vector.load %arg11[%c2_227, %c1_228, %c0_229] : memref<20x20x4xf32, #tpu.memory_space<vmem>>, vector<16x16x4xf32>
    %186 = arith.maximumf %184, %185 : vector<16x16x4xf32>
    %c2_230 = arith.constant 2 : index
    %c2_231 = arith.constant 2 : index
    %c0_232 = arith.constant 0 : index
    %187 = vector.load %arg11[%c2_230, %c2_231, %c0_232] : memref<20x20x4xf32, #tpu.memory_space<vmem>>, vector<16x16x4xf32>
    %188 = arith.maximumf %186, %187 : vector<16x16x4xf32>
    %189 = vector.shape_cast %188 : vector<16x16x4xf32> to vector<256x4xf32>
    %c0_233 = arith.constant 0 : index
    %c0_234 = arith.constant 0 : index
    %190 = vector.load %arg8[%c0_233, %c0_234] : memref<4x2xf32, #tpu.memory_space<vmem>>, vector<4x2xf32>
    %cst_235 = arith.constant dense<0.000000e+00> : vector<256x2xf32>
    %191 = tpu.matmul %189, %190, %cst_235 {dimension_numbers = #tpu.dot_dimension_numbers<[1], [0], [0], [1], [0, 0, 1, 1], [], []>} : vector<256x4xf32>, vector<4x2xf32>, vector<256x2xf32> -> vector<256x2xf32>
    %c0_236 = arith.constant 0 : index
    %c0_237 = arith.constant 0 : index
    %192 = vector.load %arg9[%c0_236, %c0_237] : memref<2x2xf32, #tpu.memory_space<vmem>>, vector<1x2xf32>
    %193 = vector.shape_cast %192 : vector<1x2xf32> to vector<2xf32>
    %194 = vector.shape_cast %193 : vector<2xf32> to vector<1x2xf32>
    %195 = vector.broadcast %194 : vector<1x2xf32> to vector<256x2xf32>
    %196 = arith.mulf %191, %195 : vector<256x2xf32>
    %c1_238 = arith.constant 1 : index
    %c0_239 = arith.constant 0 : index
    %197 = vector.load %arg9[%c1_238, %c0_239] : memref<2x2xf32, #tpu.memory_space<vmem>>, vector<1x2xf32>
    %198 = vector.shape_cast %197 : vector<1x2xf32> to vector<2xf32>
    %199 = vector.shape_cast %198 : vector<2xf32> to vector<1x2xf32>
    %200 = vector.broadcast %199 : vector<1x2xf32> to vector<256x2xf32>
    %201 = arith.addf %196, %200 : vector<256x2xf32>
    %202 = vector.shape_cast %201 : vector<256x2xf32> to vector<16x16x2xf32>
    %c0_240 = arith.constant 0 : index
    %c0_241 = arith.constant 0 : index
    %c0_242 = arith.constant 0 : index
    %c14 = arith.constant 14 : index
    %203 = vector.load %arg10[%c0_240, %c0_241, %c0_242, %c14] : memref<1x16x16x16xf32, #tpu.memory_space<vmem>>, vector<1x16x16x2xf32>
    %204 = vector.shape_cast %203 : vector<1x16x16x2xf32> to vector<16x16x2xf32>
    %205 = vector.shape_cast %202 : vector<16x16x2xf32> to vector<1x16x16x2xf32>
    tpu.vector_store %arg10[%c0_240, %c0_241, %c0_242, %c14], %205 {strides = array<i32>} : memref<1x16x16x16xf32, #tpu.memory_space<vmem>>, vector<1x16x16x2xf32>,
    return
  }
  func.func @transform_0(%arg0: i32) -> (i32, i32, i32, i32) {
    %c0_i32 = arith.constant 0 : i32
    %c0_i32_0 = arith.constant 0 : i32
    %c0_i32_1 = arith.constant 0 : i32
    %c0_i32_2 = arith.constant 0 : i32
    return %arg0, %c0_i32, %c0_i32_0, %c0_i32_1 : i32, i32, i32, i32
  }
  func.func @transform_1(%arg0: i32) -> (i32, i32) {
    %c0_i32 = arith.constant 0 : i32
    %c0_i32_0 = arith.constant 0 : i32
    %c0_i32_1 = arith.constant 0 : i32
    return %c0_i32, %c0_i32_0 : i32, i32
  }
  func.func @transform_2(%arg0: i32) -> (i32, i32) {
    %c0_i32 = arith.constant 0 : i32
    %c0_i32_0 = arith.constant 0 : i32
    %c0_i32_1 = arith.constant 0 : i32
    return %c0_i32, %c0_i32_0 : i32, i32
  }
  func.func @transform_3(%arg0: i32) -> (i32, i32) {
    %c0_i32 = arith.constant 0 : i32
    %c0_i32_0 = arith.constant 0 : i32
    %c0_i32_1 = arith.constant 0 : i32
    return %c0_i32, %c0_i32_0 : i32, i32
  }
  func.func @transform_4(%arg0: i32) -> (i32, i32) {
    %c0_i32 = arith.constant 0 : i32
    %c0_i32_0 = arith.constant 0 : i32
    %c0_i32_1 = arith.constant 0 : i32
    return %c0_i32, %c0_i32_0 : i32, i32
  }
  func.func @transform_5(%arg0: i32) -> (i32, i32) {
    %c0_i32 = arith.constant 0 : i32
    %c0_i32_0 = arith.constant 0 : i32
    %c0_i32_1 = arith.constant 0 : i32
    return %c0_i32, %c0_i32_0 : i32, i32
  }
  func.func @transform_6(%arg0: i32) -> (i32, i32) {
    %c0_i32 = arith.constant 0 : i32
    %c0_i32_0 = arith.constant 0 : i32
    %c0_i32_1 = arith.constant 0 : i32
    return %c0_i32, %c0_i32_0 : i32, i32
  }
  func.func @transform_7(%arg0: i32) -> (i32, i32) {
    %c0_i32 = arith.constant 0 : i32
    %c0_i32_0 = arith.constant 0 : i32
    %c0_i32_1 = arith.constant 0 : i32
    return %c0_i32, %c0_i32_0 : i32, i32
  }
  func.func @transform_8(%arg0: i32) -> (i32, i32) {
    %c0_i32 = arith.constant 0 : i32
    %c0_i32_0 = arith.constant 0 : i32
    %c0_i32_1 = arith.constant 0 : i32
    return %c0_i32, %c0_i32_0 : i32, i32
  }
  func.func @transform_9(%arg0: i32) -> (i32, i32, i32, i32) {
    %c0_i32 = arith.constant 0 : i32
    %c0_i32_0 = arith.constant 0 : i32
    %c0_i32_1 = arith.constant 0 : i32
    %c0_i32_2 = arith.constant 0 : i32
    return %arg0, %c0_i32, %c0_i32_0, %c0_i32_1 : i32, i32, i32, i32
  }
}

</mosaic_0001>

<bundles_post_ra>
// kernel: _lambda_.1
= control target key start
LH: loop header
LB: loop body
LE: loop exit
PB: predicated region body
PF: predicated region fallthrough
CT: control target
= control target key end

     0   :  { %s10519_s30 = smov 0   ;;  %s15540_s0 = inlined_call_operand.vmem [shape: f32[2,16,16,4], index: 0, kind: input, shape index: {}]   ;;  %s15541_s1 = inlined_call_operand.vmem [shape: f32[4,4], index: 1, kind: input, shape index: {}]   ;;  %s15542_s2 = inlined_call_operand.vmem [shape: f32[2,4], index: 2, kind: input, shape index: {}]   ;;  %s15543_s3 = inlined_call_operand.vmem [shape: f32[36,8], index: 3, kind: input, shape index: {}]   ;;  %s15544_s4 = inlined_call_operand.vmem [shape: f32[2,8], index: 4, kind: input, shape index: {}]   ;;  %s15545_s5 = inlined_call_operand.vmem [shape: f32[100,2], index: 5, kind: input, shape index: {}]   ;;  %s15546_s6 = inlined_call_operand.vmem [shape: f32[2,2], index: 6, kind: input, shape index: {}]   ;;  %s15547_s7 = inlined_call_operand.vmem [shape: f32[4,2], index: 7, kind: input, shape index: {}]   ;;  %s15548_s8 = inlined_call_operand.vmem [shape: f32[2,2], index: 8, kind: input, shape index: {}]   ;;  %s15549_s9 = inlined_call_operand.vmem [shape: f32[2,16,16,16], index: 9, kind: output, shape index: {}]  }
   0x1 LB: > { %s9832_s10 = sadd.s32 4294967295, %s10440_s30   ;;  %p9836_p0 = scmp.ge.s32.totalorder %s10440_s30, 1  ;;  %s10440_s30 = sphi %s10519_s30, %s19_s30  }
   0x2   : > { %p287_p1 = scmp.lt.s32.totalorder %s10440_s30, 3 }
   0x4   : > { %p288_p2 = pnand %p9836_p0, %p287_p1 }
   0x6   : > { %291 = sbr.rel (%p288_p2) target bundleno = 2966 (0xb96), region = 56 }
   0xd   : > { %vm366_vm0 = vcmask 31744   ;;  %p10529_p3 = scmp.lt.s32.totalorder %s9832_s10, 1  ;;  %vm832_vm1 = vcmask 27648   ;;  %v15550_v0 = vmov 0.0   ;;  %s10443_s16 = smov 4   ;;  %vm1148_vm2 = vcmask 64544  }
   0xe   : > { %830 = vst.msk [vmem:[#allocation2] sm:$0xff] %vm366_vm0, %v15550_v0  ;;  %831 = vst.msk [vmem:[#allocation2 + $0x8] sm:$0xff] %vm366_vm0, %v15550_v0  ;;  %s10444_s17 = smov 8   ;;  %s10445_s18 = smov 12   ;;  %vm1341_vm3 = vcmask 97344   ;;  %vm1534_vm4 = vcmask 130144  }
   0xf   : > { %834 = vst.msk [vmem:[#allocation2 + $0x18] sm:$0xff] %vm366_vm0, %v15550_v0  ;;  %835 = vst.msk [vmem:[#allocation2 + $0x20] sm:$0xff] %vm366_vm0, %v15550_v0  ;;  %s15898_s10 = smov (!%p10529_p3, %s9832_s10), 1  ;;  %s10446_s19 = smov 16   ;;  %vm1727_vm5 = vcmask 162944   ;;  %vm1920_vm6 = vcmask 195744  }
  0x10   : > { %837 = vst.msk [vmem:[#allocation2 + $0x30] sm:$0xff] %vm366_vm0, %v15550_v0  ;;  %838 = vst.msk [vmem:[#allocation2 + $0x38] sm:$0xff] %vm366_vm0, %v15550_v0  ;;  %s9983_s12 = sshll.u32 %s15898_s10, 8  ;;  %s10447_s20 = smov 20   ;;  %vm2114_vm7 = vcmask 228544   ;;  %vm463_vm8 = vcmask 1043456  }
  0x11   : > { %840 = vst.msk [vmem:[#allocation2 + $0x48] sm:$0xff] %vm366_vm0, %v15550_v0  ;;  %841 = vst.msk [vmem:[#allocation2 + $0x50] sm:$0xff] %vm366_vm0, %v15550_v0  ;;  %s10677_s15 = scalar_lea.vmem %s15540_s0, %s9983_s12  ;;  %s10448_s21 = smov 24   ;;  %vm2307_vm9 = vcmask 261344   ;;  %vm2500_vm10 = vcmask 294144   ;;  %vm2570_vm11 = vcmask 293888  }
  0x12   : > { %843 = vst.msk [vmem:[#allocation2 + $0x60] sm:$0xff] %vm366_vm0, %v15550_v0  ;;  %844 = vst.msk [vmem:[#allocation2 + $0x68] sm:$0xff] %vm366_vm0, %v15550_v0  ;;  %v10680_v1 = vld [vmem:[%s10677_s15] sm:$0xff]  ;;  %v10683_v2 = vld [vmem:[%s10677_s15 + $0x8] sm:$0xff]  ;;  %s10449_s22 = smov 28   ;;  %s12289_s13 = scalar_lea.vmem %s15549_s9, %s9983_s12  ;;  %vm3129_vm12 = vcmask 97312  }
  0x13   : > { %846 = vst.msk [vmem:[#allocation2 + $0x78] sm:$0xff] %vm366_vm0, %v15550_v0  ;;  %847 = vst.msk [vmem:[#allocation2 + $0x80] sm:$0xff] %vm366_vm0, %v15550_v0  ;;  %v10686_v3 = vld [vmem:[%s10677_s15 + $0x10] sm:$0xff]  ;;  %v10695_v4 = vld [vmem:[%s10677_s15 + $0x18] sm:$0xff]  ;;  %10135 = vmatprep.mubr.msk.f32.mxu0 %vm366_vm0, %v10680_v1  ;;  %vm5014_vm13 = vcmask 326944   ;;  %vm5207_vm14 = vcmask 359744  }
  0x14   : > { %849 = vst.msk [vmem:[#allocation2 + $0x90] sm:$0xff] %vm366_vm0, %v15550_v0  ;;  %850 = vst.msk [vmem:[#allocation2 + $0x98] sm:$0xff] %vm366_vm0, %v15550_v0  ;;  %v10698_v5 = vld [vmem:[%s10677_s15 + $0x20] sm:$0xff]  ;;  %v10701_v6 = vld [vmem:[%s10677_s15 + $0x28] sm:$0xff]  ;;  %vm5400_vm15 = vcmask 392544   ;;  %s10459_s24 = smov 64  }
  0x15   : > { %852 = vst.msk [vmem:[#allocation2 + $0xa8] sm:$0xff] %vm366_vm0, %v15550_v0  ;;  %853 = vst.msk [vmem:[#allocation2 + $0xb0] sm:$0xff] %vm366_vm0, %v15550_v0  ;;  %v988_v7 = vld [vmem:[#allocation2 + $0x1] sm:$0xff]  ;;  %v10712_v9 = vld [vmem:[%s10677_s15 + $0x30] sm:$0xff]  ;;  %s10460_s25 = smov 68   ;;  %s10461_s26 = smov 72  }
  0x16   : > { %855 = vst.msk [vmem:[#allocation2 + $0xc0] sm:$0xff] %vm366_vm0, %v15550_v0  ;;  %856 = vst.msk [vmem:[#allocation2 + $0xc8] sm:$0xff] %vm366_vm0, %v15550_v0  ;;  %1052 = vrot.lane.b32.xlu0 %v988_v7, %s10443_s16  ;;  %v10718_v10 = vld [vmem:[%s10677_s15 + $0x38] sm:$0xff]  ;;  %v10721_v11 = vld [vmem:[%s10677_s15 + $0x40] sm:$0xff]  ;;  %s10462_s27 = smov 76   ;;  %s10463_s28 = smov 80  }
  0x17   : > { %858 = vst.msk [vmem:[#allocation2 + $0xd8] sm:$0xff] %vm366_vm0, %v15550_v0  ;;  %859 = vst.msk [vmem:[#allocation2 + $0xe0] sm:$0xff] %vm366_vm0, %v15550_v0  ;;  %v10724_v12 = vld [vmem:[%s10677_s15 + $0x48] sm:$0xff]  ;;  %v10733_v13 = vld [vmem:[%s10677_s15 + $0x50] sm:$0xff]  ;;  %s10464_s12 = smov 84   ;;  %s10468_s23 = smov 14  }
  0x18   : > { %861 = vst.msk [vmem:[#allocation2 + $0xf0] sm:$0xff] %vm366_vm0, %v15550_v0  ;;  %862 = vst.msk [vmem:[#allocation2 + $0xf8] sm:$0xff] %vm366_vm0, %v15550_v0  ;;  %v10736_v14 = vld [vmem:[%s10677_s15 + $0x58] sm:$0xff]  ;;  %v10739_v15 = vld [vmem:[%s10677_s15 + $0x60] sm:$0xff] }
  0x19   : > { %864 = vst.msk [vmem:[#allocation2 + $0x108] sm:$0xff] %vm366_vm0, %v15550_v0  ;;  %865 = vst.msk [vmem:[#allocation2 + $0x110] sm:$0xff] %vm366_vm0, %v15550_v0  ;;  %v10748_v16 = vld [vmem:[%s10677_s15 + $0x68] sm:$0xff]  ;;  %v10751_v17 = vld [vmem:[%s10677_s15 + $0x70] sm:$0xff] }
  0x1a   : > { %867 = vst.msk [vmem:[#allocation2 + $0x120] sm:$0xff] %vm366_vm0, %v15550_v0  ;;  %868 = vst.msk [vmem:[#allocation2 + $0x128] sm:$0xff] %vm366_vm0, %v15550_v0  ;;  %v10754_v18 = vld [vmem:[%s10677_s15 + $0x78] sm:$0xff]  ;;  %v10763_v19 = vld [vmem:[%s10677_s15 + $0x80] sm:$0xff] }
  0x1b   : > { %870 = vst.msk [vmem:[#allocation2 + $0x138] sm:$0xff] %vm366_vm0, %v15550_v0  ;;  %871 = vst.msk [vmem:[#allocation2 + $0x140] sm:$0xff] %vm366_vm0, %v15550_v0  ;;  %v10766_v20 = vld [vmem:[%s10677_s15 + $0x88] sm:$0xff]  ;;  %v10769_v21 = vld [vmem:[%s10677_s15 + $0x90] sm:$0xff] }
  0x1c   : > { %873 = vst.msk [vmem:[#allocation2 + $0x150] sm:$0xff] %vm366_vm0, %v15550_v0  ;;  %874 = vst.msk [vmem:[#allocation2 + $0x158] sm:$0xff] %vm366_vm0, %v15550_v0  ;;  %v10779_v22 = vld [vmem:[%s10677_s15 + $0x98] sm:$0xff]  ;;  %v10782_v23 = vld [vmem:[%s10677_s15 + $0xa0] sm:$0xff] }
  0x1d   : > { %876 = vst.msk [vmem:[#allocation2 + $0x168] sm:$0xff] %vm366_vm0, %v15550_v0  ;;  %877 = vst.msk [vmem:[#allocation2 + $0x170] sm:$0xff] %vm366_vm0, %v15550_v0  ;;  %v10785_v24 = vld [vmem:[%s10677_s15 + $0xa8] sm:$0xff]  ;;  %v10802_v28 = vld [vmem:[%s10677_s15 + $0xb0] sm:$0xff] }
  0x1e   : > { %879 = vst.msk [vmem:[#allocation2 + $0x180] sm:$0xff] %vm366_vm0, %v15550_v0  ;;  %880 = vst.msk [vmem:[#allocation2 + $0x188] sm:$0xff] %vm366_vm0, %v15550_v0  ;;  %v10805_v29 = vld [vmem:[%s10677_s15 + $0xb8] sm:$0xff]  ;;  %v10824_v33 = vld [vmem:[%s10677_s15 + $0xc0] sm:$0xff] }
  0x1f   : > { %882 = vst.msk [vmem:[#allocation2 + $0x198] sm:$0xff] %vm366_vm0, %v15550_v0  ;;  %883 = vst.msk [vmem:[#allocation2 + $0x1a0] sm:$0xff] %vm366_vm0, %v15550_v0  ;;  %v10827_v34 = vld [vmem:[%s10677_s15 + $0xc8] sm:$0xff]  ;;  %v10830_v35 = vld [vmem:[%s10677_s15 + $0xd0] sm:$0xff] }
  0x20   : > { %885 = vst.msk [vmem:[#allocation2 + $0x1b0] sm:$0xff] %vm366_vm0, %v15550_v0  ;;  %886 = vst.msk [vmem:[#allocation2 + $0x1b8] sm:$0xff] %vm366_vm0, %v15550_v0  ;;  %v10841_v36 = vld [vmem:[%s10677_s15 + $0xd8] sm:$0xff]  ;;  %v10844_v37 = vld [vmem:[%s10677_s15 + $0xe0] sm:$0xff] }
  0x21   : > { %888 = vst.msk [vmem:[#allocation2 + $0x1c8] sm:$0xff] %vm366_vm0, %v15550_v0  ;;  %889 = vst.msk [vmem:[#allocation2 + $0x1d0] sm:$0xff] %vm366_vm0, %v15550_v0  ;;  %v10847_v38 = vld [vmem:[%s10677_s15 + $0xe8] sm:$0xff]  ;;  %v924_v49 = vld [vmem:[#allocation2] sm:$0xff] }
  0x22   : > { %833 = vst.msk [vmem:[#allocation2 + $0x10] sm:$0xf] %vm832_vm1, %v15550_v0  ;;  %836 = vst.msk [vmem:[#allocation2 + $0x28] sm:$0xf] %vm832_vm1, %v15550_v0  ;;  %v10885_v47 = vld [vmem:[#allocation2 + $0x2] sm:$0xff] }
  0x23   : > { %839 = vst.msk [vmem:[#allocation2 + $0x40] sm:$0xf] %vm832_vm1, %v15550_v0  ;;  %842 = vst.msk [vmem:[#allocation2 + $0x58] sm:$0xf] %vm832_vm1, %v15550_v0  ;;  %v925_v52 = vld [vmem:[#allocation2 + $0x8] sm:$0xff] }
  0x24   : > { %845 = vst.msk [vmem:[#allocation2 + $0x70] sm:$0xf] %vm832_vm1, %v15550_v0  ;;  %848 = vst.msk [vmem:[#allocation2 + $0x88] sm:$0xf] %vm832_vm1, %v15550_v0 }
  0x25   : > { %851 = vst.msk [vmem:[#allocation2 + $0xa0] sm:$0xf] %vm832_vm1, %v15550_v0  ;;  %854 = vst.msk [vmem:[#allocation2 + $0xb8] sm:$0xf] %vm832_vm1, %v15550_v0 }
  0x26   : > { %857 = vst.msk [vmem:[#allocation2 + $0xd0] sm:$0xf] %vm832_vm1, %v15550_v0  ;;  %860 = vst.msk [vmem:[#allocation2 + $0xe8] sm:$0xf] %vm832_vm1, %v15550_v0 }
  0x27   : > { %863 = vst.msk [vmem:[#allocation2 + $0x100] sm:$0xf] %vm832_vm1, %v15550_v0  ;;  %866 = vst.msk [vmem:[#allocation2 + $0x118] sm:$0xf] %vm832_vm1, %v15550_v0 }
  0x28   : > { %869 = vst.msk [vmem:[#allocation2 + $0x130] sm:$0xf] %vm832_vm1, %v15550_v0  ;;  %872 = vst.msk [vmem:[#allocation2 + $0x148] sm:$0xf] %vm832_vm1, %v15550_v0 }
  0x29   : > { %875 = vst.msk [vmem:[#allocation2 + $0x160] sm:$0xf] %vm832_vm1, %v15550_v0  ;;  %878 = vst.msk [vmem:[#allocation2 + $0x178] sm:$0xf] %vm832_vm1, %v15550_v0  ;;  %v989_v8 = vld [vmem:[#allocation2 + $0x9] sm:$0xff] }
  0x2a   : > { %881 = vst.msk [vmem:[#allocation2 + $0x190] sm:$0xf] %vm832_vm1, %v15550_v0  ;;  %884 = vst.msk [vmem:[#allocation2 + $0x1a8] sm:$0xf] %vm832_vm1, %v15550_v0  ;;  %1054 = vrot.lane.b32.xlu0 %v989_v8, %s10443_s16  ;;  %v10859_v40 = vld [vmem:[#allocation2 + $0xa] sm:$0xff] }
  0x2b   : > { %887 = vst.msk [vmem:[#allocation2 + $0x1c0] sm:$0xf] %vm832_vm1, %v15550_v0  ;;  %890 = vst.msk [vmem:[#allocation2 + $0x1d8] sm:$0xf] %vm832_vm1, %v15550_v0 }
  0x2c   : > { %3216 = vst.msk [vmem:[#allocation2 + $0x1b0] sm:$0xff] %vm366_vm0, %v15550_v0  ;;  %3217 = vst.msk [vmem:[#allocation2 + $0x1b8] sm:$0xff] %vm366_vm0, %v15550_v0 }
  0x2d   : > { %3219 = vst.msk [vmem:[#allocation2 + $0x1c8] sm:$0xff] %vm366_vm0, %v15550_v0  ;;  %3220 = vst.msk [vmem:[#allocation2 + $0x1d0] sm:$0xff] %vm366_vm0, %v15550_v0 }
  0x2e   : > { %3218 = vst.msk [vmem:[#allocation2 + $0x1c0] sm:$0xf] %vm832_vm1, %v15550_v0  ;;  %3221 = vst.msk [vmem:[#allocation2 + $0x1d8] sm:$0xf] %vm832_vm1, %v15550_v0 }
  0x2f   : > { %15671 = vst [vmem:[#allocation4_spill] sm:$0xff] %v10680_v1  ;;  %15672 = vst [vmem:[#allocation5_spill] sm:$0xff] %v10683_v2 }
  0x30   : > { %15673 = vst [vmem:[#allocation6_spill] sm:$0xff] %v10686_v3  ;;  %892 = vst.msk [vmem:[#allocation2 + $0x19] sm:$0xff] %vm366_vm0, %v10680_v1 }
  0x31   : > { %893 = vst.msk [vmem:[#allocation2 + $0x21] sm:$0xff] %vm366_vm0, %v10683_v2  ;;  %894 = vst.msk [vmem:[#allocation2 + $0x31] sm:$0xff] %vm366_vm0, %v10686_v3  ;;  %v11082_v2 = vld [vmem:[%s10677_s15 + $0xf0] sm:$0xff] }
  0x32   : > { %15674 = vst [vmem:[#allocation7_spill] sm:$0xff] %v10695_v4  ;;  %15675 = vst [vmem:[#allocation8_spill] sm:$0xff] %v10698_v5 }
  0x33   : > { %15676 = vst [vmem:[#allocation9_spill] sm:$0xff] %v10701_v6  ;;  %895 = vst.msk [vmem:[#allocation2 + $0x39] sm:$0xff] %vm366_vm0, %v10695_v4 }
  0x34   : > { %896 = vst.msk [vmem:[#allocation2 + $0x49] sm:$0xff] %vm366_vm0, %v10698_v5  ;;  %897 = vst.msk [vmem:[#allocation2 + $0x51] sm:$0xff] %vm366_vm0, %v10701_v6 }
  0x35   : > { %15677 = vst [vmem:[#allocation10_spill] sm:$0xff] %v10712_v9  ;;  %898 = vst.msk [vmem:[#allocation2 + $0x61] sm:$0xff] %vm366_vm0, %v10712_v9 }
  0x36   : > { %15678 = vst [vmem:[#allocation11_spill] sm:$0xff] %v10718_v10  ;;  %15679 = vst [vmem:[#allocation12_spill] sm:$0xff] %v10721_v11 }
  0x37   : > { %15680 = vst [vmem:[#allocation13_spill] sm:$0xff] %v10724_v12  ;;  %899 = vst.msk [vmem:[#allocation2 + $0x69] sm:$0xff] %vm366_vm0, %v10718_v10  ;;  %v10787_v25 = vld [vmem:[#allocation2 + $0x19] sm:$0xff] }
  0x38   : > { %900 = vst.msk [vmem:[#allocation2 + $0x79] sm:$0xff] %vm366_vm0, %v10721_v11  ;;  %901 = vst.msk [vmem:[#allocation2 + $0x81] sm:$0xff] %vm366_vm0, %v10724_v12  ;;  %v10789_v26 = vld [vmem:[#allocation2 + $0x31] sm:$0xff]  ;;  %1056 = vrot.lane.b32.xlu1 %v10787_v25, %s10443_s16  ;;  %v10799_v27 = vld [vmem:[#allocation2 + $0x21] sm:$0xff] }
  0x39   : > { %15681 = vst [vmem:[#allocation14_spill] sm:$0xff] %v10733_v13  ;;  %15682 = vst [vmem:[#allocation15_spill] sm:$0xff] %v10736_v14  ;;  %1060 = vrot.lane.b32.xlu0 %v10789_v26, %s10443_s16  ;;  %v10861_v41 = vld [vmem:[#allocation2 + $0x22] sm:$0xff]  ;;  %v10889_v48 = vld [vmem:[#allocation2 + $0x1a] sm:$0xff] }
  0x3a   : > { %15683 = vst [vmem:[#allocation16_spill] sm:$0xff] %v10739_v15  ;;  %902 = vst.msk [vmem:[#allocation2 + $0x91] sm:$0xff] %vm366_vm0, %v10733_v13  ;;  %v10817_v31 = vld [vmem:[#allocation2 + $0x39] sm:$0xff]  ;;  %v10913_v55 = vld [vmem:[#allocation2 + $0x30] sm:$0xff] }
  0x3b   : > { %903 = vst.msk [vmem:[#allocation2 + $0x99] sm:$0xff] %vm366_vm0, %v10736_v14  ;;  %904 = vst.msk [vmem:[#allocation2 + $0xa9] sm:$0xff] %vm366_vm0, %v10739_v15  ;;  %v10813_v30 = vld [vmem:[#allocation2 + $0x49] sm:$0xff]  ;;  %v10849_v39 = vld [vmem:[#allocation2 + $0x51] sm:$0xff] }
  0x3c   : > { %15684 = vst [vmem:[#allocation17_spill] sm:$0xff] %v10748_v16  ;;  %15685 = vst [vmem:[#allocation18_spill] sm:$0xff] %v10751_v17  ;;  %1058 = vrot.lane.b32.xlu1 %v10799_v27, %s10443_s16  ;;  %v10821_v32 = vld [vmem:[#allocation2 + $0x61] sm:$0xff]  ;;  %v10891_v50 = vld [vmem:[#allocation2 + $0x18] sm:$0xff] }
  0x3d   : > { %15686 = vst [vmem:[#allocation19_spill] sm:$0xff] %v10754_v18  ;;  %905 = vst.msk [vmem:[#allocation2 + $0xb1] sm:$0xff] %vm366_vm0, %v10748_v16  ;;  %1064 = vrot.lane.b32.xlu0 %v10813_v30, %s10443_s16  ;;  %v10907_v53 = vld [vmem:[#allocation2 + $0x20] sm:$0xff]  ;;  %v10915_v56 = vld [vmem:[#allocation2 + $0x38] sm:$0xff] }
  0x3e   : > { %906 = vst.msk [vmem:[#allocation2 + $0xc1] sm:$0xff] %vm366_vm0, %v10751_v17  ;;  %907 = vst.msk [vmem:[#allocation2 + $0xc9] sm:$0xff] %vm366_vm0, %v10754_v18  ;;  %v10871_v43 = vld [vmem:[#allocation2 + $0x69] sm:$0xff]  ;;  %v10937_v61 = vld [vmem:[#allocation2 + $0x60] sm:$0xff] }
  0x3f   : > { %15687 = vst [vmem:[#allocation20_spill] sm:$0xff] %v10763_v19  ;;  %15688 = vst [vmem:[#allocation21_spill] sm:$0xff] %v10766_v20  ;;  %v10863_v42 = vld [vmem:[#allocation2 + $0x79] sm:$0xff]  ;;  %v10879_v45 = vld [vmem:[#allocation2 + $0x81] sm:$0xff] }
  0x40   : > { %15689 = vst [vmem:[#allocation22_spill] sm:$0xff] %v10769_v21  ;;  %908 = vst.msk [vmem:[#allocation2 + $0xd9] sm:$0xff] %vm366_vm0, %v10763_v19  ;;  %1062 = vrot.lane.b32.xlu1 %v10817_v31, %s10443_s16  ;;  %v10927_v58 = vld [vmem:[#allocation2 + $0x48] sm:$0xff]  ;;  %v10929_v59 = vld [vmem:[#allocation2 + $0x50] sm:$0xff] }
  0x41   : > { %909 = vst.msk [vmem:[#allocation2 + $0xe1] sm:$0xff] %vm366_vm0, %v10766_v20  ;;  %910 = vst.msk [vmem:[#allocation2 + $0xf1] sm:$0xff] %vm366_vm0, %v10769_v21  ;;  %1068 = vrot.lane.b32.xlu0 %v10821_v32, %s10443_s16  ;;  %v10875_v44 = vld [vmem:[#allocation2 + $0x91] sm:$0xff]  ;;  %v10939_v62 = vld [vmem:[#allocation2 + $0x68] sm:$0xff] }
  0x42   : > { %15690 = vst [vmem:[#allocation23_spill] sm:$0xff] %v10779_v22  ;;  %15691 = vst [vmem:[#allocation24_spill] sm:$0xff] %v10782_v23  ;;  %v10883_v46 = vld [vmem:[#allocation2 + $0xa9] sm:$0xff]  ;;  %v10893_v51 = vld [vmem:[#allocation2 + $0x99] sm:$0xff] }
  0x43   : > { %15692 = vst [vmem:[#allocation25_spill] sm:$0xff] %v10785_v24  ;;  %911 = vst.msk [vmem:[#allocation2 + $0xf9] sm:$0xff] %vm366_vm0, %v10779_v22  ;;  %v10941_v63 = vld [vmem:[#allocation2 + $0x78] sm:$0xff]  ;;  %v10951_v7 = vld [vmem:[#allocation2 + $0x80] sm:$0xff] }
  0x44   : > { %912 = vst.msk [vmem:[#allocation2 + $0x109] sm:$0xff] %vm366_vm0, %v10782_v23  ;;  %913 = vst.msk [vmem:[#allocation2 + $0x111] sm:$0xff] %vm366_vm0, %v10785_v24  ;;  %1066 = vrot.lane.b32.xlu1 %v10849_v39, %s10443_s16  ;;  %v10921_v57 = vld [vmem:[#allocation2 + $0xb1] sm:$0xff] }
  0x45   : > { %15693 = vst [vmem:[#allocation26_spill] sm:$0xff] %v10802_v28  ;;  %15694 = vst [vmem:[#allocation27_spill] sm:$0xff] %v10805_v29  ;;  %1072 = vrot.lane.b32.xlu0 %v10863_v42, %s10443_s16  ;;  %v10909_v54 = vld [vmem:[#allocation2 + $0xc1] sm:$0xff]  ;;  %v10953_v8 = vld [vmem:[#allocation2 + $0x90] sm:$0xff] }
  0x46   : > { %914 = vst.msk [vmem:[#allocation2 + $0x121] sm:$0xff] %vm366_vm0, %v10802_v28  ;;  %915 = vst.msk [vmem:[#allocation2 + $0x129] sm:$0xff] %vm366_vm0, %v10805_v29 }
  0x47   : > { %15695 = vst [vmem:[#allocation28_spill] sm:$0xff] %v10824_v33  ;;  %15696 = vst [vmem:[#allocation29_spill] sm:$0xff] %v10827_v34  ;;  %v10931_v60 = vld [vmem:[#allocation2 + $0xd9] sm:$0xff] }
  0x48   : > { %15697 = vst [vmem:[#allocation30_spill] sm:$0xff] %v10830_v35  ;;  %916 = vst.msk [vmem:[#allocation2 + $0x139] sm:$0xff] %vm366_vm0, %v10824_v33  ;;  %1070 = vrot.lane.b32.xlu1 %v10871_v43, %s10443_s16  ;;  %v10979_v33 = vld [vmem:[#allocation2 + $0xc8] sm:$0xff]  ;;  %v10983_v28 = vld [vmem:[#allocation2 + $0xe0] sm:$0xff] }
  0x49   : > { %917 = vst.msk [vmem:[#allocation2 + $0x141] sm:$0xff] %vm366_vm0, %v10827_v34  ;;  %918 = vst.msk [vmem:[#allocation2 + $0x151] sm:$0xff] %vm366_vm0, %v10830_v35  ;;  %1076 = vrot.lane.b32.xlu0 %v10875_v44, %s10443_s16  ;;  %v10967_v35 = vld [vmem:[#allocation2 + $0xb0] sm:$0xff]  ;;  %v10981_v34 = vld [vmem:[#allocation2 + $0xd8] sm:$0xff] }
  0x4a   : > { %15698 = vst [vmem:[#allocation31_spill] sm:$0xff] %v10841_v36  ;;  %15699 = vst [vmem:[#allocation32_spill] sm:$0xff] %v10844_v37  ;;  %v10991_v29 = vld [vmem:[#allocation2 + $0xf0] sm:$0xff]  ;;  %v10993_v23 = vld [vmem:[#allocation2 + $0xf8] sm:$0xff] }
  0x4b   : > { %15700 = vst [vmem:[#allocation33_spill] sm:$0xff] %v10847_v38  ;;  %919 = vst.msk [vmem:[#allocation2 + $0x159] sm:$0xff] %vm366_vm0, %v10841_v36  ;;  %v10969_v36 = vld [vmem:[#allocation2 + $0xc0] sm:$0xff]  ;;  %v10995_v24 = vld [vmem:[#allocation2 + $0x108] sm:$0xff] }
  0x4c   : > { %920 = vst.msk [vmem:[#allocation2 + $0x169] sm:$0xff] %vm366_vm0, %v10844_v37  ;;  %921 = vst.msk [vmem:[#allocation2 + $0x171] sm:$0xff] %vm366_vm0, %v10847_v38  ;;  %1074 = vrot.lane.b32.xlu1 %v10879_v45, %s10443_s16  ;;  %v11005_v21 = vld [vmem:[#allocation2 + $0x110] sm:$0xff]  ;;  %v11017_v17 = vld [vmem:[#allocation2 + $0xe1] sm:$0xff] }
  0x4d   : > { %15701 = vst [vmem:[#allocation34_spill] sm:$0xff] %v10861_v41  ;;  %3164 = vst.msk [vmem:[#allocation2 + $0x10] sm:$0xf] %vm832_vm1, %v15550_v0  ;;  %1080 = vrot.lane.b32.xlu0 %v10883_v46, %s10443_s16  ;;  %v11007_v22 = vld [vmem:[#allocation2 + $0xf1] sm:$0xff]  ;;  %v11013_v19 = vld [vmem:[#allocation2 + $0x120] sm:$0xff] }
  0x4e   : > { %3167 = vst.msk [vmem:[#allocation2 + $0x28] sm:$0xf] %vm832_vm1, %v15550_v0  ;;  %15702 = vst [vmem:[#allocation35_spill] sm:$0xff] %v10889_v48  ;;  %v11015_v20 = vld [vmem:[#allocation2 + $0x128] sm:$0xff]  ;;  %v11033_v13 = vld [vmem:[#allocation2 + $0xf9] sm:$0xff] }
  0x4f   : > { %956 = vst.msk [vmem:[#allocation3] sm:$0xff] %vm366_vm0, %v924_v49  ;;  %3162 = vst.msk [vmem:[#allocation2] sm:$0xff] %vm366_vm0, %v15550_v0  ;;  %v10955_v49 = vld [vmem:[#allocation2 + $0x98] sm:$0xff]  ;;  %v11025_v18 = vld [vmem:[#allocation2 + $0x109] sm:$0xff] }
  0x50   : > { %958 = vst.msk [vmem:[#allocation3 + $0x10] sm:$0xff] %vm366_vm0, %v10891_v50  ;;  %3165 = vst.msk [vmem:[#allocation2 + $0x18] sm:$0xff] %vm366_vm0, %v15550_v0  ;;  %1078 = vrot.lane.b32.xlu1 %v10893_v51, %s10443_s16  ;;  %v11029_v15 = vld [vmem:[#allocation2 + $0x138] sm:$0xff]  ;;  %v11031_v16 = vld [vmem:[#allocation2 + $0x140] sm:$0xff] }
  0x51   : > { %957 = vst.msk [vmem:[#allocation3 + $0x8] sm:$0xff] %vm366_vm0, %v925_v52  ;;  %3163 = vst.msk [vmem:[#allocation2 + $0x8] sm:$0xff] %vm366_vm0, %v15550_v0  ;;  %1084 = vrot.lane.b32.xlu0 %v10909_v54, %s10443_s16  ;;  %v10957_v52 = vld [vmem:[#allocation2 + $0xc9] sm:$0xff]  ;;  %v11041_v14 = vld [vmem:[#allocation2 + $0x121] sm:$0xff] }
  0x52   : > { %959 = vst.msk [vmem:[#allocation3 + $0x18] sm:$0xff] %vm366_vm0, %v10907_v53  ;;  %3166 = vst.msk [vmem:[#allocation2 + $0x20] sm:$0xff] %vm366_vm0, %v15550_v0  ;;  %v10965_v0 = vld [vmem:[#allocation2 + $0xa8] sm:$0xff]  ;;  %v11045_v11 = vld [vmem:[#allocation2 + $0x150] sm:$0xff] }
  0x53   : > { %960 = vst.msk [vmem:[#allocation3 + $0x20] sm:$0xff] %vm366_vm0, %v10913_v55  ;;  %961 = vst.msk [vmem:[#allocation3 + $0x28] sm:$0xff] %vm366_vm0, %v10915_v56  ;;  %v11047_v12 = vld [vmem:[#allocation2 + $0x158] sm:$0xff]  ;;  %v11061_v5 = vld [vmem:[#allocation2 + $0x168] sm:$0xff] }
  0x54   : > { %962 = vst.msk [vmem:[#allocation3 + $0x30] sm:$0xff] %vm366_vm0, %v10927_v58  ;;  %963 = vst.msk [vmem:[#allocation3 + $0x38] sm:$0xff] %vm366_vm0, %v10929_v59  ;;  %1082 = vrot.lane.b32.xlu1 %v10921_v57, %s10443_s16  ;;  %v11049_v9 = vld [vmem:[#allocation2 + $0x111] sm:$0xff]  ;;  %v11057_v10 = vld [vmem:[#allocation2 + $0x139] sm:$0xff] }
  0x55   : > { %964 = vst.msk [vmem:[#allocation3 + $0x40] sm:$0xff] %vm366_vm0, %v10937_v61  ;;  %965 = vst.msk [vmem:[#allocation3 + $0x48] sm:$0xff] %vm366_vm0, %v10939_v62  ;;  %1088 = vrot.lane.b32.xlu0 %v10931_v60, %s10443_s16  ;;  %v11063_v6 = vld [vmem:[#allocation2 + $0x170] sm:$0xff]  ;;  %v11077_v1 = vld [vmem:[#allocation2 + $0x141] sm:$0xff] }
  0x56   : > { %966 = vst.msk [vmem:[#allocation3 + $0x50] sm:$0xff] %vm366_vm0, %v10941_v63  ;;  %967 = vst.msk [vmem:[#allocation3 + $0x58] sm:$0xff] %vm366_vm0, %v10951_v7  ;;  %v11065_v3 = vld [vmem:[#allocation2 + $0x129] sm:$0xff]  ;;  %v11073_v4 = vld [vmem:[#allocation2 + $0x151] sm:$0xff] }
  0x57   : > { %968 = vst.msk [vmem:[#allocation3 + $0x60] sm:$0xff] %vm366_vm0, %v10953_v8  ;;  %969 = vst.msk [vmem:[#allocation3 + $0x68] sm:$0xff] %vm366_vm0, %v10955_v49 }
  0x58   : > { %970 = vst.msk [vmem:[#allocation3 + $0x70] sm:$0xff] %vm366_vm0, %v10965_v0  ;;  %971 = vst.msk [vmem:[#allocation3 + $0x78] sm:$0xff] %vm366_vm0, %v10967_v35  ;;  %1086 = vrot.lane.b32.xlu1 %v10957_v52, %s10443_s16 }
  0x59   : > { %972 = vst.msk [vmem:[#allocation3 + $0x80] sm:$0xff] %vm366_vm0, %v10969_v36  ;;  %973 = vst.msk [vmem:[#allocation3 + $0x88] sm:$0xff] %vm366_vm0, %v10979_v33  ;;  %1092 = vrot.lane.b32.xlu0 %v11007_v22, %s10443_s16 }
  0x5a   : > { %974 = vst.msk [vmem:[#allocation3 + $0x90] sm:$0xff] %vm366_vm0, %v10981_v34  ;;  %975 = vst.msk [vmem:[#allocation3 + $0x98] sm:$0xff] %vm366_vm0, %v10983_v28 }
  0x5b   : > { %976 = vst.msk [vmem:[#allocation3 + $0xa0] sm:$0xff] %vm366_vm0, %v10991_v29  ;;  %977 = vst.msk [vmem:[#allocation3 + $0xa8] sm:$0xff] %vm366_vm0, %v10993_v23 }
  0x5c   : > { %978 = vst.msk [vmem:[#allocation3 + $0xb0] sm:$0xff] %vm366_vm0, %v10995_v24  ;;  %979 = vst.msk [vmem:[#allocation3 + $0xb8] sm:$0xff] %vm366_vm0, %v11005_v21  ;;  %1090 = vrot.lane.b32.xlu1 %v11017_v17, %s10443_s16 }
  0x5d   : > { %980 = vst.msk [vmem:[#allocation3 + $0xc0] sm:$0xff] %vm366_vm0, %v11013_v19  ;;  %981 = vst.msk [vmem:[#allocation3 + $0xc8] sm:$0xff] %vm366_vm0, %v11015_v20  ;;  %1096 = vrot.lane.b32.xlu0 %v11025_v18, %s10443_s16 }
  0x5e   : > { %982 = vst.msk [vmem:[#allocation3 + $0xd0] sm:$0xff] %vm366_vm0, %v11029_v15  ;;  %983 = vst.msk [vmem:[#allocation3 + $0xd8] sm:$0xff] %vm366_vm0, %v11031_v16 }
  0x5f   : > { %15703 = vst [vmem:[#allocation36_spill] sm:$0xff] %v11041_v14  ;;  %15704 = vst [vmem:[#allocation37_spill] sm:$0xff] %v11047_v12 }
  0x60   : > { %1094 = vrot.lane.b32.xlu1 %v11033_v13, %s10443_s16  ;;  %15705 = vst [vmem:[#allocation38_spill] sm:$0xff] %v11049_v9  ;;  %984 = vst.msk [vmem:[#allocation3 + $0xe0] sm:$0xff] %vm366_vm0, %v11045_v11 }
  0x61   : > { %985 = vst.msk [vmem:[#allocation3 + $0xe8] sm:$0xff] %vm366_vm0, %v11047_v12  ;;  %1100 = vrot.lane.b32.xlu0 %v11041_v14, %s10443_s16  ;;  %15706 = vst [vmem:[#allocation39_spill] sm:$0xff] %v11063_v6  ;;  %v11089_v14 = vld [vmem:[%s10677_s15 + $0xf8] sm:$0xff]  ;;  %s10450_s15 = smov 32  }
  0x62   : > { %15707 = vst [vmem:[#allocation40_spill] sm:$0xff] %v11065_v3  ;;  %986 = vst.msk [vmem:[#allocation3 + $0xf0] sm:$0xff] %vm366_vm0, %v11061_v5 }
  0x63   : > { %987 = vst.msk [vmem:[#allocation3 + $0xf8] sm:$0xff] %vm366_vm0, %v11063_v6  ;;  %15708 = vst [vmem:[#allocation41_spill] sm:$0xff] %v11073_v4 }
  0x64   : > { %1098 = vrot.lane.b32.xlu1 %v11049_v9, %s10443_s16  ;;  %15709 = vst [vmem:[#allocation42_spill] sm:$0xff] %v11082_v2  ;;  %v11084_v9 = vld [vmem:[#allocation2 + $0x169] sm:$0xff]  ;;  %922 = vst.msk [vmem:[#allocation2 + $0x181] sm:$0xff] %vm366_vm0, %v11082_v2 }
  0x65   : > { %1104 = vrot.lane.b32.xlu0 %v11057_v10, %s10443_s16  ;;  %15710 = vst [vmem:[#allocation43_spill] sm:$0xff] %v11089_v14  ;;  %923 = vst.msk [vmem:[#allocation2 + $0x189] sm:$0xff] %vm366_vm0, %v11089_v14  ;;  %v11109_v14 = vld [vmem:[#allocation2 + $0x32] sm:$0xff]  ;;  %v11115_v2 = vld [vmem:[#allocation2 + $0x4a] sm:$0xff] }
  0x66   : > { %15713 = vst [vmem:[#allocation46_spill] sm:$0xff] %v11109_v14  ;;  %15714 = vst [vmem:[#allocation47_spill] sm:$0xff] %v11115_v2 }
  0x68   : > { %1102 = vrot.lane.b32.xlu1 %v11065_v3, %s10443_s16  ;;  %v11095_v3 = vld [vmem:[#allocation2 + $0x159] sm:$0xff] }
  0x69   : > { %1108 = vrot.lane.b32.xlu0 %v11073_v4, %s10443_s16  ;;  %15711 = vst [vmem:[#allocation44_spill] sm:$0xff] %v11095_v3  ;;  %v11101_v4 = vld [vmem:[#allocation2 + $0x171] sm:$0xff] }
  0x6a   : > { %15712 = vst [vmem:[#allocation45_spill] sm:$0xff] %v11101_v4 }
  0x6c   : > { %1106 = vrot.lane.b32.xlu1 %v11077_v1, %s10443_s16 }
  0x6d   : > { %1112 = vrot.lane.b32.xlu0 %v11084_v9, %s10443_s16 }
  0x70   : > { %1110 = vrot.lane.b32.xlu1 %v11095_v3, %s10443_s16 }
  0x71   : > { %1245 = vrot.lane.b32.xlu0 %v10885_v47, %s10444_s17  ;;  %v11119_v47 = vld [vmem:[#allocation2 + $0x3a] sm:$0xff] }
  0x72   : > { %15715 = vst [vmem:[#allocation48_spill] sm:$0xff] %v11119_v47 }
  0x74   : > { %1114 = vrot.lane.b32.xlu1 %v11101_v4, %s10443_s16  ;;  %v11123_v4 = vld [vmem:[#allocation2 + $0x62] sm:$0xff] }
  0x75   : > { %1249 = vrot.lane.b32.xlu0 %v10889_v48, %s10444_s17  ;;  %15716 = vst [vmem:[#allocation49_spill] sm:$0xff] %v11123_v4  ;;  %v11127_v48 = vld [vmem:[#allocation2 + $0x52] sm:$0xff] }
  0x76   : > { %15717 = vst [vmem:[#allocation50_spill] sm:$0xff] %v11127_v48 }
  0x78   : > { %1247 = vrot.lane.b32.xlu1 %v10859_v40, %s10444_s17  ;;  %v11131_v40 = vld [vmem:[#allocation2 + $0x7a] sm:$0xff] }
  0x79   : > { %1253 = vrot.lane.b32.xlu0 %v11109_v14, %s10444_s17  ;;  %15718 = vst [vmem:[#allocation51_spill] sm:$0xff] %v11131_v40  ;;  %v11199_v14 = vld [vmem:[#allocation2 + $0x12a] sm:$0xff] }
  0x7a   : > { %15735 = vst [vmem:[#allocation68_spill] sm:$0xff] %v11199_v14 }
  0x7c   : > { %1251 = vrot.lane.b32.xlu1 %v10861_v41, %s10444_s17  ;;  %v11135_v41 = vld [vmem:[#allocation2 + $0x6a] sm:$0xff] }
  0x7d   : > { %1257 = vrot.lane.b32.xlu0 %v11115_v2, %s10444_s17  ;;  %15719 = vst [vmem:[#allocation52_spill] sm:$0xff] %v11135_v41  ;;  %v11139_v2 = vld [vmem:[#allocation2 + $0x92] sm:$0xff] }
  0x7e   : > { %15720 = vst [vmem:[#allocation53_spill] sm:$0xff] %v11139_v2 }
  0x80   : > { %1255 = vrot.lane.b32.xlu1 %v11119_v47, %s10444_s17  ;;  %v11143_v47 = vld [vmem:[#allocation2 + $0x82] sm:$0xff] }
  0x81   : > { %1261 = vrot.lane.b32.xlu0 %v11123_v4, %s10444_s17  ;;  %15721 = vst [vmem:[#allocation54_spill] sm:$0xff] %v11143_v47  ;;  %v11147_v4 = vld [vmem:[#allocation2 + $0xaa] sm:$0xff] }
  0x82   : > { %15722 = vst [vmem:[#allocation55_spill] sm:$0xff] %v11147_v4 }
  0x84   : > { %1259 = vrot.lane.b32.xlu1 %v11127_v48, %s10444_s17  ;;  %v11151_v48 = vld [vmem:[#allocation2 + $0x9a] sm:$0xff] }
  0x85   : > { %1265 = vrot.lane.b32.xlu0 %v11131_v40, %s10444_s17  ;;  %15723 = vst [vmem:[#allocation56_spill] sm:$0xff] %v11151_v48  ;;  %v11155_v40 = vld [vmem:[#allocation2 + $0xc2] sm:$0xff] }
  0x86   : > { %15724 = vst [vmem:[#allocation57_spill] sm:$0xff] %v11155_v40 }
  0x88   : > { %1263 = vrot.lane.b32.xlu1 %v11135_v41, %s10444_s17  ;;  %v11159_v41 = vld [vmem:[#allocation2 + $0xb2] sm:$0xff] }
  0x89   : > { %1269 = vrot.lane.b32.xlu0 %v11139_v2, %s10444_s17  ;;  %15725 = vst [vmem:[#allocation58_spill] sm:$0xff] %v11159_v41  ;;  %v11163_v2 = vld [vmem:[#allocation2 + $0xda] sm:$0xff] }
  0x8a   : > { %15726 = vst [vmem:[#allocation59_spill] sm:$0xff] %v11163_v2 }
  0x8c   : > { %1267 = vrot.lane.b32.xlu1 %v11143_v47, %s10444_s17  ;;  %v11167_v47 = vld [vmem:[#allocation2 + $0xca] sm:$0xff] }
  0x8d   : > { %1273 = vrot.lane.b32.xlu0 %v11147_v4, %s10444_s17  ;;  %15727 = vst [vmem:[#allocation60_spill] sm:$0xff] %v11167_v47  ;;  %v11171_v4 = vld [vmem:[#allocation2 + $0xf2] sm:$0xff] }
  0x8e   : > { %15728 = vst [vmem:[#allocation61_spill] sm:$0xff] %v11171_v4 }
  0x90   : > { %1271 = vrot.lane.b32.xlu1 %v11151_v48, %s10444_s17  ;;  %v11175_v48 = vld [vmem:[#allocation2 + $0xe2] sm:$0xff] }
  0x91   : > { %1277 = vrot.lane.b32.xlu0 %v11155_v40, %s10444_s17  ;;  %15729 = vst [vmem:[#allocation62_spill] sm:$0xff] %v11175_v48  ;;  %v11179_v40 = vld [vmem:[#allocation2 + $0x10a] sm:$0xff] }
  0x92   : > { %15730 = vst [vmem:[#allocation63_spill] sm:$0xff] %v11179_v40 }
  0x94   : > { %1275 = vrot.lane.b32.xlu1 %v11159_v41, %s10444_s17  ;;  %v11183_v41 = vld [vmem:[#allocation2 + $0xfa] sm:$0xff] }
  0x95   : > { %1281 = vrot.lane.b32.xlu0 %v11163_v2, %s10444_s17  ;;  %15731 = vst [vmem:[#allocation64_spill] sm:$0xff] %v11183_v41  ;;  %v11187_v2 = vld [vmem:[#allocation2 + $0x122] sm:$0xff] }
  0x96   : > { %15732 = vst [vmem:[#allocation65_spill] sm:$0xff] %v11187_v2 }
  0x98   : > { %1279 = vrot.lane.b32.xlu1 %v11167_v47, %s10444_s17  ;;  %v11191_v47 = vld [vmem:[#allocation2 + $0x112] sm:$0xff] }
  0x99   : > { %1285 = vrot.lane.b32.xlu0 %v11171_v4, %s10444_s17  ;;  %15733 = vst [vmem:[#allocation66_spill] sm:$0xff] %v11191_v47  ;;  %v11195_v4 = vld [vmem:[#allocation2 + $0x13a] sm:$0xff] }
  0x9a   : > { %15734 = vst [vmem:[#allocation67_spill] sm:$0xff] %v11195_v4 }
  0x9c   : > { %1283 = vrot.lane.b32.xlu1 %v11175_v48, %s10444_s17  ;;  %v1053_v48 = vpop.permute.xlu0 %1052 }
  0x9d   : > { %1289 = vrot.lane.b32.xlu0 %v11179_v40, %s10444_s17  ;;  %1149 = vst.msk [vmem:[#allocation3] sm:$0xff] %vm1148_vm2, %v1053_v48  ;;  %v11208_v40 = vld [vmem:[#allocation2 + $0x142] sm:$0xff]  ;;  %v11214_v48 = vld [vmem:[#allocation2 + $0x16a] sm:$0xff] }
  0x9e   : > { %15736 = vst [vmem:[#allocation69_spill] sm:$0xff] %v11208_v40 }
  0xa0   : > { %1287 = vrot.lane.b32.xlu1 %v11183_v41, %s10444_s17  ;;  %v11204_v41 = vld [vmem:[#allocation2 + $0x152] sm:$0xff] }
  0xa1   : > { %1293 = vrot.lane.b32.xlu0 %v11187_v2, %s10444_s17  ;;  %v1055_v2 = vpop.permute.xlu0 %1054 }
  0xa2   : > { %1150 = vst.msk [vmem:[#allocation3 + $0x8] sm:$0xff] %vm1148_vm2, %v1055_v2 }
  0xa4   : > { %1291 = vrot.lane.b32.xlu1 %v11191_v47, %s10444_s17  ;;  %v11218_v47 = vld [vmem:[#allocation2 + $0x15a] sm:$0xff] }
  0xa5   : > { %1297 = vrot.lane.b32.xlu0 %v11195_v4, %s10444_s17 }
  0xa8   : > { %1295 = vrot.lane.b32.xlu1 %v11199_v14, %s10444_s17 }
  0xa9   : > { %1301 = vrot.lane.b32.xlu0 %v11204_v41, %s10444_s17 }
  0xaa   : > { %v1057_v3 = vpop.permute.xlu1 %1056 }
  0xab   : > { %1151 = vst.msk [vmem:[#allocation3 + $0x10] sm:$0xff] %vm1148_vm2, %v1057_v3  ;;  %v1061_v4 = vpop.permute.xlu0 %1060  ;;  %v11226_v3 = vld [vmem:[#allocation2 + $0x172] sm:$0xff] }
  0xac   : > { %1299 = vrot.lane.b32.xlu1 %v11208_v40, %s10444_s17  ;;  %1153 = vst.msk [vmem:[#allocation3 + $0x20] sm:$0xff] %vm1148_vm2, %v1061_v4 }
  0xad   : > { %1305 = vrot.lane.b32.xlu0 %v11214_v48, %s10444_s17 }
  0xae   : > { %v1059_v14 = vpop.permute.xlu1 %1058 }
  0xaf   : > { %1152 = vst.msk [vmem:[#allocation3 + $0x18] sm:$0xff] %vm1148_vm2, %v1059_v14  ;;  %v1065_v2 = vpop.permute.xlu0 %1064 }
  0xb0   : > { %1303 = vrot.lane.b32.xlu1 %v11218_v47, %s10444_s17  ;;  %1155 = vst.msk [vmem:[#allocation3 + $0x30] sm:$0xff] %vm1148_vm2, %v1065_v2 }
  0xb1   : > { %1438 = vrot.lane.b32.xlu0 %v10891_v50, %s10445_s18 }
  0xb2   : > { %v1063_v40 = vpop.permute.xlu1 %1062 }
  0xb3   : > { %1154 = vst.msk [vmem:[#allocation3 + $0x28] sm:$0xff] %vm1148_vm2, %v1063_v40  ;;  %v1069_v4 = vpop.permute.xlu0 %1068 }
  0xb4   : > { %1307 = vrot.lane.b32.xlu1 %v11226_v3, %s10444_s17  ;;  %1157 = vst.msk [vmem:[#allocation3 + $0x40] sm:$0xff] %vm1148_vm2, %v1069_v4 }
  0xb5   : > { %1442 = vrot.lane.b32.xlu0 %v10913_v55, %s10445_s18 }
  0xb6   : > { %v1067_v14 = vpop.permute.xlu1 %1066 }
  0xb7   : > { %1156 = vst.msk [vmem:[#allocation3 + $0x38] sm:$0xff] %vm1148_vm2, %v1067_v14  ;;  %v1073_v2 = vpop.permute.xlu0 %1072 }
  0xb8   : > { %1440 = vrot.lane.b32.xlu1 %v10907_v53, %s10445_s18  ;;  %1159 = vst.msk [vmem:[#allocation3 + $0x50] sm:$0xff] %vm1148_vm2, %v1073_v2 }
  0xb9   : > { %1446 = vrot.lane.b32.xlu0 %v10927_v58, %s10445_s18 }
  0xba   : > { %v1071_v50 = vpop.permute.xlu1 %1070 }
  0xbb   : > { %1158 = vst.msk [vmem:[#allocation3 + $0x48] sm:$0xff] %vm1148_vm2, %v1071_v50  ;;  %v1077_v40 = vpop.permute.xlu0 %1076 }
  0xbc   : > { %1444 = vrot.lane.b32.xlu1 %v10915_v56, %s10445_s18  ;;  %1161 = vst.msk [vmem:[#allocation3 + $0x60] sm:$0xff] %vm1148_vm2, %v1077_v40 }
  0xbd   : > { %1450 = vrot.lane.b32.xlu0 %v10937_v61, %s10445_s18 }
  0xbe   : > { %v1075_v4 = vpop.permute.xlu1 %1074 }
  0xbf   : > { %1160 = vst.msk [vmem:[#allocation3 + $0x58] sm:$0xff] %vm1148_vm2, %v1075_v4  ;;  %v1081_v53 = vpop.permute.xlu0 %1080 }
  0xc0   : > { %1448 = vrot.lane.b32.xlu1 %v10929_v59, %s10445_s18  ;;  %1163 = vst.msk [vmem:[#allocation3 + $0x70] sm:$0xff] %vm1148_vm2, %v1081_v53 }
  0xc1   : > { %1454 = vrot.lane.b32.xlu0 %v10941_v63, %s10445_s18 }
  0xc2   : > { %v1079_v14 = vpop.permute.xlu1 %1078 }
  0xc3   : > { %1162 = vst.msk [vmem:[#allocation3 + $0x68] sm:$0xff] %vm1148_vm2, %v1079_v14  ;;  %v1085_v2 = vpop.permute.xlu0 %1084 }
  0xc4   : > { %1452 = vrot.lane.b32.xlu1 %v10939_v62, %s10445_s18  ;;  %1165 = vst.msk [vmem:[#allocation3 + $0x80] sm:$0xff] %vm1148_vm2, %v1085_v2 }
  0xc5   : > { %1458 = vrot.lane.b32.xlu0 %v10953_v8, %s10445_s18 }
  0xc6   : > { %v1083_v50 = vpop.permute.xlu1 %1082 }
  0xc7   : > { %1164 = vst.msk [vmem:[#allocation3 + $0x78] sm:$0xff] %vm1148_vm2, %v1083_v50  ;;  %v1089_v40 = vpop.permute.xlu0 %1088 }
  0xc8   : > { %1456 = vrot.lane.b32.xlu1 %v10951_v7, %s10445_s18  ;;  %1167 = vst.msk [vmem:[#allocation3 + $0x90] sm:$0xff] %vm1148_vm2, %v1089_v40 }
  0xc9   : > { %1462 = vrot.lane.b32.xlu0 %v10965_v0, %s10445_s18 }
  0xca   : > { %v1087_v4 = vpop.permute.xlu1 %1086 }
  0xcb   : > { %1166 = vst.msk [vmem:[#allocation3 + $0x88] sm:$0xff] %vm1148_vm2, %v1087_v4  ;;  %v1093_v53 = vpop.permute.xlu0 %1092 }
  0xcc   : > { %1460 = vrot.lane.b32.xlu1 %v10955_v49, %s10445_s18  ;;  %1169 = vst.msk [vmem:[#allocation3 + $0xa0] sm:$0xff] %vm1148_vm2, %v1093_v53 }
  0xcd   : > { %1466 = vrot.lane.b32.xlu0 %v10969_v36, %s10445_s18 }
  0xce   : > { %v1091_v14 = vpop.permute.xlu1 %1090 }
  0xcf   : > { %1168 = vst.msk [vmem:[#allocation3 + $0x98] sm:$0xff] %vm1148_vm2, %v1091_v14  ;;  %v1097_v2 = vpop.permute.xlu0 %1096 }
  0xd0   : > { %1464 = vrot.lane.b32.xlu1 %v10967_v35, %s10445_s18  ;;  %1171 = vst.msk [vmem:[#allocation3 + $0xb0] sm:$0xff] %vm1148_vm2, %v1097_v2 }
  0xd1   : > { %1470 = vrot.lane.b32.xlu0 %v10981_v34, %s10445_s18 }
  0xd2   : > { %v1095_v50 = vpop.permute.xlu1 %1094 }
  0xd3   : > { %1170 = vst.msk [vmem:[#allocation3 + $0xa8] sm:$0xff] %vm1148_vm2, %v1095_v50  ;;  %v1101_v40 = vpop.permute.xlu0 %1100 }
  0xd4   : > { %1468 = vrot.lane.b32.xlu1 %v10979_v33, %s10445_s18  ;;  %1173 = vst.msk [vmem:[#allocation3 + $0xc0] sm:$0xff] %vm1148_vm2, %v1101_v40 }
  0xd5   : > { %1474 = vrot.lane.b32.xlu0 %v10991_v29, %s10445_s18 }
  0xd6   : > { %v1099_v4 = vpop.permute.xlu1 %1098 }
  0xd7   : > { %1172 = vst.msk [vmem:[#allocation3 + $0xb8] sm:$0xff] %vm1148_vm2, %v1099_v4  ;;  %v1105_v53 = vpop.permute.xlu0 %1104 }
  0xd8   : > { %1472 = vrot.lane.b32.xlu1 %v10983_v28, %s10445_s18  ;;  %1175 = vst.msk [vmem:[#allocation3 + $0xd0] sm:$0xff] %vm1148_vm2, %v1105_v53 }
  0xd9   : > { %1478 = vrot.lane.b32.xlu0 %v10995_v24, %s10445_s18 }
  0xda   : > { %v1103_v14 = vpop.permute.xlu1 %1102 }
  0xdb   : > { %1174 = vst.msk [vmem:[#allocation3 + $0xc8] sm:$0xff] %vm1148_vm2, %v1103_v14  ;;  %v1109_v2 = vpop.permute.xlu0 %1108 }
  0xdc   : > { %1476 = vrot.lane.b32.xlu1 %v10993_v23, %s10445_s18  ;;  %1177 = vst.msk [vmem:[#allocation3 + $0xe0] sm:$0xff] %vm1148_vm2, %v1109_v2 }
  0xdd   : > { %1482 = vrot.lane.b32.xlu0 %v11013_v19, %s10445_s18 }
  0xde   : > { %v1107_v50 = vpop.permute.xlu1 %1106 }
  0xdf   : > { %1176 = vst.msk [vmem:[#allocation3 + $0xd8] sm:$0xff] %vm1148_vm2, %v1107_v50  ;;  %v1113_v40 = vpop.permute.xlu0 %1112 }
  0xe0   : > { %1480 = vrot.lane.b32.xlu1 %v11005_v21, %s10445_s18  ;;  %1179 = vst.msk [vmem:[#allocation3 + $0xf0] sm:$0xff] %vm1148_vm2, %v1113_v40  ;;  %v11316_v40 = vld [vmem:[#allocation2 + $0x180] sm:$0xff] }
  0xe1   : > { %1486 = vrot.lane.b32.xlu0 %v11029_v15, %s10445_s18  ;;  %15737 = vst [vmem:[#allocation70_spill] sm:$0xff] %v11316_v40 }
  0xe2   : > { %v1111_v4 = vpop.permute.xlu1 %1110 }
  0xe3   : > { %1178 = vst.msk [vmem:[#allocation3 + $0xe8] sm:$0xff] %vm1148_vm2, %v1111_v4  ;;  %v1246_v53 = vpop.permute.xlu0 %1245 }
  0xe4   : > { %1484 = vrot.lane.b32.xlu1 %v11015_v20, %s10445_s18  ;;  %1342 = vst.msk [vmem:[#allocation3] sm:$0xff] %vm1341_vm3, %v1246_v53 }
  0xe5   : > { %1490 = vrot.lane.b32.xlu0 %v11045_v11, %s10445_s18 }
  0xe6   : > { %v1115_v14 = vpop.permute.xlu1 %1114 }
  0xe7   : > { %1180 = vst.msk [vmem:[#allocation3 + $0xf8] sm:$0xff] %vm1148_vm2, %v1115_v14  ;;  %v1250_v2 = vpop.permute.xlu0 %1249 }
  0xe8   : > { %1488 = vrot.lane.b32.xlu1 %v11031_v16, %s10445_s18  ;;  %1344 = vst.msk [vmem:[#allocation3 + $0x10] sm:$0xff] %vm1341_vm3, %v1250_v2  ;;  %v11326_v2 = vld [vmem:[#allocation2 + $0x188] sm:$0xff] }
  0xe9   : > { %1494 = vrot.lane.b32.xlu0 %v11061_v5, %s10445_s18  ;;  %15738 = vst [vmem:[#allocation71_spill] sm:$0xff] %v11326_v2 }
  0xea   : > { %v1248_v50 = vpop.permute.xlu1 %1247 }
  0xeb   : > { %1343 = vst.msk [vmem:[#allocation3 + $0x8] sm:$0xff] %vm1341_vm3, %v1248_v50  ;;  %v1254_v4 = vpop.permute.xlu0 %1253 }
  0xec   : > { %1492 = vrot.lane.b32.xlu1 %v11047_v12, %s10445_s18  ;;  %1346 = vst.msk [vmem:[#allocation3 + $0x20] sm:$0xff] %vm1341_vm3, %v1254_v4  ;;  %v11331_v4 = vld [vmem:[#allocation2 + $0x181] sm:$0xff] }
  0xed   : > { %1498 = vrot.lane.b32.xlu0 %v11316_v40, %s10445_s18  ;;  %v11333_v12 = vld [vmem:[#allocation2 + $0x182] sm:$0xff]  ;;  %v11338_v40 = vld [vmem:[#allocation2 + $0x18a] sm:$0xff] }
  0xee   : > { %v1252_v53 = vpop.permute.xlu1 %1251  ;;  %15739 = vst [vmem:[#allocation72_spill] sm:$0xff] %v11333_v12  ;;  %15740 = vst [vmem:[#allocation73_spill] sm:$0xff] %v11338_v40 }
  0xef   : > { %1345 = vst.msk [vmem:[#allocation3 + $0x18] sm:$0xff] %vm1341_vm3, %v1252_v53  ;;  %v1258_v14 = vpop.permute.xlu0 %1257  ;;  %v11336_v53 = vld [vmem:[#allocation2 + $0x189] sm:$0xff] }
  0xf0   : > { %1496 = vrot.lane.b32.xlu1 %v11063_v6, %s10445_s18  ;;  %1348 = vst.msk [vmem:[#allocation3 + $0x30] sm:$0xff] %vm1341_vm3, %v1258_v14  ;;  %v15741_v6 = vmov 0.0  }
  0xf1   : > { %1631 = vrot.lane.b32.xlu0 %v10787_v25, %s10446_s19  ;;  %3210 = vst.msk [vmem:[#allocation2 + $0x180] sm:$0xff] %vm366_vm0, %v15741_v6  ;;  %3211 = vst.msk [vmem:[#allocation2 + $0x188] sm:$0xff] %vm366_vm0, %v15741_v6 }
  0xf2   : > { %v1256_v50 = vpop.permute.xlu1 %1255  ;;  %3212 = vst.msk [vmem:[#allocation2 + $0x190] sm:$0xf] %vm832_vm1, %v15741_v6 }
  0xf3   : > { %1347 = vst.msk [vmem:[#allocation3 + $0x28] sm:$0xff] %vm1341_vm3, %v1256_v50  ;;  %v1262_v14 = vpop.permute.xlu0 %1261 }
  0xf4   : > { %1500 = vrot.lane.b32.xlu1 %v11326_v2, %s10445_s18  ;;  %1350 = vst.msk [vmem:[#allocation3 + $0x40] sm:$0xff] %vm1341_vm3, %v1262_v14 }
  0xf5   : > { %3251 = vst.msk [vmem:[#allocation2 + $0x18a] sm:$0xff] %vm366_vm0, %v10847_v38  ;;  %3250 = vst.msk [vmem:[#allocation2 + $0x182] sm:$0xff] %vm366_vm0, %v10844_v37  ;;  %1635 = vrot.lane.b32.xlu0 %v10789_v26, %s10446_s19 }
  0xf6   : > { %v1260_v25 = vpop.permute.xlu1 %1259 }
  0xf7   : > { %1349 = vst.msk [vmem:[#allocation3 + $0x38] sm:$0xff] %vm1341_vm3, %v1260_v25  ;;  %v1266_v50 = vpop.permute.xlu0 %1265 }
  0xf8   : > { %1633 = vrot.lane.b32.xlu1 %v10799_v27, %s10446_s19  ;;  %1352 = vst.msk [vmem:[#allocation3 + $0x50] sm:$0xff] %vm1341_vm3, %v1266_v50 }
  0xf9   : > { %1639 = vrot.lane.b32.xlu0 %v10813_v30, %s10446_s19 }
  0xfa   : > { %v1264_v2 = vpop.permute.xlu1 %1263 }
  0xfb   : > { %1351 = vst.msk [vmem:[#allocation3 + $0x48] sm:$0xff] %vm1341_vm3, %v1264_v2  ;;  %v1270_v14 = vpop.permute.xlu0 %1269  ;;  %v15742_v2 = vld [vmem:[#allocation36_spill] sm:$0xff] }
  0xfc   : > { %1637 = vrot.lane.b32.xlu1 %v10817_v31, %s10446_s19  ;;  %1354 = vst.msk [vmem:[#allocation3 + $0x60] sm:$0xff] %vm1341_vm3, %v1270_v14 }
  0xfd   : > { %1643 = vrot.lane.b32.xlu0 %v10821_v32, %s10446_s19 }
  0xfe   : > { %v1268_v26 = vpop.permute.xlu1 %1267 }
  0xff   : > { %1353 = vst.msk [vmem:[#allocation3 + $0x58] sm:$0xff] %vm1341_vm3, %v1268_v26  ;;  %v1274_v27 = vpop.permute.xlu0 %1273  ;;  %v15745_v26 = vld [vmem:[#allocation41_spill] sm:$0xff] }
 0x100   : > { %1641 = vrot.lane.b32.xlu1 %v10849_v39, %s10446_s19  ;;  %1356 = vst.msk [vmem:[#allocation3 + $0x70] sm:$0xff] %vm1341_vm3, %v1274_v27 }
 0x101   : > { %1647 = vrot.lane.b32.xlu0 %v10863_v42, %s10446_s19 }
 0x102   : > { %v1272_v30 = vpop.permute.xlu1 %1271 }
 0x103   : > { %1355 = vst.msk [vmem:[#allocation3 + $0x68] sm:$0xff] %vm1341_vm3, %v1272_v30  ;;  %v1278_v31 = vpop.permute.xlu0 %1277  ;;  %v15746_v30 = vld [vmem:[#allocation44_spill] sm:$0xff] }
 0x104   : > { %1645 = vrot.lane.b32.xlu1 %v10871_v43, %s10446_s19  ;;  %1358 = vst.msk [vmem:[#allocation3 + $0x80] sm:$0xff] %vm1341_vm3, %v1278_v31 }
 0x105   : > { %1651 = vrot.lane.b32.xlu0 %v10875_v44, %s10446_s19 }
 0x106   : > { %v1276_v32 = vpop.permute.xlu1 %1275 }
 0x107   : > { %1357 = vst.msk [vmem:[#allocation3 + $0x78] sm:$0xff] %vm1341_vm3, %v1276_v32  ;;  %v1282_v39 = vpop.permute.xlu0 %1281 }
 0x108   : > { %1649 = vrot.lane.b32.xlu1 %v10879_v45, %s10446_s19  ;;  %1360 = vst.msk [vmem:[#allocation3 + $0x90] sm:$0xff] %vm1341_vm3, %v1282_v39 }
 0x109   : > { %1655 = vrot.lane.b32.xlu0 %v10883_v46, %s10446_s19 }
 0x10a   : > { %v1280_v42 = vpop.permute.xlu1 %1279 }
 0x10b   : > { %1359 = vst.msk [vmem:[#allocation3 + $0x88] sm:$0xff] %vm1341_vm3, %v1280_v42  ;;  %v1286_v43 = vpop.permute.xlu0 %1285  ;;  %v15748_v42 = vld [vmem:[#allocation35_spill] sm:$0xff] }
 0x10c   : > { %1653 = vrot.lane.b32.xlu1 %v10893_v51, %s10446_s19  ;;  %1362 = vst.msk [vmem:[#allocation3 + $0xa0] sm:$0xff] %vm1341_vm3, %v1286_v43 }
 0x10d   : > { %1659 = vrot.lane.b32.xlu0 %v10909_v54, %s10446_s19 }
 0x10e   : > { %v1284_v44 = vpop.permute.xlu1 %1283 }
 0x10f   : > { %1361 = vst.msk [vmem:[#allocation3 + $0x98] sm:$0xff] %vm1341_vm3, %v1284_v44  ;;  %v1290_v45 = vpop.permute.xlu0 %1289 }
 0x110   : > { %1657 = vrot.lane.b32.xlu1 %v10921_v57, %s10446_s19  ;;  %1364 = vst.msk [vmem:[#allocation3 + $0xb0] sm:$0xff] %vm1341_vm3, %v1290_v45  ;;  %v15749_v45 = vld [vmem:[#allocation46_spill] sm:$0xff] }
 0x111   : > { %1663 = vrot.lane.b32.xlu0 %v10931_v60, %s10446_s19 }
 0x112   : > { %v1288_v46 = vpop.permute.xlu1 %1287 }
 0x113   : > { %1363 = vst.msk [vmem:[#allocation3 + $0xa8] sm:$0xff] %vm1341_vm3, %v1288_v46  ;;  %v1294_v51 = vpop.permute.xlu0 %1293  ;;  %v15750_v46 = vld [vmem:[#allocation34_spill] sm:$0xff] }
 0x114   : > { %1661 = vrot.lane.b32.xlu1 %v10957_v52, %s10446_s19  ;;  %1366 = vst.msk [vmem:[#allocation3 + $0xc0] sm:$0xff] %vm1341_vm3, %v1294_v51 }
 0x115   : > { %1667 = vrot.lane.b32.xlu0 %v11007_v22, %s10446_s19 }
 0x116   : > { %v1292_v54 = vpop.permute.xlu1 %1291 }
 0x117   : > { %1365 = vst.msk [vmem:[#allocation3 + $0xb8] sm:$0xff] %vm1341_vm3, %v1292_v54  ;;  %v1298_v57 = vpop.permute.xlu0 %1297 }
 0x118   : > { %1665 = vrot.lane.b32.xlu1 %v11017_v17, %s10446_s19  ;;  %1368 = vst.msk [vmem:[#allocation3 + $0xd0] sm:$0xff] %vm1341_vm3, %v1298_v57  ;;  %v15743_v17 = vld [vmem:[#allocation38_spill] sm:$0xff]  ;;  %v15751_v57 = vld [vmem:[#allocation47_spill] sm:$0xff] }
 0x119   : > { %1671 = vrot.lane.b32.xlu0 %v11025_v18, %s10446_s19 }
 0x11a   : > { %v1296_v60 = vpop.permute.xlu1 %1295 }
 0x11b   : > { %1367 = vst.msk [vmem:[#allocation3 + $0xc8] sm:$0xff] %vm1341_vm3, %v1296_v60  ;;  %v1302_v52 = vpop.permute.xlu0 %1301  ;;  %v15752_v60 = vld [vmem:[#allocation48_spill] sm:$0xff] }
 0x11c   : > { %1669 = vrot.lane.b32.xlu1 %v11033_v13, %s10446_s19  ;;  %1370 = vst.msk [vmem:[#allocation3 + $0xe0] sm:$0xff] %vm1341_vm3, %v1302_v52  ;;  %v15744_v13 = vld [vmem:[#allocation40_spill] sm:$0xff] }
 0x11d   : > { %1675 = vrot.lane.b32.xlu0 %v15742_v2, %s10446_s19  ;;  %v15753_v2 = vld [vmem:[#allocation49_spill] sm:$0xff] }
 0x11e   : > { %v1300_v22 = vpop.permute.xlu1 %1299 }
 0x11f   : > { %1369 = vst.msk [vmem:[#allocation3 + $0xd8] sm:$0xff] %vm1341_vm3, %v1300_v22  ;;  %v1306_v25 = vpop.permute.xlu0 %1305 }
 0x120   : > { %1673 = vrot.lane.b32.xlu1 %v15743_v17, %s10446_s19  ;;  %1372 = vst.msk [vmem:[#allocation3 + $0xf0] sm:$0xff] %vm1341_vm3, %v1306_v25  ;;  %v15754_v17 = vld [vmem:[#allocation50_spill] sm:$0xff] }
 0x121   : > { %1679 = vrot.lane.b32.xlu0 %v11057_v10, %s10446_s19 }
 0x122   : > { %v1304_v18 = vpop.permute.xlu1 %1303 }
 0x123   : > { %1371 = vst.msk [vmem:[#allocation3 + $0xe8] sm:$0xff] %vm1341_vm3, %v1304_v18  ;;  %v1439_v50 = vpop.permute.xlu0 %1438 }
 0x124   : > { %1677 = vrot.lane.b32.xlu1 %v15744_v13, %s10446_s19  ;;  %1535 = vst.msk [vmem:[#allocation3] sm:$0xff] %vm1534_vm4, %v1439_v50  ;;  %v15755_v13 = vld [vmem:[#allocation51_spill] sm:$0xff]  ;;  %v15756_v50 = vld [vmem:[#allocation52_spill] sm:$0xff] }
 0x125   : > { %1683 = vrot.lane.b32.xlu0 %v15745_v26, %s10446_s19 }
 0x126   : > { %v1308_v14 = vpop.permute.xlu1 %1307 }
 0x127   : > { %1373 = vst.msk [vmem:[#allocation3 + $0xf8] sm:$0xff] %vm1341_vm3, %v1308_v14  ;;  %v1443_v27 = vpop.permute.xlu0 %1442 }
 0x128   : > { %1681 = vrot.lane.b32.xlu1 %v11077_v1, %s10446_s19  ;;  %1537 = vst.msk [vmem:[#allocation3 + $0x10] sm:$0xff] %vm1534_vm4, %v1443_v27  ;;  %v15747_v1 = vld [vmem:[#allocation45_spill] sm:$0xff] }
 0x129   : > { %1687 = vrot.lane.b32.xlu0 %v11084_v9, %s10446_s19  ;;  %v15757_v27 = vld [vmem:[#allocation53_spill] sm:$0xff] }
 0x12a   : > { %v1441_v10 = vpop.permute.xlu1 %1440 }
 0x12b   : > { %1536 = vst.msk [vmem:[#allocation3 + $0x8] sm:$0xff] %vm1534_vm4, %v1441_v10  ;;  %v1447_v31 = vpop.permute.xlu0 %1446  ;;  %v15758_v10 = vld [vmem:[#allocation54_spill] sm:$0xff] }
 0x12c   : > { %1685 = vrot.lane.b32.xlu1 %v15746_v30, %s10446_s19  ;;  %1539 = vst.msk [vmem:[#allocation3 + $0x20] sm:$0xff] %vm1534_vm4, %v1447_v31 }
 0x12d   : > { %1691 = vrot.lane.b32.xlu0 %v11331_v4, %s10446_s19 }
 0x12e   : > { %v1445_v32 = vpop.permute.xlu1 %1444 }
 0x12f   : > { %1538 = vst.msk [vmem:[#allocation3 + $0x18] sm:$0xff] %vm1534_vm4, %v1445_v32  ;;  %v1451_v39 = vpop.permute.xlu0 %1450  ;;  %v15759_v32 = vld [vmem:[#allocation55_spill] sm:$0xff] }
 0x130   : > { %1689 = vrot.lane.b32.xlu1 %v15747_v1, %s10446_s19  ;;  %1541 = vst.msk [vmem:[#allocation3 + $0x30] sm:$0xff] %vm1534_vm4, %v1451_v39  ;;  %v15760_v1 = vld [vmem:[#allocation56_spill] sm:$0xff] }
 0x131   : > { %1824 = vrot.lane.b32.xlu0 %v15748_v42, %s10447_s20  ;;  %v15761_v42 = vld [vmem:[#allocation57_spill] sm:$0xff] }
 0x132   : > { %v1449_v9 = vpop.permute.xlu1 %1448 }
 0x133   : > { %1540 = vst.msk [vmem:[#allocation3 + $0x28] sm:$0xff] %vm1534_vm4, %v1449_v9  ;;  %v1455_v43 = vpop.permute.xlu0 %1454 }
 0x134   : > { %1693 = vrot.lane.b32.xlu1 %v11336_v53, %s10446_s19  ;;  %1543 = vst.msk [vmem:[#allocation3 + $0x40] sm:$0xff] %vm1534_vm4, %v1455_v43  ;;  %v15762_v43 = vld [vmem:[#allocation58_spill] sm:$0xff] }
 0x135   : > { %1828 = vrot.lane.b32.xlu0 %v15749_v45, %s10447_s20 }
 0x136   : > { %v1453_v44 = vpop.permute.xlu1 %1452 }
 0x137   : > { %1542 = vst.msk [vmem:[#allocation3 + $0x38] sm:$0xff] %vm1534_vm4, %v1453_v44  ;;  %v1459_v51 = vpop.permute.xlu0 %1458 }
 0x138   : > { %1826 = vrot.lane.b32.xlu1 %v15750_v46, %s10447_s20  ;;  %1545 = vst.msk [vmem:[#allocation3 + $0x50] sm:$0xff] %vm1534_vm4, %v1459_v51  ;;  %v15763_v46 = vld [vmem:[#allocation59_spill] sm:$0xff]  ;;  %v15764_v51 = vld [vmem:[#allocation60_spill] sm:$0xff] }
 0x139   : > { %1832 = vrot.lane.b32.xlu0 %v15751_v57, %s10447_s20 }
 0x13a   : > { %v1457_v54 = vpop.permute.xlu1 %1456 }
 0x13b   : > { %1544 = vst.msk [vmem:[#allocation3 + $0x48] sm:$0xff] %vm1534_vm4, %v1457_v54  ;;  %v1463_v52 = vpop.permute.xlu0 %1462 }
 0x13c   : > { %1830 = vrot.lane.b32.xlu1 %v15752_v60, %s10447_s20  ;;  %1547 = vst.msk [vmem:[#allocation3 + $0x60] sm:$0xff] %vm1534_vm4, %v1463_v52  ;;  %v15765_v60 = vld [vmem:[#allocation61_spill] sm:$0xff]  ;;  %v15766_v52 = vld [vmem:[#allocation62_spill] sm:$0xff] }
 0x13d   : > { %1836 = vrot.lane.b32.xlu0 %v15753_v2, %s10447_s20 }
 0x13e   : > { %v1461_v22 = vpop.permute.xlu1 %1460 }
 0x13f   : > { %1546 = vst.msk [vmem:[#allocation3 + $0x58] sm:$0xff] %vm1534_vm4, %v1461_v22  ;;  %v1467_v25 = vpop.permute.xlu0 %1466 }
 0x140   : > { %1834 = vrot.lane.b32.xlu1 %v15754_v17, %s10447_s20  ;;  %1549 = vst.msk [vmem:[#allocation3 + $0x70] sm:$0xff] %vm1534_vm4, %v1467_v25  ;;  %v15767_v17 = vld [vmem:[#allocation63_spill] sm:$0xff]  ;;  %v15768_v25 = vld [vmem:[#allocation64_spill] sm:$0xff] }
 0x141   : > { %1840 = vrot.lane.b32.xlu0 %v15755_v13, %s10447_s20 }
 0x142   : > { %v1465_v18 = vpop.permute.xlu1 %1464 }
 0x143   : > { %1548 = vst.msk [vmem:[#allocation3 + $0x68] sm:$0xff] %vm1534_vm4, %v1465_v18  ;;  %v1471_v14 = vpop.permute.xlu0 %1470 }
 0x144   : > { %1838 = vrot.lane.b32.xlu1 %v15756_v50, %s10447_s20  ;;  %1551 = vst.msk [vmem:[#allocation3 + $0x80] sm:$0xff] %vm1534_vm4, %v1471_v14  ;;  %v15769_v50 = vld [vmem:[#allocation65_spill] sm:$0xff]  ;;  %v15770_v14 = vld [vmem:[#allocation66_spill] sm:$0xff] }
 0x145   : > { %1844 = vrot.lane.b32.xlu0 %v15757_v27, %s10447_s20 }
 0x146   : > { %v1469_v26 = vpop.permute.xlu1 %1468 }
 0x147   : > { %1550 = vst.msk [vmem:[#allocation3 + $0x78] sm:$0xff] %vm1534_vm4, %v1469_v26  ;;  %v1475_v30 = vpop.permute.xlu0 %1474 }
 0x148   : > { %1842 = vrot.lane.b32.xlu1 %v15758_v10, %s10447_s20  ;;  %1553 = vst.msk [vmem:[#allocation3 + $0x90] sm:$0xff] %vm1534_vm4, %v1475_v30  ;;  %v15771_v10 = vld [vmem:[#allocation67_spill] sm:$0xff]  ;;  %v15772_v30 = vld [vmem:[#allocation68_spill] sm:$0xff] }
 0x149   : > { %1848 = vrot.lane.b32.xlu0 %v15759_v32, %s10447_s20 }
 0x14a   : > { %v1473_v31 = vpop.permute.xlu1 %1472 }
 0x14b   : > { %1552 = vst.msk [vmem:[#allocation3 + $0x88] sm:$0xff] %vm1534_vm4, %v1473_v31  ;;  %v1479_v39 = vpop.permute.xlu0 %1478 }
 0x14c   : > { %1846 = vrot.lane.b32.xlu1 %v15760_v1, %s10447_s20  ;;  %1555 = vst.msk [vmem:[#allocation3 + $0xa0] sm:$0xff] %vm1534_vm4, %v1479_v39  ;;  %v15773_v1 = vld [vmem:[#allocation69_spill] sm:$0xff] }
 0x14d   : > { %1852 = vrot.lane.b32.xlu0 %v15761_v42, %s10447_s20 }
 0x14e   : > { %v1477_v9 = vpop.permute.xlu1 %1476 }
 0x14f   : > { %1554 = vst.msk [vmem:[#allocation3 + $0x98] sm:$0xff] %vm1534_vm4, %v1477_v9  ;;  %v1483_v44 = vpop.permute.xlu0 %1482 }
 0x150   : > { %1850 = vrot.lane.b32.xlu1 %v15762_v43, %s10447_s20  ;;  %1557 = vst.msk [vmem:[#allocation3 + $0xb0] sm:$0xff] %vm1534_vm4, %v1483_v44 }
 0x151   : > { %1856 = vrot.lane.b32.xlu0 %v15763_v46, %s10447_s20  ;;  %v11552_v46 = vld [vmem:[#allocation2 + $0x39] sm:$0xff] }
 0x152   : > { %v1481_v45 = vpop.permute.xlu1 %1480 }
 0x153   : > { %1556 = vst.msk [vmem:[#allocation3 + $0xa8] sm:$0xff] %vm1534_vm4, %v1481_v45  ;;  %v1487_v54 = vpop.permute.xlu0 %1486  ;;  %v11549_v45 = vld [vmem:[#allocation2 + $0x32] sm:$0xff] }
 0x154   : > { %1854 = vrot.lane.b32.xlu1 %v15764_v51, %s10447_s20  ;;  %1559 = vst.msk [vmem:[#allocation3 + $0xc0] sm:$0xff] %vm1534_vm4, %v1487_v54  ;;  %v15775_v54 = vld [vmem:[#allocation4_spill] sm:$0xff] }
 0x155   : > { %1860 = vrot.lane.b32.xlu0 %v15765_v60, %s10447_s20  ;;  %v11573_v60 = vld [vmem:[#allocation2 + $0x4a] sm:$0xff] }
 0x156   : > { %v1485_v57 = vpop.permute.xlu1 %1484 }
 0x157   : > { %1558 = vst.msk [vmem:[#allocation3 + $0xb8] sm:$0xff] %vm1534_vm4, %v1485_v57  ;;  %v1491_v22 = vpop.permute.xlu0 %1490 }
 0x158   : > { %1858 = vrot.lane.b32.xlu1 %v15766_v52, %s10447_s20  ;;  %1561 = vst.msk [vmem:[#allocation3 + $0xd0] sm:$0xff] %vm1534_vm4, %v1491_v22  ;;  %v11576_v52 = vld [vmem:[#allocation2 + $0x51] sm:$0xff] }
 0x159   : > { %1864 = vrot.lane.b32.xlu0 %v15767_v17, %s10447_s20  ;;  %v11580_v22 = vld [vmem:[#allocation2 + $0x52] sm:$0xff] }
 0x15a   : > { %v1489_v2 = vpop.permute.xlu1 %1488  ;;  %3173 = vst.msk [vmem:[#allocation2 + $0x58] sm:$0xf] %vm832_vm1, %v15741_v6  ;;  %v15777_v17 = vld [vmem:[#allocation6_spill] sm:$0xff] }
 0x15b   : > { %1560 = vst.msk [vmem:[#allocation3 + $0xc8] sm:$0xff] %vm1534_vm4, %v1489_v2  ;;  %v1495_v18 = vpop.permute.xlu0 %1494 }
 0x15c   : > { %1862 = vrot.lane.b32.xlu1 %v15768_v25, %s10447_s20  ;;  %1563 = vst.msk [vmem:[#allocation3 + $0xe0] sm:$0xff] %vm1534_vm4, %v1495_v18  ;;  %v11597_v18 = vld [vmem:[#allocation2 + $0x62] sm:$0xff] }
 0x15d   : > { %1868 = vrot.lane.b32.xlu0 %v15769_v50, %s10447_s20  ;;  %v11604_v50 = vld [vmem:[#allocation2 + $0x6a] sm:$0xff] }
 0x15e   : > { %v1493_v13 = vpop.permute.xlu1 %1492 }
 0x15f   : > { %1562 = vst.msk [vmem:[#allocation3 + $0xd8] sm:$0xff] %vm1534_vm4, %v1493_v13  ;;  %v1499_v26 = vpop.permute.xlu0 %1498  ;;  %v11600_v13 = vld [vmem:[#allocation2 + $0x69] sm:$0xff] }
 0x160   : > { %1866 = vrot.lane.b32.xlu1 %v15770_v14, %s10447_s20  ;;  %1565 = vst.msk [vmem:[#allocation3 + $0xf0] sm:$0xff] %vm1534_vm4, %v1499_v26  ;;  %v15779_v26 = vld [vmem:[#allocation8_spill] sm:$0xff] }
 0x161   : > { %1872 = vrot.lane.b32.xlu0 %v15771_v10, %s10447_s20  ;;  %3176 = vst.msk [vmem:[#allocation2 + $0x70] sm:$0xf] %vm832_vm1, %v15741_v6  ;;  %v11621_v10 = vld [vmem:[#allocation2 + $0x7a] sm:$0xff] }
 0x162   : > { %v1497_v27 = vpop.permute.xlu1 %1496 }
 0x163   : > { %1564 = vst.msk [vmem:[#allocation3 + $0xe8] sm:$0xff] %vm1534_vm4, %v1497_v27  ;;  %v1632_v31 = vpop.permute.xlu0 %1631 }
 0x164   : > { %1870 = vrot.lane.b32.xlu1 %v15772_v30, %s10447_s20  ;;  %1728 = vst.msk [vmem:[#allocation3] sm:$0xff] %vm1727_vm5, %v1632_v31  ;;  %v11624_v30 = vld [vmem:[#allocation2 + $0x81] sm:$0xff] }
 0x165   : > { %1876 = vrot.lane.b32.xlu0 %v11204_v41, %s10447_s20  ;;  %v11628_v31 = vld [vmem:[#allocation2 + $0x82] sm:$0xff] }
 0x166   : > { %v1501_v32 = vpop.permute.xlu1 %1500  ;;  %3179 = vst.msk [vmem:[#allocation2 + $0x88] sm:$0xf] %vm832_vm1, %v15741_v6 }
 0x167   : > { %1566 = vst.msk [vmem:[#allocation3 + $0xf8] sm:$0xff] %vm1534_vm4, %v1501_v32  ;;  %v1636_v39 = vpop.permute.xlu0 %1635 }
 0x168   : > { %1874 = vrot.lane.b32.xlu1 %v15773_v1, %s10447_s20  ;;  %1730 = vst.msk [vmem:[#allocation3 + $0x10] sm:$0xff] %vm1727_vm5, %v1636_v39  ;;  %v15781_v1 = vld [vmem:[#allocation10_spill] sm:$0xff] }
 0x169   : > { %1880 = vrot.lane.b32.xlu0 %v11214_v48, %s10447_s20 }
 0x16a   : > { %v1634_v9 = vpop.permute.xlu1 %1633 }
 0x16b   : > { %1729 = vst.msk [vmem:[#allocation3 + $0x8] sm:$0xff] %vm1727_vm5, %v1634_v9  ;;  %v1640_v42 = vpop.permute.xlu0 %1639  ;;  %v11645_v9 = vld [vmem:[#allocation2 + $0x92] sm:$0xff] }
 0x16c   : > { %1878 = vrot.lane.b32.xlu1 %v11218_v47, %s10447_s20  ;;  %1732 = vst.msk [vmem:[#allocation3 + $0x20] sm:$0xff] %vm1727_vm5, %v1640_v42  ;;  %v11648_v42 = vld [vmem:[#allocation2 + $0x99] sm:$0xff] }
 0x16d   : > { %1884 = vrot.lane.b32.xlu0 %v11333_v12, %s10447_s20  ;;  %v11864_v12 = vld [vmem:[#allocation2 + $0x171] sm:$0xff] }
 0x16e   : > { %v1638_v41 = vpop.permute.xlu1 %1637 }
 0x16f   : > { %1731 = vst.msk [vmem:[#allocation3 + $0x18] sm:$0xff] %vm1727_vm5, %v1638_v41  ;;  %v1644_v43 = vpop.permute.xlu0 %1643  ;;  %v11652_v41 = vld [vmem:[#allocation2 + $0x9a] sm:$0xff] }
 0x170   : > { %1882 = vrot.lane.b32.xlu1 %v11226_v3, %s10447_s20  ;;  %1734 = vst.msk [vmem:[#allocation3 + $0x30] sm:$0xff] %vm1727_vm5, %v1644_v43  ;;  %v11547_v3 = vld [vmem:[#allocation2 + $0x31] sm:$0xff] }
 0x171   : > { %2018 = vrot.lane.b32.xlu0 %v10913_v55, %s10448_s21  ;;  %3168 = vst.msk [vmem:[#allocation2 + $0x30] sm:$0xff] %vm366_vm0, %v15741_v6  ;;  %v11556_v55 = vld [vmem:[#allocation2 + $0x3a] sm:$0xff] }
 0x172   : > { %v1642_v48 = vpop.permute.xlu1 %1641  ;;  %3169 = vst.msk [vmem:[#allocation2 + $0x38] sm:$0xff] %vm366_vm0, %v15741_v6 }
 0x173   : > { %1733 = vst.msk [vmem:[#allocation3 + $0x28] sm:$0xff] %vm1727_vm5, %v1642_v48  ;;  %v1648_v47 = vpop.permute.xlu0 %1647  ;;  %v15783_v48 = vld [vmem:[#allocation12_spill] sm:$0xff] }
 0x174   : > { %1886 = vrot.lane.b32.xlu1 %v11338_v40, %s10447_s20  ;;  %1736 = vst.msk [vmem:[#allocation3 + $0x40] sm:$0xff] %vm1727_vm5, %v1648_v47  ;;  %v1984_v40 = vld [vmem:[#allocation2 + $0x198] sm:$0xff] }
 0x175   : > { %2022 = vrot.lane.b32.xlu0 %v10927_v58, %s10448_s21  ;;  %3170 = vst.msk [vmem:[#allocation2 + $0x40] sm:$0xf] %vm832_vm1, %v15741_v6  ;;  %v15774_v58 = vld [vmem:[#allocation5_spill] sm:$0xff]  ;;  %3182 = vst.msk [vmem:[#allocation2 + $0xa0] sm:$0xf] %vm832_vm1, %v15741_v6 }
 0x176   : > { %v1646_v44 = vpop.permute.xlu1 %1645  ;;  %3223 = vst.msk [vmem:[#allocation2 + $0x3a] sm:$0xff] %vm366_vm0, %v15774_v58  ;;  %3222 = vst.msk [vmem:[#allocation2 + $0x32] sm:$0xff] %vm366_vm0, %v15775_v54  ;;  %v11720_v54 = vld [vmem:[#allocation2 + $0xe1] sm:$0xff]  ;;  %v11861_v58 = vld [vmem:[#allocation2 + $0x16a] sm:$0xff] }
 0x177   : > { %1735 = vst.msk [vmem:[#allocation3 + $0x38] sm:$0xff] %vm1727_vm5, %v1646_v44  ;;  %v1652_v51 = vpop.permute.xlu0 %1651  ;;  %v11669_v44 = vld [vmem:[#allocation2 + $0xaa] sm:$0xff]  ;;  %15804 = vst [vmem:[#allocation40_spill] sm:$0xff] %v11861_v58  ;;  %v1985_v58 = vld [vmem:[#allocation2 + $0x1a0] sm:$0xff] }
 0x178   : > { %2020 = vrot.lane.b32.xlu1 %v10915_v56, %s10448_s21  ;;  %1738 = vst.msk [vmem:[#allocation3 + $0x50] sm:$0xff] %vm1727_vm5, %v1652_v51  ;;  %v11571_v56 = vld [vmem:[#allocation2 + $0x49] sm:$0xff]  ;;  %v11672_v51 = vld [vmem:[#allocation2 + $0xb1] sm:$0xff] }
 0x179   : > { %2026 = vrot.lane.b32.xlu0 %v10937_v61, %s10448_s21  ;;  %3171 = vst.msk [vmem:[#allocation2 + $0x48] sm:$0xff] %vm366_vm0, %v15741_v6  ;;  %3172 = vst.msk [vmem:[#allocation2 + $0x50] sm:$0xff] %vm366_vm0, %v15741_v6  ;;  %v15776_v61 = vld [vmem:[#allocation7_spill] sm:$0xff] }
 0x17a   : > { %v1650_v57 = vpop.permute.xlu1 %1649  ;;  %3225 = vst.msk [vmem:[#allocation2 + $0x52] sm:$0xff] %vm366_vm0, %v15776_v61  ;;  %3224 = vst.msk [vmem:[#allocation2 + $0x4a] sm:$0xff] %vm366_vm0, %v15777_v17  ;;  %v15803_v17 = vld [vmem:[#allocation70_spill] sm:$0xff] }
 0x17b   : > { %1737 = vst.msk [vmem:[#allocation3 + $0x48] sm:$0xff] %vm1727_vm5, %v1650_v57  ;;  %v1656_v2 = vpop.permute.xlu0 %1655  ;;  %v11676_v57 = vld [vmem:[#allocation2 + $0xb2] sm:$0xff] }
 0x17c   : > { %2024 = vrot.lane.b32.xlu1 %v10929_v59, %s10448_s21  ;;  %1740 = vst.msk [vmem:[#allocation3 + $0x60] sm:$0xff] %vm1727_vm5, %v1656_v2  ;;  %v11595_v59 = vld [vmem:[#allocation2 + $0x61] sm:$0xff] }
 0x17d   : > { %2030 = vrot.lane.b32.xlu0 %v10941_v63, %s10448_s21  ;;  %3174 = vst.msk [vmem:[#allocation2 + $0x60] sm:$0xff] %vm366_vm0, %v15741_v6  ;;  %3175 = vst.msk [vmem:[#allocation2 + $0x68] sm:$0xff] %vm366_vm0, %v15741_v6  ;;  %v15778_v63 = vld [vmem:[#allocation9_spill] sm:$0xff] }
 0x17e   : > { %v1654_v25 = vpop.permute.xlu1 %1653  ;;  %3227 = vst.msk [vmem:[#allocation2 + $0x6a] sm:$0xff] %vm366_vm0, %v15778_v63  ;;  %3226 = vst.msk [vmem:[#allocation2 + $0x62] sm:$0xff] %vm366_vm0, %v15779_v26  ;;  %v11837_v63 = vld [vmem:[#allocation2 + $0x152] sm:$0xff] }
 0x17f   : > { %1739 = vst.msk [vmem:[#allocation3 + $0x58] sm:$0xff] %vm1727_vm5, %v1654_v25  ;;  %v1660_v14 = vpop.permute.xlu0 %1659  ;;  %v15785_v25 = vld [vmem:[#allocation14_spill] sm:$0xff]  ;;  %v11840_v26 = vld [vmem:[#allocation2 + $0x159] sm:$0xff] }
 0x180   : > { %2028 = vrot.lane.b32.xlu1 %v10939_v62, %s10448_s21  ;;  %1742 = vst.msk [vmem:[#allocation3 + $0x70] sm:$0xff] %vm1727_vm5, %v1660_v14  ;;  %v11619_v62 = vld [vmem:[#allocation2 + $0x79] sm:$0xff] }
 0x181   : > { %2034 = vrot.lane.b32.xlu0 %v10953_v8, %s10448_s21  ;;  %3177 = vst.msk [vmem:[#allocation2 + $0x78] sm:$0xff] %vm366_vm0, %v15741_v6  ;;  %3178 = vst.msk [vmem:[#allocation2 + $0x80] sm:$0xff] %vm366_vm0, %v15741_v6  ;;  %v15780_v8 = vld [vmem:[#allocation11_spill] sm:$0xff] }
 0x182   : > { %v1658_v27 = vpop.permute.xlu1 %1657  ;;  %3229 = vst.msk [vmem:[#allocation2 + $0x82] sm:$0xff] %vm366_vm0, %v15780_v8  ;;  %3228 = vst.msk [vmem:[#allocation2 + $0x7a] sm:$0xff] %vm366_vm0, %v15781_v1  ;;  %v11813_v8 = vld [vmem:[#allocation2 + $0x13a] sm:$0xff] }
 0x183   : > { %1741 = vst.msk [vmem:[#allocation3 + $0x68] sm:$0xff] %vm1727_vm5, %v1658_v27  ;;  %v1664_v32 = vpop.permute.xlu0 %1663  ;;  %v11693_v27 = vld [vmem:[#allocation2 + $0xc2] sm:$0xff] }
 0x184   : > { %2032 = vrot.lane.b32.xlu1 %v10951_v7, %s10448_s21  ;;  %1744 = vst.msk [vmem:[#allocation3 + $0x80] sm:$0xff] %vm1727_vm5, %v1664_v32  ;;  %v11643_v7 = vld [vmem:[#allocation2 + $0x91] sm:$0xff]  ;;  %v11696_v32 = vld [vmem:[#allocation2 + $0xc9] sm:$0xff]  ;;  %v11816_v1 = vld [vmem:[#allocation2 + $0x141] sm:$0xff] }
 0x185   : > { %2038 = vrot.lane.b32.xlu0 %v10965_v0, %s10448_s21  ;;  %3180 = vst.msk [vmem:[#allocation2 + $0x90] sm:$0xff] %vm366_vm0, %v15741_v6  ;;  %3181 = vst.msk [vmem:[#allocation2 + $0x98] sm:$0xff] %vm366_vm0, %v15741_v6  ;;  %v15782_v0 = vld [vmem:[#allocation13_spill] sm:$0xff] }
 0x186   : > { %v1662_v39 = vpop.permute.xlu1 %1661  ;;  %3231 = vst.msk [vmem:[#allocation2 + $0x9a] sm:$0xff] %vm366_vm0, %v15782_v0  ;;  %3230 = vst.msk [vmem:[#allocation2 + $0x92] sm:$0xff] %vm366_vm0, %v15783_v48  ;;  %v11789_v0 = vld [vmem:[#allocation2 + $0x122] sm:$0xff] }
 0x187   : > { %1743 = vst.msk [vmem:[#allocation3 + $0x78] sm:$0xff] %vm1727_vm5, %v1662_v39  ;;  %v1668_v43 = vpop.permute.xlu0 %1667  ;;  %v11700_v39 = vld [vmem:[#allocation2 + $0xca] sm:$0xff] }
 0x188   : > { %2036 = vrot.lane.b32.xlu1 %v10955_v49, %s10448_s21  ;;  %1746 = vst.msk [vmem:[#allocation3 + $0x90] sm:$0xff] %vm1727_vm5, %v1668_v43  ;;  %v11667_v49 = vld [vmem:[#allocation2 + $0xa9] sm:$0xff] }
 0x189   : > { %2042 = vrot.lane.b32.xlu0 %v10969_v36, %s10448_s21  ;;  %3183 = vst.msk [vmem:[#allocation2 + $0xa8] sm:$0xff] %vm366_vm0, %v15741_v6  ;;  %3184 = vst.msk [vmem:[#allocation2 + $0xb0] sm:$0xff] %vm366_vm0, %v15741_v6  ;;  %v15784_v36 = vld [vmem:[#allocation15_spill] sm:$0xff]  ;;  %v11792_v48 = vld [vmem:[#allocation2 + $0x129] sm:$0xff] }
 0x18a   : > { %v1666_v47 = vpop.permute.xlu1 %1665  ;;  %3185 = vst.msk [vmem:[#allocation2 + $0xb8] sm:$0xf] %vm832_vm1, %v15741_v6  ;;  %3188 = vst.msk [vmem:[#allocation2 + $0xd0] sm:$0xf] %vm832_vm1, %v15741_v6 }
 0x18b   : > { %1745 = vst.msk [vmem:[#allocation3 + $0x88] sm:$0xff] %vm1727_vm5, %v1666_v47  ;;  %v1672_v2 = vpop.permute.xlu0 %1671  ;;  %v15787_v47 = vld [vmem:[#allocation16_spill] sm:$0xff] }
 0x18c   : > { %2040 = vrot.lane.b32.xlu1 %v10967_v35, %s10448_s21  ;;  %1748 = vst.msk [vmem:[#allocation3 + $0xa0] sm:$0xff] %vm1727_vm5, %v1672_v2  ;;  %v11691_v35 = vld [vmem:[#allocation2 + $0xc1] sm:$0xff] }
 0x18d   : > { %3233 = vst.msk [vmem:[#allocation2 + $0xb2] sm:$0xff] %vm366_vm0, %v15784_v36  ;;  %3232 = vst.msk [vmem:[#allocation2 + $0xaa] sm:$0xff] %vm366_vm0, %v15785_v25  ;;  %2046 = vrot.lane.b32.xlu0 %v10981_v34, %s10448_s21  ;;  %v15786_v34 = vld [vmem:[#allocation17_spill] sm:$0xff]  ;;  %v11768_v25 = vld [vmem:[#allocation2 + $0x111] sm:$0xff] }
 0x18e   : > { %v1670_v14 = vpop.permute.xlu1 %1669  ;;  %3186 = vst.msk [vmem:[#allocation2 + $0xc0] sm:$0xff] %vm366_vm0, %v15741_v6  ;;  %3187 = vst.msk [vmem:[#allocation2 + $0xc8] sm:$0xff] %vm366_vm0, %v15741_v6  ;;  %v11765_v36 = vld [vmem:[#allocation2 + $0x10a] sm:$0xff] }
 0x18f   : > { %1747 = vst.msk [vmem:[#allocation3 + $0x98] sm:$0xff] %vm1727_vm5, %v1670_v14  ;;  %v1676_v43 = vpop.permute.xlu0 %1675  ;;  %v11717_v14 = vld [vmem:[#allocation2 + $0xda] sm:$0xff] }
 0x190   : > { %2044 = vrot.lane.b32.xlu1 %v10979_v33, %s10448_s21  ;;  %1750 = vst.msk [vmem:[#allocation3 + $0xb0] sm:$0xff] %vm1727_vm5, %v1676_v43  ;;  %v11715_v33 = vld [vmem:[#allocation2 + $0xd9] sm:$0xff]  ;;  %v11724_v43 = vld [vmem:[#allocation2 + $0xe2] sm:$0xff] }
 0x191   : > { %3235 = vst.msk [vmem:[#allocation2 + $0xca] sm:$0xff] %vm366_vm0, %v15786_v34  ;;  %3234 = vst.msk [vmem:[#allocation2 + $0xc2] sm:$0xff] %vm366_vm0, %v15787_v47  ;;  %2050 = vrot.lane.b32.xlu0 %v10991_v29, %s10448_s21  ;;  %v15788_v29 = vld [vmem:[#allocation19_spill] sm:$0xff] }
 0x192   : > { %v1674_v2 = vpop.permute.xlu1 %1673  ;;  %3189 = vst.msk [vmem:[#allocation2 + $0xd8] sm:$0xff] %vm366_vm0, %v15741_v6  ;;  %3190 = vst.msk [vmem:[#allocation2 + $0xe0] sm:$0xff] %vm366_vm0, %v15741_v6  ;;  %v11741_v34 = vld [vmem:[#allocation2 + $0xf2] sm:$0xff] }
 0x193   : > { %1749 = vst.msk [vmem:[#allocation3 + $0xa8] sm:$0xff] %vm1727_vm5, %v1674_v2  ;;  %v1680_v38 = vpop.permute.xlu0 %1679  ;;  %v15789_v2 = vld [vmem:[#allocation18_spill] sm:$0xff]  ;;  %v11744_v47 = vld [vmem:[#allocation2 + $0xf9] sm:$0xff] }
 0x194   : > { %2048 = vrot.lane.b32.xlu1 %v10983_v28, %s10448_s21  ;;  %3191 = vst.msk [vmem:[#allocation2 + $0xe8] sm:$0xf] %vm832_vm1, %v15741_v6  ;;  %v11739_v28 = vld [vmem:[#allocation2 + $0xf1] sm:$0xff] }
 0x195   : > { %1752 = vst.msk [vmem:[#allocation3 + $0xc0] sm:$0xff] %vm1727_vm5, %v1680_v38  ;;  %2054 = vrot.lane.b32.xlu0 %v10995_v24, %s10448_s21  ;;  %v11748_v38 = vld [vmem:[#allocation2 + $0xfa] sm:$0xff]  ;;  %v15790_v24 = vld [vmem:[#allocation21_spill] sm:$0xff] }
 0x196   : > { %3237 = vst.msk [vmem:[#allocation2 + $0xe2] sm:$0xff] %vm366_vm0, %v15788_v29  ;;  %3236 = vst.msk [vmem:[#allocation2 + $0xda] sm:$0xff] %vm366_vm0, %v15789_v2  ;;  %v1678_v37 = vpop.permute.xlu1 %1677 }
 0x197   : > { %1751 = vst.msk [vmem:[#allocation3 + $0xb8] sm:$0xff] %vm1727_vm5, %v1678_v37  ;;  %v1684_v29 = vpop.permute.xlu0 %1683  ;;  %v15791_v37 = vld [vmem:[#allocation20_spill] sm:$0xff] }
 0x198   : > { %3192 = vst.msk [vmem:[#allocation2 + $0xf0] sm:$0xff] %vm366_vm0, %v15741_v6  ;;  %2052 = vrot.lane.b32.xlu1 %v10993_v23, %s10448_s21  ;;  %3193 = vst.msk [vmem:[#allocation2 + $0xf8] sm:$0xff] %vm366_vm0, %v15741_v6  ;;  %v11763_v23 = vld [vmem:[#allocation2 + $0x109] sm:$0xff] }
 0x199   : > { %3194 = vst.msk [vmem:[#allocation2 + $0x100] sm:$0xf] %vm832_vm1, %v15741_v6  ;;  %2058 = vrot.lane.b32.xlu0 %v11013_v19, %s10448_s21  ;;  %v15792_v19 = vld [vmem:[#allocation23_spill] sm:$0xff] }
 0x19a   : > { %1754 = vst.msk [vmem:[#allocation3 + $0xd0] sm:$0xff] %vm1727_vm5, %v1684_v29  ;;  %v1682_v2 = vpop.permute.xlu1 %1681  ;;  %v11772_v29 = vld [vmem:[#allocation2 + $0x112] sm:$0xff] }
 0x19b   : > { %3239 = vst.msk [vmem:[#allocation2 + $0xfa] sm:$0xff] %vm366_vm0, %v15790_v24  ;;  %3238 = vst.msk [vmem:[#allocation2 + $0xf2] sm:$0xff] %vm366_vm0, %v15791_v37  ;;  %v1688_v24 = vpop.permute.xlu0 %1687 }
 0x19c   : > { %1753 = vst.msk [vmem:[#allocation3 + $0xc8] sm:$0xff] %vm1727_vm5, %v1682_v2  ;;  %2056 = vrot.lane.b32.xlu1 %v11005_v21, %s10448_s21  ;;  %1756 = vst.msk [vmem:[#allocation3 + $0xe0] sm:$0xff] %vm1727_vm5, %v1688_v24  ;;  %v15793_v2 = vld [vmem:[#allocation22_spill] sm:$0xff]  ;;  %v11787_v21 = vld [vmem:[#allocation2 + $0x121] sm:$0xff] }
 0x19d   : > { %3195 = vst.msk [vmem:[#allocation2 + $0x108] sm:$0xff] %vm366_vm0, %v15741_v6  ;;  %3196 = vst.msk [vmem:[#allocation2 + $0x110] sm:$0xff] %vm366_vm0, %v15741_v6  ;;  %2062 = vrot.lane.b32.xlu0 %v11029_v15, %s10448_s21  ;;  %v11796_v24 = vld [vmem:[#allocation2 + $0x12a] sm:$0xff] }
 0x19e   : > { %3197 = vst.msk [vmem:[#allocation2 + $0x118] sm:$0xf] %vm832_vm1, %v15741_v6  ;;  %v1686_v37 = vpop.permute.xlu1 %1685  ;;  %3200 = vst.msk [vmem:[#allocation2 + $0x130] sm:$0xf] %vm832_vm1, %v15741_v6  ;;  %v15794_v15 = vld [vmem:[#allocation25_spill] sm:$0xff] }
 0x19f   : > { %3241 = vst.msk [vmem:[#allocation2 + $0x112] sm:$0xff] %vm366_vm0, %v15792_v19  ;;  %3240 = vst.msk [vmem:[#allocation2 + $0x10a] sm:$0xff] %vm366_vm0, %v15793_v2  ;;  %v1692_v19 = vpop.permute.xlu0 %1691 }
 0x1a0   : > { %1755 = vst.msk [vmem:[#allocation3 + $0xd8] sm:$0xff] %vm1727_vm5, %v1686_v37  ;;  %2060 = vrot.lane.b32.xlu1 %v11015_v20, %s10448_s21  ;;  %1758 = vst.msk [vmem:[#allocation3 + $0xf0] sm:$0xff] %vm1727_vm5, %v1692_v19  ;;  %v15795_v37 = vld [vmem:[#allocation24_spill] sm:$0xff] }
 0x1a1   : > { %3198 = vst.msk [vmem:[#allocation2 + $0x120] sm:$0xff] %vm366_vm0, %v15741_v6  ;;  %3199 = vst.msk [vmem:[#allocation2 + $0x128] sm:$0xff] %vm366_vm0, %v15741_v6  ;;  %2066 = vrot.lane.b32.xlu0 %v11045_v11, %s10448_s21  ;;  %v11811_v20 = vld [vmem:[#allocation2 + $0x139] sm:$0xff]  ;;  %v11820_v19 = vld [vmem:[#allocation2 + $0x142] sm:$0xff] }
 0x1a2   : > { %3243 = vst.msk [vmem:[#allocation2 + $0x12a] sm:$0xff] %vm366_vm0, %v15794_v15  ;;  %3242 = vst.msk [vmem:[#allocation2 + $0x122] sm:$0xff] %vm366_vm0, %v15795_v37  ;;  %v1690_v2 = vpop.permute.xlu1 %1689  ;;  %v15797_v11 = vld [vmem:[#allocation27_spill] sm:$0xff] }
 0x1a3   : > { %1757 = vst.msk [vmem:[#allocation3 + $0xe8] sm:$0xff] %vm1727_vm5, %v1690_v2  ;;  %15796 = vst [vmem:[#allocation36_spill] sm:$0xff] %v11820_v19  ;;  %v1825_v15 = vpop.permute.xlu0 %1824  ;;  %v15798_v2 = vld [vmem:[#allocation26_spill] sm:$0xff] }
 0x1a4   : > { %3201 = vst.msk [vmem:[#allocation2 + $0x138] sm:$0xff] %vm366_vm0, %v15741_v6  ;;  %2064 = vrot.lane.b32.xlu1 %v11031_v16, %s10448_s21  ;;  %3202 = vst.msk [vmem:[#allocation2 + $0x140] sm:$0xff] %vm366_vm0, %v15741_v6  ;;  %v11835_v16 = vld [vmem:[#allocation2 + $0x151] sm:$0xff] }
 0x1a5   : > { %3203 = vst.msk [vmem:[#allocation2 + $0x148] sm:$0xf] %vm832_vm1, %v15741_v6  ;;  %2070 = vrot.lane.b32.xlu0 %v11061_v5, %s10448_s21  ;;  %v15801_v5 = vld [vmem:[#allocation29_spill] sm:$0xff] }
 0x1a6   : > { %1921 = vst.msk [vmem:[#allocation3] sm:$0xff] %vm1920_vm6, %v1825_v15  ;;  %v1694_v37 = vpop.permute.xlu1 %1693  ;;  %v11844_v15 = vld [vmem:[#allocation2 + $0x15a] sm:$0xff] }
 0x1a7   : > { %3245 = vst.msk [vmem:[#allocation2 + $0x142] sm:$0xff] %vm366_vm0, %v15797_v11  ;;  %3244 = vst.msk [vmem:[#allocation2 + $0x13a] sm:$0xff] %vm366_vm0, %v15798_v2  ;;  %v15800_v11 = vld [vmem:[#allocation37_spill] sm:$0xff]  ;;  %v1829_v2 = vpop.permute.xlu0 %1828 }
 0x1a8   : > { %1759 = vst.msk [vmem:[#allocation3 + $0xf8] sm:$0xff] %vm1727_vm5, %v1694_v37  ;;  %15799 = vst [vmem:[#allocation38_spill] sm:$0xff] %v11844_v15  ;;  %2068 = vrot.lane.b32.xlu1 %v15800_v11, %s10448_s21  ;;  %v15802_v37 = vld [vmem:[#allocation28_spill] sm:$0xff]  ;;  %v11859_v11 = vld [vmem:[#allocation2 + $0x169] sm:$0xff] }
 0x1a9   : > { %3204 = vst.msk [vmem:[#allocation2 + $0x150] sm:$0xff] %vm366_vm0, %v15741_v6  ;;  %3205 = vst.msk [vmem:[#allocation2 + $0x158] sm:$0xff] %vm366_vm0, %v15741_v6  ;;  %2074 = vrot.lane.b32.xlu0 %v15803_v17, %s10448_s21  ;;  %v15808_v17 = vld [vmem:[#allocation30_spill] sm:$0xff] }
 0x1aa   : > { %3206 = vst.msk [vmem:[#allocation2 + $0x160] sm:$0xf] %vm832_vm1, %v15741_v6  ;;  %v1827_v61 = vpop.permute.xlu1 %1826 }
 0x1ab   : > { %1923 = vst.msk [vmem:[#allocation3 + $0x10] sm:$0xff] %vm1920_vm6, %v1829_v2  ;;  %1922 = vst.msk [vmem:[#allocation3 + $0x8] sm:$0xff] %vm1920_vm6, %v1827_v61  ;;  %v11868_v2 = vld [vmem:[#allocation2 + $0x172] sm:$0xff] }
 0x1ac   : > { %3247 = vst.msk [vmem:[#allocation2 + $0x15a] sm:$0xff] %vm366_vm0, %v15801_v5  ;;  %3246 = vst.msk [vmem:[#allocation2 + $0x152] sm:$0xff] %vm366_vm0, %v15802_v37  ;;  %v15806_v5 = vld [vmem:[#allocation39_spill] sm:$0xff]  ;;  %v1833_v37 = vpop.permute.xlu0 %1832 }
 0x1ad   : > { %3207 = vst.msk [vmem:[#allocation2 + $0x168] sm:$0xff] %vm366_vm0, %v15741_v6  ;;  %15805 = vst [vmem:[#allocation41_spill] sm:$0xff] %v11868_v2  ;;  %2072 = vrot.lane.b32.xlu1 %v15806_v5, %s10448_s21  ;;  %v15807_v61 = vld [vmem:[#allocation31_spill] sm:$0xff]  ;;  %2078 = vrot.lane.b32.xlu0 %v1984_v40, %s10448_s21  ;;  %v11893_v40 = vld [vmem:[#allocation2 + $0x1a1] sm:$0xff] }
 0x1ae   : > { %3208 = vst.msk [vmem:[#allocation2 + $0x170] sm:$0xff] %vm366_vm0, %v15741_v6  ;;  %v1831_v15 = vpop.permute.xlu1 %1830  ;;  %v15809_v5 = vld [vmem:[#allocation71_spill] sm:$0xff] }
 0x1af   : > { %3209 = vst.msk [vmem:[#allocation2 + $0x178] sm:$0xf] %vm832_vm1, %v15741_v6 }
 0x1b0   : > { %1925 = vst.msk [vmem:[#allocation3 + $0x20] sm:$0xff] %vm1920_vm6, %v1833_v37  ;;  %1924 = vst.msk [vmem:[#allocation3 + $0x18] sm:$0xff] %vm1920_vm6, %v1831_v15  ;;  %v1837_v2 = vpop.permute.xlu0 %1836  ;;  %v11888_v37 = vld [vmem:[#allocation2 + $0x199] sm:$0xff]  ;;  %v11897_v15 = vld [vmem:[#allocation2 + $0x1a2] sm:$0xff] }
 0x1b1   : > { %3249 = vst.msk [vmem:[#allocation2 + $0x172] sm:$0xff] %vm366_vm0, %v15807_v61  ;;  %3248 = vst.msk [vmem:[#allocation2 + $0x16a] sm:$0xff] %vm366_vm0, %v15808_v17  ;;  %2076 = vrot.lane.b32.xlu1 %v15809_v5, %s10448_s21  ;;  %2211 = vrot.lane.b32.xlu0 %v11547_v3, %s10449_s22  ;;  %v11890_v61 = vld [vmem:[#allocation2 + $0x19a] sm:$0xff]  ;;  %v15810_v3 = vld [vmem:[#allocation42_spill] sm:$0xff] }
 0x1b2   : > { %1927 = vst.msk [vmem:[#allocation3 + $0x30] sm:$0xff] %vm1920_vm6, %v1837_v2  ;;  %v1835_v19 = vpop.permute.xlu1 %1834 }
 0x1b3   : > { %1926 = vst.msk [vmem:[#allocation3 + $0x28] sm:$0xff] %vm1920_vm6, %v1835_v19  ;;  %v15811_v19 = vld [vmem:[#allocation43_spill] sm:$0xff] }
 0x1b4   : > { %3213 = vst.msk [vmem:[#allocation2 + $0x198] sm:$0xff] %vm366_vm0, %v15741_v6  ;;  %v1841_v2 = vpop.permute.xlu0 %1840  ;;  %3214 = vst.msk [vmem:[#allocation2 + $0x1a0] sm:$0xff] %vm366_vm0, %v15741_v6 }
 0x1b5   : > { %2080 = vrot.lane.b32.xlu1 %v1985_v58, %s10448_s21  ;;  %3215 = vst.msk [vmem:[#allocation2 + $0x1a8] sm:$0xf] %vm832_vm1, %v15741_v6  ;;  %2215 = vrot.lane.b32.xlu0 %v11571_v56, %s10449_s22 }
 0x1b6   : > { %1929 = vst.msk [vmem:[#allocation3 + $0x40] sm:$0xff] %vm1920_vm6, %v1841_v2  ;;  %v1839_v5 = vpop.permute.xlu1 %1838 }
 0x1b7   : > { %3252 = vst.msk [vmem:[#allocation2 + $0x19a] sm:$0xff] %vm366_vm0, %v15810_v3  ;;  %3253 = vst.msk [vmem:[#allocation2 + $0x1a2] sm:$0xff] %vm366_vm0, %v15811_v19 }
 0x1b8   : > { %1928 = vst.msk [vmem:[#allocation3 + $0x38] sm:$0xff] %vm1920_vm6, %v1839_v5  ;;  %v1845_v58 = vpop.permute.xlu0 %1844 }
 0x1b9   : > { %2213 = vrot.lane.b32.xlu1 %v11552_v46, %s10449_s22  ;;  %1931 = vst.msk [vmem:[#allocation3 + $0x50] sm:$0xff] %vm1920_vm6, %v1845_v58  ;;  %2219 = vrot.lane.b32.xlu0 %v11595_v59, %s10449_s22 }
 0x1ba   : > { %v1843_v6 = vpop.permute.xlu1 %1842 }
 0x1bb   : > { %1930 = vst.msk [vmem:[#allocation3 + $0x48] sm:$0xff] %vm1920_vm6, %v1843_v6  ;;  %v2568_v6 = vld [vmem:[%s15543_s3 + $0x18] sm:$0xff] }
 0x1bc   : > { %v1849_v2 = vpop.permute.xlu0 %1848 }
 0x1bd   : > { %2217 = vrot.lane.b32.xlu1 %v11576_v52, %s10449_s22  ;;  %1933 = vst.msk [vmem:[#allocation3 + $0x60] sm:$0xff] %vm1920_vm6, %v1849_v2  ;;  %2223 = vrot.lane.b32.xlu0 %v11619_v62, %s10449_s22 }
 0x1be   : > { %v1847_v56 = vpop.permute.xlu1 %1846 }
 0x1bf   : > { %1932 = vst.msk [vmem:[#allocation3 + $0x58] sm:$0xff] %vm1920_vm6, %v1847_v56  ;;  %v2569_v56 = vld [vmem:[%s15543_s3 + $0x20] sm:$0xf] }
 0x1c0   : > { %v1853_v46 = vpop.permute.xlu0 %1852 }
 0x1c1   : > { %2221 = vrot.lane.b32.xlu1 %v11600_v13, %s10449_s22  ;;  %1935 = vst.msk [vmem:[#allocation3 + $0x70] sm:$0xff] %vm1920_vm6, %v1853_v46  ;;  %2227 = vrot.lane.b32.xlu0 %v11643_v7, %s10449_s22 }
 0x1c2   : > { %v1851_v59 = vpop.permute.xlu1 %1850 }
 0x1c3   : > { %1934 = vst.msk [vmem:[#allocation3 + $0x68] sm:$0xff] %vm1920_vm6, %v1851_v59 }
 0x1c4   : > { %v1857_v52 = vpop.permute.xlu0 %1856 }
 0x1c5   : > { %2225 = vrot.lane.b32.xlu1 %v11624_v30, %s10449_s22  ;;  %1937 = vst.msk [vmem:[#allocation3 + $0x80] sm:$0xff] %vm1920_vm6, %v1857_v52  ;;  %2231 = vrot.lane.b32.xlu0 %v11667_v49, %s10449_s22 }
 0x1c6   : > { %v1855_v62 = vpop.permute.xlu1 %1854 }
 0x1c7   : > { %1936 = vst.msk [vmem:[#allocation3 + $0x78] sm:$0xff] %vm1920_vm6, %v1855_v62  ;;  %v15813_v62 = vld [vmem:[#allocation40_spill] sm:$0xff] }
 0x1c8   : > { %v1861_v13 = vpop.permute.xlu0 %1860 }
 0x1c9   : > { %2229 = vrot.lane.b32.xlu1 %v11648_v42, %s10449_s22  ;;  %1939 = vst.msk [vmem:[#allocation3 + $0x90] sm:$0xff] %vm1920_vm6, %v1861_v13  ;;  %2235 = vrot.lane.b32.xlu0 %v11691_v35, %s10449_s22 }
 0x1ca   : > { %v1859_v7 = vpop.permute.xlu1 %1858 }
 0x1cb   : > { %1938 = vst.msk [vmem:[#allocation3 + $0x88] sm:$0xff] %vm1920_vm6, %v1859_v7  ;;  %v15815_v7 = vld [vmem:[#allocation72_spill] sm:$0xff] }
 0x1cc   : > { %v1865_v30 = vpop.permute.xlu0 %1864 }
 0x1cd   : > { %2233 = vrot.lane.b32.xlu1 %v11672_v51, %s10449_s22  ;;  %1941 = vst.msk [vmem:[#allocation3 + $0xa0] sm:$0xff] %vm1920_vm6, %v1865_v30  ;;  %2239 = vrot.lane.b32.xlu0 %v11715_v33, %s10449_s22  ;;  %v15816_v30 = vld [vmem:[#allocation41_spill] sm:$0xff] }
 0x1ce   : > { %v1863_v49 = vpop.permute.xlu1 %1862 }
 0x1cf   : > { %1940 = vst.msk [vmem:[#allocation3 + $0x98] sm:$0xff] %vm1920_vm6, %v1863_v49 }
 0x1d0   : > { %v1869_v42 = vpop.permute.xlu0 %1868 }
 0x1d1   : > { %2237 = vrot.lane.b32.xlu1 %v11696_v32, %s10449_s22  ;;  %1943 = vst.msk [vmem:[#allocation3 + $0xb0] sm:$0xff] %vm1920_vm6, %v1869_v42  ;;  %2243 = vrot.lane.b32.xlu0 %v11739_v28, %s10449_s22 }
 0x1d2   : > { %v1867_v35 = vpop.permute.xlu1 %1866 }
 0x1d3   : > { %1942 = vst.msk [vmem:[#allocation3 + $0xa8] sm:$0xff] %vm1920_vm6, %v1867_v35  ;;  %v365_v35 = vld [vmem:[%s15541_s1] sm:$0xf] }
 0x1d4   : > { %v1873_v51 = vpop.permute.xlu0 %1872  ;;  %10133 = vmatprep.subr.msk.mxu0 %vm463_vm8, %v365_v35 }
 0x1d5   : > { %2241 = vrot.lane.b32.xlu1 %v11720_v54, %s10449_s22  ;;  %1945 = vst.msk [vmem:[#allocation3 + $0xc0] sm:$0xff] %vm1920_vm6, %v1873_v51  ;;  %2247 = vrot.lane.b32.xlu0 %v11763_v23, %s10449_s22  ;;  %v15817_v51 = vld [vmem:[#allocation73_spill] sm:$0xff] }
 0x1d6   : > { %v1871_v33 = vpop.permute.xlu1 %1870  ;;  %10134 = vmatpush3.msk.msra.mxu0 %vm463_vm8, %v365_v35 }
 0x1d7   : > { %1944 = vst.msk [vmem:[#allocation3 + $0xb8] sm:$0xff] %vm1920_vm6, %v1871_v33 }
 0x1d8   : > { %v1877_v32 = vpop.permute.xlu0 %1876 }
 0x1d9   : > { %2245 = vrot.lane.b32.xlu1 %v11744_v47, %s10449_s22  ;;  %1947 = vst.msk [vmem:[#allocation3 + $0xd0] sm:$0xff] %vm1920_vm6, %v1877_v32  ;;  %2251 = vrot.lane.b32.xlu0 %v11787_v21, %s10449_s22 }
 0x1da   : > { %v1875_v28 = vpop.permute.xlu1 %1874 }
 0x1db   : > { %1946 = vst.msk [vmem:[#allocation3 + $0xc8] sm:$0xff] %vm1920_vm6, %v1875_v28  ;;  %v15818_v28 = vld [vmem:[#allocation5_spill] sm:$0xff] }
 0x1dc   : > { %v1881_v54 = vpop.permute.xlu0 %1880  ;;  %10136 = vmatmul.mubr.msk.f32.vlgmr.msra.gmra.mrb[0].mxu0 %vm366_vm0, %v15818_v28 }
 0x1dd   : > { %2249 = vrot.lane.b32.xlu1 %v11768_v25, %s10449_s22  ;;  %1949 = vst.msk [vmem:[#allocation3 + $0xe0] sm:$0xff] %vm1920_vm6, %v1881_v54  ;;  %2255 = vrot.lane.b32.xlu0 %v11811_v20, %s10449_s22 }
 0x1de   : > { %v1879_v23 = vpop.permute.xlu1 %1878 }
 0x1df   : > { %1948 = vst.msk [vmem:[#allocation3 + $0xd8] sm:$0xff] %vm1920_vm6, %v1879_v23 }
 0x1e0   : > { %v1885_v47 = vpop.permute.xlu0 %1884 }
 0x1e1   : > { %2253 = vrot.lane.b32.xlu1 %v11792_v48, %s10449_s22  ;;  %1951 = vst.msk [vmem:[#allocation3 + $0xf0] sm:$0xff] %vm1920_vm6, %v1885_v47  ;;  %2259 = vrot.lane.b32.xlu0 %v11835_v16, %s10449_s22  ;;  %v2565_v48 = vld [vmem:[%s15543_s3] sm:$0xff]  ;;  %v2566_v16 = vld [vmem:[%s15543_s3 + $0x8] sm:$0xff]  ;;  %v15820_v47 = vld [vmem:[#allocation7_spill] sm:$0xff] }
 0x1e2   : > { %v1883_v21 = vpop.permute.xlu1 %1882  ;;  %v10365_v5 = vpack.c.bf16 %v2566_v16, %v2565_v48  ;;  %v15822_v48 = vld [vmem:[#allocation9_spill] sm:$0xff] }
 0x1e3   : > { %1950 = vst.msk [vmem:[#allocation3 + $0xe8] sm:$0xff] %vm1920_vm6, %v1883_v21  ;;  %v15821_v21 = vld [vmem:[#allocation8_spill] sm:$0xff] }
 0x1e4   : > { %v2019_v25 = vpop.permute.xlu0 %2018  ;;  %10366 = vmatprep.subr.bf16.mxu1 %v10365_v5 }
 0x1e5   : > { %2257 = vrot.lane.b32.xlu1 %v11816_v1, %s10449_s22  ;;  %2115 = vst.msk [vmem:[#allocation3] sm:$0xff] %vm2114_vm7, %v2019_v25  ;;  %2263 = vrot.lane.b32.xlu0 %v11859_v11, %s10449_s22  ;;  %v2567_v11 = vld [vmem:[%s15543_s3 + $0x10] sm:$0xff] }
 0x1e6   : > { %v1887_v20 = vpop.permute.xlu1 %1886  ;;  %10368 = vmatpush3.bf16.msra.mxu1 %v10365_v5 }
 0x1e7   : > { %1952 = vst.msk [vmem:[#allocation3 + $0xf8] sm:$0xff] %vm1920_vm6, %v1887_v20 }
 0x1e8   : > { %v2023_v1 = vpop.permute.xlu0 %2022 }
 0x1e9   : > { %2261 = vrot.lane.b32.xlu1 %v11840_v26, %s10449_s22  ;;  %2117 = vst.msk [vmem:[#allocation3 + $0x10] sm:$0xff] %vm2114_vm7, %v2023_v1  ;;  %2267 = vrot.lane.b32.xlu0 %v11331_v4, %s10449_s22  ;;  %v10369_v26 = vpack.c.bf16 %v2568_v6, %v2567_v11  ;;  %v15824_v1 = vld [vmem:[#allocation11_spill] sm:$0xff] }
 0x1ea   : > { %v2021_v58 = vpop.permute.xlu1 %2020 }
 0x1eb   : > { %2116 = vst.msk [vmem:[#allocation3 + $0x8] sm:$0xff] %vm2114_vm7, %v2021_v58  ;;  %10370 = vmatprep.subr.bf16.mxu1 %v10369_v26  ;;  %v15825_v58 = vld [vmem:[#allocation12_spill] sm:$0xff] }
 0x1ec   : > { %v2027_v2 = vpop.permute.xlu0 %2026  ;;  %10372 = vmatpush3.bf16.msra.mxu1 %v10369_v26  ;;  %v15826_v26 = vld [vmem:[#allocation13_spill] sm:$0xff] }
 0x1ed   : > { %2265 = vrot.lane.b32.xlu1 %v11864_v12, %s10449_s22  ;;  %2119 = vst.msk [vmem:[#allocation3 + $0x20] sm:$0xff] %vm2114_vm7, %v2027_v2  ;;  %2271 = vrot.lane.b32.xlu0 %v11888_v37, %s10449_s22  ;;  %v15827_v2 = vld [vmem:[#allocation14_spill] sm:$0xff] }
 0x1ee   : > { %v2025_v4 = vpop.permute.xlu1 %2024  ;;  %10191 = vmatprep.subr.msk.mxu1 %vm463_vm8, %v2569_v56 }
 0x1ef   : > { %2118 = vst.msk [vmem:[#allocation3 + $0x18] sm:$0xff] %vm2114_vm7, %v2025_v4 }
 0x1f0   : > { %v2031_v12 = vpop.permute.xlu0 %2030  ;;  %10192 = vmatpush3.msk.msra.mxu1 %vm463_vm8, %v2569_v56 }
 0x1f1   : > { %2269 = vrot.lane.b32.xlu1 %v11336_v53, %s10449_s22  ;;  %2121 = vst.msk [vmem:[#allocation3 + $0x30] sm:$0xff] %vm2114_vm7, %v2031_v12  ;;  %2404 = vrot.lane.b32.xlu0 %v11549_v45, %s10450_s15  ;;  %v15828_v12 = vld [vmem:[#allocation15_spill] sm:$0xff] }
 0x1f2   : > { %v2029_v46 = vpop.permute.xlu1 %2028 }
 0x1f3   : > { %2120 = vst.msk [vmem:[#allocation3 + $0x28] sm:$0xff] %vm2114_vm7, %v2029_v46  ;;  %v15829_v46 = vld [vmem:[#allocation16_spill] sm:$0xff] }
 0x1f4   : > { %v2035_v37 = vpop.permute.xlu0 %2034 }
 0x1f5   : > { %2273 = vrot.lane.b32.xlu1 %v11893_v40, %s10449_s22  ;;  %2123 = vst.msk [vmem:[#allocation3 + $0x40] sm:$0xff] %vm2114_vm7, %v2035_v37  ;;  %2408 = vrot.lane.b32.xlu0 %v11573_v60, %s10450_s15 }
 0x1f6   : > { %v2033_v53 = vpop.permute.xlu1 %2032 }
 0x1f7   : > { %2122 = vst.msk [vmem:[#allocation3 + $0x38] sm:$0xff] %vm2114_vm7, %v2033_v53 }
 0x1f8   : > { %v2039_v45 = vpop.permute.xlu0 %2038 }
 0x1f9   : > { %2406 = vrot.lane.b32.xlu1 %v11556_v55, %s10450_s15  ;;  %2125 = vst.msk [vmem:[#allocation3 + $0x50] sm:$0xff] %vm2114_vm7, %v2039_v45  ;;  %2412 = vrot.lane.b32.xlu0 %v11597_v18, %s10450_s15  ;;  %v15830_v45 = vld [vmem:[#allocation17_spill] sm:$0xff] }
 0x1fa   : > { %v2037_v59 = vpop.permute.xlu1 %2036 }
 0x1fb   : > { %2124 = vst.msk [vmem:[#allocation3 + $0x48] sm:$0xff] %vm2114_vm7, %v2037_v59  ;;  %v15831_v59 = vld [vmem:[#allocation18_spill] sm:$0xff] }
 0x1fc   : > { %v2043_v40 = vpop.permute.xlu0 %2042 }
 0x1fd   : > { %2410 = vrot.lane.b32.xlu1 %v11580_v22, %s10450_s15  ;;  %2127 = vst.msk [vmem:[#allocation3 + $0x60] sm:$0xff] %vm2114_vm7, %v2043_v40  ;;  %2416 = vrot.lane.b32.xlu0 %v11621_v10, %s10450_s15 }
 0x1fe   : > { %v2041_v60 = vpop.permute.xlu1 %2040 }
 0x1ff   : > { %2126 = vst.msk [vmem:[#allocation3 + $0x58] sm:$0xff] %vm2114_vm7, %v2041_v60 }
 0x200   : > { %v2047_v55 = vpop.permute.xlu0 %2046 }
 0x201   : > { %2414 = vrot.lane.b32.xlu1 %v11604_v50, %s10450_s15  ;;  %2129 = vst.msk [vmem:[#allocation3 + $0x70] sm:$0xff] %vm2114_vm7, %v2047_v55  ;;  %2420 = vrot.lane.b32.xlu0 %v11645_v9, %s10450_s15  ;;  %v15832_v55 = vld [vmem:[#allocation19_spill] sm:$0xff] }
 0x202   : > { %v2045_v18 = vpop.permute.xlu1 %2044 }
 0x203   : > { %2128 = vst.msk [vmem:[#allocation3 + $0x68] sm:$0xff] %vm2114_vm7, %v2045_v18  ;;  %v15833_v18 = vld [vmem:[#allocation20_spill] sm:$0xff] }
 0x204   : > { %v2051_v22 = vpop.permute.xlu0 %2050 }
 0x205   : > { %2418 = vrot.lane.b32.xlu1 %v11628_v31, %s10450_s15  ;;  %2131 = vst.msk [vmem:[#allocation3 + $0x80] sm:$0xff] %vm2114_vm7, %v2051_v22  ;;  %2424 = vrot.lane.b32.xlu0 %v11669_v44, %s10450_s15 }
 0x206   : > { %v2049_v10 = vpop.permute.xlu1 %2048 }
 0x207   : > { %2130 = vst.msk [vmem:[#allocation3 + $0x78] sm:$0xff] %vm2114_vm7, %v2049_v10 }
 0x208   : > { %v2055_v50 = vpop.permute.xlu0 %2054 }
 0x209   : > { %2422 = vrot.lane.b32.xlu1 %v11652_v41, %s10450_s15  ;;  %2133 = vst.msk [vmem:[#allocation3 + $0x90] sm:$0xff] %vm2114_vm7, %v2055_v50  ;;  %2428 = vrot.lane.b32.xlu0 %v11693_v27, %s10450_s15  ;;  %v15834_v50 = vld [vmem:[#allocation21_spill] sm:$0xff] }
 0x20a   : > { %v2053_v9 = vpop.permute.xlu1 %2052 }
 0x20b   : > { %2132 = vst.msk [vmem:[#allocation3 + $0x88] sm:$0xff] %vm2114_vm7, %v2053_v9  ;;  %v15835_v9 = vld [vmem:[#allocation22_spill] sm:$0xff] }
 0x20c   : > { %v2059_v31 = vpop.permute.xlu0 %2058 }
 0x20d   : > { %2426 = vrot.lane.b32.xlu1 %v11676_v57, %s10450_s15  ;;  %2135 = vst.msk [vmem:[#allocation3 + $0xa0] sm:$0xff] %vm2114_vm7, %v2059_v31  ;;  %2432 = vrot.lane.b32.xlu0 %v11717_v14, %s10450_s15 }
 0x20e   : > { %v2057_v44 = vpop.permute.xlu1 %2056 }
 0x20f   : > { %2134 = vst.msk [vmem:[#allocation3 + $0x98] sm:$0xff] %vm2114_vm7, %v2057_v44 }
 0x210   : > { %v2063_v41 = vpop.permute.xlu0 %2062 }
 0x211   : > { %2430 = vrot.lane.b32.xlu1 %v11700_v39, %s10450_s15  ;;  %2137 = vst.msk [vmem:[#allocation3 + $0xb0] sm:$0xff] %vm2114_vm7, %v2063_v41  ;;  %2436 = vrot.lane.b32.xlu0 %v11741_v34, %s10450_s15  ;;  %v15836_v41 = vld [vmem:[#allocation23_spill] sm:$0xff] }
 0x212   : > { %v2061_v27 = vpop.permute.xlu1 %2060 }
 0x213   : > { %2136 = vst.msk [vmem:[#allocation3 + $0xa8] sm:$0xff] %vm2114_vm7, %v2061_v27  ;;  %v15837_v27 = vld [vmem:[#allocation24_spill] sm:$0xff] }
 0x214   : > { %v2067_v57 = vpop.permute.xlu0 %2066 }
 0x215   : > { %2434 = vrot.lane.b32.xlu1 %v11724_v43, %s10450_s15  ;;  %2139 = vst.msk [vmem:[#allocation3 + $0xc0] sm:$0xff] %vm2114_vm7, %v2067_v57  ;;  %2440 = vrot.lane.b32.xlu0 %v11765_v36, %s10450_s15 }
 0x216   : > { %v2065_v14 = vpop.permute.xlu1 %2064 }
 0x217   : > { %2138 = vst.msk [vmem:[#allocation3 + $0xb8] sm:$0xff] %vm2114_vm7, %v2065_v14 }
 0x218   : > { %v2071_v39 = vpop.permute.xlu0 %2070 }
 0x219   : > { %2438 = vrot.lane.b32.xlu1 %v11748_v38, %s10450_s15  ;;  %2141 = vst.msk [vmem:[#allocation3 + $0xd0] sm:$0xff] %vm2114_vm7, %v2071_v39  ;;  %2444 = vrot.lane.b32.xlu0 %v11789_v0, %s10450_s15  ;;  %v15838_v39 = vld [vmem:[#allocation25_spill] sm:$0xff] }
 0x21a   : > { %v2069_v34 = vpop.permute.xlu1 %2068 }
 0x21b   : > { %2140 = vst.msk [vmem:[#allocation3 + $0xc8] sm:$0xff] %vm2114_vm7, %v2069_v34  ;;  %v15839_v34 = vld [vmem:[#allocation26_spill] sm:$0xff] }
 0x21c   : > { %v2075_v43 = vpop.permute.xlu0 %2074 }
 0x21d   : > { %2442 = vrot.lane.b32.xlu1 %v11772_v29, %s10450_s15  ;;  %2143 = vst.msk [vmem:[#allocation3 + $0xe0] sm:$0xff] %vm2114_vm7, %v2075_v43  ;;  %2448 = vrot.lane.b32.xlu0 %v11813_v8, %s10450_s15  ;;  %v15812_v29 = vld [vmem:[#allocation36_spill] sm:$0xff] }
 0x21f   : > { %v2073_v36 = vpop.permute.xlu1 %2072 }
 0x220   : > { %2142 = vst.msk [vmem:[#allocation3 + $0xd8] sm:$0xff] %vm2114_vm7, %v2073_v36  ;;  %v2079_v38 = vpop.permute.xlu0 %2078 }
 0x221   : > { %2446 = vrot.lane.b32.xlu1 %v11796_v24, %s10450_s15  ;;  %2145 = vst.msk [vmem:[#allocation3 + $0xf0] sm:$0xff] %vm2114_vm7, %v2079_v38  ;;  %2452 = vrot.lane.b32.xlu0 %v11837_v63, %s10450_s15  ;;  %v15814_v24 = vld [vmem:[#allocation38_spill] sm:$0xff]  ;;  %v15840_v38 = vld [vmem:[#allocation27_spill] sm:$0xff] }
 0x223   : > { %v2077_v0 = vpop.permute.xlu1 %2076 }
 0x224   : > { %2144 = vst.msk [vmem:[#allocation3 + $0xe8] sm:$0xff] %vm2114_vm7, %v2077_v0  ;;  %v2212_v52 = vpop.permute.xlu0 %2211  ;;  %v15841_v0 = vld [vmem:[#allocation28_spill] sm:$0xff] }
 0x225   : > { %2450 = vrot.lane.b32.xlu1 %v15812_v29, %s10450_s15  ;;  %2308 = vst.msk [vmem:[#allocation3] sm:$0xff] %vm2307_vm9, %v2212_v52  ;;  %2456 = vrot.lane.b32.xlu0 %v15813_v62, %s10450_s15 }
 0x227   : > { %v2081_v8 = vpop.permute.xlu1 %2080 }
 0x228   : > { %2146 = vst.msk [vmem:[#allocation3 + $0xf8] sm:$0xff] %vm2114_vm7, %v2081_v8  ;;  %v2216_v13 = vpop.permute.xlu0 %2215  ;;  %v15842_v8 = vld [vmem:[#allocation29_spill] sm:$0xff] }
 0x229   : > { %2454 = vrot.lane.b32.xlu1 %v15814_v24, %s10450_s15  ;;  %2310 = vst.msk [vmem:[#allocation3 + $0x10] sm:$0xff] %vm2307_vm9, %v2216_v13  ;;  %2460 = vrot.lane.b32.xlu0 %v15815_v7, %s10450_s15  ;;  %v15843_v13 = vld [vmem:[#allocation31_spill] sm:$0xff] }
 0x22b   : > { %v2214_v63 = vpop.permute.xlu1 %2213 }
 0x22c   : > { %2309 = vst.msk [vmem:[#allocation3 + $0x8] sm:$0xff] %vm2307_vm9, %v2214_v63  ;;  %v2220_v49 = vpop.permute.xlu0 %2219  ;;  %v15844_v63 = vld [vmem:[#allocation32_spill] sm:$0xff] }
 0x22d   : > { %2458 = vrot.lane.b32.xlu1 %v15816_v30, %s10450_s15  ;;  %2312 = vst.msk [vmem:[#allocation3 + $0x20] sm:$0xff] %vm2307_vm9, %v2220_v49  ;;  %2464 = vrot.lane.b32.xlu0 %v11890_v61, %s10450_s15  ;;  %v15819_v61 = vld [vmem:[#allocation6_spill] sm:$0xff]  ;;  %v15845_v49 = vld [vmem:[#allocation33_spill] sm:$0xff] }
 0x22e   : > { %10138 = vmatprep.mubr.msk.f32.mxu0 %vm366_vm0, %v15819_v61 }
 0x22f   : > { %v2218_v42 = vpop.permute.xlu1 %2217  ;;  %10139 = vmatmul.mubr.msk.f32.gmra.mrb[2].mxu0 %vm366_vm0, %v15820_v47 }
 0x230   : > { %2311 = vst.msk [vmem:[#allocation3 + $0x18] sm:$0xff] %vm2307_vm9, %v2218_v42  ;;  %v2224_v33 = vpop.permute.xlu0 %2223  ;;  %10141 = vmatprep.mubr.msk.f32.mxu0 %vm366_vm0, %v15821_v21 }
 0x231   : > { %2462 = vrot.lane.b32.xlu1 %v15817_v51, %s10450_s15  ;;  %2314 = vst.msk [vmem:[#allocation3 + $0x30] sm:$0xff] %vm2307_vm9, %v2224_v33 }
 0x233   : > { %v2222_v32 = vpop.permute.xlu1 %2221  ;;  %10142 = vmatmul.mubr.msk.f32.gmra.mrb[4].mxu0 %vm366_vm0, %v15822_v48 }
 0x234   : > { %2313 = vst.msk [vmem:[#allocation3 + $0x28] sm:$0xff] %vm2307_vm9, %v2222_v32  ;;  %v2228_v54 = vpop.permute.xlu0 %2227 }
 0x235   : > { %2466 = vrot.lane.b32.xlu1 %v11897_v15, %s10450_s15  ;;  %2316 = vst.msk [vmem:[#allocation3 + $0x40] sm:$0xff] %vm2307_vm9, %v2228_v54  ;;  %v15823_v15 = vld [vmem:[#allocation10_spill] sm:$0xff] }
 0x236   : > { %10144 = vmatprep.mubr.msk.f32.mxu0 %vm366_vm0, %v15823_v15 }
 0x237   : > { %v2226_v23 = vpop.permute.xlu1 %2225  ;;  %10145 = vmatmul.mubr.msk.f32.gmra.mrb[6].mxu0 %vm366_vm0, %v15824_v1 }
 0x238   : > { %2315 = vst.msk [vmem:[#allocation3 + $0x38] sm:$0xff] %vm2307_vm9, %v2226_v23  ;;  %v2232_v25 = vpop.permute.xlu0 %2231  ;;  %10147 = vmatprep.mubr.msk.f32.mxu0 %vm366_vm0, %v15825_v58 }
 0x239   : > { %2318 = vst.msk [vmem:[#allocation3 + $0x50] sm:$0xff] %vm2307_vm9, %v2232_v25 }
 0x23b   : > { %v2230_v20 = vpop.permute.xlu1 %2229  ;;  %10148 = vmatmul.mubr.msk.f32.gmra.mrb[8].mxu0 %vm366_vm0, %v15826_v26 }
 0x23c   : > { %2317 = vst.msk [vmem:[#allocation3 + $0x48] sm:$0xff] %vm2307_vm9, %v2230_v20  ;;  %v2236_v16 = vpop.permute.xlu0 %2235  ;;  %10150 = vmatprep.mubr.msk.f32.mxu0 %vm366_vm0, %v15827_v2 }
 0x23d   : > { %2320 = vst.msk [vmem:[#allocation3 + $0x60] sm:$0xff] %vm2307_vm9, %v2236_v16 }
 0x23f   : > { %v2234_v5 = vpop.permute.xlu1 %2233  ;;  %10151 = vmatmul.mubr.msk.f32.gmra.mrb[10].mxu0 %vm366_vm0, %v15828_v12 }
 0x240   : > { %2319 = vst.msk [vmem:[#allocation3 + $0x58] sm:$0xff] %vm2307_vm9, %v2234_v5  ;;  %v2240_v11 = vpop.permute.xlu0 %2239  ;;  %10153 = vmatprep.mubr.msk.f32.mxu0 %vm366_vm0, %v15829_v46 }
 0x241   : > { %2322 = vst.msk [vmem:[#allocation3 + $0x70] sm:$0xff] %vm2307_vm9, %v2240_v11 }
 0x243   : > { %v2238_v6 = vpop.permute.xlu1 %2237  ;;  %10154 = vmatmul.mubr.msk.f32.gmra.mrb[12].mxu0 %vm366_vm0, %v15830_v45 }
 0x244   : > { %2321 = vst.msk [vmem:[#allocation3 + $0x68] sm:$0xff] %vm2307_vm9, %v2238_v6  ;;  %v2244_v4 = vpop.permute.xlu0 %2243  ;;  %10156 = vmatprep.mubr.msk.f32.mxu0 %vm366_vm0, %v15831_v59 }
 0x245   : > { %2324 = vst.msk [vmem:[#allocation3 + $0x80] sm:$0xff] %vm2307_vm9, %v2244_v4 }
 0x247   : > { %v2242_v56 = vpop.permute.xlu1 %2241  ;;  %10157 = vmatmul.mubr.msk.f32.gmra.mrb[14].mxu0 %vm366_vm0, %v15832_v55 }
 0x248   : > { %2323 = vst.msk [vmem:[#allocation3 + $0x78] sm:$0xff] %vm2307_vm9, %v2242_v56  ;;  %v2248_v37 = vpop.permute.xlu0 %2247  ;;  %10159 = vmatprep.mubr.msk.f32.mxu0 %vm366_vm0, %v15833_v18 }
 0x249   : > { %2326 = vst.msk [vmem:[#allocation3 + $0x90] sm:$0xff] %vm2307_vm9, %v2248_v37 }
 0x24b   : > { %v2246_v53 = vpop.permute.xlu1 %2245  ;;  %10160 = vmatmul.mubr.msk.f32.gmra.mrb[16].mxu0 %vm366_vm0, %v15834_v50 }
 0x24c   : > { %2325 = vst.msk [vmem:[#allocation3 + $0x88] sm:$0xff] %vm2307_vm9, %v2246_v53  ;;  %v2252_v40 = vpop.permute.xlu0 %2251  ;;  %10162 = vmatprep.mubr.msk.f32.mxu0 %vm366_vm0, %v15835_v9 }
 0x24d   : > { %2328 = vst.msk [vmem:[#allocation3 + $0xa0] sm:$0xff] %vm2307_vm9, %v2252_v40 }
 0x24f   : > { %v2250_v60 = vpop.permute.xlu1 %2249  ;;  %10163 = vmatmul.mubr.msk.f32.gmra.mrb[18].mxu0 %vm366_vm0, %v15836_v41 }
 0x250   : > { %2327 = vst.msk [vmem:[#allocation3 + $0x98] sm:$0xff] %vm2307_vm9, %v2250_v60  ;;  %v2256_v22 = vpop.permute.xlu0 %2255  ;;  %10165 = vmatprep.mubr.msk.f32.mxu0 %vm366_vm0, %v15837_v27 }
 0x251   : > { %2330 = vst.msk [vmem:[#allocation3 + $0xb0] sm:$0xff] %vm2307_vm9, %v2256_v22 }
 0x253   : > { %v2254_v10 = vpop.permute.xlu1 %2253  ;;  %10166 = vmatmul.mubr.msk.f32.gmra.mrb[20].mxu0 %vm366_vm0, %v15838_v39  ;;  %v3536_v39 = vld [vmem:[#allocation2 + $0x13a] sm:$0xff] }
 0x254   : > { %2329 = vst.msk [vmem:[#allocation3 + $0xa8] sm:$0xff] %vm2307_vm9, %v2254_v10  ;;  %v2260_v31 = vpop.permute.xlu0 %2259  ;;  %10168 = vmatprep.mubr.msk.f32.mxu0 %vm366_vm0, %v15839_v34 }
 0x255   : > { %2332 = vst.msk [vmem:[#allocation3 + $0xc0] sm:$0xff] %vm2307_vm9, %v2260_v31 }
 0x257   : > { %v2258_v44 = vpop.permute.xlu1 %2257  ;;  %10169 = vmatmul.mubr.msk.f32.gmra.mrb[22].mxu0 %vm366_vm0, %v15840_v38  ;;  %v3514_v38 = vld [vmem:[#allocation2 + $0x32] sm:$0xff] }
 0x258   : > { %2331 = vst.msk [vmem:[#allocation3 + $0xb8] sm:$0xff] %vm2307_vm9, %v2258_v44  ;;  %v2264_v57 = vpop.permute.xlu0 %2263  ;;  %10171 = vmatprep.mubr.msk.f32.mxu0 %vm366_vm0, %v15841_v0 }
 0x259   : > { %2334 = vst.msk [vmem:[#allocation3 + $0xd0] sm:$0xff] %vm2307_vm9, %v2264_v57 }
 0x25b   : > { %v2262_v14 = vpop.permute.xlu1 %2261  ;;  %10172 = vmatmul.mubr.msk.f32.gmra.mrb[24].mxu0 %vm366_vm0, %v15842_v8  ;;  %v3512_v8 = vld [vmem:[#allocation2 + $0x1a] sm:$0xff] }
 0x25c   : > { %2333 = vst.msk [vmem:[#allocation3 + $0xc8] sm:$0xff] %vm2307_vm9, %v2262_v14  ;;  %v2268_v43 = vpop.permute.xlu0 %2267  ;;  %10174 = vmatprep.mubr.msk.f32.mxu0 %vm366_vm0, %v15808_v17  ;;  %v3348_v17 = vld [vmem:[#allocation2 + $0x169] sm:$0xff] }
 0x25d   : > { %2336 = vst.msk [vmem:[#allocation3 + $0xe0] sm:$0xff] %vm2307_vm9, %v2268_v43 }
 0x25f   : > { %v2266_v36 = vpop.permute.xlu1 %2265  ;;  %10175 = vmatmul.mubr.msk.f32.gmra.mrb[26].mxu0 %vm366_vm0, %v15843_v13  ;;  %v3346_v13 = vld [vmem:[#allocation2 + $0x151] sm:$0xff] }
 0x260   : > { %2335 = vst.msk [vmem:[#allocation3 + $0xd8] sm:$0xff] %vm2307_vm9, %v2266_v36  ;;  %v2272_v29 = vpop.permute.xlu0 %2271  ;;  %10177 = vmatprep.mubr.msk.f32.mxu0 %vm366_vm0, %v15844_v63 }
 0x261   : > { %2338 = vst.msk [vmem:[#allocation3 + $0xf0] sm:$0xff] %vm2307_vm9, %v2272_v29 }
 0x263   : > { %v2270_v52 = vpop.permute.xlu1 %2269  ;;  %10178 = vmatmul.mubr.msk.f32.gmra.mrb[28].mxu0 %vm366_vm0, %v15845_v49 }
 0x264   : > { %2337 = vst.msk [vmem:[#allocation3 + $0xe8] sm:$0xff] %vm2307_vm9, %v2270_v52  ;;  %v2405_v62 = vpop.permute.xlu0 %2404  ;;  %10180 = vmatprep.mubr.msk.f32.mxu0 %vm366_vm0, %v15810_v3  ;;  %v3344_v3 = vld [vmem:[#allocation2 + $0x139] sm:$0xff] }
 0x265   : > { %2501 = vst.msk [vmem:[#allocation3] sm:$0xff] %vm2500_vm10, %v2405_v62 }
 0x267   : > { %v2274_v24 = vpop.permute.xlu1 %2273  ;;  %10181 = vmatmul.mubr.msk.f32.gmra.mrb[30].mxu0 %vm366_vm0, %v15811_v19  ;;  %v12664_v19 = vld [vmem:[#allocation2 + $0x170] sm:$0xff] }
 0x268   : > { %2339 = vst.msk [vmem:[#allocation3 + $0xf8] sm:$0xff] %vm2307_vm9, %v2274_v24  ;;  %v2409_v7 = vpop.permute.xlu0 %2408 }
 0x269   : > { %2503 = vst.msk [vmem:[#allocation3 + $0x10] sm:$0xff] %vm2500_vm10, %v2409_v7 }
 0x26b   : > { %v2407_v30 = vpop.permute.xlu1 %2406 }
 0x26c   : > { %2502 = vst.msk [vmem:[#allocation3 + $0x8] sm:$0xff] %vm2500_vm10, %v2407_v30  ;;  %v2413_v42 = vpop.permute.xlu0 %2412  ;;  %v2533_v35 = vld [vmem:[#allocation3] sm:$0xff] }
 0x26d   : > { %2505 = vst.msk [vmem:[#allocation3 + $0x20] sm:$0xff] %vm2500_vm10, %v2413_v42  ;;  %10193 = vmatprep.mubr.msk.f32.mxu1 %vm2570_vm11, %v2533_v35 }
 0x26f   : > { %v2411_v51 = vpop.permute.xlu1 %2410 }
 0x270   : > { %2504 = vst.msk [vmem:[#allocation3 + $0x18] sm:$0xff] %vm2500_vm10, %v2411_v51  ;;  %v2417_v33 = vpop.permute.xlu0 %2416  ;;  %v2535_v32 = vld [vmem:[#allocation3 + $0x10] sm:$0xff] }
 0x271   : > { %2507 = vst.msk [vmem:[#allocation3 + $0x30] sm:$0xff] %vm2500_vm10, %v2417_v33 }
 0x273   : > { %v2415_v54 = vpop.permute.xlu1 %2414  ;;  %v2534_v23 = vld [vmem:[#allocation3 + $0x8] sm:$0xff] }
 0x274   : > { %2506 = vst.msk [vmem:[#allocation3 + $0x28] sm:$0xff] %vm2500_vm10, %v2415_v54  ;;  %10194 = vmatmul.mubr.msk.f32.vlgmr.msra.gmra.mrb[0].mxu1 %vm2570_vm11, %v2534_v23  ;;  %v2421_v25 = vpop.permute.xlu0 %2420  ;;  %v2537_v20 = vld [vmem:[#allocation3 + $0x20] sm:$0xff] }
 0x275   : > { %10196 = vmatprep.mubr.msk.f32.mxu1 %vm2570_vm11, %v2535_v32  ;;  %2509 = vst.msk [vmem:[#allocation3 + $0x40] sm:$0xff] %vm2500_vm10, %v2421_v25 }
 0x277   : > { %v2419_v16 = vpop.permute.xlu1 %2418  ;;  %v2536_v5 = vld [vmem:[#allocation3 + $0x18] sm:$0xff] }
 0x278   : > { %2508 = vst.msk [vmem:[#allocation3 + $0x38] sm:$0xff] %vm2500_vm10, %v2419_v16  ;;  %10197 = vmatmul.mubr.msk.f32.gmra.mrb[2].mxu1 %vm2570_vm11, %v2536_v5  ;;  %v2425_v11 = vpop.permute.xlu0 %2424  ;;  %v2539_v6 = vld [vmem:[#allocation3 + $0x30] sm:$0xff] }
 0x279   : > { %10199 = vmatprep.mubr.msk.f32.mxu1 %vm2570_vm11, %v2537_v20  ;;  %2511 = vst.msk [vmem:[#allocation3 + $0x50] sm:$0xff] %vm2500_vm10, %v2425_v11 }
 0x27b   : > { %v2423_v4 = vpop.permute.xlu1 %2422  ;;  %v2538_v56 = vld [vmem:[#allocation3 + $0x28] sm:$0xff] }
 0x27c   : > { %2510 = vst.msk [vmem:[#allocation3 + $0x48] sm:$0xff] %vm2500_vm10, %v2423_v4  ;;  %10200 = vmatmul.mubr.msk.f32.gmra.mrb[4].mxu1 %vm2570_vm11, %v2538_v56  ;;  %v2429_v37 = vpop.permute.xlu0 %2428  ;;  %v2541_v53 = vld [vmem:[#allocation3 + $0x40] sm:$0xff] }
 0x27d   : > { %10202 = vmatprep.mubr.msk.f32.mxu1 %vm2570_vm11, %v2539_v6  ;;  %2513 = vst.msk [vmem:[#allocation3 + $0x60] sm:$0xff] %vm2500_vm10, %v2429_v37 }
 0x27f   : > { %v2427_v40 = vpop.permute.xlu1 %2426  ;;  %v2540_v60 = vld [vmem:[#allocation3 + $0x38] sm:$0xff] }
 0x280   : > { %2512 = vst.msk [vmem:[#allocation3 + $0x58] sm:$0xff] %vm2500_vm10, %v2427_v40  ;;  %10203 = vmatmul.mubr.msk.f32.gmra.mrb[6].mxu1 %vm2570_vm11, %v2540_v60  ;;  %v2433_v22 = vpop.permute.xlu0 %2432  ;;  %v2543_v10 = vld [vmem:[#allocation3 + $0x50] sm:$0xff] }
 0x281   : > { %10205 = vmatprep.mubr.msk.f32.mxu1 %vm2570_vm11, %v2541_v53  ;;  %2515 = vst.msk [vmem:[#allocation3 + $0x70] sm:$0xff] %vm2500_vm10, %v2433_v22 }
 0x283   : > { %v2431_v31 = vpop.permute.xlu1 %2430  ;;  %v2542_v44 = vld [vmem:[#allocation3 + $0x48] sm:$0xff] }
 0x284   : > { %2514 = vst.msk [vmem:[#allocation3 + $0x68] sm:$0xff] %vm2500_vm10, %v2431_v31  ;;  %10206 = vmatmul.mubr.msk.f32.gmra.mrb[8].mxu1 %vm2570_vm11, %v2542_v44  ;;  %v2437_v57 = vpop.permute.xlu0 %2436  ;;  %v2545_v14 = vld [vmem:[#allocation3 + $0x60] sm:$0xff] }
 0x285   : > { %10208 = vmatprep.mubr.msk.f32.mxu1 %vm2570_vm11, %v2543_v10  ;;  %2517 = vst.msk [vmem:[#allocation3 + $0x80] sm:$0xff] %vm2500_vm10, %v2437_v57 }
 0x287   : > { %v2435_v43 = vpop.permute.xlu1 %2434  ;;  %v2544_v36 = vld [vmem:[#allocation3 + $0x58] sm:$0xff] }
 0x288   : > { %2516 = vst.msk [vmem:[#allocation3 + $0x78] sm:$0xff] %vm2500_vm10, %v2435_v43  ;;  %10209 = vmatmul.mubr.msk.f32.gmra.mrb[10].mxu1 %vm2570_vm11, %v2544_v36  ;;  %v2441_v29 = vpop.permute.xlu0 %2440  ;;  %v2547_v52 = vld [vmem:[#allocation3 + $0x70] sm:$0xff] }
 0x289   : > { %10211 = vmatprep.mubr.msk.f32.mxu1 %vm2570_vm11, %v2545_v14  ;;  %2519 = vst.msk [vmem:[#allocation3 + $0x90] sm:$0xff] %vm2500_vm10, %v2441_v29 }
 0x28b   : > { %v2439_v62 = vpop.permute.xlu1 %2438  ;;  %v2546_v24 = vld [vmem:[#allocation3 + $0x68] sm:$0xff] }
 0x28c   : > { %2518 = vst.msk [vmem:[#allocation3 + $0x88] sm:$0xff] %vm2500_vm10, %v2439_v62  ;;  %10212 = vmatmul.mubr.msk.f32.gmra.mrb[12].mxu1 %vm2570_vm11, %v2546_v24  ;;  %v2445_v7 = vpop.permute.xlu0 %2444  ;;  %v2549_v30 = vld [vmem:[#allocation3 + $0x80] sm:$0xff] }
 0x28d   : > { %10214 = vmatprep.mubr.msk.f32.mxu1 %vm2570_vm11, %v2547_v52  ;;  %2521 = vst.msk [vmem:[#allocation3 + $0xa0] sm:$0xff] %vm2500_vm10, %v2445_v7  ;;  %v12274_v62 = vld [vmem:[%s15542_s2] ss:$0 sm:$0xff]  ;;  %v12279_v24 = vld [vmem:[%s15542_s2 + $0x1] ss:$0 sm:$0xff] }
 0x28f   : > { %v2443_v42 = vpop.permute.xlu1 %2442  ;;  %v2548_v35 = vld [vmem:[#allocation3 + $0x78] sm:$0xff] }
 0x290   : > { %2520 = vst.msk [vmem:[#allocation3 + $0x98] sm:$0xff] %vm2500_vm10, %v2443_v42  ;;  %10215 = vmatmul.mubr.msk.f32.gmra.mrb[14].mxu1 %vm2570_vm11, %v2548_v35  ;;  %v2449_v51 = vpop.permute.xlu0 %2448  ;;  %v2551_v33 = vld [vmem:[#allocation3 + $0x90] sm:$0xff] }
 0x291   : > { %10217 = vmatprep.mubr.msk.f32.mxu1 %vm2570_vm11, %v2549_v30  ;;  %2523 = vst.msk [vmem:[#allocation3 + $0xb0] sm:$0xff] %vm2500_vm10, %v2449_v51 }
 0x293   : > { %v2447_v32 = vpop.permute.xlu1 %2446  ;;  %v2550_v54 = vld [vmem:[#allocation3 + $0x88] sm:$0xff] }
 0x294   : > { %2522 = vst.msk [vmem:[#allocation3 + $0xa8] sm:$0xff] %vm2500_vm10, %v2447_v32  ;;  %10218 = vmatmul.mubr.msk.f32.gmra.mrb[16].mxu1 %vm2570_vm11, %v2550_v54  ;;  %v2453_v23 = vpop.permute.xlu0 %2452  ;;  %v2553_v25 = vld [vmem:[#allocation3 + $0xa0] sm:$0xff] }
 0x295   : > { %10220 = vmatprep.mubr.msk.f32.mxu1 %vm2570_vm11, %v2551_v33  ;;  %2525 = vst.msk [vmem:[#allocation3 + $0xc0] sm:$0xff] %vm2500_vm10, %v2453_v23 }
 0x297   : > { %v2451_v20 = vpop.permute.xlu1 %2450  ;;  %v2552_v16 = vld [vmem:[#allocation3 + $0x98] sm:$0xff] }
 0x298   : > { %2524 = vst.msk [vmem:[#allocation3 + $0xb8] sm:$0xff] %vm2500_vm10, %v2451_v20  ;;  %10221 = vmatmul.mubr.msk.f32.gmra.mrb[18].mxu1 %vm2570_vm11, %v2552_v16  ;;  %v2457_v5 = vpop.permute.xlu0 %2456  ;;  %v2555_v11 = vld [vmem:[#allocation3 + $0xb0] sm:$0xff] }
 0x299   : > { %10223 = vmatprep.mubr.msk.f32.mxu1 %vm2570_vm11, %v2553_v25  ;;  %2527 = vst.msk [vmem:[#allocation3 + $0xd0] sm:$0xff] %vm2500_vm10, %v2457_v5 }
 0x29b   : > { %v2455_v6 = vpop.permute.xlu1 %2454  ;;  %v2554_v4 = vld [vmem:[#allocation3 + $0xa8] sm:$0xff] }
 0x29c   : > { %2526 = vst.msk [vmem:[#allocation3 + $0xc8] sm:$0xff] %vm2500_vm10, %v2455_v6  ;;  %10224 = vmatmul.mubr.msk.f32.gmra.mrb[20].mxu1 %vm2570_vm11, %v2554_v4  ;;  %v2461_v56 = vpop.permute.xlu0 %2460  ;;  %v2557_v37 = vld [vmem:[#allocation3 + $0xc0] sm:$0xff] }
 0x29d   : > { %10226 = vmatprep.mubr.msk.f32.mxu1 %vm2570_vm11, %v2555_v11  ;;  %2529 = vst.msk [vmem:[#allocation3 + $0xe0] sm:$0xff] %vm2500_vm10, %v2461_v56 }
 0x29f   : > { %v2459_v53 = vpop.permute.xlu1 %2458  ;;  %v2556_v40 = vld [vmem:[#allocation3 + $0xb8] sm:$0xff] }
 0x2a0   : > { %2528 = vst.msk [vmem:[#allocation3 + $0xd8] sm:$0xff] %vm2500_vm10, %v2459_v53  ;;  %10227 = vmatmul.mubr.msk.f32.gmra.mrb[22].mxu1 %vm2570_vm11, %v2556_v40  ;;  %v2465_v60 = vpop.permute.xlu0 %2464  ;;  %v2559_v22 = vld [vmem:[#allocation3 + $0xd0] sm:$0xff] }
 0x2a1   : > { %10229 = vmatprep.mubr.msk.f32.mxu1 %vm2570_vm11, %v2557_v37  ;;  %2531 = vst.msk [vmem:[#allocation3 + $0xf0] sm:$0xff] %vm2500_vm10, %v2465_v60  ;;  %v12310_v60 = vld [vmem:[%s15544_s4] ss:$0 sm:$0xff] }
 0x2a3   : > { %v2463_v10 = vpop.permute.xlu1 %2462  ;;  %v2558_v31 = vld [vmem:[#allocation3 + $0xc8] sm:$0xff] }
 0x2a4   : > { %2530 = vst.msk [vmem:[#allocation3 + $0xe8] sm:$0xff] %vm2500_vm10, %v2463_v10  ;;  %10230 = vmatmul.mubr.msk.f32.gmra.mrb[24].mxu1 %vm2570_vm11, %v2558_v31  ;;  %v2561_v44 = vld [vmem:[#allocation3 + $0xe0] sm:$0xff] }
 0x2a5   : > { %10232 = vmatprep.mubr.msk.f32.mxu1 %vm2570_vm11, %v2559_v22 }
 0x2a7   : > { %v2467_v57 = vpop.permute.xlu1 %2466  ;;  %v2560_v14 = vld [vmem:[#allocation3 + $0xd8] sm:$0xff] }
 0x2a8   : > { %2532 = vst.msk [vmem:[#allocation3 + $0xf8] sm:$0xff] %vm2500_vm10, %v2467_v57  ;;  %10233 = vmatmul.mubr.msk.f32.gmra.mrb[26].mxu1 %vm2570_vm11, %v2560_v14  ;;  %v2563_v43 = vld [vmem:[#allocation3 + $0xf0] sm:$0xff] }
 0x2a9   : > { %10235 = vmatprep.mubr.msk.f32.mxu1 %vm2570_vm11, %v2561_v44 }
 0x2ab   : > { %v2562_v36 = vld [vmem:[#allocation3 + $0xe8] sm:$0xff] }
 0x2ac   : > { %10236 = vmatmul.mubr.msk.f32.gmra.mrb[28].mxu1 %vm2570_vm11, %v2562_v36 }
 0x2ad   : > { %10238 = vmatprep.mubr.msk.f32.mxu1 %vm2570_vm11, %v2563_v43  ;;  %v12317_v43 = vld [vmem:[%s15544_s4 + $0x1] ss:$0 sm:$0xff] }
 0x2af   : > { %v2564_v29 = vld [vmem:[#allocation3 + $0xf8] sm:$0xff]  ;;  %v10137_v52 = vpop.f32.mrb[0].mxu0 }
 0x2b0   : > { %10239 = vmatmul.mubr.msk.f32.gmra.mrb[30].mxu1 %vm2570_vm11, %v2564_v29  ;;  %v698_v7 = vmul.f32 %v10137_v52, %v12274_v62  ;;  %v533_v30 = vpop.f32.mrb[1].mxu0  ;;  %3317 = vst.msk [vmem:[#allocation3 + $0xf8] sm:$0xff] %vm366_vm0, %v12664_v19  ;;  %vm7139_vm11 = vcmask 687744  }
 0x2b1   : > { %v697_v42 = vmul.f32 %v12274_v62, %v533_v30 }
 0x2b2   : > { %v735_v35 = vadd.f32 %v12279_v24, %v698_v7 }
 0x2b3   : > { %v734_v51 = vadd.f32 %v12279_v24, %v697_v42 }
 0x2b4   : > { %v767_v32 = vmax.f32 %v735_v35, 0.0 }
 0x2b5   : > { %v766_v25 = vmax.f32 %v734_v51, 0.0 }
 0x2b6   : > { %799 = vst.msk [vmem:[%s12289_s13 + $0x8] sm:$0xff] %vm366_vm0, %v767_v32 }
 0x2b7   : > { %798 = vst.msk [vmem:[%s12289_s13] sm:$0xff] %vm366_vm0, %v766_v25 }
 0x302   : > { %v10140_v33 = vpop.f32.mrb[2].mxu0 }
 0x303   : > { %v700_v54 = vmul.f32 %v10140_v33, %v12274_v62  ;;  %v543_v23 = vpop.f32.mrb[3].mxu0 }
 0x304   : > { %v699_v20 = vmul.f32 %v12274_v62, %v543_v23 }
 0x305   : > { %v737_v16 = vadd.f32 %v12279_v24, %v700_v54 }
 0x306   : > { %v736_v5 = vadd.f32 %v12279_v24, %v699_v20  ;;  %v10143_v4 = vpop.f32.mrb[4].mxu0 }
 0x307   : > { %v769_v11 = vmax.f32 %v737_v16, 0.0  ;;  %v702_v56 = vmul.f32 %v10143_v4, %v12274_v62  ;;  %v553_v37 = vpop.f32.mrb[5].mxu0 }
 0x308   : > { %v768_v6 = vmax.f32 %v736_v5, 0.0  ;;  %v701_v53 = vmul.f32 %v12274_v62, %v553_v37 }
 0x309   : > { %801 = vst.msk [vmem:[%s12289_s13 + $0x18] sm:$0xff] %vm366_vm0, %v769_v11  ;;  %v739_v40 = vadd.f32 %v12279_v24, %v702_v56 }
 0x30a   : > { %800 = vst.msk [vmem:[%s12289_s13 + $0x10] sm:$0xff] %vm366_vm0, %v768_v6  ;;  %v738_v22 = vadd.f32 %v12279_v24, %v701_v53  ;;  %v10146_v10 = vpop.f32.mrb[6].mxu0 }
 0x30b   : > { %v771_v31 = vmax.f32 %v739_v40, 0.0  ;;  %v704_v44 = vmul.f32 %v10146_v10, %v12274_v62  ;;  %v563_v57 = vpop.f32.mrb[7].mxu0 }
 0x30c   : > { %v770_v36 = vmax.f32 %v738_v22, 0.0  ;;  %v703_v29 = vmul.f32 %v12274_v62, %v563_v57 }
 0x30d   : > { %803 = vst.msk [vmem:[%s12289_s13 + $0x28] sm:$0xff] %vm366_vm0, %v771_v31  ;;  %v741_v30 = vadd.f32 %v12279_v24, %v704_v44 }
 0x30e   : > { %802 = vst.msk [vmem:[%s12289_s13 + $0x20] sm:$0xff] %vm366_vm0, %v770_v36  ;;  %v740_v35 = vadd.f32 %v12279_v24, %v703_v29  ;;  %v10149_v51 = vpop.f32.mrb[8].mxu0 }
 0x30f   : > { %v773_v32 = vmax.f32 %v741_v30, 0.0  ;;  %v706_v54 = vmul.f32 %v10149_v51, %v12274_v62  ;;  %v573_v23 = vpop.f32.mrb[9].mxu0 }
 0x310   : > { %v772_v16 = vmax.f32 %v740_v35, 0.0  ;;  %v705_v5 = vmul.f32 %v12274_v62, %v573_v23 }
 0x311   : > { %805 = vst.msk [vmem:[%s12289_s13 + $0x38] sm:$0xff] %vm366_vm0, %v773_v32  ;;  %v743_v56 = vadd.f32 %v12279_v24, %v706_v54 }
 0x312   : > { %804 = vst.msk [vmem:[%s12289_s13 + $0x30] sm:$0xff] %vm366_vm0, %v772_v16  ;;  %v742_v40 = vadd.f32 %v12279_v24, %v705_v5  ;;  %v10152_v22 = vpop.f32.mrb[10].mxu0 }
 0x313   : > { %v775_v31 = vmax.f32 %v743_v56, 0.0  ;;  %v708_v44 = vmul.f32 %v10152_v22, %v12274_v62  ;;  %v583_v57 = vpop.f32.mrb[11].mxu0 }
 0x314   : > { %v774_v29 = vmax.f32 %v742_v40, 0.0 }
 0x315   : > { %807 = vst.msk [vmem:[%s12289_s13 + $0x48] sm:$0xff] %vm366_vm0, %v775_v31  ;;  %v745_v35 = vadd.f32 %v12279_v24, %v708_v44 }
 0x316   : > { %806 = vst.msk [vmem:[%s12289_s13 + $0x40] sm:$0xff] %vm366_vm0, %v774_v29  ;;  %v10155_v54 = vpop.f32.mrb[12].mxu0 }
 0x317   : > { %v593_v16 = vpop.f32.mrb[13].mxu0 }
 0x31a   : > { %v10158_v44 = vpop.f32.mrb[14].mxu0 }
 0x31b   : > { %v603_v29 = vpop.f32.mrb[15].mxu0 }
 0x347   : > { %v10195_v14 = vpop.f32.mrb[0].mxu1 }
 0x348   : > { %v2901_v52 = vmul.f32 %v10195_v14, %v12310_v60  ;;  %v2736_v7 = vpop.f32.mrb[1].mxu1 }
 0x349   : > { %v2900_v42 = vmul.f32 %v12310_v60, %v2736_v7 }
 0x34a   : > { %v2938_v33 = vadd.f32 %v12317_v43, %v2901_v52  ;;  %v707_v52 = vmul.f32 %v12274_v62, %v583_v57 }
 0x34b   : > { %v2937_v25 = vadd.f32 %v12317_v43, %v2900_v42  ;;  %v10198_v20 = vpop.f32.mrb[2].mxu1 }
 0x34c   : > { %v2970_v11 = vmax.f32 %v2938_v33, 0.0  ;;  %v2903_v6 = vmul.f32 %v10198_v20, %v12310_v60  ;;  %v2746_v4 = vpop.f32.mrb[3].mxu1  ;;  %v744_v32 = vadd.f32 %v12279_v24, %v707_v52  ;;  %v710_v20 = vmul.f32 %v10155_v54, %v12274_v62 }
 0x34d   : > { %v2969_v37 = vmax.f32 %v2937_v25, 0.0  ;;  %v2902_v53 = vmul.f32 %v12310_v60, %v2746_v4  ;;  %v777_v25 = vmax.f32 %v745_v35, 0.0  ;;  %v709_v4 = vmul.f32 %v12274_v62, %v593_v16 }
 0x34e   : > { %v2940_v10 = vadd.f32 %v12317_v43, %v2903_v6  ;;  %3035 = vrot.lane.b32.xlu1 %v2970_v11, %s10443_s16  ;;  %v776_v6 = vmax.f32 %v744_v32, 0.0  ;;  %v747_v40 = vadd.f32 %v12279_v24, %v710_v20  ;;  %v10161_v20 = vpop.f32.mrb[16].mxu0 }
 0x34f   : > { %v2939_v14 = vadd.f32 %v12317_v43, %v2902_v53  ;;  %3033 = vrot.lane.b32.xlu0 %v2969_v37, %s10443_s16  ;;  %v10201_v36 = vpop.f32.mrb[4].mxu1  ;;  %809 = vst.msk [vmem:[%s12289_s13 + $0x58] sm:$0xff] %vm366_vm0, %v777_v25  ;;  %v746_v31 = vadd.f32 %v12279_v24, %v709_v4 }
 0x350   : > { %v2972_v7 = vmax.f32 %v2940_v10, 0.0  ;;  %v2905_v30 = vmul.f32 %v10201_v36, %v12310_v60  ;;  %v2756_v42 = vpop.f32.mrb[5].mxu1  ;;  %808 = vst.msk [vmem:[%s12289_s13 + $0x50] sm:$0xff] %vm366_vm0, %v776_v6  ;;  %v712_v36 = vmul.f32 %v10158_v44, %v12274_v62  ;;  %v613_v6 = vpop.f32.mrb[17].mxu0 }
 0x351   : > { %v2971_v51 = vmax.f32 %v2939_v14, 0.0  ;;  %v2904_v33 = vmul.f32 %v12310_v60, %v2756_v42  ;;  %v779_v14 = vmax.f32 %v747_v40, 0.0  ;;  %v711_v42 = vmul.f32 %v12274_v62, %v603_v29 }
 0x352   : > { %v2942_v23 = vadd.f32 %v12317_v43, %v2905_v30  ;;  %3039 = vrot.lane.b32.xlu1 %v2972_v7, %s10443_s16  ;;  %v778_v30 = vmax.f32 %v746_v31, 0.0  ;;  %v749_v32 = vadd.f32 %v12279_v24, %v712_v36  ;;  %v10164_v36 = vpop.f32.mrb[18].mxu0 }
 0x353   : > { %v2941_v5 = vadd.f32 %v12317_v43, %v2904_v33  ;;  %3037 = vrot.lane.b32.xlu0 %v2971_v51, %s10443_s16  ;;  %v10204_v11 = vpop.f32.mrb[6].mxu1  ;;  %811 = vst.msk [vmem:[%s12289_s13 + $0x68] sm:$0xff] %vm366_vm0, %v779_v14  ;;  %v748_v25 = vadd.f32 %v12279_v24, %v711_v42 }
 0x354   : > { %v2974_v56 = vmax.f32 %v2942_v23, 0.0  ;;  %v2907_v37 = vmul.f32 %v10204_v11, %v12310_v60  ;;  %v2766_v53 = vpop.f32.mrb[7].mxu1  ;;  %810 = vst.msk [vmem:[%s12289_s13 + $0x60] sm:$0xff] %vm366_vm0, %v778_v30  ;;  %v714_v11 = vmul.f32 %v10161_v20, %v12274_v62  ;;  %v623_v30 = vpop.f32.mrb[19].mxu0 }
 0x355   : > { %v2973_v22 = vmax.f32 %v2941_v5, 0.0  ;;  %v2906_v10 = vmul.f32 %v12310_v60, %v2766_v53  ;;  %v781_v5 = vmax.f32 %v749_v32, 0.0  ;;  %v713_v53 = vmul.f32 %v12274_v62, %v613_v6 }
 0x356   : > { %v2944_v57 = vadd.f32 %v12317_v43, %v2907_v37  ;;  %3043 = vrot.lane.b32.xlu1 %v2974_v56, %s10443_s16  ;;  %v780_v37 = vmax.f32 %v748_v25, 0.0  ;;  %v751_v31 = vadd.f32 %v12279_v24, %v714_v11  ;;  %v10167_v11 = vpop.f32.mrb[20].mxu0 }
 0x357   : > { %v2943_v52 = vadd.f32 %v12317_v43, %v2906_v10  ;;  %3041 = vrot.lane.b32.xlu0 %v2973_v22, %s10443_s16  ;;  %v10207_v7 = vpop.f32.mrb[8].mxu1  ;;  %813 = vst.msk [vmem:[%s12289_s13 + $0x78] sm:$0xff] %vm366_vm0, %v781_v5  ;;  %v750_v14 = vadd.f32 %v12279_v24, %v713_v53 }
 0x358   : > { %v2976_v35 = vmax.f32 %v2944_v57, 0.0  ;;  %v2909_v51 = vmul.f32 %v10207_v7, %v12310_v60  ;;  %v2776_v33 = vpop.f32.mrb[9].mxu1  ;;  %812 = vst.msk [vmem:[%s12289_s13 + $0x70] sm:$0xff] %vm366_vm0, %v780_v37  ;;  %v716_v7 = vmul.f32 %v10164_v36, %v12274_v62  ;;  %v633_v37 = vpop.f32.mrb[21].mxu0 }
 0x359   : > { %v2975_v54 = vmax.f32 %v2943_v52, 0.0  ;;  %v2908_v23 = vmul.f32 %v12310_v60, %v2776_v33  ;;  %v783_v52 = vmax.f32 %v751_v31, 0.0  ;;  %v715_v33 = vmul.f32 %v12274_v62, %v623_v30 }
 0x35a   : > { %v2946_v16 = vadd.f32 %v12317_v43, %v2909_v51  ;;  %3047 = vrot.lane.b32.xlu1 %v2976_v35, %s10443_s16  ;;  %v782_v51 = vmax.f32 %v750_v14, 0.0  ;;  %v753_v25 = vadd.f32 %v12279_v24, %v716_v7  ;;  %v10170_v7 = vpop.f32.mrb[22].mxu0 }
 0x35b   : > { %v2945_v4 = vadd.f32 %v12317_v43, %v2908_v23  ;;  %3045 = vrot.lane.b32.xlu0 %v2975_v54, %s10443_s16  ;;  %v10210_v56 = vpop.f32.mrb[10].mxu1  ;;  %815 = vst.msk [vmem:[%s12289_s13 + $0x88] sm:$0xff] %vm366_vm0, %v783_v52  ;;  %v752_v5 = vadd.f32 %v12279_v24, %v715_v33 }
 0x35c   : > { %v2978_v40 = vmax.f32 %v2946_v16, 0.0  ;;  %v2911_v22 = vmul.f32 %v10210_v56, %v12310_v60  ;;  %v2786_v10 = vpop.f32.mrb[11].mxu1  ;;  %814 = vst.msk [vmem:[%s12289_s13 + $0x80] sm:$0xff] %vm366_vm0, %v782_v51  ;;  %v718_v56 = vmul.f32 %v10167_v11, %v12274_v62  ;;  %v643_v51 = vpop.f32.mrb[23].mxu0 }
 0x35d   : > { %v2977_v44 = vmax.f32 %v2945_v4, 0.0  ;;  %v2910_v57 = vmul.f32 %v12310_v60, %v2786_v10  ;;  %v785_v4 = vmax.f32 %v753_v25, 0.0  ;;  %v717_v10 = vmul.f32 %v12274_v62, %v633_v37 }
 0x35e   : > { %v2948_v29 = vadd.f32 %v12317_v43, %v2911_v22  ;;  %3051 = vrot.lane.b32.xlu1 %v2978_v40, %s10443_s16  ;;  %v784_v22 = vmax.f32 %v752_v5, 0.0  ;;  %v755_v14 = vadd.f32 %v12279_v24, %v718_v56  ;;  %v10173_v56 = vpop.f32.mrb[24].mxu0 }
 0x35f   : > { %v2947_v42 = vadd.f32 %v12317_v43, %v2910_v57  ;;  %3049 = vrot.lane.b32.xlu0 %v2977_v44, %s10443_s16  ;;  %v10213_v35 = vpop.f32.mrb[12].mxu1  ;;  %817 = vst.msk [vmem:[%s12289_s13 + $0x98] sm:$0xff] %vm366_vm0, %v785_v4  ;;  %v754_v52 = vadd.f32 %v12279_v24, %v717_v10 }
 0x360   : > { %v2980_v32 = vmax.f32 %v2948_v29, 0.0  ;;  %v2913_v54 = vmul.f32 %v10213_v35, %v12310_v60  ;;  %v2796_v23 = vpop.f32.mrb[13].mxu1  ;;  %816 = vst.msk [vmem:[%s12289_s13 + $0x90] sm:$0xff] %vm366_vm0, %v784_v22  ;;  %v720_v35 = vmul.f32 %v10170_v7, %v12274_v62  ;;  %v653_v22 = vpop.f32.mrb[25].mxu0 }
 0x361   : > { %v2979_v20 = vmax.f32 %v2947_v42, 0.0  ;;  %v2912_v16 = vmul.f32 %v12310_v60, %v2796_v23  ;;  %v787_v42 = vmax.f32 %v755_v14, 0.0  ;;  %v719_v23 = vmul.f32 %v12274_v62, %v643_v51 }
 0x362   : > { %v2950_v6 = vadd.f32 %v12317_v43, %v2913_v54  ;;  %3055 = vrot.lane.b32.xlu1 %v2980_v32, %s10443_s16  ;;  %v786_v54 = vmax.f32 %v754_v52, 0.0  ;;  %v757_v5 = vadd.f32 %v12279_v24, %v720_v35  ;;  %v10176_v35 = vpop.f32.mrb[26].mxu0 }
 0x363   : > { %v2949_v53 = vadd.f32 %v12317_v43, %v2912_v16  ;;  %3053 = vrot.lane.b32.xlu0 %v2979_v20, %s10443_s16  ;;  %v10216_v40 = vpop.f32.mrb[14].mxu1  ;;  %819 = vst.msk [vmem:[%s12289_s13 + $0xa8] sm:$0xff] %vm366_vm0, %v787_v42  ;;  %v756_v4 = vadd.f32 %v12279_v24, %v719_v23 }
 0x364   : > { %v2982_v31 = vmax.f32 %v2950_v6, 0.0  ;;  %v2915_v44 = vmul.f32 %v10216_v40, %v12310_v60  ;;  %v2806_v57 = vpop.f32.mrb[15].mxu1  ;;  %818 = vst.msk [vmem:[%s12289_s13 + $0xa0] sm:$0xff] %vm366_vm0, %v786_v54  ;;  %v722_v40 = vmul.f32 %v10173_v56, %v12274_v62  ;;  %v663_v54 = vpop.f32.mrb[27].mxu0 }
 0x365   : > { %v2981_v36 = vmax.f32 %v2949_v53, 0.0  ;;  %v2914_v29 = vmul.f32 %v12310_v60, %v2806_v57  ;;  %v789_v53 = vmax.f32 %v757_v5, 0.0  ;;  %v721_v57 = vmul.f32 %v12274_v62, %v653_v22 }
 0x366   : > { %v2952_v30 = vadd.f32 %v12317_v43, %v2915_v44  ;;  %3059 = vrot.lane.b32.xlu1 %v2982_v31, %s10443_s16  ;;  %v788_v44 = vmax.f32 %v756_v4, 0.0  ;;  %v759_v52 = vadd.f32 %v12279_v24, %v722_v40  ;;  %v10179_v40 = vpop.f32.mrb[28].mxu0 }
 0x367   : > { %v2951_v33 = vadd.f32 %v12317_v43, %v2914_v29  ;;  %3057 = vrot.lane.b32.xlu0 %v2981_v36, %s10443_s16  ;;  %v10219_v32 = vpop.f32.mrb[16].mxu1  ;;  %821 = vst.msk [vmem:[%s12289_s13 + $0xb8] sm:$0xff] %vm366_vm0, %v789_v53  ;;  %v758_v42 = vadd.f32 %v12279_v24, %v721_v57 }
 0x368   : > { %v2984_v25 = vmax.f32 %v2952_v30, 0.0  ;;  %v2917_v20 = vmul.f32 %v10219_v32, %v12310_v60  ;;  %v2816_v16 = vpop.f32.mrb[17].mxu1  ;;  %820 = vst.msk [vmem:[%s12289_s13 + $0xb0] sm:$0xff] %vm366_vm0, %v788_v44  ;;  %v724_v32 = vmul.f32 %v10176_v35, %v12274_v62  ;;  %v673_v44 = vpop.f32.mrb[29].mxu0 }
 0x369   : > { %v2983_v11 = vmax.f32 %v2951_v33, 0.0  ;;  %v2916_v6 = vmul.f32 %v12310_v60, %v2816_v16  ;;  %v791_v33 = vmax.f32 %v759_v52, 0.0  ;;  %v723_v16 = vmul.f32 %v12274_v62, %v663_v54 }
 0x36a   : > { %v2954_v37 = vadd.f32 %v12317_v43, %v2917_v20  ;;  %3063 = vrot.lane.b32.xlu1 %v2984_v25, %s10443_s16  ;;  %v790_v20 = vmax.f32 %v758_v42, 0.0  ;;  %v761_v4 = vadd.f32 %v12279_v24, %v724_v32  ;;  %v10182_v32 = vpop.f32.mrb[30].mxu0 }
 0x36b   : > { %v2953_v10 = vadd.f32 %v12317_v43, %v2916_v6  ;;  %3061 = vrot.lane.b32.xlu0 %v2983_v11, %s10443_s16  ;;  %v10222_v31 = vpop.f32.mrb[18].mxu1  ;;  %823 = vst.msk [vmem:[%s12289_s13 + $0xc8] sm:$0xff] %vm366_vm0, %v791_v33  ;;  %v760_v53 = vadd.f32 %v12279_v24, %v723_v16 }
 0x36c   : > { %v2986_v14 = vmax.f32 %v2954_v37, 0.0  ;;  %v2919_v36 = vmul.f32 %v10222_v31, %v12310_v60  ;;  %v2826_v29 = vpop.f32.mrb[19].mxu1  ;;  %822 = vst.msk [vmem:[%s12289_s13 + $0xc0] sm:$0xff] %vm366_vm0, %v790_v20  ;;  %v726_v31 = vmul.f32 %v10179_v40, %v12274_v62  ;;  %v683_v20 = vpop.f32.mrb[31].mxu0 }
 0x36d   : > { %v2985_v7 = vmax.f32 %v2953_v10, 0.0  ;;  %v2918_v30 = vmul.f32 %v12310_v60, %v2826_v29  ;;  %v793_v10 = vmax.f32 %v761_v4, 0.0  ;;  %v725_v29 = vmul.f32 %v12274_v62, %v673_v44 }
 0x36e   : > { %v2956_v51 = vadd.f32 %v12317_v43, %v2919_v36  ;;  %3067 = vrot.lane.b32.xlu1 %v2986_v14, %s10443_s16  ;;  %v792_v36 = vmax.f32 %v760_v53, 0.0  ;;  %v763_v42 = vadd.f32 %v12279_v24, %v726_v31 }
 0x36f   : > { %v2955_v23 = vadd.f32 %v12317_v43, %v2918_v30  ;;  %3065 = vrot.lane.b32.xlu0 %v2985_v7, %s10443_s16  ;;  %v10225_v25 = vpop.f32.mrb[20].mxu1  ;;  %825 = vst.msk [vmem:[%s12289_s13 + $0xd8] sm:$0xff] %vm366_vm0, %v793_v10  ;;  %v762_v33 = vadd.f32 %v12279_v24, %v725_v29 }
 0x370   : > { %v2988_v5 = vmax.f32 %v2956_v51, 0.0  ;;  %v2921_v11 = vmul.f32 %v10225_v25, %v12310_v60  ;;  %v2836_v6 = vpop.f32.mrb[21].mxu1  ;;  %824 = vst.msk [vmem:[%s12289_s13 + $0xd0] sm:$0xff] %vm366_vm0, %v792_v36  ;;  %v728_v25 = vmul.f32 %v10182_v32, %v12274_v62 }
 0x371   : > { %v2987_v56 = vmax.f32 %v2955_v23, 0.0  ;;  %v2920_v37 = vmul.f32 %v12310_v60, %v2836_v6  ;;  %v795_v23 = vmax.f32 %v763_v42, 0.0  ;;  %v727_v6 = vmul.f32 %v12274_v62, %v683_v20  ;;  %v3255_v20 = vld [vmem:[#allocation2 + $0x8] sm:$0xff] }
 0x372   : > { %v2958_v22 = vadd.f32 %v12317_v43, %v2921_v11  ;;  %3071 = vrot.lane.b32.xlu1 %v2988_v5, %s10443_s16  ;;  %v794_v11 = vmax.f32 %v762_v33, 0.0  ;;  %v765_v53 = vadd.f32 %v12279_v24, %v728_v25  ;;  %3287 = vst.msk [vmem:[#allocation3 + $0x8] sm:$0xff] %vm366_vm0, %v3255_v20  ;;  %v3327_v20 = vld [vmem:[#allocation2 + $0x69] sm:$0xff] }
 0x373   : > { %v2957_v57 = vadd.f32 %v12317_v43, %v2920_v37  ;;  %3069 = vrot.lane.b32.xlu0 %v2987_v56, %s10443_s16  ;;  %v10228_v14 = vpop.f32.mrb[22].mxu1  ;;  %827 = vst.msk [vmem:[%s12289_s13 + $0xe8] sm:$0xff] %vm366_vm0, %v795_v23  ;;  %v764_v10 = vadd.f32 %v12279_v24, %v727_v6  ;;  %v12516_v6 = vld [vmem:[#allocation2 + $0x18] sm:$0xff] }
 0x374   : > { %v2990_v52 = vmax.f32 %v2958_v22, 0.0  ;;  %v2923_v7 = vmul.f32 %v10228_v14, %v12310_v60  ;;  %v2846_v30 = vpop.f32.mrb[23].mxu1  ;;  %826 = vst.msk [vmem:[%s12289_s13 + $0xe0] sm:$0xff] %vm366_vm0, %v794_v11  ;;  %v797_v62 = vmax.f32 %v765_v53, 0.0  ;;  %3288 = vst.msk [vmem:[#allocation3 + $0x10] sm:$0xff] %vm366_vm0, %v12516_v6 }
 0x375   : > { %v2989_v35 = vmax.f32 %v2957_v57, 0.0  ;;  %v2922_v51 = vmul.f32 %v12310_v60, %v2846_v30  ;;  %v796_v14 = vmax.f32 %v764_v10, 0.0 }
 0x376   : > { %v2960_v54 = vadd.f32 %v12317_v43, %v2923_v7  ;;  %3075 = vrot.lane.b32.xlu1 %v2990_v52, %s10443_s16  ;;  %829 = vst.msk [vmem:[%s12289_s13 + $0xf8] sm:$0xff] %vm366_vm0, %v797_v62  ;;  %v12530_v62 = vld [vmem:[#allocation2 + $0x30] sm:$0xff] }
 0x377   : > { %v2959_v16 = vadd.f32 %v12317_v43, %v2922_v51  ;;  %3073 = vrot.lane.b32.xlu0 %v2989_v35, %s10443_s16  ;;  %v10231_v5 = vpop.f32.mrb[24].mxu1  ;;  %828 = vst.msk [vmem:[%s12289_s13 + $0xf0] sm:$0xff] %vm366_vm0, %v796_v14  ;;  %v3254_v51 = vld [vmem:[#allocation2] sm:$0xff]  ;;  %3290 = vst.msk [vmem:[#allocation3 + $0x20] sm:$0xff] %vm366_vm0, %v12530_v62  ;;  %v3319_v14 = vld [vmem:[#allocation2 + $0x9] sm:$0xff] }
 0x378   : > { %v2992_v4 = vmax.f32 %v2960_v54, 0.0  ;;  %v2925_v56 = vmul.f32 %v10231_v5, %v12310_v60  ;;  %v2856_v37 = vpop.f32.mrb[25].mxu1  ;;  %3286 = vst.msk [vmem:[#allocation3] sm:$0xff] %vm366_vm0, %v3254_v51  ;;  %v3322_v51 = vld [vmem:[#allocation2 + $0x31] sm:$0xff] }
 0x379   : > { %v2991_v40 = vmax.f32 %v2959_v16, 0.0  ;;  %v2924_v22 = vmul.f32 %v12310_v60, %v2856_v37 }
 0x37a   : > { %v2962_v31 = vadd.f32 %v12317_v43, %v2925_v56  ;;  %3079 = vrot.lane.b32.xlu1 %v2992_v4, %s10443_s16 }
 0x37b   : > { %v2961_v44 = vadd.f32 %v12317_v43, %v2924_v22  ;;  %3077 = vrot.lane.b32.xlu0 %v2991_v40, %s10443_s16  ;;  %v10234_v57 = vpop.f32.mrb[26].mxu1  ;;  %v12522_v22 = vld [vmem:[#allocation2 + $0x20] sm:$0xff] }
 0x37c   : > { %v2994_v36 = vmax.f32 %v2962_v31, 0.0  ;;  %v2927_v29 = vmul.f32 %v10234_v57, %v12310_v60  ;;  %v2866_v52 = vpop.f32.mrb[27].mxu1  ;;  %3289 = vst.msk [vmem:[#allocation3 + $0x18] sm:$0xff] %vm366_vm0, %v12522_v22  ;;  %v12534_v57 = vld [vmem:[#allocation2 + $0x38] sm:$0xff] }
 0x37d   : > { %v2993_v7 = vmax.f32 %v2961_v44, 0.0  ;;  %v2926_v24 = vmul.f32 %v12310_v60, %v2866_v52  ;;  %3291 = vst.msk [vmem:[#allocation3 + $0x28] sm:$0xff] %vm366_vm0, %v12534_v57  ;;  %v3321_v52 = vld [vmem:[#allocation2 + $0x21] sm:$0xff] }
 0x37e   : > { %v2964_v30 = vadd.f32 %v12317_v43, %v2927_v29  ;;  %3083 = vrot.lane.b32.xlu1 %v2994_v36, %s10443_s16  ;;  %v3318_v36 = vld [vmem:[#allocation2 + $0x1] sm:$0xff]  ;;  %v12544_v29 = vld [vmem:[#allocation2 + $0x50] sm:$0xff] }
 0x37f   : > { %v2963_v42 = vadd.f32 %v12317_v43, %v2926_v24  ;;  %3081 = vrot.lane.b32.xlu0 %v2993_v7, %s10443_s16  ;;  %v10237_v35 = vpop.f32.mrb[28].mxu1  ;;  %3293 = vst.msk [vmem:[#allocation3 + $0x38] sm:$0xff] %vm366_vm0, %v12544_v29  ;;  %v12550_v7 = vld [vmem:[#allocation2 + $0x60] sm:$0xff] }
 0x380   : > { %v2996_v33 = vmax.f32 %v2964_v30, 0.0  ;;  %v2929_v32 = vmul.f32 %v10237_v35, %v12310_v60  ;;  %v2876_v54 = vpop.f32.mrb[29].mxu1  ;;  %v3320_v24 = vld [vmem:[#allocation2 + $0x19] sm:$0xff]  ;;  %3294 = vst.msk [vmem:[#allocation3 + $0x40] sm:$0xff] %vm366_vm0, %v12550_v7  ;;  %v12554_v30 = vld [vmem:[#allocation2 + $0x68] sm:$0xff] }
 0x381   : > { %v2995_v23 = vmax.f32 %v2963_v42, 0.0  ;;  %v2928_v25 = vmul.f32 %v12310_v60, %v2876_v54  ;;  %3295 = vst.msk [vmem:[#allocation3 + $0x48] sm:$0xff] %vm366_vm0, %v12554_v30  ;;  %v3323_v42 = vld [vmem:[#allocation2 + $0x39] sm:$0xff]  ;;  %v12570_v54 = vld [vmem:[#allocation2 + $0x90] sm:$0xff] }
 0x382   : > { %v2966_v16 = vadd.f32 %v12317_v43, %v2929_v32  ;;  %3087 = vrot.lane.b32.xlu1 %v2996_v33, %s10443_s16  ;;  %v12560_v35 = vld [vmem:[#allocation2 + $0x78] sm:$0xff]  ;;  %v12564_v33 = vld [vmem:[#allocation2 + $0x80] sm:$0xff]  ;;  %3298 = vst.msk [vmem:[#allocation3 + $0x60] sm:$0xff] %vm366_vm0, %v12570_v54 }
 0x383   : > { %v2965_v5 = vadd.f32 %v12317_v43, %v2928_v25  ;;  %3085 = vrot.lane.b32.xlu0 %v2995_v23, %s10443_s16  ;;  %v10240_v11 = vpop.f32.mrb[30].mxu1  ;;  %3296 = vst.msk [vmem:[#allocation3 + $0x50] sm:$0xff] %vm366_vm0, %v12560_v35  ;;  %3297 = vst.msk [vmem:[#allocation3 + $0x58] sm:$0xff] %vm366_vm0, %v12564_v33  ;;  %v3325_v32 = vld [vmem:[#allocation2 + $0x51] sm:$0xff]  ;;  %v3324_v23 = vld [vmem:[#allocation2 + $0x49] sm:$0xff] }
 0x384   : > { %v2998_v4 = vmax.f32 %v2966_v16, 0.0  ;;  %v2931_v56 = vmul.f32 %v10240_v11, %v12310_v60  ;;  %v2886_v37 = vpop.f32.mrb[31].mxu1  ;;  %v12574_v25 = vld [vmem:[#allocation2 + $0x98] sm:$0xff]  ;;  %v12580_v16 = vld [vmem:[#allocation2 + $0xa8] sm:$0xff]  ;;  %v12584_v11 = vld [vmem:[#allocation2 + $0xb0] sm:$0xff] }
 0x385   : > { %v2997_v53 = vmax.f32 %v2965_v5, 0.0  ;;  %v2930_v40 = vmul.f32 %v12310_v60, %v2886_v37  ;;  %3299 = vst.msk [vmem:[#allocation3 + $0x68] sm:$0xff] %vm366_vm0, %v12574_v25  ;;  %v3326_v5 = vld [vmem:[#allocation2 + $0x61] sm:$0xff]  ;;  %3300 = vst.msk [vmem:[#allocation3 + $0x70] sm:$0xff] %vm366_vm0, %v12580_v16  ;;  %v3328_v37 = vld [vmem:[#allocation2 + $0x79] sm:$0xff] }
 0x386   : > { %v2968_v10 = vadd.f32 %v12317_v43, %v2931_v56  ;;  %3091 = vrot.lane.b32.xlu1 %v2998_v4, %s10443_s16  ;;  %3301 = vst.msk [vmem:[#allocation3 + $0x78] sm:$0xff] %vm366_vm0, %v12584_v11  ;;  %v3329_v4 = vld [vmem:[#allocation2 + $0x81] sm:$0xff] }
 0x387   : > { %v2967_v31 = vadd.f32 %v12317_v43, %v2930_v40  ;;  %3089 = vrot.lane.b32.xlu0 %v2997_v53, %s10443_s16  ;;  %v12540_v43 = vld [vmem:[#allocation2 + $0x48] sm:$0xff]  ;;  %v12590_v56 = vld [vmem:[#allocation2 + $0xc0] sm:$0xff] }
 0x388   : > { %v3000_v44 = vmax.f32 %v2968_v10, 0.0  ;;  %3292 = vst.msk [vmem:[#allocation3 + $0x30] sm:$0xff] %vm366_vm0, %v12540_v43  ;;  %3302 = vst.msk [vmem:[#allocation3 + $0x80] sm:$0xff] %vm366_vm0, %v12590_v56  ;;  %v12594_v53 = vld [vmem:[#allocation2 + $0xc8] sm:$0xff]  ;;  %v3331_v40 = vld [vmem:[#allocation2 + $0x99] sm:$0xff] }
 0x389   : > { %v2999_v60 = vmax.f32 %v2967_v31, 0.0  ;;  %3303 = vst.msk [vmem:[#allocation3 + $0x88] sm:$0xff] %vm366_vm0, %v12594_v53  ;;  %v12600_v10 = vld [vmem:[#allocation2 + $0xd8] sm:$0xff] }
 0x38a   : > { %3095 = vrot.lane.b32.xlu1 %v3000_v44, %s10443_s16  ;;  %v3330_v31 = vld [vmem:[#allocation2 + $0x91] sm:$0xff]  ;;  %3304 = vst.msk [vmem:[#allocation3 + $0x90] sm:$0xff] %vm366_vm0, %v12600_v10  ;;  %v12604_v44 = vld [vmem:[#allocation2 + $0xe0] sm:$0xff] }
 0x38b   : > { %3093 = vrot.lane.b32.xlu0 %v2999_v60, %s10443_s16  ;;  %3305 = vst.msk [vmem:[#allocation3 + $0x98] sm:$0xff] %vm366_vm0, %v12604_v44  ;;  %v3333_v60 = vld [vmem:[#allocation2 + $0xb1] sm:$0xff] }
 0x38e   : > { %3384 = vrot.lane.b32.xlu1 %v3319_v14, %s10443_s16  ;;  %v12610_v14 = vld [vmem:[#allocation2 + $0xf0] sm:$0xff] }
 0x38f   : > { %3382 = vrot.lane.b32.xlu0 %v3318_v36, %s10443_s16  ;;  %v3332_v36 = vld [vmem:[#allocation2 + $0xa9] sm:$0xff]  ;;  %3306 = vst.msk [vmem:[#allocation3 + $0xa0] sm:$0xff] %vm366_vm0, %v12610_v14 }
 0x392   : > { %3388 = vrot.lane.b32.xlu1 %v3321_v52, %s10443_s16  ;;  %v12614_v52 = vld [vmem:[#allocation2 + $0xf8] sm:$0xff] }
 0x393   : > { %3386 = vrot.lane.b32.xlu0 %v3320_v24, %s10443_s16  ;;  %3307 = vst.msk [vmem:[#allocation3 + $0xa8] sm:$0xff] %vm366_vm0, %v12614_v52  ;;  %v3335_v24 = vld [vmem:[#allocation2 + $0xc9] sm:$0xff] }
 0x396   : > { %3392 = vrot.lane.b32.xlu1 %v3323_v42, %s10443_s16  ;;  %v12620_v42 = vld [vmem:[#allocation2 + $0x108] sm:$0xff] }
 0x397   : > { %3390 = vrot.lane.b32.xlu0 %v3322_v51, %s10443_s16  ;;  %v3334_v51 = vld [vmem:[#allocation2 + $0xc1] sm:$0xff]  ;;  %3308 = vst.msk [vmem:[#allocation3 + $0xb0] sm:$0xff] %vm366_vm0, %v12620_v42 }
 0x39a   : > { %3396 = vrot.lane.b32.xlu1 %v3325_v32, %s10443_s16  ;;  %v12624_v32 = vld [vmem:[#allocation2 + $0x110] sm:$0xff] }
 0x39b   : > { %3394 = vrot.lane.b32.xlu0 %v3324_v23, %s10443_s16  ;;  %3309 = vst.msk [vmem:[#allocation3 + $0xb8] sm:$0xff] %vm366_vm0, %v12624_v32  ;;  %v3337_v23 = vld [vmem:[#allocation2 + $0xe1] sm:$0xff] }
 0x39e   : > { %3400 = vrot.lane.b32.xlu1 %v3327_v20, %s10443_s16  ;;  %v12630_v20 = vld [vmem:[#allocation2 + $0x120] sm:$0xff] }
 0x39f   : > { %3398 = vrot.lane.b32.xlu0 %v3326_v5, %s10443_s16  ;;  %v3336_v5 = vld [vmem:[#allocation2 + $0xd9] sm:$0xff]  ;;  %3310 = vst.msk [vmem:[#allocation3 + $0xc0] sm:$0xff] %vm366_vm0, %v12630_v20 }
 0x3a2   : > { %3404 = vrot.lane.b32.xlu1 %v3329_v4, %s10443_s16  ;;  %v12634_v4 = vld [vmem:[#allocation2 + $0x128] sm:$0xff] }
 0x3a3   : > { %3402 = vrot.lane.b32.xlu0 %v3328_v37, %s10443_s16  ;;  %3311 = vst.msk [vmem:[#allocation3 + $0xc8] sm:$0xff] %vm366_vm0, %v12634_v4  ;;  %v3339_v37 = vld [vmem:[#allocation2 + $0xf9] sm:$0xff] }
 0x3a6   : > { %3408 = vrot.lane.b32.xlu1 %v3331_v40, %s10443_s16  ;;  %v12640_v40 = vld [vmem:[#allocation2 + $0x138] sm:$0xff] }
 0x3a7   : > { %3406 = vrot.lane.b32.xlu0 %v3330_v31, %s10443_s16  ;;  %v3338_v31 = vld [vmem:[#allocation2 + $0xf1] sm:$0xff]  ;;  %3312 = vst.msk [vmem:[#allocation3 + $0xd0] sm:$0xff] %vm366_vm0, %v12640_v40 }
 0x3aa   : > { %3412 = vrot.lane.b32.xlu1 %v3333_v60, %s10443_s16  ;;  %v12644_v60 = vld [vmem:[#allocation2 + $0x140] sm:$0xff] }
 0x3ab   : > { %3410 = vrot.lane.b32.xlu0 %v3332_v36, %s10443_s16  ;;  %3313 = vst.msk [vmem:[#allocation3 + $0xd8] sm:$0xff] %vm366_vm0, %v12644_v60  ;;  %v3341_v36 = vld [vmem:[#allocation2 + $0x111] sm:$0xff] }
 0x3ae   : > { %3416 = vrot.lane.b32.xlu1 %v3335_v24, %s10443_s16  ;;  %v12650_v24 = vld [vmem:[#allocation2 + $0x150] sm:$0xff] }
 0x3af   : > { %3414 = vrot.lane.b32.xlu0 %v3334_v51, %s10443_s16  ;;  %v3340_v51 = vld [vmem:[#allocation2 + $0x109] sm:$0xff]  ;;  %3314 = vst.msk [vmem:[#allocation3 + $0xe0] sm:$0xff] %vm366_vm0, %v12650_v24 }
 0x3b2   : > { %3420 = vrot.lane.b32.xlu1 %v3337_v23, %s10443_s16  ;;  %v12654_v23 = vld [vmem:[#allocation2 + $0x158] sm:$0xff] }
 0x3b3   : > { %3418 = vrot.lane.b32.xlu0 %v3336_v5, %s10443_s16  ;;  %3315 = vst.msk [vmem:[#allocation3 + $0xe8] sm:$0xff] %vm366_vm0, %v12654_v23  ;;  %v3343_v5 = vld [vmem:[#allocation2 + $0x129] sm:$0xff] }
 0x3b6   : > { %3424 = vrot.lane.b32.xlu1 %v3339_v37, %s10443_s16  ;;  %v12660_v37 = vld [vmem:[#allocation2 + $0x168] sm:$0xff] }
 0x3b7   : > { %3422 = vrot.lane.b32.xlu0 %v3338_v31, %s10443_s16  ;;  %v3342_v31 = vld [vmem:[#allocation2 + $0x121] sm:$0xff]  ;;  %3316 = vst.msk [vmem:[#allocation3 + $0xf0] sm:$0xff] %vm366_vm0, %v12660_v37 }
 0x3ba   : > { %3428 = vrot.lane.b32.xlu1 %v3341_v36, %s10443_s16  ;;  %v3345_v36 = vld [vmem:[#allocation2 + $0x141] sm:$0xff] }
 0x3bb   : > { %3426 = vrot.lane.b32.xlu0 %v3340_v51, %s10443_s16 }
 0x3be   : > { %3432 = vrot.lane.b32.xlu1 %v3343_v5, %s10443_s16  ;;  %v3347_v5 = vld [vmem:[#allocation2 + $0x159] sm:$0xff] }
 0x3bf   : > { %3430 = vrot.lane.b32.xlu0 %v3342_v31, %s10443_s16 }
 0x3c0   : > { %v3036_v51 = vpop.permute.xlu1 %3035 }
 0x3c1   : > { %3131 = vst.msk [vmem:[%s12289_s13 + $0x8] sm:$0xff] %vm3129_vm12, %v3036_v51  ;;  %v3034_v49 = vpop.permute.xlu0 %3033 }
 0x3c2   : > { %3130 = vst.msk [vmem:[%s12289_s13] sm:$0xff] %vm3129_vm12, %v3034_v49  ;;  %3436 = vrot.lane.b32.xlu1 %v3345_v36, %s10443_s16  ;;  %v3349_v49 = vld [vmem:[#allocation2 + $0x171] sm:$0xff] }
 0x3c3   : > { %3434 = vrot.lane.b32.xlu0 %v3344_v3, %s10443_s16 }
 0x3c4   : > { %v3040_v63 = vpop.permute.xlu1 %3039 }
 0x3c5   : > { %3133 = vst.msk [vmem:[%s12289_s13 + $0x18] sm:$0xff] %vm3129_vm12, %v3040_v63  ;;  %v3038_v31 = vpop.permute.xlu0 %3037  ;;  %v3511_v63 = vld [vmem:[#allocation2 + $0xa] sm:$0xff] }
 0x3c6   : > { %3132 = vst.msk [vmem:[%s12289_s13 + $0x10] sm:$0xff] %vm3129_vm12, %v3038_v31  ;;  %3440 = vrot.lane.b32.xlu1 %v3347_v5, %s10443_s16  ;;  %v3510_v31 = vld [vmem:[#allocation2 + $0x2] sm:$0xff] }
 0x3c7   : > { %3438 = vrot.lane.b32.xlu0 %v3346_v13, %s10443_s16  ;;  %v12693_v13 = vld [vmem:[#allocation2 + $0x3] sm:$0xff] }
 0x3c8   : > { %v3044_v51 = vpop.permute.xlu1 %3043 }
 0x3c9   : > { %3135 = vst.msk [vmem:[%s12289_s13 + $0x28] sm:$0xff] %vm3129_vm12, %v3044_v51  ;;  %v3042_v3 = vpop.permute.xlu0 %3041  ;;  %v12695_v51 = vld [vmem:[#allocation2 + $0x4] sm:$0xff] }
 0x3ca   : > { %3134 = vst.msk [vmem:[%s12289_s13 + $0x20] sm:$0xff] %vm3129_vm12, %v3042_v3  ;;  %3444 = vrot.lane.b32.xlu1 %v3349_v49, %s10443_s16  ;;  %v3513_v49 = vld [vmem:[#allocation2 + $0x22] sm:$0xff]  ;;  %v15657_v3 = vmov -inf  }
 0x3cb   : > { %3442 = vrot.lane.b32.xlu0 %v3348_v17, %s10443_s16  ;;  %v12698_v17 = vld [vmem:[#allocation2 + $0xb] sm:$0xff]  ;;  %8581 = vst.msk [vmem:[#allocation2] sm:$0xff] %vm366_vm0, %v15657_v3  ;;  %s10452_s16 = smov 36  }
 0x3cc   : > { %v3048_v36 = vpop.permute.xlu1 %3047 }
 0x3cd   : > { %3137 = vst.msk [vmem:[%s12289_s13 + $0x38] sm:$0xff] %vm3129_vm12, %v3048_v36  ;;  %v3046_v5 = vpop.permute.xlu0 %3045  ;;  %v12702_v36 = vld [vmem:[#allocation2 + $0xc] sm:$0xff] }
 0x3ce   : > { %3136 = vst.msk [vmem:[%s12289_s13 + $0x30] sm:$0xff] %vm3129_vm12, %v3046_v5  ;;  %3576 = vrot.lane.b32.xlu1 %v3511_v63, %s10444_s17 }
 0x3cf   : > { %3574 = vrot.lane.b32.xlu0 %v3510_v31, %s10444_s17  ;;  %8583 = vst.msk [vmem:[#allocation2 + $0x10] sm:$0xf] %vm832_vm1, %v15657_v3  ;;  %v3515_v31 = vld [vmem:[#allocation2 + $0x3a] sm:$0xff] }
 0x3d0   : > { %v3052_v5 = vpop.permute.xlu1 %3051  ;;  %8582 = vst.msk [vmem:[#allocation2 + $0x8] sm:$0xff] %vm366_vm0, %v15657_v3  ;;  %v3516_v3 = vld [vmem:[#allocation2 + $0x4a] sm:$0xff] }
 0x3d1   : > { %3139 = vst.msk [vmem:[%s12289_s13 + $0x48] sm:$0xff] %vm3129_vm12, %v3052_v5  ;;  %v3050_v63 = vpop.permute.xlu0 %3049  ;;  %v3517_v5 = vld [vmem:[#allocation2 + $0x52] sm:$0xff] }
 0x3d2   : > { %3138 = vst.msk [vmem:[%s12289_s13 + $0x40] sm:$0xff] %vm3129_vm12, %v3050_v63  ;;  %3580 = vrot.lane.b32.xlu1 %v3513_v49, %s10444_s17  ;;  %v3518_v49 = vld [vmem:[#allocation2 + $0x62] sm:$0xff] }
 0x3d3   : > { %3578 = vrot.lane.b32.xlu0 %v3512_v8, %s10444_s17 }
 0x3d4   : > { %v3056_v0 = vpop.permute.xlu1 %3055 }
 0x3d5   : > { %3141 = vst.msk [vmem:[%s12289_s13 + $0x58] sm:$0xff] %vm3129_vm12, %v3056_v0  ;;  %v3054_v34 = vpop.permute.xlu0 %3053 }
 0x3d6   : > { %3140 = vst.msk [vmem:[%s12289_s13 + $0x50] sm:$0xff] %vm3129_vm12, %v3054_v34  ;;  %3584 = vrot.lane.b32.xlu1 %v3515_v31, %s10444_s17  ;;  %v3519_v34 = vld [vmem:[#allocation2 + $0x6a] sm:$0xff]  ;;  %v3521_v31 = vld [vmem:[#allocation2 + $0x82] sm:$0xff] }
 0x3d7   : > { %3582 = vrot.lane.b32.xlu0 %v3514_v38, %s10444_s17 }
 0x3d8   : > { %v3060_v63 = vpop.permute.xlu1 %3059 }
 0x3d9   : > { %3143 = vst.msk [vmem:[%s12289_s13 + $0x68] sm:$0xff] %vm3129_vm12, %v3060_v63  ;;  %v3058_v8 = vpop.permute.xlu0 %3057 }
 0x3da   : > { %3142 = vst.msk [vmem:[%s12289_s13 + $0x60] sm:$0xff] %vm3129_vm12, %v3058_v8  ;;  %3588 = vrot.lane.b32.xlu1 %v3517_v5, %s10444_s17  ;;  %v3520_v8 = vld [vmem:[#allocation2 + $0x7a] sm:$0xff] }
 0x3db   : > { %3586 = vrot.lane.b32.xlu0 %v3516_v3, %s10444_s17  ;;  %v3523_v5 = vld [vmem:[#allocation2 + $0x9a] sm:$0xff] }
 0x3dc   : > { %v3064_v0 = vpop.permute.xlu1 %3063 }
 0x3dd   : > { %3145 = vst.msk [vmem:[%s12289_s13 + $0x78] sm:$0xff] %vm3129_vm12, %v3064_v0  ;;  %v3062_v38 = vpop.permute.xlu0 %3061 }
 0x3de   : > { %3144 = vst.msk [vmem:[%s12289_s13 + $0x70] sm:$0xff] %vm3129_vm12, %v3062_v38  ;;  %3592 = vrot.lane.b32.xlu1 %v3519_v34, %s10444_s17  ;;  %v3522_v38 = vld [vmem:[#allocation2 + $0x92] sm:$0xff] }
 0x3df   : > { %3590 = vrot.lane.b32.xlu0 %v3518_v49, %s10444_s17  ;;  %v3525_v49 = vld [vmem:[#allocation2 + $0xb2] sm:$0xff] }
 0x3e0   : > { %v3068_v63 = vpop.permute.xlu1 %3067 }
 0x3e1   : > { %3147 = vst.msk [vmem:[%s12289_s13 + $0x88] sm:$0xff] %vm3129_vm12, %v3068_v63  ;;  %v3066_v3 = vpop.permute.xlu0 %3065 }
 0x3e2   : > { %3146 = vst.msk [vmem:[%s12289_s13 + $0x80] sm:$0xff] %vm3129_vm12, %v3066_v3  ;;  %3596 = vrot.lane.b32.xlu1 %v3521_v31, %s10444_s17  ;;  %v3524_v3 = vld [vmem:[#allocation2 + $0xaa] sm:$0xff] }
 0x3e3   : > { %3594 = vrot.lane.b32.xlu0 %v3520_v8, %s10444_s17  ;;  %v3527_v8 = vld [vmem:[#allocation2 + $0xca] sm:$0xff] }
 0x3e4   : > { %v3072_v0 = vpop.permute.xlu1 %3071 }
 0x3e5   : > { %3149 = vst.msk [vmem:[%s12289_s13 + $0x98] sm:$0xff] %vm3129_vm12, %v3072_v0  ;;  %v3070_v34 = vpop.permute.xlu0 %3069 }
 0x3e6   : > { %3148 = vst.msk [vmem:[%s12289_s13 + $0x90] sm:$0xff] %vm3129_vm12, %v3070_v34  ;;  %3600 = vrot.lane.b32.xlu1 %v3523_v5, %s10444_s17  ;;  %v3526_v34 = vld [vmem:[#allocation2 + $0xc2] sm:$0xff] }
 0x3e7   : > { %3598 = vrot.lane.b32.xlu0 %v3522_v38, %s10444_s17  ;;  %v3529_v38 = vld [vmem:[#allocation2 + $0xe2] sm:$0xff] }
 0x3e8   : > { %v3076_v63 = vpop.permute.xlu1 %3075 }
 0x3e9   : > { %3151 = vst.msk [vmem:[%s12289_s13 + $0xa8] sm:$0xff] %vm3129_vm12, %v3076_v63  ;;  %v3074_v31 = vpop.permute.xlu0 %3073 }
 0x3ea   : > { %3150 = vst.msk [vmem:[%s12289_s13 + $0xa0] sm:$0xff] %vm3129_vm12, %v3074_v31  ;;  %3604 = vrot.lane.b32.xlu1 %v3525_v49, %s10444_s17  ;;  %v3528_v31 = vld [vmem:[#allocation2 + $0xda] sm:$0xff] }
 0x3eb   : > { %3602 = vrot.lane.b32.xlu0 %v3524_v3, %s10444_s17  ;;  %v3531_v3 = vld [vmem:[#allocation2 + $0xfa] sm:$0xff] }
 0x3ec   : > { %v3080_v0 = vpop.permute.xlu1 %3079 }
 0x3ed   : > { %3153 = vst.msk [vmem:[%s12289_s13 + $0xb8] sm:$0xff] %vm3129_vm12, %v3080_v0  ;;  %v3078_v5 = vpop.permute.xlu0 %3077 }
 0x3ee   : > { %3152 = vst.msk [vmem:[%s12289_s13 + $0xb0] sm:$0xff] %vm3129_vm12, %v3078_v5  ;;  %3608 = vrot.lane.b32.xlu1 %v3527_v8, %s10444_s17  ;;  %v3530_v5 = vld [vmem:[#allocation2 + $0xf2] sm:$0xff] }
 0x3ef   : > { %3606 = vrot.lane.b32.xlu0 %v3526_v34, %s10444_s17  ;;  %v3533_v34 = vld [vmem:[#allocation2 + $0x112] sm:$0xff] }
 0x3f0   : > { %v3084_v63 = vpop.permute.xlu1 %3083 }
 0x3f1   : > { %3155 = vst.msk [vmem:[%s12289_s13 + $0xc8] sm:$0xff] %vm3129_vm12, %v3084_v63  ;;  %v3082_v49 = vpop.permute.xlu0 %3081 }
 0x3f2   : > { %3154 = vst.msk [vmem:[%s12289_s13 + $0xc0] sm:$0xff] %vm3129_vm12, %v3082_v49  ;;  %3612 = vrot.lane.b32.xlu1 %v3529_v38, %s10444_s17  ;;  %v3532_v49 = vld [vmem:[#allocation2 + $0x10a] sm:$0xff] }
 0x3f3   : > { %3610 = vrot.lane.b32.xlu0 %v3528_v31, %s10444_s17  ;;  %v3535_v31 = vld [vmem:[#allocation2 + $0x12a] sm:$0xff] }
 0x3f4   : > { %v3088_v0 = vpop.permute.xlu1 %3087 }
 0x3f5   : > { %3157 = vst.msk [vmem:[%s12289_s13 + $0xd8] sm:$0xff] %vm3129_vm12, %v3088_v0  ;;  %v3086_v8 = vpop.permute.xlu0 %3085 }
 0x3f6   : > { %3156 = vst.msk [vmem:[%s12289_s13 + $0xd0] sm:$0xff] %vm3129_vm12, %v3086_v8  ;;  %3616 = vrot.lane.b32.xlu1 %v3531_v3, %s10444_s17  ;;  %v3534_v8 = vld [vmem:[#allocation2 + $0x122] sm:$0xff] }
 0x3f7   : > { %3614 = vrot.lane.b32.xlu0 %v3530_v5, %s10444_s17  ;;  %v3537_v5 = vld [vmem:[#allocation2 + $0x142] sm:$0xff] }
 0x3f8   : > { %v3092_v63 = vpop.permute.xlu1 %3091 }
 0x3f9   : > { %3159 = vst.msk [vmem:[%s12289_s13 + $0xe8] sm:$0xff] %vm3129_vm12, %v3092_v63  ;;  %v3090_v38 = vpop.permute.xlu0 %3089 }
 0x3fa   : > { %3158 = vst.msk [vmem:[%s12289_s13 + $0xe0] sm:$0xff] %vm3129_vm12, %v3090_v38  ;;  %3620 = vrot.lane.b32.xlu1 %v3533_v34, %s10444_s17  ;;  %v3539_v34 = vld [vmem:[#allocation2 + $0x15a] sm:$0xff] }
 0x3fb   : > { %3618 = vrot.lane.b32.xlu0 %v3532_v49, %s10444_s17 }
 0x3fc   : > { %v3096_v0 = vpop.permute.xlu1 %3095 }
 0x3fd   : > { %3161 = vst.msk [vmem:[%s12289_s13 + $0xf8] sm:$0xff] %vm3129_vm12, %v3096_v0  ;;  %v3094_v3 = vpop.permute.xlu0 %3093  ;;  %v3538_v0 = vld [vmem:[#allocation2 + $0x152] sm:$0xff] }
 0x3fe   : > { %3160 = vst.msk [vmem:[%s12289_s13 + $0xf0] sm:$0xff] %vm3129_vm12, %v3094_v3  ;;  %3624 = vrot.lane.b32.xlu1 %v3535_v31, %s10444_s17  ;;  %v3541_v31 = vld [vmem:[#allocation2 + $0x172] sm:$0xff]  ;;  %vm7332_vm12 = vcmask 720544  }
 0x3ff   : > { %3622 = vrot.lane.b32.xlu0 %v3534_v8, %s10444_s17 }
 0x400   : > { %v3385_v63 = vpop.permute.xlu1 %3384 }
 0x401   : > { %v3383_v38 = vpop.permute.xlu0 %3382  ;;  %3479 = vst.msk [vmem:[#allocation3 + $0x8] sm:$0xff] %vm1148_vm2, %v3385_v63  ;;  %v3540_v63 = vld [vmem:[#allocation2 + $0x16a] sm:$0xff] }
 0x402   : > { %3478 = vst.msk [vmem:[#allocation3] sm:$0xff] %vm1148_vm2, %v3383_v38  ;;  %3628 = vrot.lane.b32.xlu1 %v3537_v5, %s10444_s17 }
 0x403   : > { %3626 = vrot.lane.b32.xlu0 %v3536_v39, %s10444_s17 }
 0x404   : > { %v3389_v49 = vpop.permute.xlu1 %3388 }
 0x405   : > { %v3387_v3 = vpop.permute.xlu0 %3386  ;;  %3481 = vst.msk [vmem:[#allocation3 + $0x18] sm:$0xff] %vm1148_vm2, %v3389_v49 }
 0x406   : > { %3480 = vst.msk [vmem:[#allocation3 + $0x10] sm:$0xff] %vm1148_vm2, %v3387_v3  ;;  %3632 = vrot.lane.b32.xlu1 %v3539_v34, %s10444_s17  ;;  %v3705_v34 = vld [vmem:[#allocation2 + $0x23] sm:$0xff] }
 0x407   : > { %3630 = vrot.lane.b32.xlu0 %v3538_v0, %s10444_s17  ;;  %v3704_v0 = vld [vmem:[#allocation2 + $0x1b] sm:$0xff] }
 0x408   : > { %v3393_v8 = vpop.permute.xlu1 %3392 }
 0x409   : > { %v3391_v38 = vpop.permute.xlu0 %3390  ;;  %3483 = vst.msk [vmem:[#allocation3 + $0x28] sm:$0xff] %vm1148_vm2, %v3393_v8 }
 0x40a   : > { %3482 = vst.msk [vmem:[#allocation3 + $0x20] sm:$0xff] %vm1148_vm2, %v3391_v38  ;;  %3636 = vrot.lane.b32.xlu1 %v3541_v31, %s10444_s17  ;;  %v3707_v31 = vld [vmem:[#allocation2 + $0x3b] sm:$0xff] }
 0x40b   : > { %3634 = vrot.lane.b32.xlu0 %v3540_v63, %s10444_s17  ;;  %v3706_v63 = vld [vmem:[#allocation2 + $0x33] sm:$0xff]  ;;  %s10453_s17 = smov 40  }
 0x40c   : > { %v3397_v39 = vpop.permute.xlu1 %3396 }
 0x40d   : > { %v3395_v5 = vpop.permute.xlu0 %3394  ;;  %3485 = vst.msk [vmem:[#allocation3 + $0x38] sm:$0xff] %vm1148_vm2, %v3397_v39  ;;  %v3708_v39 = vld [vmem:[#allocation2 + $0x4b] sm:$0xff] }
 0x40e   : > { %3484 = vst.msk [vmem:[#allocation3 + $0x30] sm:$0xff] %vm1148_vm2, %v3395_v5  ;;  %3768 = vrot.lane.b32.xlu1 %v12698_v17, %s10445_s18 }
 0x40f   : > { %3766 = vrot.lane.b32.xlu0 %v12693_v13, %s10445_s18  ;;  %v3709_v13 = vld [vmem:[#allocation2 + $0x53] sm:$0xff] }
 0x410   : > { %v3401_v49 = vpop.permute.xlu1 %3400 }
 0x411   : > { %v3399_v3 = vpop.permute.xlu0 %3398  ;;  %3487 = vst.msk [vmem:[#allocation3 + $0x48] sm:$0xff] %vm1148_vm2, %v3401_v49 }
 0x412   : > { %3486 = vst.msk [vmem:[#allocation3 + $0x40] sm:$0xff] %vm1148_vm2, %v3399_v3  ;;  %3772 = vrot.lane.b32.xlu1 %v3705_v34, %s10445_s18  ;;  %v3711_v34 = vld [vmem:[#allocation2 + $0x6b] sm:$0xff] }
 0x413   : > { %3770 = vrot.lane.b32.xlu0 %v3704_v0, %s10445_s18  ;;  %v3710_v0 = vld [vmem:[#allocation2 + $0x63] sm:$0xff] }
 0x414   : > { %v3405_v8 = vpop.permute.xlu1 %3404 }
 0x415   : > { %v3403_v38 = vpop.permute.xlu0 %3402  ;;  %3489 = vst.msk [vmem:[#allocation3 + $0x58] sm:$0xff] %vm1148_vm2, %v3405_v8 }
 0x416   : > { %3488 = vst.msk [vmem:[#allocation3 + $0x50] sm:$0xff] %vm1148_vm2, %v3403_v38  ;;  %3776 = vrot.lane.b32.xlu1 %v3707_v31, %s10445_s18  ;;  %v3713_v31 = vld [vmem:[#allocation2 + $0x83] sm:$0xff] }
 0x417   : > { %3774 = vrot.lane.b32.xlu0 %v3706_v63, %s10445_s18  ;;  %v3712_v63 = vld [vmem:[#allocation2 + $0x7b] sm:$0xff] }
 0x418   : > { %v3409_v17 = vpop.permute.xlu1 %3408 }
 0x419   : > { %v3407_v5 = vpop.permute.xlu0 %3406  ;;  %3491 = vst.msk [vmem:[#allocation3 + $0x68] sm:$0xff] %vm1148_vm2, %v3409_v17 }
 0x41a   : > { %3490 = vst.msk [vmem:[#allocation3 + $0x60] sm:$0xff] %vm1148_vm2, %v3407_v5  ;;  %3780 = vrot.lane.b32.xlu1 %v3709_v13, %s10445_s18  ;;  %v3715_v13 = vld [vmem:[#allocation2 + $0x9b] sm:$0xff] }
 0x41b   : > { %3778 = vrot.lane.b32.xlu0 %v3708_v39, %s10445_s18  ;;  %v3714_v39 = vld [vmem:[#allocation2 + $0x93] sm:$0xff] }
 0x41c   : > { %v3413_v49 = vpop.permute.xlu1 %3412 }
 0x41d   : > { %v3411_v3 = vpop.permute.xlu0 %3410  ;;  %3493 = vst.msk [vmem:[#allocation3 + $0x78] sm:$0xff] %vm1148_vm2, %v3413_v49 }
 0x41e   : > { %3492 = vst.msk [vmem:[#allocation3 + $0x70] sm:$0xff] %vm1148_vm2, %v3411_v3  ;;  %3784 = vrot.lane.b32.xlu1 %v3711_v34, %s10445_s18  ;;  %v3717_v34 = vld [vmem:[#allocation2 + $0xb3] sm:$0xff] }
 0x41f   : > { %3782 = vrot.lane.b32.xlu0 %v3710_v0, %s10445_s18  ;;  %v3716_v0 = vld [vmem:[#allocation2 + $0xab] sm:$0xff] }
 0x420   : > { %v3417_v8 = vpop.permute.xlu1 %3416 }
 0x421   : > { %v3415_v38 = vpop.permute.xlu0 %3414  ;;  %3495 = vst.msk [vmem:[#allocation3 + $0x88] sm:$0xff] %vm1148_vm2, %v3417_v8 }
 0x422   : > { %3494 = vst.msk [vmem:[#allocation3 + $0x80] sm:$0xff] %vm1148_vm2, %v3415_v38  ;;  %3788 = vrot.lane.b32.xlu1 %v3713_v31, %s10445_s18  ;;  %v3719_v31 = vld [vmem:[#allocation2 + $0xcb] sm:$0xff] }
 0x423   : > { %3786 = vrot.lane.b32.xlu0 %v3712_v63, %s10445_s18  ;;  %v3718_v63 = vld [vmem:[#allocation2 + $0xc3] sm:$0xff] }
 0x424   : > { %v3421_v17 = vpop.permute.xlu1 %3420 }
 0x425   : > { %v3419_v5 = vpop.permute.xlu0 %3418  ;;  %3497 = vst.msk [vmem:[#allocation3 + $0x98] sm:$0xff] %vm1148_vm2, %v3421_v17 }
 0x426   : > { %3496 = vst.msk [vmem:[#allocation3 + $0x90] sm:$0xff] %vm1148_vm2, %v3419_v5  ;;  %3792 = vrot.lane.b32.xlu1 %v3715_v13, %s10445_s18  ;;  %v3721_v13 = vld [vmem:[#allocation2 + $0xe3] sm:$0xff] }
 0x427   : > { %3790 = vrot.lane.b32.xlu0 %v3714_v39, %s10445_s18  ;;  %v3720_v39 = vld [vmem:[#allocation2 + $0xdb] sm:$0xff] }
 0x428   : > { %v3425_v49 = vpop.permute.xlu1 %3424 }
 0x429   : > { %v3423_v3 = vpop.permute.xlu0 %3422  ;;  %3499 = vst.msk [vmem:[#allocation3 + $0xa8] sm:$0xff] %vm1148_vm2, %v3425_v49 }
 0x42a   : > { %3498 = vst.msk [vmem:[#allocation3 + $0xa0] sm:$0xff] %vm1148_vm2, %v3423_v3  ;;  %3796 = vrot.lane.b32.xlu1 %v3717_v34, %s10445_s18  ;;  %v3723_v34 = vld [vmem:[#allocation2 + $0xfb] sm:$0xff] }
 0x42b   : > { %3794 = vrot.lane.b32.xlu0 %v3716_v0, %s10445_s18  ;;  %v3722_v0 = vld [vmem:[#allocation2 + $0xf3] sm:$0xff] }
 0x42c   : > { %v3429_v8 = vpop.permute.xlu1 %3428 }
 0x42d   : > { %v3427_v38 = vpop.permute.xlu0 %3426  ;;  %3501 = vst.msk [vmem:[#allocation3 + $0xb8] sm:$0xff] %vm1148_vm2, %v3429_v8 }
 0x42e   : > { %3500 = vst.msk [vmem:[#allocation3 + $0xb0] sm:$0xff] %vm1148_vm2, %v3427_v38  ;;  %3800 = vrot.lane.b32.xlu1 %v3719_v31, %s10445_s18  ;;  %v3725_v31 = vld [vmem:[#allocation2 + $0x113] sm:$0xff] }
 0x42f   : > { %3798 = vrot.lane.b32.xlu0 %v3718_v63, %s10445_s18  ;;  %v3724_v63 = vld [vmem:[#allocation2 + $0x10b] sm:$0xff] }
 0x430   : > { %v3433_v17 = vpop.permute.xlu1 %3432 }
 0x431   : > { %v3431_v5 = vpop.permute.xlu0 %3430  ;;  %3503 = vst.msk [vmem:[#allocation3 + $0xc8] sm:$0xff] %vm1148_vm2, %v3433_v17 }
 0x432   : > { %3502 = vst.msk [vmem:[#allocation3 + $0xc0] sm:$0xff] %vm1148_vm2, %v3431_v5  ;;  %3804 = vrot.lane.b32.xlu1 %v3721_v13, %s10445_s18  ;;  %v3727_v13 = vld [vmem:[#allocation2 + $0x12b] sm:$0xff] }
 0x433   : > { %3802 = vrot.lane.b32.xlu0 %v3720_v39, %s10445_s18  ;;  %v3726_v39 = vld [vmem:[#allocation2 + $0x123] sm:$0xff] }
 0x434   : > { %v3437_v49 = vpop.permute.xlu1 %3436 }
 0x435   : > { %v3435_v3 = vpop.permute.xlu0 %3434  ;;  %3505 = vst.msk [vmem:[#allocation3 + $0xd8] sm:$0xff] %vm1148_vm2, %v3437_v49 }
 0x436   : > { %3504 = vst.msk [vmem:[#allocation3 + $0xd0] sm:$0xff] %vm1148_vm2, %v3435_v3  ;;  %3808 = vrot.lane.b32.xlu1 %v3723_v34, %s10445_s18  ;;  %v3729_v34 = vld [vmem:[#allocation2 + $0x143] sm:$0xff] }
 0x437   : > { %3806 = vrot.lane.b32.xlu0 %v3722_v0, %s10445_s18  ;;  %v3728_v0 = vld [vmem:[#allocation2 + $0x13b] sm:$0xff] }
 0x438   : > { %v3441_v8 = vpop.permute.xlu1 %3440 }
 0x439   : > { %v3439_v38 = vpop.permute.xlu0 %3438  ;;  %3507 = vst.msk [vmem:[#allocation3 + $0xe8] sm:$0xff] %vm1148_vm2, %v3441_v8 }
 0x43a   : > { %3506 = vst.msk [vmem:[#allocation3 + $0xe0] sm:$0xff] %vm1148_vm2, %v3439_v38  ;;  %3812 = vrot.lane.b32.xlu1 %v3725_v31, %s10445_s18  ;;  %v3731_v31 = vld [vmem:[#allocation2 + $0x15b] sm:$0xff] }
 0x43b   : > { %3810 = vrot.lane.b32.xlu0 %v3724_v63, %s10445_s18  ;;  %v3730_v63 = vld [vmem:[#allocation2 + $0x153] sm:$0xff] }
 0x43c   : > { %v3445_v17 = vpop.permute.xlu1 %3444 }
 0x43d   : > { %v3443_v5 = vpop.permute.xlu0 %3442  ;;  %3509 = vst.msk [vmem:[#allocation3 + $0xf8] sm:$0xff] %vm1148_vm2, %v3445_v17 }
 0x43e   : > { %3508 = vst.msk [vmem:[#allocation3 + $0xf0] sm:$0xff] %vm1148_vm2, %v3443_v5  ;;  %3816 = vrot.lane.b32.xlu1 %v3727_v13, %s10445_s18  ;;  %v3733_v13 = vld [vmem:[#allocation2 + $0x173] sm:$0xff]  ;;  %vm5593_vm2 = vcmask 425344  }
 0x43f   : > { %3814 = vrot.lane.b32.xlu0 %v3726_v39, %s10445_s18  ;;  %v3732_v39 = vld [vmem:[#allocation2 + $0x16b] sm:$0xff] }
 0x440   : > { %v3577_v49 = vpop.permute.xlu1 %3576 }
 0x441   : > { %v3575_v3 = vpop.permute.xlu0 %3574  ;;  %3671 = vst.msk [vmem:[#allocation3 + $0x8] sm:$0xff] %vm1341_vm3, %v3577_v49 }
 0x442   : > { %3670 = vst.msk [vmem:[#allocation3] sm:$0xff] %vm1341_vm3, %v3575_v3  ;;  %3820 = vrot.lane.b32.xlu1 %v3729_v34, %s10445_s18 }
 0x443   : > { %3818 = vrot.lane.b32.xlu0 %v3728_v0, %s10445_s18  ;;  %v3897_v0 = vld [vmem:[#allocation2 + $0x24] sm:$0xff] }
 0x444   : > { %v3581_v8 = vpop.permute.xlu1 %3580 }
 0x445   : > { %v3579_v38 = vpop.permute.xlu0 %3578  ;;  %3673 = vst.msk [vmem:[#allocation3 + $0x18] sm:$0xff] %vm1341_vm3, %v3581_v8 }
 0x446   : > { %3672 = vst.msk [vmem:[#allocation3 + $0x10] sm:$0xff] %vm1341_vm3, %v3579_v38  ;;  %3824 = vrot.lane.b32.xlu1 %v3731_v31, %s10445_s18  ;;  %v3896_v31 = vld [vmem:[#allocation2 + $0x1c] sm:$0xff] }
 0x447   : > { %3822 = vrot.lane.b32.xlu0 %v3730_v63, %s10445_s18  ;;  %v3899_v63 = vld [vmem:[#allocation2 + $0x3c] sm:$0xff] }
 0x448   : > { %v3585_v17 = vpop.permute.xlu1 %3584 }
 0x449   : > { %v3583_v5 = vpop.permute.xlu0 %3582  ;;  %3675 = vst.msk [vmem:[#allocation3 + $0x28] sm:$0xff] %vm1341_vm3, %v3585_v17 }
 0x44a   : > { %3674 = vst.msk [vmem:[#allocation3 + $0x20] sm:$0xff] %vm1341_vm3, %v3583_v5  ;;  %3828 = vrot.lane.b32.xlu1 %v3733_v13, %s10445_s18  ;;  %v3898_v13 = vld [vmem:[#allocation2 + $0x34] sm:$0xff] }
 0x44b   : > { %3826 = vrot.lane.b32.xlu0 %v3732_v39, %s10445_s18  ;;  %v3900_v39 = vld [vmem:[#allocation2 + $0x4c] sm:$0xff] }
 0x44c   : > { %v3589_v34 = vpop.permute.xlu1 %3588 }
 0x44d   : > { %v3587_v49 = vpop.permute.xlu0 %3586  ;;  %3677 = vst.msk [vmem:[#allocation3 + $0x38] sm:$0xff] %vm1341_vm3, %v3589_v34  ;;  %v3903_v34 = vld [vmem:[#allocation2 + $0x6c] sm:$0xff] }
 0x44e   : > { %3676 = vst.msk [vmem:[#allocation3 + $0x30] sm:$0xff] %vm1341_vm3, %v3587_v49  ;;  %3960 = vrot.lane.b32.xlu1 %v12702_v36, %s10446_s19 }
 0x44f   : > { %3958 = vrot.lane.b32.xlu0 %v12695_v51, %s10446_s19  ;;  %v3901_v51 = vld [vmem:[#allocation2 + $0x54] sm:$0xff] }
 0x450   : > { %v3593_v3 = vpop.permute.xlu1 %3592 }
 0x451   : > { %v3591_v8 = vpop.permute.xlu0 %3590  ;;  %3679 = vst.msk [vmem:[#allocation3 + $0x48] sm:$0xff] %vm1341_vm3, %v3593_v3 }
 0x452   : > { %3678 = vst.msk [vmem:[#allocation3 + $0x40] sm:$0xff] %vm1341_vm3, %v3591_v8  ;;  %3964 = vrot.lane.b32.xlu1 %v3897_v0, %s10446_s19  ;;  %v3902_v0 = vld [vmem:[#allocation2 + $0x64] sm:$0xff] }
 0x453   : > { %3962 = vrot.lane.b32.xlu0 %v3896_v31, %s10446_s19  ;;  %v3905_v31 = vld [vmem:[#allocation2 + $0x84] sm:$0xff] }
 0x454   : > { %v3597_v38 = vpop.permute.xlu1 %3596 }
 0x455   : > { %v3595_v17 = vpop.permute.xlu0 %3594  ;;  %3681 = vst.msk [vmem:[#allocation3 + $0x58] sm:$0xff] %vm1341_vm3, %v3597_v38 }
 0x456   : > { %3680 = vst.msk [vmem:[#allocation3 + $0x50] sm:$0xff] %vm1341_vm3, %v3595_v17  ;;  %3968 = vrot.lane.b32.xlu1 %v3899_v63, %s10446_s19  ;;  %v3904_v63 = vld [vmem:[#allocation2 + $0x7c] sm:$0xff] }
 0x457   : > { %3966 = vrot.lane.b32.xlu0 %v3898_v13, %s10446_s19  ;;  %v3907_v13 = vld [vmem:[#allocation2 + $0x9c] sm:$0xff] }
 0x458   : > { %v3601_v36 = vpop.permute.xlu1 %3600 }
 0x459   : > { %v3599_v5 = vpop.permute.xlu0 %3598  ;;  %3683 = vst.msk [vmem:[#allocation3 + $0x68] sm:$0xff] %vm1341_vm3, %v3601_v36 }
 0x45a   : > { %3682 = vst.msk [vmem:[#allocation3 + $0x60] sm:$0xff] %vm1341_vm3, %v3599_v5  ;;  %3972 = vrot.lane.b32.xlu1 %v3901_v51, %s10446_s19  ;;  %v3906_v51 = vld [vmem:[#allocation2 + $0x94] sm:$0xff] }
 0x45b   : > { %3970 = vrot.lane.b32.xlu0 %v3900_v39, %s10446_s19  ;;  %v3909_v39 = vld [vmem:[#allocation2 + $0xb4] sm:$0xff] }
 0x45c   : > { %v3605_v49 = vpop.permute.xlu1 %3604 }
 0x45d   : > { %v3603_v3 = vpop.permute.xlu0 %3602  ;;  %3685 = vst.msk [vmem:[#allocation3 + $0x78] sm:$0xff] %vm1341_vm3, %v3605_v49 }
 0x45e   : > { %3684 = vst.msk [vmem:[#allocation3 + $0x70] sm:$0xff] %vm1341_vm3, %v3603_v3  ;;  %3976 = vrot.lane.b32.xlu1 %v3903_v34, %s10446_s19  ;;  %v3908_v34 = vld [vmem:[#allocation2 + $0xac] sm:$0xff] }
 0x45f   : > { %3974 = vrot.lane.b32.xlu0 %v3902_v0, %s10446_s19  ;;  %v3911_v0 = vld [vmem:[#allocation2 + $0xcc] sm:$0xff] }
 0x460   : > { %v3609_v8 = vpop.permute.xlu1 %3608 }
 0x461   : > { %v3607_v38 = vpop.permute.xlu0 %3606  ;;  %3687 = vst.msk [vmem:[#allocation3 + $0x88] sm:$0xff] %vm1341_vm3, %v3609_v8 }
 0x462   : > { %3686 = vst.msk [vmem:[#allocation3 + $0x80] sm:$0xff] %vm1341_vm3, %v3607_v38  ;;  %3980 = vrot.lane.b32.xlu1 %v3905_v31, %s10446_s19  ;;  %v3910_v31 = vld [vmem:[#allocation2 + $0xc4] sm:$0xff] }
 0x463   : > { %3978 = vrot.lane.b32.xlu0 %v3904_v63, %s10446_s19  ;;  %v3913_v63 = vld [vmem:[#allocation2 + $0xe4] sm:$0xff] }
 0x464   : > { %v3613_v17 = vpop.permute.xlu1 %3612 }
 0x465   : > { %v3611_v36 = vpop.permute.xlu0 %3610  ;;  %3689 = vst.msk [vmem:[#allocation3 + $0x98] sm:$0xff] %vm1341_vm3, %v3613_v17 }
 0x466   : > { %3688 = vst.msk [vmem:[#allocation3 + $0x90] sm:$0xff] %vm1341_vm3, %v3611_v36  ;;  %3984 = vrot.lane.b32.xlu1 %v3907_v13, %s10446_s19  ;;  %v3912_v13 = vld [vmem:[#allocation2 + $0xdc] sm:$0xff] }
 0x467   : > { %3982 = vrot.lane.b32.xlu0 %v3906_v51, %s10446_s19  ;;  %v3915_v51 = vld [vmem:[#allocation2 + $0xfc] sm:$0xff] }
 0x468   : > { %v3617_v5 = vpop.permute.xlu1 %3616 }
 0x469   : > { %v3615_v49 = vpop.permute.xlu0 %3614  ;;  %3691 = vst.msk [vmem:[#allocation3 + $0xa8] sm:$0xff] %vm1341_vm3, %v3617_v5 }
 0x46a   : > { %3690 = vst.msk [vmem:[#allocation3 + $0xa0] sm:$0xff] %vm1341_vm3, %v3615_v49  ;;  %3988 = vrot.lane.b32.xlu1 %v3909_v39, %s10446_s19  ;;  %v3914_v39 = vld [vmem:[#allocation2 + $0xf4] sm:$0xff] }
 0x46b   : > { %3986 = vrot.lane.b32.xlu0 %v3908_v34, %s10446_s19  ;;  %v3917_v34 = vld [vmem:[#allocation2 + $0x114] sm:$0xff] }
 0x46c   : > { %v3621_v3 = vpop.permute.xlu1 %3620 }
 0x46d   : > { %v3619_v8 = vpop.permute.xlu0 %3618  ;;  %3693 = vst.msk [vmem:[#allocation3 + $0xb8] sm:$0xff] %vm1341_vm3, %v3621_v3 }
 0x46e   : > { %3692 = vst.msk [vmem:[#allocation3 + $0xb0] sm:$0xff] %vm1341_vm3, %v3619_v8  ;;  %3992 = vrot.lane.b32.xlu1 %v3911_v0, %s10446_s19  ;;  %v3916_v0 = vld [vmem:[#allocation2 + $0x10c] sm:$0xff] }
 0x46f   : > { %3990 = vrot.lane.b32.xlu0 %v3910_v31, %s10446_s19  ;;  %v3919_v31 = vld [vmem:[#allocation2 + $0x12c] sm:$0xff] }
 0x470   : > { %v3625_v38 = vpop.permute.xlu1 %3624 }
 0x471   : > { %v3623_v17 = vpop.permute.xlu0 %3622  ;;  %3695 = vst.msk [vmem:[#allocation3 + $0xc8] sm:$0xff] %vm1341_vm3, %v3625_v38 }
 0x472   : > { %3694 = vst.msk [vmem:[#allocation3 + $0xc0] sm:$0xff] %vm1341_vm3, %v3623_v17  ;;  %3996 = vrot.lane.b32.xlu1 %v3913_v63, %s10446_s19  ;;  %v3918_v63 = vld [vmem:[#allocation2 + $0x124] sm:$0xff] }
 0x473   : > { %3994 = vrot.lane.b32.xlu0 %v3912_v13, %s10446_s19  ;;  %v3921_v13 = vld [vmem:[#allocation2 + $0x144] sm:$0xff] }
 0x474   : > { %v3629_v36 = vpop.permute.xlu1 %3628 }
 0x475   : > { %v3627_v5 = vpop.permute.xlu0 %3626  ;;  %3697 = vst.msk [vmem:[#allocation3 + $0xd8] sm:$0xff] %vm1341_vm3, %v3629_v36 }
 0x476   : > { %3696 = vst.msk [vmem:[#allocation3 + $0xd0] sm:$0xff] %vm1341_vm3, %v3627_v5  ;;  %4000 = vrot.lane.b32.xlu1 %v3915_v51, %s10446_s19  ;;  %v3920_v51 = vld [vmem:[#allocation2 + $0x13c] sm:$0xff] }
 0x477   : > { %3998 = vrot.lane.b32.xlu0 %v3914_v39, %s10446_s19  ;;  %v3923_v39 = vld [vmem:[#allocation2 + $0x15c] sm:$0xff] }
 0x478   : > { %v3633_v49 = vpop.permute.xlu1 %3632 }
 0x479   : > { %v3631_v3 = vpop.permute.xlu0 %3630  ;;  %3699 = vst.msk [vmem:[#allocation3 + $0xe8] sm:$0xff] %vm1341_vm3, %v3633_v49 }
 0x47a   : > { %3698 = vst.msk [vmem:[#allocation3 + $0xe0] sm:$0xff] %vm1341_vm3, %v3631_v3  ;;  %4004 = vrot.lane.b32.xlu1 %v3917_v34, %s10446_s19  ;;  %v3922_v34 = vld [vmem:[#allocation2 + $0x154] sm:$0xff] }
 0x47b   : > { %4002 = vrot.lane.b32.xlu0 %v3916_v0, %s10446_s19  ;;  %v3925_v0 = vld [vmem:[#allocation2 + $0x174] sm:$0xff] }
 0x47c   : > { %v3637_v8 = vpop.permute.xlu1 %3636 }
 0x47d   : > { %v3635_v38 = vpop.permute.xlu0 %3634  ;;  %3701 = vst.msk [vmem:[#allocation3 + $0xf8] sm:$0xff] %vm1341_vm3, %v3637_v8 }
 0x47e   : > { %3700 = vst.msk [vmem:[#allocation3 + $0xf0] sm:$0xff] %vm1341_vm3, %v3635_v38  ;;  %4008 = vrot.lane.b32.xlu1 %v3919_v31, %s10446_s19  ;;  %v3924_v31 = vld [vmem:[#allocation2 + $0x16c] sm:$0xff]  ;;  %vm5786_vm3 = vcmask 458144  }
 0x47f   : > { %4006 = vrot.lane.b32.xlu0 %v3918_v63, %s10446_s19 }
 0x480   : > { %v3769_v17 = vpop.permute.xlu1 %3768 }
 0x481   : > { %v3767_v36 = vpop.permute.xlu0 %3766  ;;  %3863 = vst.msk [vmem:[#allocation3 + $0x8] sm:$0xff] %vm1534_vm4, %v3769_v17 }
 0x482   : > { %3862 = vst.msk [vmem:[#allocation3] sm:$0xff] %vm1534_vm4, %v3767_v36  ;;  %4012 = vrot.lane.b32.xlu1 %v3921_v13, %s10446_s19 }
 0x483   : > { %4010 = vrot.lane.b32.xlu0 %v3920_v51, %s10446_s19 }
 0x484   : > { %v3773_v5 = vpop.permute.xlu1 %3772 }
 0x485   : > { %v3771_v49 = vpop.permute.xlu0 %3770  ;;  %3865 = vst.msk [vmem:[#allocation3 + $0x18] sm:$0xff] %vm1534_vm4, %v3773_v5 }
 0x486   : > { %3864 = vst.msk [vmem:[#allocation3 + $0x10] sm:$0xff] %vm1534_vm4, %v3771_v49  ;;  %4016 = vrot.lane.b32.xlu1 %v3923_v39, %s10446_s19  ;;  %v4116_v39 = vld [vmem:[#allocation2 + $0x180] sm:$0xff] }
 0x487   : > { %4014 = vrot.lane.b32.xlu0 %v3922_v34, %s10446_s19  ;;  %v4278_v34 = vld [vmem:[#allocation2 + $0x19] sm:$0xff] }
 0x488   : > { %v3777_v3 = vpop.permute.xlu1 %3776 }
 0x489   : > { %v3775_v8 = vpop.permute.xlu0 %3774  ;;  %3867 = vst.msk [vmem:[#allocation3 + $0x28] sm:$0xff] %vm1534_vm4, %v3777_v3 }
 0x48a   : > { %3866 = vst.msk [vmem:[#allocation3 + $0x20] sm:$0xff] %vm1534_vm4, %v3775_v8  ;;  %4020 = vrot.lane.b32.xlu1 %v3925_v0, %s10446_s19  ;;  %v4280_v0 = vld [vmem:[#allocation2 + $0x31] sm:$0xff] }
 0x48b   : > { %4018 = vrot.lane.b32.xlu0 %v3924_v31, %s10446_s19  ;;  %v4283_v31 = vld [vmem:[#allocation2 + $0x51] sm:$0xff]  ;;  %s10454_s19 = smov 44  }
 0x48c   : > { %v3781_v63 = vpop.permute.xlu1 %3780 }
 0x48d   : > { %v3779_v38 = vpop.permute.xlu0 %3778  ;;  %3869 = vst.msk [vmem:[#allocation3 + $0x38] sm:$0xff] %vm1534_vm4, %v3781_v63  ;;  %v4282_v63 = vld [vmem:[#allocation2 + $0x49] sm:$0xff] }
 0x48e   : > { %3868 = vst.msk [vmem:[#allocation3 + $0x30] sm:$0xff] %vm1534_vm4, %v3779_v38  ;;  %4152 = vrot.lane.b32.xlu1 %v12522_v22, %s10447_s20 }
 0x48f   : > { %4150 = vrot.lane.b32.xlu0 %v12516_v6, %s10447_s20 }
 0x490   : > { %v3785_v13 = vpop.permute.xlu1 %3784 }
 0x491   : > { %v3783_v17 = vpop.permute.xlu0 %3782  ;;  %3871 = vst.msk [vmem:[#allocation3 + $0x48] sm:$0xff] %vm1534_vm4, %v3785_v13  ;;  %v4285_v13 = vld [vmem:[#allocation2 + $0x69] sm:$0xff] }
 0x492   : > { %3870 = vst.msk [vmem:[#allocation3 + $0x40] sm:$0xff] %vm1534_vm4, %v3783_v17  ;;  %4156 = vrot.lane.b32.xlu1 %v12534_v57, %s10447_s20 }
 0x493   : > { %4154 = vrot.lane.b32.xlu0 %v12530_v62, %s10447_s20 }
 0x494   : > { %v3789_v51 = vpop.permute.xlu1 %3788 }
 0x495   : > { %v3787_v36 = vpop.permute.xlu0 %3786  ;;  %3873 = vst.msk [vmem:[#allocation3 + $0x58] sm:$0xff] %vm1534_vm4, %v3789_v51  ;;  %v4284_v51 = vld [vmem:[#allocation2 + $0x61] sm:$0xff] }
 0x496   : > { %3872 = vst.msk [vmem:[#allocation3 + $0x50] sm:$0xff] %vm1534_vm4, %v3787_v36  ;;  %4160 = vrot.lane.b32.xlu1 %v12544_v29, %s10447_s20 }
 0x497   : > { %4158 = vrot.lane.b32.xlu0 %v12540_v43, %s10447_s20 }
 0x498   : > { %v3793_v6 = vpop.permute.xlu1 %3792 }
 0x499   : > { %v3791_v22 = vpop.permute.xlu0 %3790  ;;  %3875 = vst.msk [vmem:[#allocation3 + $0x68] sm:$0xff] %vm1534_vm4, %v3793_v6  ;;  %v4287_v6 = vld [vmem:[#allocation2 + $0x81] sm:$0xff] }
 0x49a   : > { %3874 = vst.msk [vmem:[#allocation3 + $0x60] sm:$0xff] %vm1534_vm4, %v3791_v22  ;;  %4164 = vrot.lane.b32.xlu1 %v12554_v30, %s10447_s20 }
 0x49b   : > { %4162 = vrot.lane.b32.xlu0 %v12550_v7, %s10447_s20 }
 0x49c   : > { %v3797_v62 = vpop.permute.xlu1 %3796 }
 0x49d   : > { %v3795_v57 = vpop.permute.xlu0 %3794  ;;  %3877 = vst.msk [vmem:[#allocation3 + $0x78] sm:$0xff] %vm1534_vm4, %v3797_v62  ;;  %v4286_v62 = vld [vmem:[#allocation2 + $0x79] sm:$0xff] }
 0x49e   : > { %3876 = vst.msk [vmem:[#allocation3 + $0x70] sm:$0xff] %vm1534_vm4, %v3795_v57  ;;  %4168 = vrot.lane.b32.xlu1 %v12564_v33, %s10447_s20 }
 0x49f   : > { %4166 = vrot.lane.b32.xlu0 %v12560_v35, %s10447_s20 }
 0x4a0   : > { %v3801_v43 = vpop.permute.xlu1 %3800 }
 0x4a1   : > { %v3799_v29 = vpop.permute.xlu0 %3798  ;;  %3879 = vst.msk [vmem:[#allocation3 + $0x88] sm:$0xff] %vm1534_vm4, %v3801_v43  ;;  %v4289_v43 = vld [vmem:[#allocation2 + $0x99] sm:$0xff] }
 0x4a2   : > { %3878 = vst.msk [vmem:[#allocation3 + $0x80] sm:$0xff] %vm1534_vm4, %v3799_v29  ;;  %4172 = vrot.lane.b32.xlu1 %v12574_v25, %s10447_s20 }
 0x4a3   : > { %4170 = vrot.lane.b32.xlu0 %v12570_v54, %s10447_s20 }
 0x4a4   : > { %v3805_v7 = vpop.permute.xlu1 %3804 }
 0x4a5   : > { %v3803_v30 = vpop.permute.xlu0 %3802  ;;  %3881 = vst.msk [vmem:[#allocation3 + $0x98] sm:$0xff] %vm1534_vm4, %v3805_v7  ;;  %v4288_v7 = vld [vmem:[#allocation2 + $0x91] sm:$0xff] }
 0x4a6   : > { %3880 = vst.msk [vmem:[#allocation3 + $0x90] sm:$0xff] %vm1534_vm4, %v3803_v30  ;;  %4176 = vrot.lane.b32.xlu1 %v12584_v11, %s10447_s20 }
 0x4a7   : > { %4174 = vrot.lane.b32.xlu0 %v12580_v16, %s10447_s20 }
 0x4a8   : > { %v3809_v35 = vpop.permute.xlu1 %3808 }
 0x4a9   : > { %v3807_v33 = vpop.permute.xlu0 %3806  ;;  %3883 = vst.msk [vmem:[#allocation3 + $0xa8] sm:$0xff] %vm1534_vm4, %v3809_v35  ;;  %v4291_v35 = vld [vmem:[#allocation2 + $0xb1] sm:$0xff] }
 0x4aa   : > { %3882 = vst.msk [vmem:[#allocation3 + $0xa0] sm:$0xff] %vm1534_vm4, %v3807_v33  ;;  %4180 = vrot.lane.b32.xlu1 %v12594_v53, %s10447_s20 }
 0x4ab   : > { %4178 = vrot.lane.b32.xlu0 %v12590_v56, %s10447_s20 }
 0x4ac   : > { %v3813_v54 = vpop.permute.xlu1 %3812 }
 0x4ad   : > { %v3811_v25 = vpop.permute.xlu0 %3810  ;;  %3885 = vst.msk [vmem:[#allocation3 + $0xb8] sm:$0xff] %vm1534_vm4, %v3813_v54  ;;  %v4290_v54 = vld [vmem:[#allocation2 + $0xa9] sm:$0xff] }
 0x4ae   : > { %3884 = vst.msk [vmem:[#allocation3 + $0xb0] sm:$0xff] %vm1534_vm4, %v3811_v25  ;;  %4184 = vrot.lane.b32.xlu1 %v12604_v44, %s10447_s20 }
 0x4af   : > { %4182 = vrot.lane.b32.xlu0 %v12600_v10, %s10447_s20 }
 0x4b0   : > { %v3817_v16 = vpop.permute.xlu1 %3816 }
 0x4b1   : > { %v3815_v11 = vpop.permute.xlu0 %3814  ;;  %3887 = vst.msk [vmem:[#allocation3 + $0xc8] sm:$0xff] %vm1534_vm4, %v3817_v16  ;;  %v4293_v16 = vld [vmem:[#allocation2 + $0xc9] sm:$0xff] }
 0x4b2   : > { %3886 = vst.msk [vmem:[#allocation3 + $0xc0] sm:$0xff] %vm1534_vm4, %v3815_v11  ;;  %4188 = vrot.lane.b32.xlu1 %v12614_v52, %s10447_s20 }
 0x4b3   : > { %4186 = vrot.lane.b32.xlu0 %v12610_v14, %s10447_s20 }
 0x4b4   : > { %v3821_v56 = vpop.permute.xlu1 %3820 }
 0x4b5   : > { %v3819_v53 = vpop.permute.xlu0 %3818  ;;  %3889 = vst.msk [vmem:[#allocation3 + $0xd8] sm:$0xff] %vm1534_vm4, %v3821_v56  ;;  %v4292_v56 = vld [vmem:[#allocation2 + $0xc1] sm:$0xff] }
 0x4b6   : > { %3888 = vst.msk [vmem:[#allocation3 + $0xd0] sm:$0xff] %vm1534_vm4, %v3819_v53  ;;  %4192 = vrot.lane.b32.xlu1 %v12624_v32, %s10447_s20 }
 0x4b7   : > { %4190 = vrot.lane.b32.xlu0 %v12620_v42, %s10447_s20 }
 0x4b8   : > { %v3825_v10 = vpop.permute.xlu1 %3824 }
 0x4b9   : > { %v3823_v44 = vpop.permute.xlu0 %3822  ;;  %3891 = vst.msk [vmem:[#allocation3 + $0xe8] sm:$0xff] %vm1534_vm4, %v3825_v10  ;;  %v4295_v10 = vld [vmem:[#allocation2 + $0xe1] sm:$0xff] }
 0x4ba   : > { %3890 = vst.msk [vmem:[#allocation3 + $0xe0] sm:$0xff] %vm1534_vm4, %v3823_v44  ;;  %4196 = vrot.lane.b32.xlu1 %v12634_v4, %s10447_s20 }
 0x4bb   : > { %4194 = vrot.lane.b32.xlu0 %v12630_v20, %s10447_s20 }
 0x4bc   : > { %v3829_v14 = vpop.permute.xlu1 %3828 }
 0x4bd   : > { %v3827_v52 = vpop.permute.xlu0 %3826  ;;  %3893 = vst.msk [vmem:[#allocation3 + $0xf8] sm:$0xff] %vm1534_vm4, %v3829_v14  ;;  %v4294_v14 = vld [vmem:[#allocation2 + $0xd9] sm:$0xff] }
 0x4be   : > { %3892 = vst.msk [vmem:[#allocation3 + $0xf0] sm:$0xff] %vm1534_vm4, %v3827_v52  ;;  %4200 = vrot.lane.b32.xlu1 %v12644_v60, %s10447_s20  ;;  %vm5979_vm4 = vcmask 490944  }
 0x4bf   : > { %4198 = vrot.lane.b32.xlu0 %v12640_v40, %s10447_s20  ;;  %v4117_v40 = vld [vmem:[#allocation2 + $0x188] sm:$0xff] }
 0x4c0   : > { %v3961_v42 = vpop.permute.xlu1 %3960 }
 0x4c1   : > { %v3959_v32 = vpop.permute.xlu0 %3958  ;;  %4055 = vst.msk [vmem:[#allocation3 + $0x8] sm:$0xff] %vm1727_vm5, %v3961_v42  ;;  %v4297_v42 = vld [vmem:[#allocation2 + $0xf9] sm:$0xff] }
 0x4c2   : > { %4054 = vst.msk [vmem:[#allocation3] sm:$0xff] %vm1727_vm5, %v3959_v32  ;;  %4204 = vrot.lane.b32.xlu1 %v12654_v23, %s10447_s20 }
 0x4c3   : > { %4202 = vrot.lane.b32.xlu0 %v12650_v24, %s10447_s20  ;;  %v4279_v24 = vld [vmem:[#allocation2 + $0x21] sm:$0xff] }
 0x4c4   : > { %v3965_v20 = vpop.permute.xlu1 %3964 }
 0x4c5   : > { %v3963_v4 = vpop.permute.xlu0 %3962  ;;  %4057 = vst.msk [vmem:[#allocation3 + $0x18] sm:$0xff] %vm1727_vm5, %v3965_v20  ;;  %v4296_v20 = vld [vmem:[#allocation2 + $0xf1] sm:$0xff] }
 0x4c6   : > { %4056 = vst.msk [vmem:[#allocation3 + $0x10] sm:$0xff] %vm1727_vm5, %v3963_v4  ;;  %4208 = vrot.lane.b32.xlu1 %v12664_v19, %s10447_s20  ;;  %v4281_v19 = vld [vmem:[#allocation2 + $0x39] sm:$0xff] }
 0x4c7   : > { %4206 = vrot.lane.b32.xlu0 %v12660_v37, %s10447_s20 }
 0x4c8   : > { %v3969_v60 = vpop.permute.xlu1 %3968 }
 0x4c9   : > { %v3967_v5 = vpop.permute.xlu0 %3966  ;;  %4059 = vst.msk [vmem:[#allocation3 + $0x28] sm:$0xff] %vm1727_vm5, %v3969_v60 }
 0x4ca   : > { %4058 = vst.msk [vmem:[#allocation3 + $0x20] sm:$0xff] %vm1727_vm5, %v3967_v5  ;;  %4212 = vrot.lane.b32.xlu1 %v4117_v40, %s10447_s20  ;;  %v4299_v40 = vld [vmem:[#allocation2 + $0x111] sm:$0xff] }
 0x4cb   : > { %4210 = vrot.lane.b32.xlu0 %v4116_v39, %s10447_s20  ;;  %v4298_v39 = vld [vmem:[#allocation2 + $0x109] sm:$0xff]  ;;  %s10455_s20 = smov 48  }
 0x4cc   : > { %v3973_v23 = vpop.permute.xlu1 %3972 }
 0x4cd   : > { %v3971_v49 = vpop.permute.xlu0 %3970  ;;  %4061 = vst.msk [vmem:[#allocation3 + $0x38] sm:$0xff] %vm1727_vm5, %v3973_v23 }
 0x4ce   : > { %4060 = vst.msk [vmem:[#allocation3 + $0x30] sm:$0xff] %vm1727_vm5, %v3971_v49  ;;  %4344 = vrot.lane.b32.xlu1 %v4279_v24, %s10448_s21  ;;  %v4301_v24 = vld [vmem:[#allocation2 + $0x129] sm:$0xff] }
 0x4cf   : > { %4342 = vrot.lane.b32.xlu0 %v4278_v34, %s10448_s21  ;;  %v4300_v34 = vld [vmem:[#allocation2 + $0x121] sm:$0xff] }
 0x4d0   : > { %v3977_v37 = vpop.permute.xlu1 %3976 }
 0x4d1   : > { %v3975_v3 = vpop.permute.xlu0 %3974  ;;  %4063 = vst.msk [vmem:[#allocation3 + $0x48] sm:$0xff] %vm1727_vm5, %v3977_v37 }
 0x4d2   : > { %4062 = vst.msk [vmem:[#allocation3 + $0x40] sm:$0xff] %vm1727_vm5, %v3975_v3  ;;  %4348 = vrot.lane.b32.xlu1 %v4281_v19, %s10448_s21  ;;  %v4303_v19 = vld [vmem:[#allocation2 + $0x141] sm:$0xff] }
 0x4d3   : > { %4346 = vrot.lane.b32.xlu0 %v4280_v0, %s10448_s21  ;;  %v4302_v0 = vld [vmem:[#allocation2 + $0x139] sm:$0xff] }
 0x4d4   : > { %v3981_v8 = vpop.permute.xlu1 %3980 }
 0x4d5   : > { %v3979_v38 = vpop.permute.xlu0 %3978  ;;  %4065 = vst.msk [vmem:[#allocation3 + $0x58] sm:$0xff] %vm1727_vm5, %v3981_v8 }
 0x4d6   : > { %4064 = vst.msk [vmem:[#allocation3 + $0x50] sm:$0xff] %vm1727_vm5, %v3979_v38  ;;  %4352 = vrot.lane.b32.xlu1 %v4283_v31, %s10448_s21  ;;  %v4305_v31 = vld [vmem:[#allocation2 + $0x159] sm:$0xff] }
 0x4d7   : > { %4350 = vrot.lane.b32.xlu0 %v4282_v63, %s10448_s21  ;;  %v4304_v63 = vld [vmem:[#allocation2 + $0x151] sm:$0xff] }
 0x4d8   : > { %v3985_v17 = vpop.permute.xlu1 %3984 }
 0x4d9   : > { %v3983_v36 = vpop.permute.xlu0 %3982  ;;  %4067 = vst.msk [vmem:[#allocation3 + $0x68] sm:$0xff] %vm1727_vm5, %v3985_v17 }
 0x4da   : > { %4066 = vst.msk [vmem:[#allocation3 + $0x60] sm:$0xff] %vm1727_vm5, %v3983_v36  ;;  %4356 = vrot.lane.b32.xlu1 %v4285_v13, %s10448_s21  ;;  %v4307_v13 = vld [vmem:[#allocation2 + $0x171] sm:$0xff] }
 0x4db   : > { %4354 = vrot.lane.b32.xlu0 %v4284_v51, %s10448_s21  ;;  %v4306_v51 = vld [vmem:[#allocation2 + $0x169] sm:$0xff] }
 0x4dc   : > { %v3989_v22 = vpop.permute.xlu1 %3988 }
 0x4dd   : > { %v3987_v57 = vpop.permute.xlu0 %3986  ;;  %4069 = vst.msk [vmem:[#allocation3 + $0x78] sm:$0xff] %vm1727_vm5, %v3989_v22 }
 0x4de   : > { %4068 = vst.msk [vmem:[#allocation3 + $0x70] sm:$0xff] %vm1727_vm5, %v3987_v57  ;;  %4360 = vrot.lane.b32.xlu1 %v4287_v6, %s10448_s21  ;;  %v4309_v6 = vld [vmem:[#allocation2 + $0x189] sm:$0xff] }
 0x4df   : > { %4358 = vrot.lane.b32.xlu0 %v4286_v62, %s10448_s21  ;;  %v4308_v62 = vld [vmem:[#allocation2 + $0x181] sm:$0xff] }
 0x4e0   : > { %v3993_v29 = vpop.permute.xlu1 %3992 }
 0x4e1   : > { %v3991_v30 = vpop.permute.xlu0 %3990  ;;  %4071 = vst.msk [vmem:[#allocation3 + $0x88] sm:$0xff] %vm1727_vm5, %v3993_v29 }
 0x4e2   : > { %4070 = vst.msk [vmem:[#allocation3 + $0x80] sm:$0xff] %vm1727_vm5, %v3991_v30  ;;  %4364 = vrot.lane.b32.xlu1 %v4289_v43, %s10448_s21  ;;  %v4471_v43 = vld [vmem:[#allocation2 + $0x22] sm:$0xff] }
 0x4e3   : > { %4362 = vrot.lane.b32.xlu0 %v4288_v7, %s10448_s21  ;;  %v4470_v7 = vld [vmem:[#allocation2 + $0x1a] sm:$0xff] }
 0x4e4   : > { %v3997_v33 = vpop.permute.xlu1 %3996 }
 0x4e5   : > { %v3995_v25 = vpop.permute.xlu0 %3994  ;;  %4073 = vst.msk [vmem:[#allocation3 + $0x98] sm:$0xff] %vm1727_vm5, %v3997_v33  ;;  %v13087_v33 = vld [vmem:[#allocation2 + $0x1c] sm:$0xff] }
 0x4e6   : > { %4072 = vst.msk [vmem:[#allocation3 + $0x90] sm:$0xff] %vm1727_vm5, %v3995_v25  ;;  %4368 = vrot.lane.b32.xlu1 %v4291_v35, %s10448_s21  ;;  %v13085_v35 = vld [vmem:[#allocation2 + $0x1b] sm:$0xff]  ;;  %v13090_v25 = vld [vmem:[#allocation2 + $0x23] sm:$0xff] }
 0x4e7   : > { %4366 = vrot.lane.b32.xlu0 %v4290_v54, %s10448_s21  ;;  %v4473_v54 = vld [vmem:[#allocation2 + $0x3a] sm:$0xff] }
 0x4e8   : > { %v4001_v11 = vpop.permute.xlu1 %4000 }
 0x4e9   : > { %v3999_v53 = vpop.permute.xlu0 %3998  ;;  %4075 = vst.msk [vmem:[#allocation3 + $0xa8] sm:$0xff] %vm1727_vm5, %v4001_v11  ;;  %v13094_v11 = vld [vmem:[#allocation2 + $0x24] sm:$0xff] }
 0x4ea   : > { %4074 = vst.msk [vmem:[#allocation3 + $0xa0] sm:$0xff] %vm1727_vm5, %v3999_v53  ;;  %4372 = vrot.lane.b32.xlu1 %v4293_v16, %s10448_s21  ;;  %v15846_v16 = vmov -inf   ;;  %v4472_v53 = vld [vmem:[#allocation2 + $0x32] sm:$0xff] }
 0x4eb   : > { %4370 = vrot.lane.b32.xlu0 %v4292_v56, %s10448_s21  ;;  %8584 = vst.msk [vmem:[#allocation2 + $0x18] sm:$0xff] %vm366_vm0, %v15846_v16  ;;  %8585 = vst.msk [vmem:[#allocation2 + $0x20] sm:$0xff] %vm366_vm0, %v15846_v16 }
 0x4ec   : > { %v4005_v44 = vpop.permute.xlu1 %4004  ;;  %8586 = vst.msk [vmem:[#allocation2 + $0x28] sm:$0xf] %vm832_vm1, %v15846_v16 }
 0x4ed   : > { %v4003_v52 = vpop.permute.xlu0 %4002  ;;  %4077 = vst.msk [vmem:[#allocation3 + $0xb8] sm:$0xff] %vm1727_vm5, %v4005_v44  ;;  %v15847_v44 = vld [vmem:[#allocation4_spill] sm:$0xff] }
 0x4ee   : > { %4076 = vst.msk [vmem:[#allocation3 + $0xb0] sm:$0xff] %vm1727_vm5, %v4003_v52  ;;  %4376 = vrot.lane.b32.xlu1 %v4295_v10, %s10448_s21 }
 0x4ef   : > { %4374 = vrot.lane.b32.xlu0 %v4294_v14, %s10448_s21  ;;  %8641 = vst.msk [vmem:[#allocation2 + $0x19] sm:$0xff] %vm366_vm0, %v15847_v44  ;;  %8642 = vst.msk [vmem:[#allocation2 + $0x21] sm:$0xff] %vm366_vm0, %v15818_v28  ;;  %v4475_v14 = vld [vmem:[#allocation2 + $0x52] sm:$0xff] }
 0x4f0   : > { %v4009_v32 = vpop.permute.xlu1 %4008 }
 0x4f1   : > { %v4007_v4 = vpop.permute.xlu0 %4006  ;;  %4079 = vst.msk [vmem:[#allocation3 + $0xc8] sm:$0xff] %vm1727_vm5, %v4009_v32 }
 0x4f2   : > { %4078 = vst.msk [vmem:[#allocation3 + $0xc0] sm:$0xff] %vm1727_vm5, %v4007_v4  ;;  %4380 = vrot.lane.b32.xlu1 %v4297_v42, %s10448_s21  ;;  %v4474_v42 = vld [vmem:[#allocation2 + $0x4a] sm:$0xff]  ;;  %v4476_v4 = vld [vmem:[#allocation2 + $0x62] sm:$0xff] }
 0x4f3   : > { %4378 = vrot.lane.b32.xlu0 %v4296_v20, %s10448_s21  ;;  %v4477_v20 = vld [vmem:[#allocation2 + $0x6a] sm:$0xff] }
 0x4f4   : > { %v4013_v60 = vpop.permute.xlu1 %4012 }
 0x4f5   : > { %v4011_v5 = vpop.permute.xlu0 %4010  ;;  %4081 = vst.msk [vmem:[#allocation3 + $0xd8] sm:$0xff] %vm1727_vm5, %v4013_v60  ;;  %v4479_v60 = vld [vmem:[#allocation2 + $0x82] sm:$0xff] }
 0x4f6   : > { %4080 = vst.msk [vmem:[#allocation3 + $0xd0] sm:$0xff] %vm1727_vm5, %v4011_v5  ;;  %4384 = vrot.lane.b32.xlu1 %v4299_v40, %s10448_s21  ;;  %v4478_v5 = vld [vmem:[#allocation2 + $0x7a] sm:$0xff] }
 0x4f7   : > { %4382 = vrot.lane.b32.xlu0 %v4298_v39, %s10448_s21 }
 0x4f8   : > { %v4017_v23 = vpop.permute.xlu1 %4016 }
 0x4f9   : > { %v4015_v49 = vpop.permute.xlu0 %4014  ;;  %4083 = vst.msk [vmem:[#allocation3 + $0xe8] sm:$0xff] %vm1727_vm5, %v4017_v23  ;;  %v4481_v23 = vld [vmem:[#allocation2 + $0x9a] sm:$0xff] }
 0x4fa   : > { %4082 = vst.msk [vmem:[#allocation3 + $0xe0] sm:$0xff] %vm1727_vm5, %v4015_v49  ;;  %4388 = vrot.lane.b32.xlu1 %v4301_v24, %s10448_s21  ;;  %v4480_v49 = vld [vmem:[#allocation2 + $0x92] sm:$0xff] }
 0x4fb   : > { %4386 = vrot.lane.b32.xlu0 %v4300_v34, %s10448_s21 }
 0x4fc   : > { %v4021_v37 = vpop.permute.xlu1 %4020 }
 0x4fd   : > { %v4019_v3 = vpop.permute.xlu0 %4018  ;;  %4085 = vst.msk [vmem:[#allocation3 + $0xf8] sm:$0xff] %vm1727_vm5, %v4021_v37  ;;  %v4483_v37 = vld [vmem:[#allocation2 + $0xb2] sm:$0xff] }
 0x4fe   : > { %4084 = vst.msk [vmem:[#allocation3 + $0xf0] sm:$0xff] %vm1727_vm5, %v4019_v3  ;;  %4392 = vrot.lane.b32.xlu1 %v4303_v19, %s10448_s21  ;;  %v4482_v3 = vld [vmem:[#allocation2 + $0xaa] sm:$0xff]  ;;  %vm6173_vm5 = vcmask 523744  }
 0x4ff   : > { %4390 = vrot.lane.b32.xlu0 %v4302_v0, %s10448_s21 }
 0x500   : > { %v4153_v8 = vpop.permute.xlu1 %4152 }
 0x501   : > { %v4151_v38 = vpop.permute.xlu0 %4150  ;;  %4247 = vst.msk [vmem:[#allocation3 + $0x8] sm:$0xff] %vm1920_vm6, %v4153_v8  ;;  %v4485_v8 = vld [vmem:[#allocation2 + $0xca] sm:$0xff] }
 0x502   : > { %4246 = vst.msk [vmem:[#allocation3] sm:$0xff] %vm1920_vm6, %v4151_v38  ;;  %4396 = vrot.lane.b32.xlu1 %v4305_v31, %s10448_s21  ;;  %v4484_v38 = vld [vmem:[#allocation2 + $0xc2] sm:$0xff] }
 0x503   : > { %4394 = vrot.lane.b32.xlu0 %v4304_v63, %s10448_s21 }
 0x504   : > { %v4157_v17 = vpop.permute.xlu1 %4156 }
 0x505   : > { %v4155_v36 = vpop.permute.xlu0 %4154  ;;  %4249 = vst.msk [vmem:[#allocation3 + $0x18] sm:$0xff] %vm1920_vm6, %v4157_v17  ;;  %v4487_v17 = vld [vmem:[#allocation2 + $0xe2] sm:$0xff] }
 0x506   : > { %4248 = vst.msk [vmem:[#allocation3 + $0x10] sm:$0xff] %vm1920_vm6, %v4155_v36  ;;  %4400 = vrot.lane.b32.xlu1 %v4307_v13, %s10448_s21  ;;  %v4486_v36 = vld [vmem:[#allocation2 + $0xda] sm:$0xff] }
 0x507   : > { %4398 = vrot.lane.b32.xlu0 %v4306_v51, %s10448_s21 }
 0x508   : > { %v4161_v22 = vpop.permute.xlu1 %4160 }
 0x509   : > { %v4159_v57 = vpop.permute.xlu0 %4158  ;;  %4251 = vst.msk [vmem:[#allocation3 + $0x28] sm:$0xff] %vm1920_vm6, %v4161_v22  ;;  %v4489_v22 = vld [vmem:[#allocation2 + $0xfa] sm:$0xff] }
 0x50a   : > { %4250 = vst.msk [vmem:[#allocation3 + $0x20] sm:$0xff] %vm1920_vm6, %v4159_v57  ;;  %4404 = vrot.lane.b32.xlu1 %v4309_v6, %s10448_s21  ;;  %v4488_v57 = vld [vmem:[#allocation2 + $0xf2] sm:$0xff] }
 0x50b   : > { %4402 = vrot.lane.b32.xlu0 %v4308_v62, %s10448_s21  ;;  %s10456_s21 = smov 52  }
 0x50c   : > { %v4165_v29 = vpop.permute.xlu1 %4164 }
 0x50d   : > { %v4163_v30 = vpop.permute.xlu0 %4162  ;;  %4253 = vst.msk [vmem:[#allocation3 + $0x38] sm:$0xff] %vm1920_vm6, %v4165_v29  ;;  %v4491_v29 = vld [vmem:[#allocation2 + $0x112] sm:$0xff] }
 0x50e   : > { %4252 = vst.msk [vmem:[#allocation3 + $0x30] sm:$0xff] %vm1920_vm6, %v4163_v30  ;;  %4536 = vrot.lane.b32.xlu1 %v4471_v43, %s10449_s22  ;;  %v4490_v30 = vld [vmem:[#allocation2 + $0x10a] sm:$0xff] }
 0x50f   : > { %4534 = vrot.lane.b32.xlu0 %v4470_v7, %s10449_s22 }
 0x510   : > { %v4169_v56 = vpop.permute.xlu1 %4168 }
 0x511   : > { %v4167_v10 = vpop.permute.xlu0 %4166  ;;  %4255 = vst.msk [vmem:[#allocation3 + $0x48] sm:$0xff] %vm1920_vm6, %v4169_v56  ;;  %v4493_v56 = vld [vmem:[#allocation2 + $0x12a] sm:$0xff] }
 0x512   : > { %4254 = vst.msk [vmem:[#allocation3 + $0x40] sm:$0xff] %vm1920_vm6, %v4167_v10  ;;  %4540 = vrot.lane.b32.xlu1 %v4473_v54, %s10449_s22  ;;  %v4492_v10 = vld [vmem:[#allocation2 + $0x122] sm:$0xff] }
 0x513   : > { %4538 = vrot.lane.b32.xlu0 %v4472_v53, %s10449_s22 }
 0x514   : > { %v4173_v52 = vpop.permute.xlu1 %4172 }
 0x515   : > { %v4171_v32 = vpop.permute.xlu0 %4170  ;;  %4257 = vst.msk [vmem:[#allocation3 + $0x58] sm:$0xff] %vm1920_vm6, %v4173_v52 }
 0x516   : > { %4256 = vst.msk [vmem:[#allocation3 + $0x50] sm:$0xff] %vm1920_vm6, %v4171_v32  ;;  %4544 = vrot.lane.b32.xlu1 %v4475_v14, %s10449_s22  ;;  %v4495_v14 = vld [vmem:[#allocation2 + $0x142] sm:$0xff] }
 0x517   : > { %4542 = vrot.lane.b32.xlu0 %v4474_v42, %s10449_s22  ;;  %v4494_v42 = vld [vmem:[#allocation2 + $0x13a] sm:$0xff] }
 0x518   : > { %v4177_v28 = vpop.permute.xlu1 %4176 }
 0x519   : > { %v4175_v40 = vpop.permute.xlu0 %4174  ;;  %4259 = vst.msk [vmem:[#allocation3 + $0x68] sm:$0xff] %vm1920_vm6, %v4177_v28 }
 0x51a   : > { %4258 = vst.msk [vmem:[#allocation3 + $0x60] sm:$0xff] %vm1920_vm6, %v4175_v40  ;;  %4548 = vrot.lane.b32.xlu1 %v4477_v20, %s10449_s22  ;;  %v4497_v20 = vld [vmem:[#allocation2 + $0x15a] sm:$0xff] }
 0x51b   : > { %4546 = vrot.lane.b32.xlu0 %v4476_v4, %s10449_s22  ;;  %v4496_v4 = vld [vmem:[#allocation2 + $0x152] sm:$0xff] }
 0x51c   : > { %v4181_v39 = vpop.permute.xlu1 %4180 }
 0x51d   : > { %v4179_v24 = vpop.permute.xlu0 %4178  ;;  %4261 = vst.msk [vmem:[#allocation3 + $0x78] sm:$0xff] %vm1920_vm6, %v4181_v39 }
 0x51e   : > { %4260 = vst.msk [vmem:[#allocation3 + $0x70] sm:$0xff] %vm1920_vm6, %v4179_v24  ;;  %4552 = vrot.lane.b32.xlu1 %v4479_v60, %s10449_s22  ;;  %v4499_v60 = vld [vmem:[#allocation2 + $0x172] sm:$0xff] }
 0x51f   : > { %4550 = vrot.lane.b32.xlu0 %v4478_v5, %s10449_s22  ;;  %v4498_v5 = vld [vmem:[#allocation2 + $0x16a] sm:$0xff] }
 0x520   : > { %v4185_v34 = vpop.permute.xlu1 %4184 }
 0x521   : > { %v4183_v19 = vpop.permute.xlu0 %4182  ;;  %4263 = vst.msk [vmem:[#allocation3 + $0x88] sm:$0xff] %vm1920_vm6, %v4185_v34 }
 0x522   : > { %4262 = vst.msk [vmem:[#allocation3 + $0x80] sm:$0xff] %vm1920_vm6, %v4183_v19  ;;  %4556 = vrot.lane.b32.xlu1 %v4481_v23, %s10449_s22  ;;  %v4501_v23 = vld [vmem:[#allocation2 + $0x18a] sm:$0xff] }
 0x523   : > { %4554 = vrot.lane.b32.xlu0 %v4480_v49, %s10449_s22  ;;  %v4500_v49 = vld [vmem:[#allocation2 + $0x182] sm:$0xff] }
 0x524   : > { %v4189_v0 = vpop.permute.xlu1 %4188 }
 0x525   : > { %v4187_v31 = vpop.permute.xlu0 %4186  ;;  %4265 = vst.msk [vmem:[#allocation3 + $0x98] sm:$0xff] %vm1920_vm6, %v4189_v0 }
 0x526   : > { %4264 = vst.msk [vmem:[#allocation3 + $0x90] sm:$0xff] %vm1920_vm6, %v4187_v31  ;;  %4560 = vrot.lane.b32.xlu1 %v4483_v37, %s10449_s22 }
 0x527   : > { %4558 = vrot.lane.b32.xlu0 %v4482_v3, %s10449_s22  ;;  %v4665_v3 = vld [vmem:[#allocation2 + $0x3b] sm:$0xff] }
 0x528   : > { %v4193_v63 = vpop.permute.xlu1 %4192 }
 0x529   : > { %v4191_v13 = vpop.permute.xlu0 %4190  ;;  %4267 = vst.msk [vmem:[#allocation3 + $0xa8] sm:$0xff] %vm1920_vm6, %v4193_v63 }
 0x52a   : > { %4266 = vst.msk [vmem:[#allocation3 + $0xa0] sm:$0xff] %vm1920_vm6, %v4191_v13  ;;  %4564 = vrot.lane.b32.xlu1 %v4485_v8, %s10449_s22  ;;  %v4664_v8 = vld [vmem:[#allocation2 + $0x33] sm:$0xff] }
 0x52b   : > { %4562 = vrot.lane.b32.xlu0 %v4484_v38, %s10449_s22  ;;  %v4667_v38 = vld [vmem:[#allocation2 + $0x53] sm:$0xff] }
 0x52c   : > { %v4197_v51 = vpop.permute.xlu1 %4196 }
 0x52d   : > { %v4195_v6 = vpop.permute.xlu0 %4194  ;;  %4269 = vst.msk [vmem:[#allocation3 + $0xb8] sm:$0xff] %vm1920_vm6, %v4197_v51 }
 0x52e   : > { %4268 = vst.msk [vmem:[#allocation3 + $0xb0] sm:$0xff] %vm1920_vm6, %v4195_v6  ;;  %4568 = vrot.lane.b32.xlu1 %v4487_v17, %s10449_s22  ;;  %v4666_v17 = vld [vmem:[#allocation2 + $0x4b] sm:$0xff] }
 0x52f   : > { %4566 = vrot.lane.b32.xlu0 %v4486_v36, %s10449_s22  ;;  %v4668_v36 = vld [vmem:[#allocation2 + $0x63] sm:$0xff] }
 0x530   : > { %v4201_v62 = vpop.permute.xlu1 %4200 }
 0x531   : > { %v4199_v43 = vpop.permute.xlu0 %4198  ;;  %4271 = vst.msk [vmem:[#allocation3 + $0xc8] sm:$0xff] %vm1920_vm6, %v4201_v62 }
 0x532   : > { %4270 = vst.msk [vmem:[#allocation3 + $0xc0] sm:$0xff] %vm1920_vm6, %v4199_v43  ;;  %4572 = vrot.lane.b32.xlu1 %v4489_v22, %s10449_s22  ;;  %v4671_v22 = vld [vmem:[#allocation2 + $0x83] sm:$0xff] }
 0x533   : > { %4570 = vrot.lane.b32.xlu0 %v4488_v57, %s10449_s22  ;;  %v4670_v57 = vld [vmem:[#allocation2 + $0x7b] sm:$0xff] }
 0x534   : > { %v4205_v7 = vpop.permute.xlu1 %4204 }
 0x535   : > { %v4203_v54 = vpop.permute.xlu0 %4202  ;;  %4273 = vst.msk [vmem:[#allocation3 + $0xd8] sm:$0xff] %vm1920_vm6, %v4205_v7 }
 0x536   : > { %4272 = vst.msk [vmem:[#allocation3 + $0xd0] sm:$0xff] %vm1920_vm6, %v4203_v54  ;;  %4576 = vrot.lane.b32.xlu1 %v4491_v29, %s10449_s22  ;;  %v4673_v29 = vld [vmem:[#allocation2 + $0x9b] sm:$0xff] }
 0x537   : > { %4574 = vrot.lane.b32.xlu0 %v4490_v30, %s10449_s22  ;;  %v4672_v30 = vld [vmem:[#allocation2 + $0x93] sm:$0xff] }
 0x538   : > { %v4209_v53 = vpop.permute.xlu1 %4208 }
 0x539   : > { %v4207_v44 = vpop.permute.xlu0 %4206  ;;  %4275 = vst.msk [vmem:[#allocation3 + $0xe8] sm:$0xff] %vm1920_vm6, %v4209_v53 }
 0x53a   : > { %4274 = vst.msk [vmem:[#allocation3 + $0xe0] sm:$0xff] %vm1920_vm6, %v4207_v44  ;;  %4580 = vrot.lane.b32.xlu1 %v4493_v56, %s10449_s22  ;;  %v4675_v56 = vld [vmem:[#allocation2 + $0xb3] sm:$0xff] }
 0x53b   : > { %4578 = vrot.lane.b32.xlu0 %v4492_v10, %s10449_s22  ;;  %v4674_v10 = vld [vmem:[#allocation2 + $0xab] sm:$0xff] }
 0x53c   : > { %v4213_v52 = vpop.permute.xlu1 %4212 }
 0x53d   : > { %v4211_v32 = vpop.permute.xlu0 %4210  ;;  %4277 = vst.msk [vmem:[#allocation3 + $0xf8] sm:$0xff] %vm1920_vm6, %v4213_v52 }
 0x53e   : > { %4276 = vst.msk [vmem:[#allocation3 + $0xf0] sm:$0xff] %vm1920_vm6, %v4211_v32  ;;  %4584 = vrot.lane.b32.xlu1 %v4495_v14, %s10449_s22  ;;  %v4677_v14 = vld [vmem:[#allocation2 + $0xcb] sm:$0xff]  ;;  %vm6366_vm6 = vcmask 556544  }
 0x53f   : > { %4582 = vrot.lane.b32.xlu0 %v4494_v42, %s10449_s22  ;;  %v4676_v42 = vld [vmem:[#allocation2 + $0xc3] sm:$0xff] }
 0x540   : > { %v4345_v28 = vpop.permute.xlu1 %4344 }
 0x541   : > { %v4343_v40 = vpop.permute.xlu0 %4342  ;;  %4439 = vst.msk [vmem:[#allocation3 + $0x8] sm:$0xff] %vm2114_vm7, %v4345_v28 }
 0x542   : > { %4438 = vst.msk [vmem:[#allocation3] sm:$0xff] %vm2114_vm7, %v4343_v40  ;;  %4588 = vrot.lane.b32.xlu1 %v4497_v20, %s10449_s22  ;;  %v4679_v20 = vld [vmem:[#allocation2 + $0xe3] sm:$0xff] }
 0x543   : > { %4586 = vrot.lane.b32.xlu0 %v4496_v4, %s10449_s22  ;;  %v4678_v4 = vld [vmem:[#allocation2 + $0xdb] sm:$0xff] }
 0x544   : > { %v4349_v39 = vpop.permute.xlu1 %4348 }
 0x545   : > { %v4347_v24 = vpop.permute.xlu0 %4346  ;;  %4441 = vst.msk [vmem:[#allocation3 + $0x18] sm:$0xff] %vm2114_vm7, %v4349_v39 }
 0x546   : > { %4440 = vst.msk [vmem:[#allocation3 + $0x10] sm:$0xff] %vm2114_vm7, %v4347_v24  ;;  %4592 = vrot.lane.b32.xlu1 %v4499_v60, %s10449_s22  ;;  %v4681_v60 = vld [vmem:[#allocation2 + $0xfb] sm:$0xff] }
 0x547   : > { %4590 = vrot.lane.b32.xlu0 %v4498_v5, %s10449_s22  ;;  %v4680_v5 = vld [vmem:[#allocation2 + $0xf3] sm:$0xff] }
 0x548   : > { %v4353_v34 = vpop.permute.xlu1 %4352 }
 0x549   : > { %v4351_v19 = vpop.permute.xlu0 %4350  ;;  %4443 = vst.msk [vmem:[#allocation3 + $0x28] sm:$0xff] %vm2114_vm7, %v4353_v34 }
 0x54a   : > { %4442 = vst.msk [vmem:[#allocation3 + $0x20] sm:$0xff] %vm2114_vm7, %v4351_v19  ;;  %4596 = vrot.lane.b32.xlu1 %v4501_v23, %s10449_s22  ;;  %v4683_v23 = vld [vmem:[#allocation2 + $0x113] sm:$0xff] }
 0x54b   : > { %4594 = vrot.lane.b32.xlu0 %v4500_v49, %s10449_s22  ;;  %v4682_v49 = vld [vmem:[#allocation2 + $0x10b] sm:$0xff]  ;;  %s10457_s22 = smov 56  }
 0x54c   : > { %v4357_v37 = vpop.permute.xlu1 %4356 }
 0x54d   : > { %v4355_v0 = vpop.permute.xlu0 %4354  ;;  %4445 = vst.msk [vmem:[#allocation3 + $0x38] sm:$0xff] %vm2114_vm7, %v4357_v37  ;;  %v4685_v37 = vld [vmem:[#allocation2 + $0x12b] sm:$0xff] }
 0x54e   : > { %4444 = vst.msk [vmem:[#allocation3 + $0x30] sm:$0xff] %vm2114_vm7, %v4355_v0  ;;  %4728 = vrot.lane.b32.xlu1 %v13090_v25, %s10450_s15 }
 0x54f   : > { %4726 = vrot.lane.b32.xlu0 %v13085_v35, %s10450_s15  ;;  %v4669_v35 = vld [vmem:[#allocation2 + $0x6b] sm:$0xff] }
 0x550   : > { %v4361_v31 = vpop.permute.xlu1 %4360 }
 0x551   : > { %v4359_v63 = vpop.permute.xlu0 %4358  ;;  %4447 = vst.msk [vmem:[#allocation3 + $0x48] sm:$0xff] %vm2114_vm7, %v4361_v31 }
 0x552   : > { %4446 = vst.msk [vmem:[#allocation3 + $0x40] sm:$0xff] %vm2114_vm7, %v4359_v63  ;;  %4732 = vrot.lane.b32.xlu1 %v4665_v3, %s10450_s15  ;;  %v4684_v3 = vld [vmem:[#allocation2 + $0x123] sm:$0xff] }
 0x553   : > { %4730 = vrot.lane.b32.xlu0 %v4664_v8, %s10450_s15  ;;  %v4687_v8 = vld [vmem:[#allocation2 + $0x143] sm:$0xff] }
 0x554   : > { %v4365_v13 = vpop.permute.xlu1 %4364 }
 0x555   : > { %v4363_v51 = vpop.permute.xlu0 %4362  ;;  %4449 = vst.msk [vmem:[#allocation3 + $0x58] sm:$0xff] %vm2114_vm7, %v4365_v13 }
 0x556   : > { %4448 = vst.msk [vmem:[#allocation3 + $0x50] sm:$0xff] %vm2114_vm7, %v4363_v51  ;;  %4736 = vrot.lane.b32.xlu1 %v4667_v38, %s10450_s15  ;;  %v4686_v38 = vld [vmem:[#allocation2 + $0x13b] sm:$0xff] }
 0x557   : > { %4734 = vrot.lane.b32.xlu0 %v4666_v17, %s10450_s15  ;;  %v4689_v17 = vld [vmem:[#allocation2 + $0x15b] sm:$0xff] }
 0x558   : > { %v4369_v25 = vpop.permute.xlu1 %4368 }
 0x559   : > { %v4367_v6 = vpop.permute.xlu0 %4366  ;;  %4451 = vst.msk [vmem:[#allocation3 + $0x68] sm:$0xff] %vm2114_vm7, %v4369_v25 }
 0x55a   : > { %4450 = vst.msk [vmem:[#allocation3 + $0x60] sm:$0xff] %vm2114_vm7, %v4367_v6  ;;  %4740 = vrot.lane.b32.xlu1 %v4669_v35, %s10450_s15  ;;  %v4688_v35 = vld [vmem:[#allocation2 + $0x153] sm:$0xff] }
 0x55b   : > { %4738 = vrot.lane.b32.xlu0 %v4668_v36, %s10450_s15  ;;  %v4691_v36 = vld [vmem:[#allocation2 + $0x173] sm:$0xff] }
 0x55c   : > { %v4373_v62 = vpop.permute.xlu1 %4372 }
 0x55d   : > { %v4371_v43 = vpop.permute.xlu0 %4370  ;;  %4453 = vst.msk [vmem:[#allocation3 + $0x78] sm:$0xff] %vm2114_vm7, %v4373_v62 }
 0x55e   : > { %4452 = vst.msk [vmem:[#allocation3 + $0x70] sm:$0xff] %vm2114_vm7, %v4371_v43  ;;  %4744 = vrot.lane.b32.xlu1 %v4671_v22, %s10450_s15  ;;  %v4690_v22 = vld [vmem:[#allocation2 + $0x16b] sm:$0xff] }
 0x55f   : > { %4742 = vrot.lane.b32.xlu0 %v4670_v57, %s10450_s15  ;;  %v4693_v57 = vld [vmem:[#allocation2 + $0x18b] sm:$0xff] }
 0x560   : > { %v4377_v7 = vpop.permute.xlu1 %4376 }
 0x561   : > { %v4375_v54 = vpop.permute.xlu0 %4374  ;;  %4455 = vst.msk [vmem:[#allocation3 + $0x88] sm:$0xff] %vm2114_vm7, %v4377_v7 }
 0x562   : > { %4454 = vst.msk [vmem:[#allocation3 + $0x80] sm:$0xff] %vm2114_vm7, %v4375_v54  ;;  %4748 = vrot.lane.b32.xlu1 %v4673_v29, %s10450_s15  ;;  %v4692_v29 = vld [vmem:[#allocation2 + $0x183] sm:$0xff] }
 0x563   : > { %4746 = vrot.lane.b32.xlu0 %v4672_v30, %s10450_s15 }
 0x564   : > { %v4381_v53 = vpop.permute.xlu1 %4380 }
 0x565   : > { %v4379_v44 = vpop.permute.xlu0 %4378  ;;  %4457 = vst.msk [vmem:[#allocation3 + $0x98] sm:$0xff] %vm2114_vm7, %v4381_v53 }
 0x566   : > { %4456 = vst.msk [vmem:[#allocation3 + $0x90] sm:$0xff] %vm2114_vm7, %v4379_v44  ;;  %4752 = vrot.lane.b32.xlu1 %v4675_v56, %s10450_s15  ;;  %v4857_v56 = vld [vmem:[#allocation2 + $0x3c] sm:$0xff] }
 0x567   : > { %4750 = vrot.lane.b32.xlu0 %v4674_v10, %s10450_s15  ;;  %v4856_v10 = vld [vmem:[#allocation2 + $0x34] sm:$0xff] }
 0x568   : > { %v4385_v52 = vpop.permute.xlu1 %4384 }
 0x569   : > { %v4383_v32 = vpop.permute.xlu0 %4382  ;;  %4459 = vst.msk [vmem:[#allocation3 + $0xa8] sm:$0xff] %vm2114_vm7, %v4385_v52 }
 0x56a   : > { %4458 = vst.msk [vmem:[#allocation3 + $0xa0] sm:$0xff] %vm2114_vm7, %v4383_v32  ;;  %4756 = vrot.lane.b32.xlu1 %v4677_v14, %s10450_s15  ;;  %v4859_v14 = vld [vmem:[#allocation2 + $0x54] sm:$0xff] }
 0x56b   : > { %4754 = vrot.lane.b32.xlu0 %v4676_v42, %s10450_s15  ;;  %v4858_v42 = vld [vmem:[#allocation2 + $0x4c] sm:$0xff] }
 0x56c   : > { %v4389_v28 = vpop.permute.xlu1 %4388 }
 0x56d   : > { %v4387_v40 = vpop.permute.xlu0 %4386  ;;  %4461 = vst.msk [vmem:[#allocation3 + $0xb8] sm:$0xff] %vm2114_vm7, %v4389_v28 }
 0x56e   : > { %4460 = vst.msk [vmem:[#allocation3 + $0xb0] sm:$0xff] %vm2114_vm7, %v4387_v40  ;;  %4760 = vrot.lane.b32.xlu1 %v4679_v20, %s10450_s15  ;;  %v4860_v20 = vld [vmem:[#allocation2 + $0x64] sm:$0xff] }
 0x56f   : > { %4758 = vrot.lane.b32.xlu0 %v4678_v4, %s10450_s15  ;;  %v4863_v4 = vld [vmem:[#allocation2 + $0x84] sm:$0xff] }
 0x570   : > { %v4393_v39 = vpop.permute.xlu1 %4392 }
 0x571   : > { %v4391_v24 = vpop.permute.xlu0 %4390  ;;  %4463 = vst.msk [vmem:[#allocation3 + $0xc8] sm:$0xff] %vm2114_vm7, %v4393_v39 }
 0x572   : > { %4462 = vst.msk [vmem:[#allocation3 + $0xc0] sm:$0xff] %vm2114_vm7, %v4391_v24  ;;  %4764 = vrot.lane.b32.xlu1 %v4681_v60, %s10450_s15  ;;  %v4862_v60 = vld [vmem:[#allocation2 + $0x7c] sm:$0xff] }
 0x573   : > { %4762 = vrot.lane.b32.xlu0 %v4680_v5, %s10450_s15  ;;  %v4865_v5 = vld [vmem:[#allocation2 + $0x9c] sm:$0xff] }
 0x574   : > { %v4397_v34 = vpop.permute.xlu1 %4396 }
 0x575   : > { %v4395_v19 = vpop.permute.xlu0 %4394  ;;  %4465 = vst.msk [vmem:[#allocation3 + $0xd8] sm:$0xff] %vm2114_vm7, %v4397_v34 }
 0x576   : > { %4464 = vst.msk [vmem:[#allocation3 + $0xd0] sm:$0xff] %vm2114_vm7, %v4395_v19  ;;  %4768 = vrot.lane.b32.xlu1 %v4683_v23, %s10450_s15  ;;  %v4864_v23 = vld [vmem:[#allocation2 + $0x94] sm:$0xff] }
 0x577   : > { %4766 = vrot.lane.b32.xlu0 %v4682_v49, %s10450_s15  ;;  %v4867_v49 = vld [vmem:[#allocation2 + $0xb4] sm:$0xff] }
 0x578   : > { %v4401_v0 = vpop.permute.xlu1 %4400 }
 0x579   : > { %v4399_v31 = vpop.permute.xlu0 %4398  ;;  %4467 = vst.msk [vmem:[#allocation3 + $0xe8] sm:$0xff] %vm2114_vm7, %v4401_v0 }
 0x57a   : > { %4466 = vst.msk [vmem:[#allocation3 + $0xe0] sm:$0xff] %vm2114_vm7, %v4399_v31  ;;  %4772 = vrot.lane.b32.xlu1 %v4685_v37, %s10450_s15  ;;  %v4866_v37 = vld [vmem:[#allocation2 + $0xac] sm:$0xff] }
 0x57b   : > { %4770 = vrot.lane.b32.xlu0 %v4684_v3, %s10450_s15  ;;  %v4869_v3 = vld [vmem:[#allocation2 + $0xcc] sm:$0xff] }
 0x57c   : > { %v4405_v63 = vpop.permute.xlu1 %4404 }
 0x57d   : > { %v4403_v13 = vpop.permute.xlu0 %4402  ;;  %4469 = vst.msk [vmem:[#allocation3 + $0xf8] sm:$0xff] %vm2114_vm7, %v4405_v63 }
 0x57e   : > { %4468 = vst.msk [vmem:[#allocation3 + $0xf0] sm:$0xff] %vm2114_vm7, %v4403_v13  ;;  %4776 = vrot.lane.b32.xlu1 %v4687_v8, %s10450_s15  ;;  %v4868_v8 = vld [vmem:[#allocation2 + $0xc4] sm:$0xff]  ;;  %vm6559_vm7 = vcmask 589344  }
 0x57f   : > { %4774 = vrot.lane.b32.xlu0 %v4686_v38, %s10450_s15  ;;  %v4871_v38 = vld [vmem:[#allocation2 + $0xe4] sm:$0xff] }
 0x580   : > { %v4537_v51 = vpop.permute.xlu1 %4536 }
 0x581   : > { %v4535_v25 = vpop.permute.xlu0 %4534  ;;  %4631 = vst.msk [vmem:[#allocation3 + $0x8] sm:$0xff] %vm2307_vm9, %v4537_v51 }
 0x582   : > { %4630 = vst.msk [vmem:[#allocation3] sm:$0xff] %vm2307_vm9, %v4535_v25  ;;  %4780 = vrot.lane.b32.xlu1 %v4689_v17, %s10450_s15  ;;  %v4870_v17 = vld [vmem:[#allocation2 + $0xdc] sm:$0xff] }
 0x583   : > { %4778 = vrot.lane.b32.xlu0 %v4688_v35, %s10450_s15  ;;  %v4873_v35 = vld [vmem:[#allocation2 + $0xfc] sm:$0xff] }
 0x584   : > { %v4541_v6 = vpop.permute.xlu1 %4540 }
 0x585   : > { %v4539_v62 = vpop.permute.xlu0 %4538  ;;  %4633 = vst.msk [vmem:[#allocation3 + $0x18] sm:$0xff] %vm2307_vm9, %v4541_v6 }
 0x586   : > { %4632 = vst.msk [vmem:[#allocation3 + $0x10] sm:$0xff] %vm2307_vm9, %v4539_v62  ;;  %4784 = vrot.lane.b32.xlu1 %v4691_v36, %s10450_s15  ;;  %v4872_v36 = vld [vmem:[#allocation2 + $0xf4] sm:$0xff] }
 0x587   : > { %4782 = vrot.lane.b32.xlu0 %v4690_v22, %s10450_s15  ;;  %v4875_v22 = vld [vmem:[#allocation2 + $0x114] sm:$0xff] }
 0x588   : > { %v4545_v43 = vpop.permute.xlu1 %4544 }
 0x589   : > { %v4543_v7 = vpop.permute.xlu0 %4542  ;;  %4635 = vst.msk [vmem:[#allocation3 + $0x28] sm:$0xff] %vm2307_vm9, %v4545_v43 }
 0x58a   : > { %4634 = vst.msk [vmem:[#allocation3 + $0x20] sm:$0xff] %vm2307_vm9, %v4543_v7  ;;  %4788 = vrot.lane.b32.xlu1 %v4693_v57, %s10450_s15  ;;  %v4874_v57 = vld [vmem:[#allocation2 + $0x10c] sm:$0xff] }
 0x58b   : > { %4786 = vrot.lane.b32.xlu0 %v4692_v29, %s10450_s15  ;;  %v4877_v29 = vld [vmem:[#allocation2 + $0x12c] sm:$0xff]  ;;  %s10458_s15 = smov 60  }
 0x58c   : > { %v4549_v30 = vpop.permute.xlu1 %4548 }
 0x58d   : > { %v4547_v54 = vpop.permute.xlu0 %4546  ;;  %4637 = vst.msk [vmem:[#allocation3 + $0x38] sm:$0xff] %vm2307_vm9, %v4549_v30  ;;  %v4876_v30 = vld [vmem:[#allocation2 + $0x124] sm:$0xff] }
 0x58e   : > { %4636 = vst.msk [vmem:[#allocation3 + $0x30] sm:$0xff] %vm2307_vm9, %v4547_v54  ;;  %4920 = vrot.lane.b32.xlu1 %v13094_v11, %s10452_s16 }
 0x58f   : > { %4918 = vrot.lane.b32.xlu0 %v13087_v33, %s10452_s16  ;;  %v4861_v33 = vld [vmem:[#allocation2 + $0x6c] sm:$0xff] }
 0x590   : > { %v4553_v53 = vpop.permute.xlu1 %4552 }
 0x591   : > { %v4551_v44 = vpop.permute.xlu0 %4550  ;;  %4639 = vst.msk [vmem:[#allocation3 + $0x48] sm:$0xff] %vm2307_vm9, %v4553_v53 }
 0x592   : > { %4638 = vst.msk [vmem:[#allocation3 + $0x40] sm:$0xff] %vm2307_vm9, %v4551_v44  ;;  %4924 = vrot.lane.b32.xlu1 %v4857_v56, %s10452_s16  ;;  %v4879_v56 = vld [vmem:[#allocation2 + $0x144] sm:$0xff] }
 0x593   : > { %4922 = vrot.lane.b32.xlu0 %v4856_v10, %s10452_s16  ;;  %v4878_v10 = vld [vmem:[#allocation2 + $0x13c] sm:$0xff] }
 0x594   : > { %v4557_v52 = vpop.permute.xlu1 %4556 }
 0x595   : > { %v4555_v32 = vpop.permute.xlu0 %4554  ;;  %4641 = vst.msk [vmem:[#allocation3 + $0x58] sm:$0xff] %vm2307_vm9, %v4557_v52 }
 0x596   : > { %4640 = vst.msk [vmem:[#allocation3 + $0x50] sm:$0xff] %vm2307_vm9, %v4555_v32  ;;  %4928 = vrot.lane.b32.xlu1 %v4859_v14, %s10452_s16  ;;  %v4881_v14 = vld [vmem:[#allocation2 + $0x15c] sm:$0xff] }
 0x597   : > { %4926 = vrot.lane.b32.xlu0 %v4858_v42, %s10452_s16  ;;  %v4880_v42 = vld [vmem:[#allocation2 + $0x154] sm:$0xff] }
 0x598   : > { %v4561_v11 = vpop.permute.xlu1 %4560 }
 0x599   : > { %v4559_v28 = vpop.permute.xlu0 %4558  ;;  %4643 = vst.msk [vmem:[#allocation3 + $0x68] sm:$0xff] %vm2307_vm9, %v4561_v11 }
 0x59a   : > { %4642 = vst.msk [vmem:[#allocation3 + $0x60] sm:$0xff] %vm2307_vm9, %v4559_v28  ;;  %4932 = vrot.lane.b32.xlu1 %v4861_v33, %s10452_s16  ;;  %v4883_v33 = vld [vmem:[#allocation2 + $0x174] sm:$0xff] }
 0x59b   : > { %4930 = vrot.lane.b32.xlu0 %v4860_v20, %s10452_s16  ;;  %v4882_v20 = vld [vmem:[#allocation2 + $0x16c] sm:$0xff] }
 0x59c   : > { %v4565_v40 = vpop.permute.xlu1 %4564 }
 0x59d   : > { %v4563_v39 = vpop.permute.xlu0 %4562  ;;  %4645 = vst.msk [vmem:[#allocation3 + $0x78] sm:$0xff] %vm2307_vm9, %v4565_v40 }
 0x59e   : > { %4644 = vst.msk [vmem:[#allocation3 + $0x70] sm:$0xff] %vm2307_vm9, %v4563_v39  ;;  %4936 = vrot.lane.b32.xlu1 %v4863_v4, %s10452_s16  ;;  %v4885_v4 = vld [vmem:[#allocation2 + $0x18c] sm:$0xff] }
 0x59f   : > { %4934 = vrot.lane.b32.xlu0 %v4862_v60, %s10452_s16  ;;  %v4884_v60 = vld [vmem:[#allocation2 + $0x184] sm:$0xff] }
 0x5a0   : > { %v4569_v24 = vpop.permute.xlu1 %4568 }
 0x5a1   : > { %v4567_v34 = vpop.permute.xlu0 %4566  ;;  %4647 = vst.msk [vmem:[#allocation3 + $0x88] sm:$0xff] %vm2307_vm9, %v4569_v24 }
 0x5a2   : > { %4646 = vst.msk [vmem:[#allocation3 + $0x80] sm:$0xff] %vm2307_vm9, %v4567_v34  ;;  %4940 = vrot.lane.b32.xlu1 %v4865_v5, %s10452_s16  ;;  %v5048_v5 = vld [vmem:[#allocation2 + $0x38] sm:$0xff] }
 0x5a3   : > { %4938 = vrot.lane.b32.xlu0 %v4864_v23, %s10452_s16  ;;  %v5047_v23 = vld [vmem:[#allocation2 + $0x30] sm:$0xff] }
 0x5a4   : > { %v4573_v19 = vpop.permute.xlu1 %4572 }
 0x5a5   : > { %v4571_v0 = vpop.permute.xlu0 %4570  ;;  %4649 = vst.msk [vmem:[#allocation3 + $0x98] sm:$0xff] %vm2307_vm9, %v4573_v19 }
 0x5a6   : > { %4648 = vst.msk [vmem:[#allocation3 + $0x90] sm:$0xff] %vm2307_vm9, %v4571_v0  ;;  %4944 = vrot.lane.b32.xlu1 %v4867_v49, %s10452_s16  ;;  %v5050_v49 = vld [vmem:[#allocation2 + $0x50] sm:$0xff] }
 0x5a7   : > { %4942 = vrot.lane.b32.xlu0 %v4866_v37, %s10452_s16  ;;  %v5049_v37 = vld [vmem:[#allocation2 + $0x48] sm:$0xff] }
 0x5a8   : > { %v4577_v31 = vpop.permute.xlu1 %4576 }
 0x5a9   : > { %v4575_v63 = vpop.permute.xlu0 %4574  ;;  %4651 = vst.msk [vmem:[#allocation3 + $0xa8] sm:$0xff] %vm2307_vm9, %v4577_v31 }
 0x5aa   : > { %4650 = vst.msk [vmem:[#allocation3 + $0xa0] sm:$0xff] %vm2307_vm9, %v4575_v63  ;;  %4948 = vrot.lane.b32.xlu1 %v4869_v3, %s10452_s16  ;;  %v5052_v3 = vld [vmem:[#allocation2 + $0x68] sm:$0xff] }
 0x5ab   : > { %4946 = vrot.lane.b32.xlu0 %v4868_v8, %s10452_s16  ;;  %v5051_v8 = vld [vmem:[#allocation2 + $0x60] sm:$0xff] }
 0x5ac   : > { %v4581_v13 = vpop.permute.xlu1 %4580 }
 0x5ad   : > { %v4579_v51 = vpop.permute.xlu0 %4578  ;;  %4653 = vst.msk [vmem:[#allocation3 + $0xb8] sm:$0xff] %vm2307_vm9, %v4581_v13 }
 0x5ae   : > { %4652 = vst.msk [vmem:[#allocation3 + $0xb0] sm:$0xff] %vm2307_vm9, %v4579_v51  ;;  %4952 = vrot.lane.b32.xlu1 %v4871_v38, %s10452_s16  ;;  %v5054_v38 = vld [vmem:[#allocation2 + $0x80] sm:$0xff] }
 0x5af   : > { %4950 = vrot.lane.b32.xlu0 %v4870_v17, %s10452_s16  ;;  %v5053_v17 = vld [vmem:[#allocation2 + $0x78] sm:$0xff] }
 0x5b0   : > { %v4585_v25 = vpop.permute.xlu1 %4584 }
 0x5b1   : > { %v4583_v6 = vpop.permute.xlu0 %4582  ;;  %4655 = vst.msk [vmem:[#allocation3 + $0xc8] sm:$0xff] %vm2307_vm9, %v4585_v25 }
 0x5b2   : > { %4654 = vst.msk [vmem:[#allocation3 + $0xc0] sm:$0xff] %vm2307_vm9, %v4583_v6  ;;  %4956 = vrot.lane.b32.xlu1 %v4873_v35, %s10452_s16  ;;  %v5056_v35 = vld [vmem:[#allocation2 + $0x98] sm:$0xff] }
 0x5b3   : > { %4954 = vrot.lane.b32.xlu0 %v4872_v36, %s10452_s16  ;;  %v5055_v36 = vld [vmem:[#allocation2 + $0x90] sm:$0xff] }
 0x5b4   : > { %v4589_v62 = vpop.permute.xlu1 %4588 }
 0x5b5   : > { %v4587_v43 = vpop.permute.xlu0 %4586  ;;  %4657 = vst.msk [vmem:[#allocation3 + $0xd8] sm:$0xff] %vm2307_vm9, %v4589_v62 }
 0x5b6   : > { %4656 = vst.msk [vmem:[#allocation3 + $0xd0] sm:$0xff] %vm2307_vm9, %v4587_v43  ;;  %4960 = vrot.lane.b32.xlu1 %v4875_v22, %s10452_s16  ;;  %v5058_v22 = vld [vmem:[#allocation2 + $0xb0] sm:$0xff] }
 0x5b7   : > { %4958 = vrot.lane.b32.xlu0 %v4874_v57, %s10452_s16  ;;  %v5057_v57 = vld [vmem:[#allocation2 + $0xa8] sm:$0xff] }
 0x5b8   : > { %v4593_v7 = vpop.permute.xlu1 %4592 }
 0x5b9   : > { %v4591_v54 = vpop.permute.xlu0 %4590  ;;  %4659 = vst.msk [vmem:[#allocation3 + $0xe8] sm:$0xff] %vm2307_vm9, %v4593_v7 }
 0x5ba   : > { %4658 = vst.msk [vmem:[#allocation3 + $0xe0] sm:$0xff] %vm2307_vm9, %v4591_v54  ;;  %4964 = vrot.lane.b32.xlu1 %v4877_v29, %s10452_s16  ;;  %v5060_v29 = vld [vmem:[#allocation2 + $0xc8] sm:$0xff] }
 0x5bb   : > { %4962 = vrot.lane.b32.xlu0 %v4876_v30, %s10452_s16  ;;  %v5059_v30 = vld [vmem:[#allocation2 + $0xc0] sm:$0xff] }
 0x5bc   : > { %v4597_v53 = vpop.permute.xlu1 %4596 }
 0x5bd   : > { %v4595_v44 = vpop.permute.xlu0 %4594  ;;  %4661 = vst.msk [vmem:[#allocation3 + $0xf8] sm:$0xff] %vm2307_vm9, %v4597_v53 }
 0x5be   : > { %4660 = vst.msk [vmem:[#allocation3 + $0xf0] sm:$0xff] %vm2307_vm9, %v4595_v44  ;;  %4968 = vrot.lane.b32.xlu1 %v4879_v56, %s10452_s16  ;;  %v5062_v56 = vld [vmem:[#allocation2 + $0xe0] sm:$0xff]  ;;  %vm6752_vm9 = vcmask 622144  }
 0x5bf   : > { %4966 = vrot.lane.b32.xlu0 %v4878_v10, %s10452_s16  ;;  %v5061_v10 = vld [vmem:[#allocation2 + $0xd8] sm:$0xff] }
 0x5c0   : > { %v4729_v52 = vpop.permute.xlu1 %4728 }
 0x5c1   : > { %v4727_v32 = vpop.permute.xlu0 %4726  ;;  %4823 = vst.msk [vmem:[#allocation3 + $0x8] sm:$0xff] %vm2500_vm10, %v4729_v52 }
 0x5c2   : > { %4822 = vst.msk [vmem:[#allocation3] sm:$0xff] %vm2500_vm10, %v4727_v32  ;;  %4972 = vrot.lane.b32.xlu1 %v4881_v14, %s10452_s16  ;;  %v5064_v14 = vld [vmem:[#allocation2 + $0xf8] sm:$0xff] }
 0x5c3   : > { %4970 = vrot.lane.b32.xlu0 %v4880_v42, %s10452_s16  ;;  %v5063_v42 = vld [vmem:[#allocation2 + $0xf0] sm:$0xff] }
 0x5c4   : > { %v4733_v11 = vpop.permute.xlu1 %4732 }
 0x5c5   : > { %v4731_v28 = vpop.permute.xlu0 %4730  ;;  %4825 = vst.msk [vmem:[#allocation3 + $0x18] sm:$0xff] %vm2500_vm10, %v4733_v11 }
 0x5c6   : > { %4824 = vst.msk [vmem:[#allocation3 + $0x10] sm:$0xff] %vm2500_vm10, %v4731_v28  ;;  %4976 = vrot.lane.b32.xlu1 %v4883_v33, %s10452_s16  ;;  %v5066_v33 = vld [vmem:[#allocation2 + $0x110] sm:$0xff] }
 0x5c7   : > { %4974 = vrot.lane.b32.xlu0 %v4882_v20, %s10452_s16  ;;  %v5065_v20 = vld [vmem:[#allocation2 + $0x108] sm:$0xff] }
 0x5c8   : > { %v4737_v40 = vpop.permute.xlu1 %4736 }
 0x5c9   : > { %v4735_v39 = vpop.permute.xlu0 %4734  ;;  %4827 = vst.msk [vmem:[#allocation3 + $0x28] sm:$0xff] %vm2500_vm10, %v4737_v40 }
 0x5ca   : > { %4826 = vst.msk [vmem:[#allocation3 + $0x20] sm:$0xff] %vm2500_vm10, %v4735_v39  ;;  %4980 = vrot.lane.b32.xlu1 %v4885_v4, %s10452_s16  ;;  %v5068_v4 = vld [vmem:[#allocation2 + $0x128] sm:$0xff] }
 0x5cb   : > { %4978 = vrot.lane.b32.xlu0 %v4884_v60, %s10452_s16  ;;  %v5067_v60 = vld [vmem:[#allocation2 + $0x120] sm:$0xff] }
 0x5cc   : > { %v4741_v24 = vpop.permute.xlu1 %4740 }
 0x5cd   : > { %v4739_v34 = vpop.permute.xlu0 %4738  ;;  %4829 = vst.msk [vmem:[#allocation3 + $0x38] sm:$0xff] %vm2500_vm10, %v4741_v24 }
 0x5ce   : > { %4828 = vst.msk [vmem:[#allocation3 + $0x30] sm:$0xff] %vm2500_vm10, %v4739_v34  ;;  %5113 = vrot.lane.b32.xlu1 %v5048_v5, %s10453_s17  ;;  %v5070_v5 = vld [vmem:[#allocation2 + $0x140] sm:$0xff] }
 0x5cf   : > { %5111 = vrot.lane.b32.xlu0 %v5047_v23, %s10453_s17  ;;  %v5069_v23 = vld [vmem:[#allocation2 + $0x138] sm:$0xff] }
 0x5d0   : > { %v4745_v19 = vpop.permute.xlu1 %4744 }
 0x5d1   : > { %v4743_v0 = vpop.permute.xlu0 %4742  ;;  %4831 = vst.msk [vmem:[#allocation3 + $0x48] sm:$0xff] %vm2500_vm10, %v4745_v19 }
 0x5d2   : > { %4830 = vst.msk [vmem:[#allocation3 + $0x40] sm:$0xff] %vm2500_vm10, %v4743_v0  ;;  %5117 = vrot.lane.b32.xlu1 %v5050_v49, %s10453_s17  ;;  %v5072_v49 = vld [vmem:[#allocation2 + $0x158] sm:$0xff] }
 0x5d3   : > { %5115 = vrot.lane.b32.xlu0 %v5049_v37, %s10453_s17  ;;  %v5071_v37 = vld [vmem:[#allocation2 + $0x150] sm:$0xff] }
 0x5d4   : > { %v4749_v31 = vpop.permute.xlu1 %4748 }
 0x5d5   : > { %v4747_v63 = vpop.permute.xlu0 %4746  ;;  %4833 = vst.msk [vmem:[#allocation3 + $0x58] sm:$0xff] %vm2500_vm10, %v4749_v31 }
 0x5d6   : > { %4832 = vst.msk [vmem:[#allocation3 + $0x50] sm:$0xff] %vm2500_vm10, %v4747_v63  ;;  %5121 = vrot.lane.b32.xlu1 %v5052_v3, %s10453_s17  ;;  %v5074_v3 = vld [vmem:[#allocation2 + $0x170] sm:$0xff] }
 0x5d7   : > { %5119 = vrot.lane.b32.xlu0 %v5051_v8, %s10453_s17  ;;  %v5073_v8 = vld [vmem:[#allocation2 + $0x168] sm:$0xff] }
 0x5d8   : > { %v4753_v13 = vpop.permute.xlu1 %4752 }
 0x5d9   : > { %v4751_v51 = vpop.permute.xlu0 %4750  ;;  %4835 = vst.msk [vmem:[#allocation3 + $0x68] sm:$0xff] %vm2500_vm10, %v4753_v13 }
 0x5da   : > { %4834 = vst.msk [vmem:[#allocation3 + $0x60] sm:$0xff] %vm2500_vm10, %v4751_v51  ;;  %5125 = vrot.lane.b32.xlu1 %v5054_v38, %s10453_s17  ;;  %v5076_v38 = vld [vmem:[#allocation2 + $0x188] sm:$0xff] }
 0x5db   : > { %5123 = vrot.lane.b32.xlu0 %v5053_v17, %s10453_s17  ;;  %v5075_v17 = vld [vmem:[#allocation2 + $0x180] sm:$0xff] }
 0x5dc   : > { %v4757_v25 = vpop.permute.xlu1 %4756 }
 0x5dd   : > { %v4755_v6 = vpop.permute.xlu0 %4754  ;;  %4837 = vst.msk [vmem:[#allocation3 + $0x78] sm:$0xff] %vm2500_vm10, %v4757_v25 }
 0x5de   : > { %4836 = vst.msk [vmem:[#allocation3 + $0x70] sm:$0xff] %vm2500_vm10, %v4755_v6  ;;  %5129 = vrot.lane.b32.xlu1 %v5056_v35, %s10453_s17  ;;  %v5078_v35 = vld [vmem:[#allocation2 + $0x1a0] sm:$0xff] }
 0x5df   : > { %5127 = vrot.lane.b32.xlu0 %v5055_v36, %s10453_s17  ;;  %v5077_v36 = vld [vmem:[#allocation2 + $0x198] sm:$0xff] }
 0x5e0   : > { %v4761_v62 = vpop.permute.xlu1 %4760 }
 0x5e1   : > { %v4759_v43 = vpop.permute.xlu0 %4758  ;;  %4839 = vst.msk [vmem:[#allocation3 + $0x88] sm:$0xff] %vm2500_vm10, %v4761_v62 }
 0x5e2   : > { %4838 = vst.msk [vmem:[#allocation3 + $0x80] sm:$0xff] %vm2500_vm10, %v4759_v43  ;;  %5133 = vrot.lane.b32.xlu1 %v5058_v22, %s10453_s17  ;;  %v5241_v22 = vld [vmem:[#allocation2 + $0x39] sm:$0xff] }
 0x5e3   : > { %5131 = vrot.lane.b32.xlu0 %v5057_v57, %s10453_s17  ;;  %v5240_v57 = vld [vmem:[#allocation2 + $0x31] sm:$0xff] }
 0x5e4   : > { %v4765_v7 = vpop.permute.xlu1 %4764 }
 0x5e5   : > { %v4763_v54 = vpop.permute.xlu0 %4762  ;;  %4841 = vst.msk [vmem:[#allocation3 + $0x98] sm:$0xff] %vm2500_vm10, %v4765_v7 }
 0x5e6   : > { %4840 = vst.msk [vmem:[#allocation3 + $0x90] sm:$0xff] %vm2500_vm10, %v4763_v54  ;;  %5137 = vrot.lane.b32.xlu1 %v5060_v29, %s10453_s17  ;;  %v5243_v29 = vld [vmem:[#allocation2 + $0x51] sm:$0xff] }
 0x5e7   : > { %5135 = vrot.lane.b32.xlu0 %v5059_v30, %s10453_s17  ;;  %v5242_v30 = vld [vmem:[#allocation2 + $0x49] sm:$0xff] }
 0x5e8   : > { %v4769_v53 = vpop.permute.xlu1 %4768 }
 0x5e9   : > { %v4767_v44 = vpop.permute.xlu0 %4766  ;;  %4843 = vst.msk [vmem:[#allocation3 + $0xa8] sm:$0xff] %vm2500_vm10, %v4769_v53 }
 0x5ea   : > { %4842 = vst.msk [vmem:[#allocation3 + $0xa0] sm:$0xff] %vm2500_vm10, %v4767_v44  ;;  %5141 = vrot.lane.b32.xlu1 %v5062_v56, %s10453_s17  ;;  %v5245_v56 = vld [vmem:[#allocation2 + $0x69] sm:$0xff] }
 0x5eb   : > { %5139 = vrot.lane.b32.xlu0 %v5061_v10, %s10453_s17  ;;  %v5244_v10 = vld [vmem:[#allocation2 + $0x61] sm:$0xff] }
 0x5ec   : > { %v4773_v52 = vpop.permute.xlu1 %4772 }
 0x5ed   : > { %v4771_v32 = vpop.permute.xlu0 %4770  ;;  %4845 = vst.msk [vmem:[#allocation3 + $0xb8] sm:$0xff] %vm2500_vm10, %v4773_v52 }
 0x5ee   : > { %4844 = vst.msk [vmem:[#allocation3 + $0xb0] sm:$0xff] %vm2500_vm10, %v4771_v32  ;;  %5145 = vrot.lane.b32.xlu1 %v5064_v14, %s10453_s17  ;;  %v5247_v14 = vld [vmem:[#allocation2 + $0x81] sm:$0xff] }
 0x5ef   : > { %5143 = vrot.lane.b32.xlu0 %v5063_v42, %s10453_s17  ;;  %v5246_v42 = vld [vmem:[#allocation2 + $0x79] sm:$0xff] }
 0x5f0   : > { %v4777_v11 = vpop.permute.xlu1 %4776 }
 0x5f1   : > { %v4775_v28 = vpop.permute.xlu0 %4774  ;;  %4847 = vst.msk [vmem:[#allocation3 + $0xc8] sm:$0xff] %vm2500_vm10, %v4777_v11 }
 0x5f2   : > { %4846 = vst.msk [vmem:[#allocation3 + $0xc0] sm:$0xff] %vm2500_vm10, %v4775_v28  ;;  %5149 = vrot.lane.b32.xlu1 %v5066_v33, %s10453_s17  ;;  %v5249_v33 = vld [vmem:[#allocation2 + $0x99] sm:$0xff] }
 0x5f3   : > { %5147 = vrot.lane.b32.xlu0 %v5065_v20, %s10453_s17  ;;  %v5248_v20 = vld [vmem:[#allocation2 + $0x91] sm:$0xff] }
 0x5f4   : > { %v4781_v40 = vpop.permute.xlu1 %4780 }
 0x5f5   : > { %v4779_v39 = vpop.permute.xlu0 %4778  ;;  %4849 = vst.msk [vmem:[#allocation3 + $0xd8] sm:$0xff] %vm2500_vm10, %v4781_v40 }
 0x5f6   : > { %4848 = vst.msk [vmem:[#allocation3 + $0xd0] sm:$0xff] %vm2500_vm10, %v4779_v39  ;;  %5153 = vrot.lane.b32.xlu1 %v5068_v4, %s10453_s17  ;;  %v5251_v4 = vld [vmem:[#allocation2 + $0xb1] sm:$0xff] }
 0x5f7   : > { %5151 = vrot.lane.b32.xlu0 %v5067_v60, %s10453_s17  ;;  %v5250_v60 = vld [vmem:[#allocation2 + $0xa9] sm:$0xff] }
 0x5f8   : > { %v4785_v24 = vpop.permute.xlu1 %4784 }
 0x5f9   : > { %v4783_v34 = vpop.permute.xlu0 %4782  ;;  %4851 = vst.msk [vmem:[#allocation3 + $0xe8] sm:$0xff] %vm2500_vm10, %v4785_v24 }
 0x5fa   : > { %4850 = vst.msk [vmem:[#allocation3 + $0xe0] sm:$0xff] %vm2500_vm10, %v4783_v34  ;;  %5157 = vrot.lane.b32.xlu1 %v5070_v5, %s10453_s17  ;;  %v5253_v5 = vld [vmem:[#allocation2 + $0xc9] sm:$0xff] }
 0x5fb   : > { %5155 = vrot.lane.b32.xlu0 %v5069_v23, %s10453_s17  ;;  %v5252_v23 = vld [vmem:[#allocation2 + $0xc1] sm:$0xff] }
 0x5fc   : > { %v4789_v19 = vpop.permute.xlu1 %4788 }
 0x5fd   : > { %v4787_v0 = vpop.permute.xlu0 %4786  ;;  %4853 = vst.msk [vmem:[#allocation3 + $0xf8] sm:$0xff] %vm2500_vm10, %v4789_v19 }
 0x5fe   : > { %4852 = vst.msk [vmem:[#allocation3 + $0xf0] sm:$0xff] %vm2500_vm10, %v4787_v0  ;;  %5161 = vrot.lane.b32.xlu1 %v5072_v49, %s10453_s17  ;;  %v5255_v49 = vld [vmem:[#allocation2 + $0xe1] sm:$0xff]  ;;  %vm6945_vm10 = vcmask 654944  }
 0x5ff   : > { %5159 = vrot.lane.b32.xlu0 %v5071_v37, %s10453_s17  ;;  %v5254_v37 = vld [vmem:[#allocation2 + $0xd9] sm:$0xff] }
 0x600   : > { %v4921_v31 = vpop.permute.xlu1 %4920 }
 0x601   : > { %v4919_v63 = vpop.permute.xlu0 %4918  ;;  %5016 = vst.msk [vmem:[#allocation3 + $0x8] sm:$0xff] %vm5014_vm13, %v4921_v31 }
 0x602   : > { %5015 = vst.msk [vmem:[#allocation3] sm:$0xff] %vm5014_vm13, %v4919_v63  ;;  %5165 = vrot.lane.b32.xlu1 %v5074_v3, %s10453_s17  ;;  %v5257_v3 = vld [vmem:[#allocation2 + $0xf9] sm:$0xff] }
 0x603   : > { %5163 = vrot.lane.b32.xlu0 %v5073_v8, %s10453_s17  ;;  %v5256_v8 = vld [vmem:[#allocation2 + $0xf1] sm:$0xff] }
 0x604   : > { %v4925_v13 = vpop.permute.xlu1 %4924 }
 0x605   : > { %v4923_v51 = vpop.permute.xlu0 %4922  ;;  %5018 = vst.msk [vmem:[#allocation3 + $0x18] sm:$0xff] %vm5014_vm13, %v4925_v13 }
 0x606   : > { %5017 = vst.msk [vmem:[#allocation3 + $0x10] sm:$0xff] %vm5014_vm13, %v4923_v51  ;;  %5169 = vrot.lane.b32.xlu1 %v5076_v38, %s10453_s17  ;;  %v5259_v38 = vld [vmem:[#allocation2 + $0x111] sm:$0xff] }
 0x607   : > { %5167 = vrot.lane.b32.xlu0 %v5075_v17, %s10453_s17  ;;  %v5258_v17 = vld [vmem:[#allocation2 + $0x109] sm:$0xff] }
 0x608   : > { %v4929_v25 = vpop.permute.xlu1 %4928 }
 0x609   : > { %v4927_v6 = vpop.permute.xlu0 %4926  ;;  %5020 = vst.msk [vmem:[#allocation3 + $0x28] sm:$0xff] %vm5014_vm13, %v4929_v25 }
 0x60a   : > { %5019 = vst.msk [vmem:[#allocation3 + $0x20] sm:$0xff] %vm5014_vm13, %v4927_v6  ;;  %5173 = vrot.lane.b32.xlu1 %v5078_v35, %s10453_s17  ;;  %v5261_v35 = vld [vmem:[#allocation2 + $0x129] sm:$0xff] }
 0x60b   : > { %5171 = vrot.lane.b32.xlu0 %v5077_v36, %s10453_s17  ;;  %v5260_v36 = vld [vmem:[#allocation2 + $0x121] sm:$0xff] }
 0x60c   : > { %v4933_v62 = vpop.permute.xlu1 %4932 }
 0x60d   : > { %v4931_v43 = vpop.permute.xlu0 %4930  ;;  %5022 = vst.msk [vmem:[#allocation3 + $0x38] sm:$0xff] %vm5014_vm13, %v4933_v62 }
 0x60e   : > { %5021 = vst.msk [vmem:[#allocation3 + $0x30] sm:$0xff] %vm5014_vm13, %v4931_v43  ;;  %5306 = vrot.lane.b32.xlu1 %v5241_v22, %s10454_s19  ;;  %v5263_v22 = vld [vmem:[#allocation2 + $0x141] sm:$0xff] }
 0x60f   : > { %5304 = vrot.lane.b32.xlu0 %v5240_v57, %s10454_s19  ;;  %v5262_v57 = vld [vmem:[#allocation2 + $0x139] sm:$0xff] }
 0x610   : > { %v4937_v7 = vpop.permute.xlu1 %4936 }
 0x611   : > { %v4935_v54 = vpop.permute.xlu0 %4934  ;;  %5024 = vst.msk [vmem:[#allocation3 + $0x48] sm:$0xff] %vm5014_vm13, %v4937_v7 }
 0x612   : > { %5023 = vst.msk [vmem:[#allocation3 + $0x40] sm:$0xff] %vm5014_vm13, %v4935_v54  ;;  %5310 = vrot.lane.b32.xlu1 %v5243_v29, %s10454_s19  ;;  %v5265_v29 = vld [vmem:[#allocation2 + $0x159] sm:$0xff] }
 0x613   : > { %5308 = vrot.lane.b32.xlu0 %v5242_v30, %s10454_s19  ;;  %v5264_v30 = vld [vmem:[#allocation2 + $0x151] sm:$0xff] }
 0x614   : > { %v4941_v53 = vpop.permute.xlu1 %4940 }
 0x615   : > { %v4939_v44 = vpop.permute.xlu0 %4938  ;;  %5026 = vst.msk [vmem:[#allocation3 + $0x58] sm:$0xff] %vm5014_vm13, %v4941_v53 }
 0x616   : > { %5025 = vst.msk [vmem:[#allocation3 + $0x50] sm:$0xff] %vm5014_vm13, %v4939_v44  ;;  %5314 = vrot.lane.b32.xlu1 %v5245_v56, %s10454_s19  ;;  %v5267_v56 = vld [vmem:[#allocation2 + $0x171] sm:$0xff] }
 0x617   : > { %5312 = vrot.lane.b32.xlu0 %v5244_v10, %s10454_s19  ;;  %v5266_v10 = vld [vmem:[#allocation2 + $0x169] sm:$0xff] }
 0x618   : > { %v4945_v52 = vpop.permute.xlu1 %4944 }
 0x619   : > { %v4943_v32 = vpop.permute.xlu0 %4942  ;;  %5028 = vst.msk [vmem:[#allocation3 + $0x68] sm:$0xff] %vm5014_vm13, %v4945_v52 }
 0x61a   : > { %5027 = vst.msk [vmem:[#allocation3 + $0x60] sm:$0xff] %vm5014_vm13, %v4943_v32  ;;  %5318 = vrot.lane.b32.xlu1 %v5247_v14, %s10454_s19  ;;  %v5269_v14 = vld [vmem:[#allocation2 + $0x189] sm:$0xff] }
 0x61b   : > { %5316 = vrot.lane.b32.xlu0 %v5246_v42, %s10454_s19  ;;  %v5268_v42 = vld [vmem:[#allocation2 + $0x181] sm:$0xff] }
 0x61c   : > { %v4949_v11 = vpop.permute.xlu1 %4948 }
 0x61d   : > { %v4947_v28 = vpop.permute.xlu0 %4946  ;;  %5030 = vst.msk [vmem:[#allocation3 + $0x78] sm:$0xff] %vm5014_vm13, %v4949_v11 }
 0x61e   : > { %5029 = vst.msk [vmem:[#allocation3 + $0x70] sm:$0xff] %vm5014_vm13, %v4947_v28  ;;  %5322 = vrot.lane.b32.xlu1 %v5249_v33, %s10454_s19  ;;  %v5271_v33 = vld [vmem:[#allocation2 + $0x1a1] sm:$0xff] }
 0x61f   : > { %5320 = vrot.lane.b32.xlu0 %v5248_v20, %s10454_s19  ;;  %v5270_v20 = vld [vmem:[#allocation2 + $0x199] sm:$0xff] }
 0x620   : > { %v4953_v40 = vpop.permute.xlu1 %4952 }
 0x621   : > { %v4951_v39 = vpop.permute.xlu0 %4950  ;;  %5032 = vst.msk [vmem:[#allocation3 + $0x88] sm:$0xff] %vm5014_vm13, %v4953_v40 }
 0x622   : > { %5031 = vst.msk [vmem:[#allocation3 + $0x80] sm:$0xff] %vm5014_vm13, %v4951_v39  ;;  %5326 = vrot.lane.b32.xlu1 %v5251_v4, %s10454_s19  ;;  %v5434_v4 = vld [vmem:[#allocation2 + $0x3a] sm:$0xff] }
 0x623   : > { %5324 = vrot.lane.b32.xlu0 %v5250_v60, %s10454_s19  ;;  %v5433_v60 = vld [vmem:[#allocation2 + $0x32] sm:$0xff] }
 0x624   : > { %v4957_v24 = vpop.permute.xlu1 %4956 }
 0x625   : > { %v4955_v34 = vpop.permute.xlu0 %4954  ;;  %5034 = vst.msk [vmem:[#allocation3 + $0x98] sm:$0xff] %vm5014_vm13, %v4957_v24  ;;  %v13429_v24 = vld [vmem:[#allocation2 + $0x34] sm:$0xff] }
 0x626   : > { %5033 = vst.msk [vmem:[#allocation3 + $0x90] sm:$0xff] %vm5014_vm13, %v4955_v34  ;;  %5330 = vrot.lane.b32.xlu1 %v5253_v5, %s10454_s19  ;;  %v13427_v5 = vld [vmem:[#allocation2 + $0x33] sm:$0xff]  ;;  %v13432_v34 = vld [vmem:[#allocation2 + $0x3b] sm:$0xff] }
 0x627   : > { %5328 = vrot.lane.b32.xlu0 %v5252_v23, %s10454_s19  ;;  %v5436_v23 = vld [vmem:[#allocation2 + $0x52] sm:$0xff]  ;;  %8587 = vst.msk [vmem:[#allocation2 + $0x30] sm:$0xff] %vm366_vm0, %v15846_v16 }
 0x628   : > { %v4961_v19 = vpop.permute.xlu1 %4960 }
 0x629   : > { %v4959_v0 = vpop.permute.xlu0 %4958  ;;  %5036 = vst.msk [vmem:[#allocation3 + $0xa8] sm:$0xff] %vm5014_vm13, %v4961_v19 }
 0x62a   : > { %5035 = vst.msk [vmem:[#allocation3 + $0xa0] sm:$0xff] %vm5014_vm13, %v4959_v0  ;;  %5334 = vrot.lane.b32.xlu1 %v5255_v49, %s10454_s19  ;;  %v13436_v49 = vld [vmem:[#allocation2 + $0x3c] sm:$0xff] }
 0x62b   : > { %5332 = vrot.lane.b32.xlu0 %v5254_v37, %s10454_s19  ;;  %v5435_v37 = vld [vmem:[#allocation2 + $0x4a] sm:$0xff]  ;;  %8589 = vst.msk [vmem:[#allocation2 + $0x40] sm:$0xf] %vm832_vm1, %v15846_v16 }
 0x62c   : > { %v4965_v31 = vpop.permute.xlu1 %4964  ;;  %8588 = vst.msk [vmem:[#allocation2 + $0x38] sm:$0xff] %vm366_vm0, %v15846_v16 }
 0x62d   : > { %v4963_v63 = vpop.permute.xlu0 %4962  ;;  %5038 = vst.msk [vmem:[#allocation3 + $0xb8] sm:$0xff] %vm5014_vm13, %v4965_v31 }
 0x62e   : > { %5037 = vst.msk [vmem:[#allocation3 + $0xb0] sm:$0xff] %vm5014_vm13, %v4963_v63  ;;  %5338 = vrot.lane.b32.xlu1 %v5257_v3, %s10454_s19  ;;  %v5438_v3 = vld [vmem:[#allocation2 + $0x6a] sm:$0xff] }
 0x62f   : > { %5336 = vrot.lane.b32.xlu0 %v5256_v8, %s10454_s19  ;;  %8643 = vst.msk [vmem:[#allocation2 + $0x31] sm:$0xff] %vm366_vm0, %v15819_v61  ;;  %8644 = vst.msk [vmem:[#allocation2 + $0x39] sm:$0xff] %vm366_vm0, %v15820_v47  ;;  %v5437_v8 = vld [vmem:[#allocation2 + $0x62] sm:$0xff] }
 0x630   : > { %v4969_v13 = vpop.permute.xlu1 %4968  ;;  %v5440_v61 = vld [vmem:[#allocation2 + $0x82] sm:$0xff] }
 0x631   : > { %v4967_v51 = vpop.permute.xlu0 %4966  ;;  %5040 = vst.msk [vmem:[#allocation3 + $0xc8] sm:$0xff] %vm5014_vm13, %v4969_v13 }
 0x632   : > { %5039 = vst.msk [vmem:[#allocation3 + $0xc0] sm:$0xff] %vm5014_vm13, %v4967_v51  ;;  %5342 = vrot.lane.b32.xlu1 %v5259_v38, %s10454_s19  ;;  %v5439_v38 = vld [vmem:[#allocation2 + $0x7a] sm:$0xff] }
 0x633   : > { %5340 = vrot.lane.b32.xlu0 %v5258_v17, %s10454_s19  ;;  %v5442_v17 = vld [vmem:[#allocation2 + $0x9a] sm:$0xff] }
 0x634   : > { %v4973_v25 = vpop.permute.xlu1 %4972 }
 0x635   : > { %v4971_v6 = vpop.permute.xlu0 %4970  ;;  %5042 = vst.msk [vmem:[#allocation3 + $0xd8] sm:$0xff] %vm5014_vm13, %v4973_v25 }
 0x636   : > { %5041 = vst.msk [vmem:[#allocation3 + $0xd0] sm:$0xff] %vm5014_vm13, %v4971_v6  ;;  %5346 = vrot.lane.b32.xlu1 %v5261_v35, %s10454_s19  ;;  %v5441_v35 = vld [vmem:[#allocation2 + $0x92] sm:$0xff] }
 0x637   : > { %5344 = vrot.lane.b32.xlu0 %v5260_v36, %s10454_s19  ;;  %v5444_v36 = vld [vmem:[#allocation2 + $0xb2] sm:$0xff] }
 0x638   : > { %v4977_v62 = vpop.permute.xlu1 %4976 }
 0x639   : > { %v4975_v43 = vpop.permute.xlu0 %4974  ;;  %5044 = vst.msk [vmem:[#allocation3 + $0xe8] sm:$0xff] %vm5014_vm13, %v4977_v62 }
 0x63a   : > { %5043 = vst.msk [vmem:[#allocation3 + $0xe0] sm:$0xff] %vm5014_vm13, %v4975_v43  ;;  %5350 = vrot.lane.b32.xlu1 %v5263_v22, %s10454_s19  ;;  %v5443_v22 = vld [vmem:[#allocation2 + $0xaa] sm:$0xff] }
 0x63b   : > { %5348 = vrot.lane.b32.xlu0 %v5262_v57, %s10454_s19  ;;  %v5446_v57 = vld [vmem:[#allocation2 + $0xca] sm:$0xff] }
 0x63c   : > { %v4981_v7 = vpop.permute.xlu1 %4980 }
 0x63d   : > { %v4979_v54 = vpop.permute.xlu0 %4978  ;;  %5046 = vst.msk [vmem:[#allocation3 + $0xf8] sm:$0xff] %vm5014_vm13, %v4981_v7 }
 0x63e   : > { %5045 = vst.msk [vmem:[#allocation3 + $0xf0] sm:$0xff] %vm5014_vm13, %v4979_v54  ;;  %5354 = vrot.lane.b32.xlu1 %v5265_v29, %s10454_s19  ;;  %v5445_v29 = vld [vmem:[#allocation2 + $0xc2] sm:$0xff]  ;;  %vm7525_vm13 = vcmask 753344  }
 0x63f   : > { %5352 = vrot.lane.b32.xlu0 %v5264_v30, %s10454_s19  ;;  %v5448_v30 = vld [vmem:[#allocation2 + $0xe2] sm:$0xff] }
 0x640   : > { %v5114_v53 = vpop.permute.xlu1 %5113 }
 0x641   : > { %v5112_v44 = vpop.permute.xlu0 %5111  ;;  %5209 = vst.msk [vmem:[#allocation3 + $0x8] sm:$0xff] %vm5207_vm14, %v5114_v53 }
 0x642   : > { %5208 = vst.msk [vmem:[#allocation3] sm:$0xff] %vm5207_vm14, %v5112_v44  ;;  %5358 = vrot.lane.b32.xlu1 %v5267_v56, %s10454_s19  ;;  %v5447_v56 = vld [vmem:[#allocation2 + $0xda] sm:$0xff] }
 0x643   : > { %5356 = vrot.lane.b32.xlu0 %v5266_v10, %s10454_s19  ;;  %v5450_v10 = vld [vmem:[#allocation2 + $0xfa] sm:$0xff] }
 0x644   : > { %v5118_v52 = vpop.permute.xlu1 %5117 }
 0x645   : > { %v5116_v32 = vpop.permute.xlu0 %5115  ;;  %5211 = vst.msk [vmem:[#allocation3 + $0x18] sm:$0xff] %vm5207_vm14, %v5118_v52 }
 0x646   : > { %5210 = vst.msk [vmem:[#allocation3 + $0x10] sm:$0xff] %vm5207_vm14, %v5116_v32  ;;  %5362 = vrot.lane.b32.xlu1 %v5269_v14, %s10454_s19  ;;  %v5449_v14 = vld [vmem:[#allocation2 + $0xf2] sm:$0xff] }
 0x647   : > { %5360 = vrot.lane.b32.xlu0 %v5268_v42, %s10454_s19  ;;  %v5452_v42 = vld [vmem:[#allocation2 + $0x112] sm:$0xff] }
 0x648   : > { %v5122_v11 = vpop.permute.xlu1 %5121 }
 0x649   : > { %v5120_v28 = vpop.permute.xlu0 %5119  ;;  %5213 = vst.msk [vmem:[#allocation3 + $0x28] sm:$0xff] %vm5207_vm14, %v5122_v11 }
 0x64a   : > { %5212 = vst.msk [vmem:[#allocation3 + $0x20] sm:$0xff] %vm5207_vm14, %v5120_v28  ;;  %5366 = vrot.lane.b32.xlu1 %v5271_v33, %s10454_s19  ;;  %v5451_v33 = vld [vmem:[#allocation2 + $0x10a] sm:$0xff] }
 0x64b   : > { %5364 = vrot.lane.b32.xlu0 %v5270_v20, %s10454_s19  ;;  %v5454_v20 = vld [vmem:[#allocation2 + $0x12a] sm:$0xff]  ;;  %s10465_s19 = smov 88  }
 0x64c   : > { %v5126_v40 = vpop.permute.xlu1 %5125 }
 0x64d   : > { %v5124_v39 = vpop.permute.xlu0 %5123  ;;  %5215 = vst.msk [vmem:[#allocation3 + $0x38] sm:$0xff] %vm5207_vm14, %v5126_v40 }
 0x64e   : > { %5214 = vst.msk [vmem:[#allocation3 + $0x30] sm:$0xff] %vm5207_vm14, %v5124_v39  ;;  %5499 = vrot.lane.b32.xlu1 %v5434_v4, %s10455_s20  ;;  %v5453_v4 = vld [vmem:[#allocation2 + $0x122] sm:$0xff] }
 0x64f   : > { %5497 = vrot.lane.b32.xlu0 %v5433_v60, %s10455_s20  ;;  %v5456_v60 = vld [vmem:[#allocation2 + $0x142] sm:$0xff] }
 0x650   : > { %v5130_v19 = vpop.permute.xlu1 %5129 }
 0x651   : > { %v5128_v0 = vpop.permute.xlu0 %5127  ;;  %5217 = vst.msk [vmem:[#allocation3 + $0x48] sm:$0xff] %vm5207_vm14, %v5130_v19 }
 0x652   : > { %5216 = vst.msk [vmem:[#allocation3 + $0x40] sm:$0xff] %vm5207_vm14, %v5128_v0  ;;  %5503 = vrot.lane.b32.xlu1 %v5436_v23, %s10455_s20  ;;  %v5455_v23 = vld [vmem:[#allocation2 + $0x13a] sm:$0xff] }
 0x653   : > { %5501 = vrot.lane.b32.xlu0 %v5435_v37, %s10455_s20  ;;  %v5458_v37 = vld [vmem:[#allocation2 + $0x15a] sm:$0xff] }
 0x654   : > { %v5134_v31 = vpop.permute.xlu1 %5133 }
 0x655   : > { %v5132_v63 = vpop.permute.xlu0 %5131  ;;  %5219 = vst.msk [vmem:[#allocation3 + $0x58] sm:$0xff] %vm5207_vm14, %v5134_v31 }
 0x656   : > { %5218 = vst.msk [vmem:[#allocation3 + $0x50] sm:$0xff] %vm5207_vm14, %v5132_v63  ;;  %5507 = vrot.lane.b32.xlu1 %v5438_v3, %s10455_s20  ;;  %v5457_v3 = vld [vmem:[#allocation2 + $0x152] sm:$0xff] }
 0x657   : > { %5505 = vrot.lane.b32.xlu0 %v5437_v8, %s10455_s20  ;;  %v5460_v8 = vld [vmem:[#allocation2 + $0x172] sm:$0xff] }
 0x658   : > { %v5138_v47 = vpop.permute.xlu1 %5137 }
 0x659   : > { %v5136_v13 = vpop.permute.xlu0 %5135  ;;  %5221 = vst.msk [vmem:[#allocation3 + $0x68] sm:$0xff] %vm5207_vm14, %v5138_v47 }
 0x65a   : > { %5220 = vst.msk [vmem:[#allocation3 + $0x60] sm:$0xff] %vm5207_vm14, %v5136_v13  ;;  %5511 = vrot.lane.b32.xlu1 %v5440_v61, %s10455_s20  ;;  %v5459_v61 = vld [vmem:[#allocation2 + $0x16a] sm:$0xff] }
 0x65b   : > { %5509 = vrot.lane.b32.xlu0 %v5439_v38, %s10455_s20  ;;  %v5462_v38 = vld [vmem:[#allocation2 + $0x18a] sm:$0xff] }
 0x65c   : > { %v5142_v51 = vpop.permute.xlu1 %5141 }
 0x65d   : > { %v5140_v25 = vpop.permute.xlu0 %5139  ;;  %5223 = vst.msk [vmem:[#allocation3 + $0x78] sm:$0xff] %vm5207_vm14, %v5142_v51 }
 0x65e   : > { %5222 = vst.msk [vmem:[#allocation3 + $0x70] sm:$0xff] %vm5207_vm14, %v5140_v25  ;;  %5515 = vrot.lane.b32.xlu1 %v5442_v17, %s10455_s20  ;;  %v5461_v17 = vld [vmem:[#allocation2 + $0x182] sm:$0xff] }
 0x65f   : > { %5513 = vrot.lane.b32.xlu0 %v5441_v35, %s10455_s20  ;;  %v5464_v35 = vld [vmem:[#allocation2 + $0x1a2] sm:$0xff] }
 0x660   : > { %v5146_v6 = vpop.permute.xlu1 %5145 }
 0x661   : > { %v5144_v62 = vpop.permute.xlu0 %5143  ;;  %5225 = vst.msk [vmem:[#allocation3 + $0x88] sm:$0xff] %vm5207_vm14, %v5146_v6 }
 0x662   : > { %5224 = vst.msk [vmem:[#allocation3 + $0x80] sm:$0xff] %vm5207_vm14, %v5144_v62  ;;  %5519 = vrot.lane.b32.xlu1 %v5444_v36, %s10455_s20  ;;  %v5463_v36 = vld [vmem:[#allocation2 + $0x19a] sm:$0xff] }
 0x663   : > { %5517 = vrot.lane.b32.xlu0 %v5443_v22, %s10455_s20 }
 0x664   : > { %v5150_v43 = vpop.permute.xlu1 %5149 }
 0x665   : > { %v5148_v7 = vpop.permute.xlu0 %5147  ;;  %5227 = vst.msk [vmem:[#allocation3 + $0x98] sm:$0xff] %vm5207_vm14, %v5150_v43 }
 0x666   : > { %5226 = vst.msk [vmem:[#allocation3 + $0x90] sm:$0xff] %vm5207_vm14, %v5148_v7  ;;  %5523 = vrot.lane.b32.xlu1 %v5446_v57, %s10455_s20  ;;  %v5629_v57 = vld [vmem:[#allocation2 + $0x53] sm:$0xff] }
 0x667   : > { %5521 = vrot.lane.b32.xlu0 %v5445_v29, %s10455_s20  ;;  %v5628_v29 = vld [vmem:[#allocation2 + $0x4b] sm:$0xff] }
 0x668   : > { %v5154_v54 = vpop.permute.xlu1 %5153 }
 0x669   : > { %v5152_v53 = vpop.permute.xlu0 %5151  ;;  %5229 = vst.msk [vmem:[#allocation3 + $0xa8] sm:$0xff] %vm5207_vm14, %v5154_v54 }
 0x66a   : > { %5228 = vst.msk [vmem:[#allocation3 + $0xa0] sm:$0xff] %vm5207_vm14, %v5152_v53  ;;  %5527 = vrot.lane.b32.xlu1 %v5448_v30, %s10455_s20  ;;  %v5631_v30 = vld [vmem:[#allocation2 + $0x6b] sm:$0xff] }
 0x66b   : > { %5525 = vrot.lane.b32.xlu0 %v5447_v56, %s10455_s20  ;;  %v5630_v56 = vld [vmem:[#allocation2 + $0x63] sm:$0xff] }
 0x66c   : > { %v5158_v44 = vpop.permute.xlu1 %5157 }
 0x66d   : > { %v5156_v52 = vpop.permute.xlu0 %5155  ;;  %5231 = vst.msk [vmem:[#allocation3 + $0xb8] sm:$0xff] %vm5207_vm14, %v5158_v44 }
 0x66e   : > { %5230 = vst.msk [vmem:[#allocation3 + $0xb0] sm:$0xff] %vm5207_vm14, %v5156_v52  ;;  %5531 = vrot.lane.b32.xlu1 %v5450_v10, %s10455_s20  ;;  %v5632_v10 = vld [vmem:[#allocation2 + $0x7b] sm:$0xff] }
 0x66f   : > { %5529 = vrot.lane.b32.xlu0 %v5449_v14, %s10455_s20  ;;  %v5635_v14 = vld [vmem:[#allocation2 + $0x9b] sm:$0xff] }
 0x670   : > { %v5162_v32 = vpop.permute.xlu1 %5161 }
 0x671   : > { %v5160_v11 = vpop.permute.xlu0 %5159  ;;  %5233 = vst.msk [vmem:[#allocation3 + $0xc8] sm:$0xff] %vm5207_vm14, %v5162_v32 }
 0x672   : > { %5232 = vst.msk [vmem:[#allocation3 + $0xc0] sm:$0xff] %vm5207_vm14, %v5160_v11  ;;  %5535 = vrot.lane.b32.xlu1 %v5452_v42, %s10455_s20  ;;  %v5634_v42 = vld [vmem:[#allocation2 + $0x93] sm:$0xff] }
 0x673   : > { %5533 = vrot.lane.b32.xlu0 %v5451_v33, %s10455_s20  ;;  %v5637_v33 = vld [vmem:[#allocation2 + $0xb3] sm:$0xff] }
 0x674   : > { %v5166_v28 = vpop.permute.xlu1 %5165 }
 0x675   : > { %v5164_v40 = vpop.permute.xlu0 %5163  ;;  %5235 = vst.msk [vmem:[#allocation3 + $0xd8] sm:$0xff] %vm5207_vm14, %v5166_v28 }
 0x676   : > { %5234 = vst.msk [vmem:[#allocation3 + $0xd0] sm:$0xff] %vm5207_vm14, %v5164_v40  ;;  %5539 = vrot.lane.b32.xlu1 %v5454_v20, %s10455_s20  ;;  %v5636_v20 = vld [vmem:[#allocation2 + $0xab] sm:$0xff] }
 0x677   : > { %5537 = vrot.lane.b32.xlu0 %v5453_v4, %s10455_s20  ;;  %v5639_v4 = vld [vmem:[#allocation2 + $0xcb] sm:$0xff] }
 0x678   : > { %v5170_v39 = vpop.permute.xlu1 %5169 }
 0x679   : > { %v5168_v19 = vpop.permute.xlu0 %5167  ;;  %5237 = vst.msk [vmem:[#allocation3 + $0xe8] sm:$0xff] %vm5207_vm14, %v5170_v39 }
 0x67a   : > { %5236 = vst.msk [vmem:[#allocation3 + $0xe0] sm:$0xff] %vm5207_vm14, %v5168_v19  ;;  %5543 = vrot.lane.b32.xlu1 %v5456_v60, %s10455_s20  ;;  %v5638_v60 = vld [vmem:[#allocation2 + $0xc3] sm:$0xff] }
 0x67b   : > { %5541 = vrot.lane.b32.xlu0 %v5455_v23, %s10455_s20  ;;  %v5641_v23 = vld [vmem:[#allocation2 + $0xe3] sm:$0xff] }
 0x67c   : > { %v5174_v0 = vpop.permute.xlu1 %5173 }
 0x67d   : > { %v5172_v31 = vpop.permute.xlu0 %5171  ;;  %5239 = vst.msk [vmem:[#allocation3 + $0xf8] sm:$0xff] %vm5207_vm14, %v5174_v0 }
 0x67e   : > { %5238 = vst.msk [vmem:[#allocation3 + $0xf0] sm:$0xff] %vm5207_vm14, %v5172_v31  ;;  %5547 = vrot.lane.b32.xlu1 %v5458_v37, %s10455_s20  ;;  %v5640_v37 = vld [vmem:[#allocation2 + $0xdb] sm:$0xff]  ;;  %vm7718_vm14 = vcmask 786144  }
 0x67f   : > { %5545 = vrot.lane.b32.xlu0 %v5457_v3, %s10455_s20  ;;  %v5643_v3 = vld [vmem:[#allocation2 + $0xfb] sm:$0xff] }
 0x680   : > { %v5307_v63 = vpop.permute.xlu1 %5306 }
 0x681   : > { %v5305_v47 = vpop.permute.xlu0 %5304  ;;  %5402 = vst.msk [vmem:[#allocation3 + $0x8] sm:$0xff] %vm5400_vm15, %v5307_v63 }
 0x682   : > { %5401 = vst.msk [vmem:[#allocation3] sm:$0xff] %vm5400_vm15, %v5305_v47  ;;  %5551 = vrot.lane.b32.xlu1 %v5460_v8, %s10455_s20  ;;  %v5642_v8 = vld [vmem:[#allocation2 + $0xf3] sm:$0xff] }
 0x683   : > { %5549 = vrot.lane.b32.xlu0 %v5459_v61, %s10455_s20  ;;  %v5645_v61 = vld [vmem:[#allocation2 + $0x113] sm:$0xff] }
 0x684   : > { %v5311_v13 = vpop.permute.xlu1 %5310 }
 0x685   : > { %v5309_v51 = vpop.permute.xlu0 %5308  ;;  %5404 = vst.msk [vmem:[#allocation3 + $0x18] sm:$0xff] %vm5400_vm15, %v5311_v13 }
 0x686   : > { %5403 = vst.msk [vmem:[#allocation3 + $0x10] sm:$0xff] %vm5400_vm15, %v5309_v51  ;;  %5555 = vrot.lane.b32.xlu1 %v5462_v38, %s10455_s20  ;;  %v5644_v38 = vld [vmem:[#allocation2 + $0x10b] sm:$0xff] }
 0x687   : > { %5553 = vrot.lane.b32.xlu0 %v5461_v17, %s10455_s20  ;;  %v5647_v17 = vld [vmem:[#allocation2 + $0x12b] sm:$0xff] }
 0x688   : > { %v5315_v25 = vpop.permute.xlu1 %5314 }
 0x689   : > { %v5313_v6 = vpop.permute.xlu0 %5312  ;;  %5406 = vst.msk [vmem:[#allocation3 + $0x28] sm:$0xff] %vm5400_vm15, %v5315_v25 }
 0x68a   : > { %5405 = vst.msk [vmem:[#allocation3 + $0x20] sm:$0xff] %vm5400_vm15, %v5313_v6  ;;  %5559 = vrot.lane.b32.xlu1 %v5464_v35, %s10455_s20  ;;  %v5646_v35 = vld [vmem:[#allocation2 + $0x123] sm:$0xff] }
 0x68b   : > { %5557 = vrot.lane.b32.xlu0 %v5463_v36, %s10455_s20  ;;  %v5649_v36 = vld [vmem:[#allocation2 + $0x143] sm:$0xff]  ;;  %s10466_s20 = smov 92  }
 0x68c   : > { %v5319_v22 = vpop.permute.xlu1 %5318 }
 0x68d   : > { %v5317_v62 = vpop.permute.xlu0 %5316  ;;  %5408 = vst.msk [vmem:[#allocation3 + $0x38] sm:$0xff] %vm5400_vm15, %v5319_v22  ;;  %v5648_v22 = vld [vmem:[#allocation2 + $0x13b] sm:$0xff] }
 0x68e   : > { %5407 = vst.msk [vmem:[#allocation3 + $0x30] sm:$0xff] %vm5400_vm15, %v5317_v62  ;;  %5692 = vrot.lane.b32.xlu1 %v13432_v34, %s10456_s21 }
 0x68f   : > { %5690 = vrot.lane.b32.xlu0 %v13427_v5, %s10456_s21  ;;  %v5633_v5 = vld [vmem:[#allocation2 + $0x83] sm:$0xff] }
 0x690   : > { %v5323_v43 = vpop.permute.xlu1 %5322 }
 0x691   : > { %v5321_v7 = vpop.permute.xlu0 %5320  ;;  %5410 = vst.msk [vmem:[#allocation3 + $0x48] sm:$0xff] %vm5400_vm15, %v5323_v43 }
 0x692   : > { %5409 = vst.msk [vmem:[#allocation3 + $0x40] sm:$0xff] %vm5400_vm15, %v5321_v7  ;;  %5696 = vrot.lane.b32.xlu1 %v5629_v57, %s10456_s21  ;;  %v5651_v57 = vld [vmem:[#allocation2 + $0x15b] sm:$0xff] }
 0x693   : > { %5694 = vrot.lane.b32.xlu0 %v5628_v29, %s10456_s21  ;;  %v5650_v29 = vld [vmem:[#allocation2 + $0x153] sm:$0xff] }
 0x694   : > { %v5327_v54 = vpop.permute.xlu1 %5326 }
 0x695   : > { %v5325_v53 = vpop.permute.xlu0 %5324  ;;  %5412 = vst.msk [vmem:[#allocation3 + $0x58] sm:$0xff] %vm5400_vm15, %v5327_v54 }
 0x696   : > { %5411 = vst.msk [vmem:[#allocation3 + $0x50] sm:$0xff] %vm5400_vm15, %v5325_v53  ;;  %5700 = vrot.lane.b32.xlu1 %v5631_v30, %s10456_s21  ;;  %v5653_v30 = vld [vmem:[#allocation2 + $0x173] sm:$0xff] }
 0x697   : > { %5698 = vrot.lane.b32.xlu0 %v5630_v56, %s10456_s21  ;;  %v5652_v56 = vld [vmem:[#allocation2 + $0x16b] sm:$0xff] }
 0x698   : > { %v5331_v34 = vpop.permute.xlu1 %5330 }
 0x699   : > { %v5329_v44 = vpop.permute.xlu0 %5328  ;;  %5414 = vst.msk [vmem:[#allocation3 + $0x68] sm:$0xff] %vm5400_vm15, %v5331_v34 }
 0x69a   : > { %5413 = vst.msk [vmem:[#allocation3 + $0x60] sm:$0xff] %vm5400_vm15, %v5329_v44  ;;  %5704 = vrot.lane.b32.xlu1 %v5633_v5, %s10456_s21  ;;  %v5655_v5 = vld [vmem:[#allocation2 + $0x18b] sm:$0xff] }
 0x69b   : > { %5702 = vrot.lane.b32.xlu0 %v5632_v10, %s10456_s21  ;;  %v5654_v10 = vld [vmem:[#allocation2 + $0x183] sm:$0xff] }
 0x69c   : > { %v5335_v52 = vpop.permute.xlu1 %5334 }
 0x69d   : > { %v5333_v32 = vpop.permute.xlu0 %5332  ;;  %5416 = vst.msk [vmem:[#allocation3 + $0x78] sm:$0xff] %vm5400_vm15, %v5335_v52 }
 0x69e   : > { %5415 = vst.msk [vmem:[#allocation3 + $0x70] sm:$0xff] %vm5400_vm15, %v5333_v32  ;;  %5708 = vrot.lane.b32.xlu1 %v5635_v14, %s10456_s21  ;;  %v5657_v14 = vld [vmem:[#allocation2 + $0x1a3] sm:$0xff] }
 0x69f   : > { %5706 = vrot.lane.b32.xlu0 %v5634_v42, %s10456_s21  ;;  %v5656_v42 = vld [vmem:[#allocation2 + $0x19b] sm:$0xff] }
 0x6a0   : > { %v5339_v11 = vpop.permute.xlu1 %5338 }
 0x6a1   : > { %v5337_v28 = vpop.permute.xlu0 %5336  ;;  %5418 = vst.msk [vmem:[#allocation3 + $0x88] sm:$0xff] %vm5400_vm15, %v5339_v11 }
 0x6a2   : > { %5417 = vst.msk [vmem:[#allocation3 + $0x80] sm:$0xff] %vm5400_vm15, %v5337_v28  ;;  %5712 = vrot.lane.b32.xlu1 %v5637_v33, %s10456_s21 }
 0x6a3   : > { %5710 = vrot.lane.b32.xlu0 %v5636_v20, %s10456_s21  ;;  %v5822_v20 = vld [vmem:[#allocation2 + $0x54] sm:$0xff] }
 0x6a4   : > { %v5343_v40 = vpop.permute.xlu1 %5342 }
 0x6a5   : > { %v5341_v39 = vpop.permute.xlu0 %5340  ;;  %5420 = vst.msk [vmem:[#allocation3 + $0x98] sm:$0xff] %vm5400_vm15, %v5343_v40 }
 0x6a6   : > { %5419 = vst.msk [vmem:[#allocation3 + $0x90] sm:$0xff] %vm5400_vm15, %v5341_v39  ;;  %5716 = vrot.lane.b32.xlu1 %v5639_v4, %s10456_s21  ;;  %v5821_v4 = vld [vmem:[#allocation2 + $0x4c] sm:$0xff] }
 0x6a7   : > { %5714 = vrot.lane.b32.xlu0 %v5638_v60, %s10456_s21  ;;  %v5824_v60 = vld [vmem:[#allocation2 + $0x6c] sm:$0xff] }
 0x6a8   : > { %v5347_v19 = vpop.permute.xlu1 %5346 }
 0x6a9   : > { %v5345_v0 = vpop.permute.xlu0 %5344  ;;  %5422 = vst.msk [vmem:[#allocation3 + $0xa8] sm:$0xff] %vm5400_vm15, %v5347_v19 }
 0x6aa   : > { %5421 = vst.msk [vmem:[#allocation3 + $0xa0] sm:$0xff] %vm5400_vm15, %v5345_v0  ;;  %5720 = vrot.lane.b32.xlu1 %v5641_v23, %s10456_s21  ;;  %v5823_v23 = vld [vmem:[#allocation2 + $0x64] sm:$0xff] }
 0x6ab   : > { %5718 = vrot.lane.b32.xlu0 %v5640_v37, %s10456_s21  ;;  %v5825_v37 = vld [vmem:[#allocation2 + $0x7c] sm:$0xff] }
 0x6ac   : > { %v5351_v31 = vpop.permute.xlu1 %5350 }
 0x6ad   : > { %v5349_v63 = vpop.permute.xlu0 %5348  ;;  %5424 = vst.msk [vmem:[#allocation3 + $0xb8] sm:$0xff] %vm5400_vm15, %v5351_v31 }
 0x6ae   : > { %5423 = vst.msk [vmem:[#allocation3 + $0xb0] sm:$0xff] %vm5400_vm15, %v5349_v63  ;;  %5724 = vrot.lane.b32.xlu1 %v5643_v3, %s10456_s21  ;;  %v5828_v3 = vld [vmem:[#allocation2 + $0x9c] sm:$0xff] }
 0x6af   : > { %5722 = vrot.lane.b32.xlu0 %v5642_v8, %s10456_s21  ;;  %v5827_v8 = vld [vmem:[#allocation2 + $0x94] sm:$0xff] }
 0x6b0   : > { %v5355_v47 = vpop.permute.xlu1 %5354 }
 0x6b1   : > { %v5353_v13 = vpop.permute.xlu0 %5352  ;;  %5426 = vst.msk [vmem:[#allocation3 + $0xc8] sm:$0xff] %vm5400_vm15, %v5355_v47 }
 0x6b2   : > { %5425 = vst.msk [vmem:[#allocation3 + $0xc0] sm:$0xff] %vm5400_vm15, %v5353_v13  ;;  %5728 = vrot.lane.b32.xlu1 %v5645_v61, %s10456_s21  ;;  %v5830_v61 = vld [vmem:[#allocation2 + $0xb4] sm:$0xff] }
 0x6b3   : > { %5726 = vrot.lane.b32.xlu0 %v5644_v38, %s10456_s21  ;;  %v5829_v38 = vld [vmem:[#allocation2 + $0xac] sm:$0xff] }
 0x6b4   : > { %v5359_v51 = vpop.permute.xlu1 %5358 }
 0x6b5   : > { %v5357_v25 = vpop.permute.xlu0 %5356  ;;  %5428 = vst.msk [vmem:[#allocation3 + $0xd8] sm:$0xff] %vm5400_vm15, %v5359_v51 }
 0x6b6   : > { %5427 = vst.msk [vmem:[#allocation3 + $0xd0] sm:$0xff] %vm5400_vm15, %v5357_v25  ;;  %5732 = vrot.lane.b32.xlu1 %v5647_v17, %s10456_s21  ;;  %v5832_v17 = vld [vmem:[#allocation2 + $0xcc] sm:$0xff] }
 0x6b7   : > { %5730 = vrot.lane.b32.xlu0 %v5646_v35, %s10456_s21  ;;  %v5831_v35 = vld [vmem:[#allocation2 + $0xc4] sm:$0xff] }
 0x6b8   : > { %v5363_v6 = vpop.permute.xlu1 %5362 }
 0x6b9   : > { %v5361_v62 = vpop.permute.xlu0 %5360  ;;  %5430 = vst.msk [vmem:[#allocation3 + $0xe8] sm:$0xff] %vm5400_vm15, %v5363_v6 }
 0x6ba   : > { %5429 = vst.msk [vmem:[#allocation3 + $0xe0] sm:$0xff] %vm5400_vm15, %v5361_v62  ;;  %5736 = vrot.lane.b32.xlu1 %v5649_v36, %s10456_s21  ;;  %v5834_v36 = vld [vmem:[#allocation2 + $0xe4] sm:$0xff] }
 0x6bb   : > { %5734 = vrot.lane.b32.xlu0 %v5648_v22, %s10456_s21  ;;  %v5833_v22 = vld [vmem:[#allocation2 + $0xdc] sm:$0xff] }
 0x6bc   : > { %v5367_v43 = vpop.permute.xlu1 %5366 }
 0x6bd   : > { %v5365_v7 = vpop.permute.xlu0 %5364  ;;  %5432 = vst.msk [vmem:[#allocation3 + $0xf8] sm:$0xff] %vm5400_vm15, %v5367_v43 }
 0x6be   : > { %5431 = vst.msk [vmem:[#allocation3 + $0xf0] sm:$0xff] %vm5400_vm15, %v5365_v7  ;;  %5740 = vrot.lane.b32.xlu1 %v5651_v57, %s10456_s21  ;;  %v5836_v57 = vld [vmem:[#allocation2 + $0xfc] sm:$0xff]  ;;  %vm7911_vm15 = vcmask 818944  }
 0x6bf   : > { %5738 = vrot.lane.b32.xlu0 %v5650_v29, %s10456_s21  ;;  %v5835_v29 = vld [vmem:[#allocation2 + $0xf4] sm:$0xff] }
 0x6c0   : > { %v5500_v54 = vpop.permute.xlu1 %5499 }
 0x6c1   : > { %v5498_v53 = vpop.permute.xlu0 %5497  ;;  %5595 = vst.msk [vmem:[#allocation3 + $0x8] sm:$0xff] %vm5593_vm2, %v5500_v54 }
 0x6c2   : > { %5594 = vst.msk [vmem:[#allocation3] sm:$0xff] %vm5593_vm2, %v5498_v53  ;;  %5744 = vrot.lane.b32.xlu1 %v5653_v30, %s10456_s21  ;;  %v5838_v30 = vld [vmem:[#allocation2 + $0x114] sm:$0xff] }
 0x6c3   : > { %5742 = vrot.lane.b32.xlu0 %v5652_v56, %s10456_s21  ;;  %v5837_v56 = vld [vmem:[#allocation2 + $0x10c] sm:$0xff] }
 0x6c4   : > { %v5504_v34 = vpop.permute.xlu1 %5503 }
 0x6c5   : > { %v5502_v44 = vpop.permute.xlu0 %5501  ;;  %5597 = vst.msk [vmem:[#allocation3 + $0x18] sm:$0xff] %vm5593_vm2, %v5504_v34 }
 0x6c6   : > { %5596 = vst.msk [vmem:[#allocation3 + $0x10] sm:$0xff] %vm5593_vm2, %v5502_v44  ;;  %5748 = vrot.lane.b32.xlu1 %v5655_v5, %s10456_s21  ;;  %v5840_v5 = vld [vmem:[#allocation2 + $0x12c] sm:$0xff] }
 0x6c7   : > { %5746 = vrot.lane.b32.xlu0 %v5654_v10, %s10456_s21  ;;  %v5839_v10 = vld [vmem:[#allocation2 + $0x124] sm:$0xff] }
 0x6c8   : > { %v5508_v52 = vpop.permute.xlu1 %5507 }
 0x6c9   : > { %v5506_v32 = vpop.permute.xlu0 %5505  ;;  %5599 = vst.msk [vmem:[#allocation3 + $0x28] sm:$0xff] %vm5593_vm2, %v5508_v52 }
 0x6ca   : > { %5598 = vst.msk [vmem:[#allocation3 + $0x20] sm:$0xff] %vm5593_vm2, %v5506_v32  ;;  %5752 = vrot.lane.b32.xlu1 %v5657_v14, %s10456_s21  ;;  %v5842_v14 = vld [vmem:[#allocation2 + $0x144] sm:$0xff] }
 0x6cb   : > { %5750 = vrot.lane.b32.xlu0 %v5656_v42, %s10456_s21  ;;  %v5841_v42 = vld [vmem:[#allocation2 + $0x13c] sm:$0xff] }
 0x6cc   : > { %v5512_v33 = vpop.permute.xlu1 %5511 }
 0x6cd   : > { %v5510_v11 = vpop.permute.xlu0 %5509  ;;  %5601 = vst.msk [vmem:[#allocation3 + $0x38] sm:$0xff] %vm5593_vm2, %v5512_v33  ;;  %v5844_v33 = vld [vmem:[#allocation2 + $0x15c] sm:$0xff] }
 0x6ce   : > { %5600 = vst.msk [vmem:[#allocation3 + $0x30] sm:$0xff] %vm5593_vm2, %v5510_v11  ;;  %5885 = vrot.lane.b32.xlu1 %v13436_v49, %s10457_s22 }
 0x6cf   : > { %5883 = vrot.lane.b32.xlu0 %v13429_v24, %s10457_s22  ;;  %v5826_v24 = vld [vmem:[#allocation2 + $0x84] sm:$0xff] }
 0x6d0   : > { %v5516_v28 = vpop.permute.xlu1 %5515 }
 0x6d1   : > { %v5514_v40 = vpop.permute.xlu0 %5513  ;;  %5603 = vst.msk [vmem:[#allocation3 + $0x48] sm:$0xff] %vm5593_vm2, %v5516_v28 }
 0x6d2   : > { %5602 = vst.msk [vmem:[#allocation3 + $0x40] sm:$0xff] %vm5593_vm2, %v5514_v40  ;;  %5889 = vrot.lane.b32.xlu1 %v5822_v20, %s10457_s22  ;;  %v5843_v20 = vld [vmem:[#allocation2 + $0x154] sm:$0xff] }
 0x6d3   : > { %5887 = vrot.lane.b32.xlu0 %v5821_v4, %s10457_s22  ;;  %v5846_v4 = vld [vmem:[#allocation2 + $0x174] sm:$0xff] }
 0x6d4   : > { %v5520_v39 = vpop.permute.xlu1 %5519 }
 0x6d5   : > { %v5518_v19 = vpop.permute.xlu0 %5517  ;;  %5605 = vst.msk [vmem:[#allocation3 + $0x58] sm:$0xff] %vm5593_vm2, %v5520_v39 }
 0x6d6   : > { %5604 = vst.msk [vmem:[#allocation3 + $0x50] sm:$0xff] %vm5593_vm2, %v5518_v19  ;;  %5893 = vrot.lane.b32.xlu1 %v5824_v60, %s10457_s22  ;;  %v5845_v60 = vld [vmem:[#allocation2 + $0x16c] sm:$0xff] }
 0x6d7   : > { %5891 = vrot.lane.b32.xlu0 %v5823_v23, %s10457_s22  ;;  %v5848_v23 = vld [vmem:[#allocation2 + $0x18c] sm:$0xff] }
 0x6d8   : > { %v5524_v49 = vpop.permute.xlu1 %5523 }
 0x6d9   : > { %v5522_v0 = vpop.permute.xlu0 %5521  ;;  %5607 = vst.msk [vmem:[#allocation3 + $0x68] sm:$0xff] %vm5593_vm2, %v5524_v49 }
 0x6da   : > { %5606 = vst.msk [vmem:[#allocation3 + $0x60] sm:$0xff] %vm5593_vm2, %v5522_v0  ;;  %5897 = vrot.lane.b32.xlu1 %v5826_v24, %s10457_s22  ;;  %v5847_v24 = vld [vmem:[#allocation2 + $0x184] sm:$0xff] }
 0x6db   : > { %5895 = vrot.lane.b32.xlu0 %v5825_v37, %s10457_s22  ;;  %v5850_v37 = vld [vmem:[#allocation2 + $0x1a4] sm:$0xff] }
 0x6dc   : > { %v5528_v31 = vpop.permute.xlu1 %5527 }
 0x6dd   : > { %v5526_v63 = vpop.permute.xlu0 %5525  ;;  %5609 = vst.msk [vmem:[#allocation3 + $0x78] sm:$0xff] %vm5593_vm2, %v5528_v31 }
 0x6de   : > { %5608 = vst.msk [vmem:[#allocation3 + $0x70] sm:$0xff] %vm5593_vm2, %v5526_v63  ;;  %5901 = vrot.lane.b32.xlu1 %v5828_v3, %s10457_s22  ;;  %v5849_v3 = vld [vmem:[#allocation2 + $0x19c] sm:$0xff] }
 0x6df   : > { %5899 = vrot.lane.b32.xlu0 %v5827_v8, %s10457_s22  ;;  %v6014_v8 = vld [vmem:[#allocation2 + $0x50] sm:$0xff] }
 0x6e0   : > { %v5532_v47 = vpop.permute.xlu1 %5531 }
 0x6e1   : > { %v5530_v13 = vpop.permute.xlu0 %5529  ;;  %5611 = vst.msk [vmem:[#allocation3 + $0x88] sm:$0xff] %vm5593_vm2, %v5532_v47 }
 0x6e2   : > { %5610 = vst.msk [vmem:[#allocation3 + $0x80] sm:$0xff] %vm5593_vm2, %v5530_v13  ;;  %5905 = vrot.lane.b32.xlu1 %v5830_v61, %s10457_s22  ;;  %v6013_v61 = vld [vmem:[#allocation2 + $0x48] sm:$0xff] }
 0x6e3   : > { %5903 = vrot.lane.b32.xlu0 %v5829_v38, %s10457_s22  ;;  %v6016_v38 = vld [vmem:[#allocation2 + $0x68] sm:$0xff] }
 0x6e4   : > { %v5536_v51 = vpop.permute.xlu1 %5535 }
 0x6e5   : > { %v5534_v25 = vpop.permute.xlu0 %5533  ;;  %5613 = vst.msk [vmem:[#allocation3 + $0x98] sm:$0xff] %vm5593_vm2, %v5536_v51 }
 0x6e6   : > { %5612 = vst.msk [vmem:[#allocation3 + $0x90] sm:$0xff] %vm5593_vm2, %v5534_v25  ;;  %5909 = vrot.lane.b32.xlu1 %v5832_v17, %s10457_s22  ;;  %v6015_v17 = vld [vmem:[#allocation2 + $0x60] sm:$0xff] }
 0x6e7   : > { %5907 = vrot.lane.b32.xlu0 %v5831_v35, %s10457_s22  ;;  %v6018_v35 = vld [vmem:[#allocation2 + $0x80] sm:$0xff] }
 0x6e8   : > { %v5540_v6 = vpop.permute.xlu1 %5539 }
 0x6e9   : > { %v5538_v62 = vpop.permute.xlu0 %5537  ;;  %5615 = vst.msk [vmem:[#allocation3 + $0xa8] sm:$0xff] %vm5593_vm2, %v5540_v6 }
 0x6ea   : > { %5614 = vst.msk [vmem:[#allocation3 + $0xa0] sm:$0xff] %vm5593_vm2, %v5538_v62  ;;  %5913 = vrot.lane.b32.xlu1 %v5834_v36, %s10457_s22  ;;  %v6017_v36 = vld [vmem:[#allocation2 + $0x78] sm:$0xff] }
 0x6eb   : > { %5911 = vrot.lane.b32.xlu0 %v5833_v22, %s10457_s22  ;;  %v6020_v22 = vld [vmem:[#allocation2 + $0x98] sm:$0xff] }
 0x6ec   : > { %v5544_v43 = vpop.permute.xlu1 %5543 }
 0x6ed   : > { %v5542_v7 = vpop.permute.xlu0 %5541  ;;  %5617 = vst.msk [vmem:[#allocation3 + $0xb8] sm:$0xff] %vm5593_vm2, %v5544_v43 }
 0x6ee   : > { %5616 = vst.msk [vmem:[#allocation3 + $0xb0] sm:$0xff] %vm5593_vm2, %v5542_v7  ;;  %5917 = vrot.lane.b32.xlu1 %v5836_v57, %s10457_s22  ;;  %v6019_v57 = vld [vmem:[#allocation2 + $0x90] sm:$0xff] }
 0x6ef   : > { %5915 = vrot.lane.b32.xlu0 %v5835_v29, %s10457_s22  ;;  %v6022_v29 = vld [vmem:[#allocation2 + $0xb0] sm:$0xff] }
 0x6f0   : > { %v5548_v54 = vpop.permute.xlu1 %5547 }
 0x6f1   : > { %v5546_v53 = vpop.permute.xlu0 %5545  ;;  %5619 = vst.msk [vmem:[#allocation3 + $0xc8] sm:$0xff] %vm5593_vm2, %v5548_v54 }
 0x6f2   : > { %5618 = vst.msk [vmem:[#allocation3 + $0xc0] sm:$0xff] %vm5593_vm2, %v5546_v53  ;;  %5921 = vrot.lane.b32.xlu1 %v5838_v30, %s10457_s22  ;;  %v6021_v30 = vld [vmem:[#allocation2 + $0xa8] sm:$0xff] }
 0x6f3   : > { %5919 = vrot.lane.b32.xlu0 %v5837_v56, %s10457_s22  ;;  %v6024_v56 = vld [vmem:[#allocation2 + $0xc8] sm:$0xff] }
 0x6f4   : > { %v5552_v34 = vpop.permute.xlu1 %5551 }
 0x6f5   : > { %v5550_v44 = vpop.permute.xlu0 %5549  ;;  %5621 = vst.msk [vmem:[#allocation3 + $0xd8] sm:$0xff] %vm5593_vm2, %v5552_v34 }
 0x6f6   : > { %5620 = vst.msk [vmem:[#allocation3 + $0xd0] sm:$0xff] %vm5593_vm2, %v5550_v44  ;;  %5925 = vrot.lane.b32.xlu1 %v5840_v5, %s10457_s22  ;;  %v6023_v5 = vld [vmem:[#allocation2 + $0xc0] sm:$0xff] }
 0x6f7   : > { %5923 = vrot.lane.b32.xlu0 %v5839_v10, %s10457_s22  ;;  %v6026_v10 = vld [vmem:[#allocation2 + $0xe0] sm:$0xff] }
 0x6f8   : > { %v5556_v52 = vpop.permute.xlu1 %5555 }
 0x6f9   : > { %v5554_v32 = vpop.permute.xlu0 %5553  ;;  %5623 = vst.msk [vmem:[#allocation3 + $0xe8] sm:$0xff] %vm5593_vm2, %v5556_v52 }
 0x6fa   : > { %5622 = vst.msk [vmem:[#allocation3 + $0xe0] sm:$0xff] %vm5593_vm2, %v5554_v32  ;;  %5929 = vrot.lane.b32.xlu1 %v5842_v14, %s10457_s22  ;;  %v6025_v14 = vld [vmem:[#allocation2 + $0xd8] sm:$0xff] }
 0x6fb   : > { %5927 = vrot.lane.b32.xlu0 %v5841_v42, %s10457_s22  ;;  %v6028_v42 = vld [vmem:[#allocation2 + $0xf8] sm:$0xff] }
 0x6fc   : > { %v5560_v11 = vpop.permute.xlu1 %5559 }
 0x6fd   : > { %v5558_v28 = vpop.permute.xlu0 %5557  ;;  %5625 = vst.msk [vmem:[#allocation3 + $0xf8] sm:$0xff] %vm5593_vm2, %v5560_v11 }
 0x6fe   : > { %5624 = vst.msk [vmem:[#allocation3 + $0xf0] sm:$0xff] %vm5593_vm2, %v5558_v28  ;;  %5933 = vrot.lane.b32.xlu1 %v5844_v33, %s10457_s22  ;;  %v6027_v33 = vld [vmem:[#allocation2 + $0xf0] sm:$0xff]  ;;  %vm7989_vm2 = vcmask 818176  }
 0x6ff   : > { %5931 = vrot.lane.b32.xlu0 %v5843_v20, %s10457_s22  ;;  %v6030_v20 = vld [vmem:[#allocation2 + $0x110] sm:$0xff] }
 0x700   : > { %v5693_v40 = vpop.permute.xlu1 %5692 }
 0x701   : > { %v5691_v39 = vpop.permute.xlu0 %5690  ;;  %5788 = vst.msk [vmem:[#allocation3 + $0x8] sm:$0xff] %vm5786_vm3, %v5693_v40 }
 0x702   : > { %5787 = vst.msk [vmem:[#allocation3] sm:$0xff] %vm5786_vm3, %v5691_v39  ;;  %5937 = vrot.lane.b32.xlu1 %v5846_v4, %s10457_s22  ;;  %v6029_v4 = vld [vmem:[#allocation2 + $0x108] sm:$0xff] }
 0x703   : > { %5935 = vrot.lane.b32.xlu0 %v5845_v60, %s10457_s22  ;;  %v6032_v60 = vld [vmem:[#allocation2 + $0x128] sm:$0xff] }
 0x704   : > { %v5697_v19 = vpop.permute.xlu1 %5696 }
 0x705   : > { %v5695_v49 = vpop.permute.xlu0 %5694  ;;  %5790 = vst.msk [vmem:[#allocation3 + $0x18] sm:$0xff] %vm5786_vm3, %v5697_v19 }
 0x706   : > { %5789 = vst.msk [vmem:[#allocation3 + $0x10] sm:$0xff] %vm5786_vm3, %v5695_v49  ;;  %5941 = vrot.lane.b32.xlu1 %v5848_v23, %s10457_s22  ;;  %v6031_v23 = vld [vmem:[#allocation2 + $0x120] sm:$0xff] }
 0x707   : > { %5939 = vrot.lane.b32.xlu0 %v5847_v24, %s10457_s22  ;;  %v6034_v24 = vld [vmem:[#allocation2 + $0x140] sm:$0xff] }
 0x708   : > { %v5701_v0 = vpop.permute.xlu1 %5700 }
 0x709   : > { %v5699_v31 = vpop.permute.xlu0 %5698  ;;  %5792 = vst.msk [vmem:[#allocation3 + $0x28] sm:$0xff] %vm5786_vm3, %v5701_v0 }
 0x70a   : > { %5791 = vst.msk [vmem:[#allocation3 + $0x20] sm:$0xff] %vm5786_vm3, %v5699_v31  ;;  %5945 = vrot.lane.b32.xlu1 %v5850_v37, %s10457_s22  ;;  %v6033_v37 = vld [vmem:[#allocation2 + $0x138] sm:$0xff] }
 0x70b   : > { %5943 = vrot.lane.b32.xlu0 %v5849_v3, %s10457_s22  ;;  %v6036_v3 = vld [vmem:[#allocation2 + $0x158] sm:$0xff] }
 0x70c   : > { %v5705_v63 = vpop.permute.xlu1 %5704 }
 0x70d   : > { %v5703_v47 = vpop.permute.xlu0 %5702  ;;  %5794 = vst.msk [vmem:[#allocation3 + $0x38] sm:$0xff] %vm5786_vm3, %v5705_v63 }
 0x70e   : > { %5793 = vst.msk [vmem:[#allocation3 + $0x30] sm:$0xff] %vm5786_vm3, %v5703_v47  ;;  %6079 = vrot.lane.b32.xlu1 %v6014_v8, %s10458_s15  ;;  %v6035_v8 = vld [vmem:[#allocation2 + $0x150] sm:$0xff] }
 0x70f   : > { %6077 = vrot.lane.b32.xlu0 %v6013_v61, %s10458_s15  ;;  %v6038_v61 = vld [vmem:[#allocation2 + $0x170] sm:$0xff] }
 0x710   : > { %v5709_v13 = vpop.permute.xlu1 %5708 }
 0x711   : > { %v5707_v51 = vpop.permute.xlu0 %5706  ;;  %5796 = vst.msk [vmem:[#allocation3 + $0x48] sm:$0xff] %vm5786_vm3, %v5709_v13 }
 0x712   : > { %5795 = vst.msk [vmem:[#allocation3 + $0x40] sm:$0xff] %vm5786_vm3, %v5707_v51  ;;  %6083 = vrot.lane.b32.xlu1 %v6016_v38, %s10458_s15  ;;  %v6037_v38 = vld [vmem:[#allocation2 + $0x168] sm:$0xff] }
 0x713   : > { %6081 = vrot.lane.b32.xlu0 %v6015_v17, %s10458_s15  ;;  %v6040_v17 = vld [vmem:[#allocation2 + $0x188] sm:$0xff] }
 0x714   : > { %v5713_v25 = vpop.permute.xlu1 %5712 }
 0x715   : > { %v5711_v6 = vpop.permute.xlu0 %5710  ;;  %5798 = vst.msk [vmem:[#allocation3 + $0x58] sm:$0xff] %vm5786_vm3, %v5713_v25 }
 0x716   : > { %5797 = vst.msk [vmem:[#allocation3 + $0x50] sm:$0xff] %vm5786_vm3, %v5711_v6  ;;  %6087 = vrot.lane.b32.xlu1 %v6018_v35, %s10458_s15  ;;  %v6039_v35 = vld [vmem:[#allocation2 + $0x180] sm:$0xff] }
 0x717   : > { %6085 = vrot.lane.b32.xlu0 %v6017_v36, %s10458_s15  ;;  %v6042_v36 = vld [vmem:[#allocation2 + $0x1a0] sm:$0xff] }
 0x718   : > { %v5717_v62 = vpop.permute.xlu1 %5716 }
 0x719   : > { %v5715_v43 = vpop.permute.xlu0 %5714  ;;  %5800 = vst.msk [vmem:[#allocation3 + $0x68] sm:$0xff] %vm5786_vm3, %v5717_v62 }
 0x71a   : > { %5799 = vst.msk [vmem:[#allocation3 + $0x60] sm:$0xff] %vm5786_vm3, %v5715_v43  ;;  %6091 = vrot.lane.b32.xlu1 %v6020_v22, %s10458_s15  ;;  %v6041_v22 = vld [vmem:[#allocation2 + $0x198] sm:$0xff] }
 0x71b   : > { %6089 = vrot.lane.b32.xlu0 %v6019_v57, %s10458_s15  ;;  %v6044_v57 = vld [vmem:[#allocation2 + $0x1b8] sm:$0xff] }
 0x71c   : > { %v5721_v7 = vpop.permute.xlu1 %5720 }
 0x71d   : > { %v5719_v54 = vpop.permute.xlu0 %5718  ;;  %5802 = vst.msk [vmem:[#allocation3 + $0x78] sm:$0xff] %vm5786_vm3, %v5721_v7 }
 0x71e   : > { %5801 = vst.msk [vmem:[#allocation3 + $0x70] sm:$0xff] %vm5786_vm3, %v5719_v54  ;;  %6095 = vrot.lane.b32.xlu1 %v6022_v29, %s10458_s15  ;;  %v6043_v29 = vld [vmem:[#allocation2 + $0x1b0] sm:$0xff] }
 0x71f   : > { %6093 = vrot.lane.b32.xlu0 %v6021_v30, %s10458_s15  ;;  %v6207_v30 = vld [vmem:[#allocation2 + $0x51] sm:$0xff] }
 0x720   : > { %v5725_v53 = vpop.permute.xlu1 %5724 }
 0x721   : > { %v5723_v34 = vpop.permute.xlu0 %5722  ;;  %5804 = vst.msk [vmem:[#allocation3 + $0x88] sm:$0xff] %vm5786_vm3, %v5725_v53 }
 0x722   : > { %5803 = vst.msk [vmem:[#allocation3 + $0x80] sm:$0xff] %vm5786_vm3, %v5723_v34  ;;  %6099 = vrot.lane.b32.xlu1 %v6024_v56, %s10458_s15  ;;  %v6206_v56 = vld [vmem:[#allocation2 + $0x49] sm:$0xff] }
 0x723   : > { %6097 = vrot.lane.b32.xlu0 %v6023_v5, %s10458_s15  ;;  %v6209_v5 = vld [vmem:[#allocation2 + $0x69] sm:$0xff] }
 0x724   : > { %v5729_v44 = vpop.permute.xlu1 %5728 }
 0x725   : > { %v5727_v52 = vpop.permute.xlu0 %5726  ;;  %5806 = vst.msk [vmem:[#allocation3 + $0x98] sm:$0xff] %vm5786_vm3, %v5729_v44 }
 0x726   : > { %5805 = vst.msk [vmem:[#allocation3 + $0x90] sm:$0xff] %vm5786_vm3, %v5727_v52  ;;  %6103 = vrot.lane.b32.xlu1 %v6026_v10, %s10458_s15  ;;  %v6208_v10 = vld [vmem:[#allocation2 + $0x61] sm:$0xff] }
 0x727   : > { %6101 = vrot.lane.b32.xlu0 %v6025_v14, %s10458_s15  ;;  %v6211_v14 = vld [vmem:[#allocation2 + $0x81] sm:$0xff] }
 0x728   : > { %v5733_v32 = vpop.permute.xlu1 %5732 }
 0x729   : > { %v5731_v11 = vpop.permute.xlu0 %5730  ;;  %5808 = vst.msk [vmem:[#allocation3 + $0xa8] sm:$0xff] %vm5786_vm3, %v5733_v32 }
 0x72a   : > { %5807 = vst.msk [vmem:[#allocation3 + $0xa0] sm:$0xff] %vm5786_vm3, %v5731_v11  ;;  %6107 = vrot.lane.b32.xlu1 %v6028_v42, %s10458_s15  ;;  %v6210_v42 = vld [vmem:[#allocation2 + $0x79] sm:$0xff] }
 0x72b   : > { %6105 = vrot.lane.b32.xlu0 %v6027_v33, %s10458_s15  ;;  %v6213_v33 = vld [vmem:[#allocation2 + $0x99] sm:$0xff] }
 0x72c   : > { %v5737_v28 = vpop.permute.xlu1 %5736 }
 0x72d   : > { %v5735_v40 = vpop.permute.xlu0 %5734  ;;  %5810 = vst.msk [vmem:[#allocation3 + $0xb8] sm:$0xff] %vm5786_vm3, %v5737_v28 }
 0x72e   : > { %5809 = vst.msk [vmem:[#allocation3 + $0xb0] sm:$0xff] %vm5786_vm3, %v5735_v40  ;;  %6111 = vrot.lane.b32.xlu1 %v6030_v20, %s10458_s15  ;;  %v6212_v20 = vld [vmem:[#allocation2 + $0x91] sm:$0xff] }
 0x72f   : > { %6109 = vrot.lane.b32.xlu0 %v6029_v4, %s10458_s15  ;;  %v6215_v4 = vld [vmem:[#allocation2 + $0xb1] sm:$0xff] }
 0x730   : > { %v5741_v39 = vpop.permute.xlu1 %5740 }
 0x731   : > { %v5739_v19 = vpop.permute.xlu0 %5738  ;;  %5812 = vst.msk [vmem:[#allocation3 + $0xc8] sm:$0xff] %vm5786_vm3, %v5741_v39 }
 0x732   : > { %5811 = vst.msk [vmem:[#allocation3 + $0xc0] sm:$0xff] %vm5786_vm3, %v5739_v19  ;;  %6115 = vrot.lane.b32.xlu1 %v6032_v60, %s10458_s15  ;;  %v6214_v60 = vld [vmem:[#allocation2 + $0xa9] sm:$0xff] }
 0x733   : > { %6113 = vrot.lane.b32.xlu0 %v6031_v23, %s10458_s15  ;;  %v6217_v23 = vld [vmem:[#allocation2 + $0xc9] sm:$0xff] }
 0x734   : > { %v5745_v49 = vpop.permute.xlu1 %5744 }
 0x735   : > { %v5743_v0 = vpop.permute.xlu0 %5742  ;;  %5814 = vst.msk [vmem:[#allocation3 + $0xd8] sm:$0xff] %vm5786_vm3, %v5745_v49 }
 0x736   : > { %5813 = vst.msk [vmem:[#allocation3 + $0xd0] sm:$0xff] %vm5786_vm3, %v5743_v0  ;;  %6119 = vrot.lane.b32.xlu1 %v6034_v24, %s10458_s15  ;;  %v6216_v24 = vld [vmem:[#allocation2 + $0xc1] sm:$0xff] }
 0x737   : > { %6117 = vrot.lane.b32.xlu0 %v6033_v37, %s10458_s15  ;;  %v6219_v37 = vld [vmem:[#allocation2 + $0xe1] sm:$0xff] }
 0x738   : > { %v5749_v31 = vpop.permute.xlu1 %5748 }
 0x739   : > { %v5747_v63 = vpop.permute.xlu0 %5746  ;;  %5816 = vst.msk [vmem:[#allocation3 + $0xe8] sm:$0xff] %vm5786_vm3, %v5749_v31 }
 0x73a   : > { %5815 = vst.msk [vmem:[#allocation3 + $0xe0] sm:$0xff] %vm5786_vm3, %v5747_v63  ;;  %6123 = vrot.lane.b32.xlu1 %v6036_v3, %s10458_s15  ;;  %v6218_v3 = vld [vmem:[#allocation2 + $0xd9] sm:$0xff] }
 0x73b   : > { %6121 = vrot.lane.b32.xlu0 %v6035_v8, %s10458_s15  ;;  %v6221_v8 = vld [vmem:[#allocation2 + $0xf9] sm:$0xff] }
 0x73c   : > { %v5753_v47 = vpop.permute.xlu1 %5752 }
 0x73d   : > { %v5751_v13 = vpop.permute.xlu0 %5750  ;;  %5818 = vst.msk [vmem:[#allocation3 + $0xf8] sm:$0xff] %vm5786_vm3, %v5753_v47 }
 0x73e   : > { %5817 = vst.msk [vmem:[#allocation3 + $0xf0] sm:$0xff] %vm5786_vm3, %v5751_v13  ;;  %6127 = vrot.lane.b32.xlu1 %v6038_v61, %s10458_s15  ;;  %v6220_v61 = vld [vmem:[#allocation2 + $0xf1] sm:$0xff] }
 0x73f   : > { %6125 = vrot.lane.b32.xlu0 %v6037_v38, %s10458_s15  ;;  %v6223_v38 = vld [vmem:[#allocation2 + $0x111] sm:$0xff] }
 0x740   : > { %v5886_v51 = vpop.permute.xlu1 %5885 }
 0x741   : > { %v5884_v25 = vpop.permute.xlu0 %5883  ;;  %5981 = vst.msk [vmem:[#allocation3 + $0x8] sm:$0xff] %vm5979_vm4, %v5886_v51 }
 0x742   : > { %5980 = vst.msk [vmem:[#allocation3] sm:$0xff] %vm5979_vm4, %v5884_v25  ;;  %6131 = vrot.lane.b32.xlu1 %v6040_v17, %s10458_s15  ;;  %v6222_v17 = vld [vmem:[#allocation2 + $0x109] sm:$0xff] }
 0x743   : > { %6129 = vrot.lane.b32.xlu0 %v6039_v35, %s10458_s15  ;;  %v6225_v35 = vld [vmem:[#allocation2 + $0x129] sm:$0xff] }
 0x744   : > { %v5890_v6 = vpop.permute.xlu1 %5889 }
 0x745   : > { %v5888_v62 = vpop.permute.xlu0 %5887  ;;  %5983 = vst.msk [vmem:[#allocation3 + $0x18] sm:$0xff] %vm5979_vm4, %v5890_v6 }
 0x746   : > { %5982 = vst.msk [vmem:[#allocation3 + $0x10] sm:$0xff] %vm5979_vm4, %v5888_v62  ;;  %6135 = vrot.lane.b32.xlu1 %v6042_v36, %s10458_s15  ;;  %v6224_v36 = vld [vmem:[#allocation2 + $0x121] sm:$0xff] }
 0x747   : > { %6133 = vrot.lane.b32.xlu0 %v6041_v22, %s10458_s15  ;;  %v6227_v22 = vld [vmem:[#allocation2 + $0x141] sm:$0xff] }
 0x748   : > { %v5894_v43 = vpop.permute.xlu1 %5893 }
 0x749   : > { %v5892_v7 = vpop.permute.xlu0 %5891  ;;  %5985 = vst.msk [vmem:[#allocation3 + $0x28] sm:$0xff] %vm5979_vm4, %v5894_v43 }
 0x74a   : > { %5984 = vst.msk [vmem:[#allocation3 + $0x20] sm:$0xff] %vm5979_vm4, %v5892_v7  ;;  %6139 = vrot.lane.b32.xlu1 %v6044_v57, %s10458_s15  ;;  %v6226_v57 = vld [vmem:[#allocation2 + $0x139] sm:$0xff] }
 0x74b   : > { %6137 = vrot.lane.b32.xlu0 %v6043_v29, %s10458_s15  ;;  %v6229_v29 = vld [vmem:[#allocation2 + $0x159] sm:$0xff]  ;;  %s10467_s15 = smov 96  }
 0x74c   : > { %v5898_v54 = vpop.permute.xlu1 %5897 }
 0x74d   : > { %v5896_v53 = vpop.permute.xlu0 %5895  ;;  %5987 = vst.msk [vmem:[#allocation3 + $0x38] sm:$0xff] %vm5979_vm4, %v5898_v54 }
 0x74e   : > { %5986 = vst.msk [vmem:[#allocation3 + $0x30] sm:$0xff] %vm5979_vm4, %v5896_v53  ;;  %6272 = vrot.lane.b32.xlu1 %v6207_v30, %s10459_s24  ;;  %v6228_v30 = vld [vmem:[#allocation2 + $0x151] sm:$0xff] }
 0x74f   : > { %6270 = vrot.lane.b32.xlu0 %v6206_v56, %s10459_s24  ;;  %v6231_v56 = vld [vmem:[#allocation2 + $0x171] sm:$0xff] }
 0x750   : > { %v5902_v34 = vpop.permute.xlu1 %5901 }
 0x751   : > { %v5900_v44 = vpop.permute.xlu0 %5899  ;;  %5989 = vst.msk [vmem:[#allocation3 + $0x48] sm:$0xff] %vm5979_vm4, %v5902_v34 }
 0x752   : > { %5988 = vst.msk [vmem:[#allocation3 + $0x40] sm:$0xff] %vm5979_vm4, %v5900_v44  ;;  %6276 = vrot.lane.b32.xlu1 %v6209_v5, %s10459_s24  ;;  %v6230_v5 = vld [vmem:[#allocation2 + $0x169] sm:$0xff] }
 0x753   : > { %6274 = vrot.lane.b32.xlu0 %v6208_v10, %s10459_s24  ;;  %v6233_v10 = vld [vmem:[#allocation2 + $0x189] sm:$0xff] }
 0x754   : > { %v5906_v52 = vpop.permute.xlu1 %5905 }
 0x755   : > { %v5904_v32 = vpop.permute.xlu0 %5903  ;;  %5991 = vst.msk [vmem:[#allocation3 + $0x58] sm:$0xff] %vm5979_vm4, %v5906_v52 }
 0x756   : > { %5990 = vst.msk [vmem:[#allocation3 + $0x50] sm:$0xff] %vm5979_vm4, %v5904_v32  ;;  %6280 = vrot.lane.b32.xlu1 %v6211_v14, %s10459_s24  ;;  %v6232_v14 = vld [vmem:[#allocation2 + $0x181] sm:$0xff] }
 0x757   : > { %6278 = vrot.lane.b32.xlu0 %v6210_v42, %s10459_s24  ;;  %v6235_v42 = vld [vmem:[#allocation2 + $0x1a1] sm:$0xff] }
 0x758   : > { %v5910_v11 = vpop.permute.xlu1 %5909 }
 0x759   : > { %v5908_v28 = vpop.permute.xlu0 %5907  ;;  %5993 = vst.msk [vmem:[#allocation3 + $0x68] sm:$0xff] %vm5979_vm4, %v5910_v11 }
 0x75a   : > { %5992 = vst.msk [vmem:[#allocation3 + $0x60] sm:$0xff] %vm5979_vm4, %v5908_v28  ;;  %6284 = vrot.lane.b32.xlu1 %v6213_v33, %s10459_s24  ;;  %v6234_v33 = vld [vmem:[#allocation2 + $0x199] sm:$0xff] }
 0x75b   : > { %6282 = vrot.lane.b32.xlu0 %v6212_v20, %s10459_s24  ;;  %v6237_v20 = vld [vmem:[#allocation2 + $0x1b9] sm:$0xff] }
 0x75c   : > { %v5914_v40 = vpop.permute.xlu1 %5913 }
 0x75d   : > { %v5912_v39 = vpop.permute.xlu0 %5911  ;;  %5995 = vst.msk [vmem:[#allocation3 + $0x78] sm:$0xff] %vm5979_vm4, %v5914_v40 }
 0x75e   : > { %5994 = vst.msk [vmem:[#allocation3 + $0x70] sm:$0xff] %vm5979_vm4, %v5912_v39  ;;  %6288 = vrot.lane.b32.xlu1 %v6215_v4, %s10459_s24  ;;  %v6236_v4 = vld [vmem:[#allocation2 + $0x1b1] sm:$0xff] }
 0x75f   : > { %6286 = vrot.lane.b32.xlu0 %v6214_v60, %s10459_s24  ;;  %v6400_v60 = vld [vmem:[#allocation2 + $0x52] sm:$0xff] }
 0x760   : > { %v5918_v19 = vpop.permute.xlu1 %5917 }
 0x761   : > { %v5916_v49 = vpop.permute.xlu0 %5915  ;;  %5997 = vst.msk [vmem:[#allocation3 + $0x88] sm:$0xff] %vm5979_vm4, %v5918_v19 }
 0x762   : > { %5996 = vst.msk [vmem:[#allocation3 + $0x80] sm:$0xff] %vm5979_vm4, %v5916_v49  ;;  %6292 = vrot.lane.b32.xlu1 %v6217_v23, %s10459_s24  ;;  %v6399_v23 = vld [vmem:[#allocation2 + $0x4a] sm:$0xff] }
 0x763   : > { %6290 = vrot.lane.b32.xlu0 %v6216_v24, %s10459_s24  ;;  %v13769_v24 = vld [vmem:[#allocation2 + $0x4b] sm:$0xff] }
 0x764   : > { %v5922_v0 = vpop.permute.xlu1 %5921  ;;  %v13771_v49 = vld [vmem:[#allocation2 + $0x4c] sm:$0xff] }
 0x765   : > { %v5920_v31 = vpop.permute.xlu0 %5919  ;;  %5999 = vst.msk [vmem:[#allocation3 + $0x98] sm:$0xff] %vm5979_vm4, %v5922_v0  ;;  %v13776_v0 = vld [vmem:[#allocation2 + $0x53] sm:$0xff] }
 0x766   : > { %5998 = vst.msk [vmem:[#allocation3 + $0x90] sm:$0xff] %vm5979_vm4, %v5920_v31  ;;  %6296 = vrot.lane.b32.xlu1 %v6219_v37, %s10459_s24  ;;  %v13774_v37 = vld [vmem:[#allocation2 + $0x6a] sm:$0xff] }
 0x767   : > { %6294 = vrot.lane.b32.xlu0 %v6218_v3, %s10459_s24  ;;  %8590 = vst.msk [vmem:[#allocation2 + $0x48] sm:$0xff] %vm366_vm0, %v15846_v16  ;;  %v13780_v3 = vld [vmem:[#allocation2 + $0x54] sm:$0xff] }
 0x768   : > { %v5926_v63 = vpop.permute.xlu1 %5925  ;;  %8592 = vst.msk [vmem:[#allocation2 + $0x58] sm:$0xf] %vm832_vm1, %v15846_v16 }
 0x769   : > { %v5924_v47 = vpop.permute.xlu0 %5923  ;;  %6001 = vst.msk [vmem:[#allocation3 + $0xa8] sm:$0xff] %vm5979_vm4, %v5926_v63 }
 0x76a   : > { %6000 = vst.msk [vmem:[#allocation3 + $0xa0] sm:$0xff] %vm5979_vm4, %v5924_v47  ;;  %6300 = vrot.lane.b32.xlu1 %v6221_v8, %s10459_s24  ;;  %v13782_v8 = vld [vmem:[#allocation2 + $0x62] sm:$0xff] }
 0x76b   : > { %6298 = vrot.lane.b32.xlu0 %v6220_v61, %s10459_s24  ;;  %8591 = vst.msk [vmem:[#allocation2 + $0x50] sm:$0xff] %vm366_vm0, %v15846_v16  ;;  %v13798_v61 = vld [vmem:[#allocation2 + $0x82] sm:$0xff] }
 0x76c   : > { %v5930_v13 = vpop.permute.xlu1 %5929  ;;  %8645 = vst.msk [vmem:[#allocation2 + $0x49] sm:$0xff] %vm366_vm0, %v15821_v21  ;;  %8646 = vst.msk [vmem:[#allocation2 + $0x51] sm:$0xff] %vm366_vm0, %v15822_v48  ;;  %v6406_v21 = vld [vmem:[#allocation2 + $0x9a] sm:$0xff] }
 0x76d   : > { %v5928_v51 = vpop.permute.xlu0 %5927  ;;  %6003 = vst.msk [vmem:[#allocation3 + $0xb8] sm:$0xff] %vm5979_vm4, %v5930_v13 }
 0x76e   : > { %6002 = vst.msk [vmem:[#allocation3 + $0xb0] sm:$0xff] %vm5979_vm4, %v5928_v51  ;;  %6304 = vrot.lane.b32.xlu1 %v6223_v38, %s10459_s24  ;;  %v13800_v38 = vld [vmem:[#allocation2 + $0x7a] sm:$0xff] }
 0x76f   : > { %6302 = vrot.lane.b32.xlu0 %v6222_v17, %s10459_s24  ;;  %v6405_v17 = vld [vmem:[#allocation2 + $0x92] sm:$0xff] }
 0x770   : > { %v5934_v25 = vpop.permute.xlu1 %5933 }
 0x771   : > { %v5932_v6 = vpop.permute.xlu0 %5931  ;;  %6005 = vst.msk [vmem:[#allocation3 + $0xc8] sm:$0xff] %vm5979_vm4, %v5934_v25 }
 0x772   : > { %6004 = vst.msk [vmem:[#allocation3 + $0xc0] sm:$0xff] %vm5979_vm4, %v5932_v6  ;;  %6308 = vrot.lane.b32.xlu1 %v6225_v35, %s10459_s24  ;;  %v6408_v35 = vld [vmem:[#allocation2 + $0xb2] sm:$0xff] }
 0x773   : > { %6306 = vrot.lane.b32.xlu0 %v6224_v36, %s10459_s24  ;;  %v6407_v36 = vld [vmem:[#allocation2 + $0xaa] sm:$0xff] }
 0x774   : > { %v5938_v62 = vpop.permute.xlu1 %5937 }
 0x775   : > { %v5936_v43 = vpop.permute.xlu0 %5935  ;;  %6007 = vst.msk [vmem:[#allocation3 + $0xd8] sm:$0xff] %vm5979_vm4, %v5938_v62 }
 0x776   : > { %6006 = vst.msk [vmem:[#allocation3 + $0xd0] sm:$0xff] %vm5979_vm4, %v5936_v43  ;;  %6312 = vrot.lane.b32.xlu1 %v6227_v22, %s10459_s24  ;;  %v6410_v22 = vld [vmem:[#allocation2 + $0xca] sm:$0xff] }
 0x777   : > { %6310 = vrot.lane.b32.xlu0 %v6226_v57, %s10459_s24  ;;  %v6409_v57 = vld [vmem:[#allocation2 + $0xc2] sm:$0xff] }
 0x778   : > { %v5942_v7 = vpop.permute.xlu1 %5941 }
 0x779   : > { %v5940_v54 = vpop.permute.xlu0 %5939  ;;  %6009 = vst.msk [vmem:[#allocation3 + $0xe8] sm:$0xff] %vm5979_vm4, %v5942_v7 }
 0x77a   : > { %6008 = vst.msk [vmem:[#allocation3 + $0xe0] sm:$0xff] %vm5979_vm4, %v5940_v54  ;;  %6316 = vrot.lane.b32.xlu1 %v6229_v29, %s10459_s24  ;;  %v6412_v29 = vld [vmem:[#allocation2 + $0xe2] sm:$0xff] }
 0x77b   : > { %6314 = vrot.lane.b32.xlu0 %v6228_v30, %s10459_s24  ;;  %v6411_v30 = vld [vmem:[#allocation2 + $0xda] sm:$0xff] }
 0x77c   : > { %v5946_v53 = vpop.permute.xlu1 %5945 }
 0x77d   : > { %v5944_v34 = vpop.permute.xlu0 %5943  ;;  %6011 = vst.msk [vmem:[#allocation3 + $0xf8] sm:$0xff] %vm5979_vm4, %v5946_v53 }
 0x77e   : > { %6010 = vst.msk [vmem:[#allocation3 + $0xf0] sm:$0xff] %vm5979_vm4, %v5944_v34  ;;  %6320 = vrot.lane.b32.xlu1 %v6231_v56, %s10459_s24  ;;  %v6414_v56 = vld [vmem:[#allocation2 + $0xfa] sm:$0xff] }
 0x77f   : > { %6318 = vrot.lane.b32.xlu0 %v6230_v5, %s10459_s24  ;;  %v6413_v5 = vld [vmem:[#allocation2 + $0xf2] sm:$0xff] }
 0x780   : > { %v6080_v44 = vpop.permute.xlu1 %6079 }
 0x781   : > { %v6078_v52 = vpop.permute.xlu0 %6077  ;;  %6175 = vst.msk [vmem:[#allocation3 + $0x8] sm:$0xff] %vm6173_vm5, %v6080_v44 }
 0x782   : > { %6174 = vst.msk [vmem:[#allocation3] sm:$0xff] %vm6173_vm5, %v6078_v52  ;;  %6324 = vrot.lane.b32.xlu1 %v6233_v10, %s10459_s24  ;;  %v6416_v10 = vld [vmem:[#allocation2 + $0x112] sm:$0xff] }
 0x783   : > { %6322 = vrot.lane.b32.xlu0 %v6232_v14, %s10459_s24  ;;  %v6415_v14 = vld [vmem:[#allocation2 + $0x10a] sm:$0xff] }
 0x784   : > { %v6084_v32 = vpop.permute.xlu1 %6083 }
 0x785   : > { %v6082_v11 = vpop.permute.xlu0 %6081  ;;  %6177 = vst.msk [vmem:[#allocation3 + $0x18] sm:$0xff] %vm6173_vm5, %v6084_v32 }
 0x786   : > { %6176 = vst.msk [vmem:[#allocation3 + $0x10] sm:$0xff] %vm6173_vm5, %v6082_v11  ;;  %6328 = vrot.lane.b32.xlu1 %v6235_v42, %s10459_s24  ;;  %v6418_v42 = vld [vmem:[#allocation2 + $0x12a] sm:$0xff] }
 0x787   : > { %6326 = vrot.lane.b32.xlu0 %v6234_v33, %s10459_s24  ;;  %v6417_v33 = vld [vmem:[#allocation2 + $0x122] sm:$0xff] }
 0x788   : > { %v6088_v28 = vpop.permute.xlu1 %6087 }
 0x789   : > { %v6086_v40 = vpop.permute.xlu0 %6085  ;;  %6179 = vst.msk [vmem:[#allocation3 + $0x28] sm:$0xff] %vm6173_vm5, %v6088_v28 }
 0x78a   : > { %6178 = vst.msk [vmem:[#allocation3 + $0x20] sm:$0xff] %vm6173_vm5, %v6086_v40  ;;  %6332 = vrot.lane.b32.xlu1 %v6237_v20, %s10459_s24  ;;  %v6420_v20 = vld [vmem:[#allocation2 + $0x142] sm:$0xff] }
 0x78b   : > { %6330 = vrot.lane.b32.xlu0 %v6236_v4, %s10459_s24  ;;  %v6419_v4 = vld [vmem:[#allocation2 + $0x13a] sm:$0xff] }
 0x78c   : > { %v6092_v39 = vpop.permute.xlu1 %6091 }
 0x78d   : > { %v6090_v19 = vpop.permute.xlu0 %6089  ;;  %6181 = vst.msk [vmem:[#allocation3 + $0x38] sm:$0xff] %vm6173_vm5, %v6092_v39 }
 0x78e   : > { %6180 = vst.msk [vmem:[#allocation3 + $0x30] sm:$0xff] %vm6173_vm5, %v6090_v19  ;;  %6465 = vrot.lane.b32.xlu1 %v6400_v60, %s10460_s25  ;;  %v6422_v60 = vld [vmem:[#allocation2 + $0x15a] sm:$0xff] }
 0x78f   : > { %6463 = vrot.lane.b32.xlu0 %v6399_v23, %s10460_s25  ;;  %v6421_v23 = vld [vmem:[#allocation2 + $0x152] sm:$0xff] }
 0x790   : > { %v6096_v31 = vpop.permute.xlu1 %6095 }
 0x791   : > { %v6094_v63 = vpop.permute.xlu0 %6093  ;;  %6183 = vst.msk [vmem:[#allocation3 + $0x48] sm:$0xff] %vm6173_vm5, %v6096_v31  ;;  %v6424_v31 = vld [vmem:[#allocation2 + $0x172] sm:$0xff] }
 0x792   : > { %6182 = vst.msk [vmem:[#allocation3 + $0x40] sm:$0xff] %vm6173_vm5, %v6094_v63  ;;  %6469 = vrot.lane.b32.xlu1 %v13774_v37, %s10460_s25 }
 0x793   : > { %6467 = vrot.lane.b32.xlu0 %v13782_v8, %s10460_s25 }
 0x794   : > { %v6100_v47 = vpop.permute.xlu1 %6099 }
 0x795   : > { %v6098_v13 = vpop.permute.xlu0 %6097  ;;  %6185 = vst.msk [vmem:[#allocation3 + $0x58] sm:$0xff] %vm6173_vm5, %v6100_v47  ;;  %v6423_v47 = vld [vmem:[#allocation2 + $0x16a] sm:$0xff] }
 0x796   : > { %6184 = vst.msk [vmem:[#allocation3 + $0x50] sm:$0xff] %vm6173_vm5, %v6098_v13  ;;  %6473 = vrot.lane.b32.xlu1 %v13798_v61, %s10460_s25 }
 0x797   : > { %6471 = vrot.lane.b32.xlu0 %v13800_v38, %s10460_s25 }
 0x798   : > { %v6104_v48 = vpop.permute.xlu1 %6103 }
 0x799   : > { %v6102_v51 = vpop.permute.xlu0 %6101  ;;  %6187 = vst.msk [vmem:[#allocation3 + $0x68] sm:$0xff] %vm6173_vm5, %v6104_v48 }
 0x79a   : > { %6186 = vst.msk [vmem:[#allocation3 + $0x60] sm:$0xff] %vm6173_vm5, %v6102_v51  ;;  %6477 = vrot.lane.b32.xlu1 %v6406_v21, %s10460_s25  ;;  %v6426_v21 = vld [vmem:[#allocation2 + $0x18a] sm:$0xff] }
 0x79b   : > { %6475 = vrot.lane.b32.xlu0 %v6405_v17, %s10460_s25  ;;  %v6425_v17 = vld [vmem:[#allocation2 + $0x182] sm:$0xff] }
 0x79c   : > { %v6108_v25 = vpop.permute.xlu1 %6107 }
 0x79d   : > { %v6106_v6 = vpop.permute.xlu0 %6105  ;;  %6189 = vst.msk [vmem:[#allocation3 + $0x78] sm:$0xff] %vm6173_vm5, %v6108_v25 }
 0x79e   : > { %6188 = vst.msk [vmem:[#allocation3 + $0x70] sm:$0xff] %vm6173_vm5, %v6106_v6  ;;  %6481 = vrot.lane.b32.xlu1 %v6408_v35, %s10460_s25  ;;  %v6428_v35 = vld [vmem:[#allocation2 + $0x1a2] sm:$0xff] }
 0x79f   : > { %6479 = vrot.lane.b32.xlu0 %v6407_v36, %s10460_s25  ;;  %v6427_v36 = vld [vmem:[#allocation2 + $0x19a] sm:$0xff] }
 0x7a0   : > { %v6112_v62 = vpop.permute.xlu1 %6111 }
 0x7a1   : > { %v6110_v43 = vpop.permute.xlu0 %6109  ;;  %6191 = vst.msk [vmem:[#allocation3 + $0x88] sm:$0xff] %vm6173_vm5, %v6112_v62 }
 0x7a2   : > { %6190 = vst.msk [vmem:[#allocation3 + $0x80] sm:$0xff] %vm6173_vm5, %v6110_v43  ;;  %6485 = vrot.lane.b32.xlu1 %v6410_v22, %s10460_s25  ;;  %v6430_v22 = vld [vmem:[#allocation2 + $0x1ba] sm:$0xff] }
 0x7a3   : > { %6483 = vrot.lane.b32.xlu0 %v6409_v57, %s10460_s25  ;;  %v6429_v57 = vld [vmem:[#allocation2 + $0x1b2] sm:$0xff] }
 0x7a4   : > { %v6116_v7 = vpop.permute.xlu1 %6115 }
 0x7a5   : > { %v6114_v54 = vpop.permute.xlu0 %6113  ;;  %6193 = vst.msk [vmem:[#allocation3 + $0x98] sm:$0xff] %vm6173_vm5, %v6116_v7 }
 0x7a6   : > { %6192 = vst.msk [vmem:[#allocation3 + $0x90] sm:$0xff] %vm6173_vm5, %v6114_v54  ;;  %6489 = vrot.lane.b32.xlu1 %v6412_v29, %s10460_s25 }
 0x7a7   : > { %6487 = vrot.lane.b32.xlu0 %v6411_v30, %s10460_s25  ;;  %v13866_v30 = vld [vmem:[#allocation2 + $0x6b] sm:$0xff] }
 0x7a8   : > { %v6120_v53 = vpop.permute.xlu1 %6119 }
 0x7a9   : > { %v6118_v34 = vpop.permute.xlu0 %6117  ;;  %6195 = vst.msk [vmem:[#allocation3 + $0xa8] sm:$0xff] %vm6173_vm5, %v6120_v53 }
 0x7aa   : > { %6194 = vst.msk [vmem:[#allocation3 + $0xa0] sm:$0xff] %vm6173_vm5, %v6118_v34  ;;  %6493 = vrot.lane.b32.xlu1 %v6414_v56, %s10460_s25  ;;  %v13868_v56 = vld [vmem:[#allocation2 + $0x63] sm:$0xff] }
 0x7ab   : > { %6491 = vrot.lane.b32.xlu0 %v6413_v5, %s10460_s25 }
 0x7ac   : > { %v6124_v44 = vpop.permute.xlu1 %6123 }
 0x7ad   : > { %v6122_v52 = vpop.permute.xlu0 %6121  ;;  %6197 = vst.msk [vmem:[#allocation3 + $0xb8] sm:$0xff] %vm6173_vm5, %v6124_v44 }
 0x7ae   : > { %6196 = vst.msk [vmem:[#allocation3 + $0xb0] sm:$0xff] %vm6173_vm5, %v6122_v52  ;;  %6497 = vrot.lane.b32.xlu1 %v6416_v10, %s10460_s25  ;;  %v13886_v10 = vld [vmem:[#allocation2 + $0x9b] sm:$0xff] }
 0x7af   : > { %6495 = vrot.lane.b32.xlu0 %v6415_v14, %s10460_s25  ;;  %v13888_v14 = vld [vmem:[#allocation2 + $0x93] sm:$0xff] }
 0x7b0   : > { %v6128_v32 = vpop.permute.xlu1 %6127 }
 0x7b1   : > { %v6126_v11 = vpop.permute.xlu0 %6125  ;;  %6199 = vst.msk [vmem:[#allocation3 + $0xc8] sm:$0xff] %vm6173_vm5, %v6128_v32 }
 0x7b2   : > { %6198 = vst.msk [vmem:[#allocation3 + $0xc0] sm:$0xff] %vm6173_vm5, %v6126_v11  ;;  %6501 = vrot.lane.b32.xlu1 %v6418_v42, %s10460_s25  ;;  %v13896_v42 = vld [vmem:[#allocation2 + $0xb3] sm:$0xff] }
 0x7b3   : > { %6499 = vrot.lane.b32.xlu0 %v6417_v33, %s10460_s25  ;;  %v13898_v33 = vld [vmem:[#allocation2 + $0xab] sm:$0xff] }
 0x7b4   : > { %v6132_v28 = vpop.permute.xlu1 %6131 }
 0x7b5   : > { %v6130_v40 = vpop.permute.xlu0 %6129  ;;  %6201 = vst.msk [vmem:[#allocation3 + $0xd8] sm:$0xff] %vm6173_vm5, %v6132_v28 }
 0x7b6   : > { %6200 = vst.msk [vmem:[#allocation3 + $0xd0] sm:$0xff] %vm6173_vm5, %v6130_v40  ;;  %6505 = vrot.lane.b32.xlu1 %v6420_v20, %s10460_s25  ;;  %v13906_v20 = vld [vmem:[#allocation2 + $0xcb] sm:$0xff] }
 0x7b7   : > { %6503 = vrot.lane.b32.xlu0 %v6419_v4, %s10460_s25  ;;  %v13908_v4 = vld [vmem:[#allocation2 + $0xc3] sm:$0xff] }
 0x7b8   : > { %v6136_v39 = vpop.permute.xlu1 %6135 }
 0x7b9   : > { %v6134_v19 = vpop.permute.xlu0 %6133  ;;  %6203 = vst.msk [vmem:[#allocation3 + $0xe8] sm:$0xff] %vm6173_vm5, %v6136_v39 }
 0x7ba   : > { %6202 = vst.msk [vmem:[#allocation3 + $0xe0] sm:$0xff] %vm6173_vm5, %v6134_v19  ;;  %6509 = vrot.lane.b32.xlu1 %v6422_v60, %s10460_s25  ;;  %v13916_v60 = vld [vmem:[#allocation2 + $0xe3] sm:$0xff] }
 0x7bb   : > { %6507 = vrot.lane.b32.xlu0 %v6421_v23, %s10460_s25  ;;  %15848 = vst [vmem:[#allocation44_spill] sm:$0xff] %v13916_v60  ;;  %v13918_v23 = vld [vmem:[#allocation2 + $0xdb] sm:$0xff] }
 0x7bc   : > { %v6140_v63 = vpop.permute.xlu1 %6139  ;;  %15849 = vst [vmem:[#allocation45_spill] sm:$0xff] %v13918_v23 }
 0x7bd   : > { %v6138_v13 = vpop.permute.xlu0 %6137  ;;  %6205 = vst.msk [vmem:[#allocation3 + $0xf8] sm:$0xff] %vm6173_vm5, %v6140_v63 }
 0x7be   : > { %6204 = vst.msk [vmem:[#allocation3 + $0xf0] sm:$0xff] %vm6173_vm5, %v6138_v13  ;;  %6513 = vrot.lane.b32.xlu1 %v6424_v31, %s10460_s25  ;;  %v6607_v31 = vld [vmem:[#allocation2 + $0xfb] sm:$0xff] }
 0x7bf   : > { %6511 = vrot.lane.b32.xlu0 %v6423_v47, %s10460_s25  ;;  %v6606_v47 = vld [vmem:[#allocation2 + $0xf3] sm:$0xff] }
 0x7c0   : > { %v6273_v48 = vpop.permute.xlu1 %6272 }
 0x7c1   : > { %v6271_v51 = vpop.permute.xlu0 %6270  ;;  %6368 = vst.msk [vmem:[#allocation3 + $0x8] sm:$0xff] %vm6366_vm6, %v6273_v48 }
 0x7c2   : > { %6367 = vst.msk [vmem:[#allocation3] sm:$0xff] %vm6366_vm6, %v6271_v51  ;;  %6517 = vrot.lane.b32.xlu1 %v6426_v21, %s10460_s25  ;;  %v6609_v21 = vld [vmem:[#allocation2 + $0x113] sm:$0xff] }
 0x7c3   : > { %6515 = vrot.lane.b32.xlu0 %v6425_v17, %s10460_s25  ;;  %v6608_v17 = vld [vmem:[#allocation2 + $0x10b] sm:$0xff] }
 0x7c4   : > { %v6277_v25 = vpop.permute.xlu1 %6276 }
 0x7c5   : > { %v6275_v6 = vpop.permute.xlu0 %6274  ;;  %6370 = vst.msk [vmem:[#allocation3 + $0x18] sm:$0xff] %vm6366_vm6, %v6277_v25 }
 0x7c6   : > { %6369 = vst.msk [vmem:[#allocation3 + $0x10] sm:$0xff] %vm6366_vm6, %v6275_v6  ;;  %6521 = vrot.lane.b32.xlu1 %v6428_v35, %s10460_s25  ;;  %v6611_v35 = vld [vmem:[#allocation2 + $0x12b] sm:$0xff] }
 0x7c7   : > { %6519 = vrot.lane.b32.xlu0 %v6427_v36, %s10460_s25  ;;  %v6610_v36 = vld [vmem:[#allocation2 + $0x123] sm:$0xff] }
 0x7c8   : > { %v6281_v62 = vpop.permute.xlu1 %6280 }
 0x7c9   : > { %v6279_v43 = vpop.permute.xlu0 %6278  ;;  %6372 = vst.msk [vmem:[#allocation3 + $0x28] sm:$0xff] %vm6366_vm6, %v6281_v62 }
 0x7ca   : > { %6371 = vst.msk [vmem:[#allocation3 + $0x20] sm:$0xff] %vm6366_vm6, %v6279_v43  ;;  %6525 = vrot.lane.b32.xlu1 %v6430_v22, %s10460_s25  ;;  %v6613_v22 = vld [vmem:[#allocation2 + $0x143] sm:$0xff] }
 0x7cb   : > { %6523 = vrot.lane.b32.xlu0 %v6429_v57, %s10460_s25  ;;  %v6612_v57 = vld [vmem:[#allocation2 + $0x13b] sm:$0xff] }
 0x7cc   : > { %v6285_v29 = vpop.permute.xlu1 %6284 }
 0x7cd   : > { %v6283_v7 = vpop.permute.xlu0 %6282  ;;  %6374 = vst.msk [vmem:[#allocation3 + $0x38] sm:$0xff] %vm6366_vm6, %v6285_v29  ;;  %v6615_v29 = vld [vmem:[#allocation2 + $0x15b] sm:$0xff] }
 0x7ce   : > { %6373 = vst.msk [vmem:[#allocation3 + $0x30] sm:$0xff] %vm6366_vm6, %v6283_v7  ;;  %6658 = vrot.lane.b32.xlu1 %v13776_v0, %s10461_s26  ;;  %v13876_v0 = vld [vmem:[#allocation2 + $0x83] sm:$0xff] }
 0x7cf   : > { %6656 = vrot.lane.b32.xlu0 %v13769_v24, %s10461_s26  ;;  %v13878_v24 = vld [vmem:[#allocation2 + $0x7b] sm:$0xff]  ;;  %v13941_v7 = vld [vmem:[#allocation2 + $0x64] sm:$0xff] }
 0x7d0   : > { %v6289_v54 = vpop.permute.xlu1 %6288 }
 0x7d1   : > { %v6287_v53 = vpop.permute.xlu0 %6286  ;;  %6376 = vst.msk [vmem:[#allocation3 + $0x48] sm:$0xff] %vm6366_vm6, %v6289_v54  ;;  %v13943_v54 = vld [vmem:[#allocation2 + $0x60] sm:$0xff] }
 0x7d2   : > { %6375 = vst.msk [vmem:[#allocation3 + $0x40] sm:$0xff] %vm6366_vm6, %v6287_v53  ;;  %6662 = vrot.lane.b32.xlu1 %v13866_v30, %s10461_s26  ;;  %v13945_v53 = vld [vmem:[#allocation2 + $0x61] sm:$0xff] }
 0x7d3   : > { %6660 = vrot.lane.b32.xlu0 %v13868_v56, %s10461_s26  ;;  %8593 = vst.msk [vmem:[#allocation2 + $0x60] sm:$0xff] %vm366_vm0, %v15846_v16 }
 0x7d4   : > { %v6293_v5 = vpop.permute.xlu1 %6292 }
 0x7d5   : > { %v6291_v34 = vpop.permute.xlu0 %6290  ;;  %6378 = vst.msk [vmem:[#allocation3 + $0x58] sm:$0xff] %vm6366_vm6, %v6293_v5  ;;  %v13948_v5 = vld [vmem:[#allocation2 + $0x6c] sm:$0xff] }
 0x7d6   : > { %6377 = vst.msk [vmem:[#allocation3 + $0x50] sm:$0xff] %vm6366_vm6, %v6291_v34  ;;  %6666 = vrot.lane.b32.xlu1 %v13876_v0, %s10461_s26  ;;  %v13950_v34 = vld [vmem:[#allocation2 + $0x68] sm:$0xff] }
 0x7d7   : > { %6664 = vrot.lane.b32.xlu0 %v13878_v24, %s10461_s26 }
 0x7d8   : > { %v6297_v44 = vpop.permute.xlu1 %6296 }
 0x7d9   : > { %v6295_v52 = vpop.permute.xlu0 %6294  ;;  %6380 = vst.msk [vmem:[#allocation3 + $0x68] sm:$0xff] %vm6366_vm6, %v6297_v44  ;;  %v13952_v44 = vld [vmem:[#allocation2 + $0x69] sm:$0xff] }
 0x7da   : > { %6379 = vst.msk [vmem:[#allocation3 + $0x60] sm:$0xff] %vm6366_vm6, %v6295_v52  ;;  %6670 = vrot.lane.b32.xlu1 %v13886_v10, %s10461_s26 }
 0x7db   : > { %6668 = vrot.lane.b32.xlu0 %v13888_v14, %s10461_s26  ;;  %8595 = vst.msk [vmem:[#allocation2 + $0x70] sm:$0xf] %vm832_vm1, %v15846_v16 }
 0x7dc   : > { %v6301_v32 = vpop.permute.xlu1 %6300  ;;  %8594 = vst.msk [vmem:[#allocation2 + $0x68] sm:$0xff] %vm366_vm0, %v15846_v16 }
 0x7dd   : > { %v6299_v11 = vpop.permute.xlu0 %6298  ;;  %6382 = vst.msk [vmem:[#allocation3 + $0x78] sm:$0xff] %vm6366_vm6, %v6301_v32  ;;  %v6614_v32 = vld [vmem:[#allocation2 + $0x153] sm:$0xff] }
 0x7de   : > { %6381 = vst.msk [vmem:[#allocation3 + $0x70] sm:$0xff] %vm6366_vm6, %v6299_v11  ;;  %6674 = vrot.lane.b32.xlu1 %v13896_v42, %s10461_s26 }
 0x7df   : > { %6672 = vrot.lane.b32.xlu0 %v13898_v33, %s10461_s26  ;;  %8647 = vst.msk [vmem:[#allocation2 + $0x61] sm:$0xff] %vm366_vm0, %v15823_v15  ;;  %8648 = vst.msk [vmem:[#allocation2 + $0x69] sm:$0xff] %vm366_vm0, %v15824_v1  ;;  %v6619_v15 = vld [vmem:[#allocation2 + $0x18b] sm:$0xff] }
 0x7e0   : > { %v6305_v28 = vpop.permute.xlu1 %6304 }
 0x7e1   : > { %v6303_v40 = vpop.permute.xlu0 %6302  ;;  %6384 = vst.msk [vmem:[#allocation3 + $0x88] sm:$0xff] %vm6366_vm6, %v6305_v28  ;;  %v6617_v28 = vld [vmem:[#allocation2 + $0x173] sm:$0xff] }
 0x7e2   : > { %6383 = vst.msk [vmem:[#allocation3 + $0x80] sm:$0xff] %vm6366_vm6, %v6303_v40  ;;  %6678 = vrot.lane.b32.xlu1 %v13906_v20, %s10461_s26 }
 0x7e3   : > { %6676 = vrot.lane.b32.xlu0 %v13908_v4, %s10461_s26 }
 0x7e4   : > { %v6309_v39 = vpop.permute.xlu1 %6308 }
 0x7e5   : > { %v6307_v19 = vpop.permute.xlu0 %6306  ;;  %6386 = vst.msk [vmem:[#allocation3 + $0x98] sm:$0xff] %vm6366_vm6, %v6309_v39  ;;  %v6616_v39 = vld [vmem:[#allocation2 + $0x16b] sm:$0xff] }
 0x7e6   : > { %6385 = vst.msk [vmem:[#allocation3 + $0x90] sm:$0xff] %vm6366_vm6, %v6307_v19  ;;  %6682 = vrot.lane.b32.xlu1 %v13916_v60, %s10461_s26 }
 0x7e7   : > { %6680 = vrot.lane.b32.xlu0 %v13918_v23, %s10461_s26  ;;  %v14153_v23 = vld [vmem:[#allocation2 + $0xca] sm:$0xff] }
 0x7e8   : > { %v6313_v63 = vpop.permute.xlu1 %6312 }
 0x7e9   : > { %v6311_v13 = vpop.permute.xlu0 %6310  ;;  %6388 = vst.msk [vmem:[#allocation3 + $0xa8] sm:$0xff] %vm6366_vm6, %v6313_v63 }
 0x7ea   : > { %6387 = vst.msk [vmem:[#allocation3 + $0xa0] sm:$0xff] %vm6366_vm6, %v6311_v13  ;;  %6686 = vrot.lane.b32.xlu1 %v6607_v31, %s10461_s26  ;;  %v6618_v31 = vld [vmem:[#allocation2 + $0x183] sm:$0xff] }
 0x7eb   : > { %6684 = vrot.lane.b32.xlu0 %v6606_v47, %s10461_s26  ;;  %v6621_v47 = vld [vmem:[#allocation2 + $0x1a3] sm:$0xff] }
 0x7ec   : > { %v6317_v48 = vpop.permute.xlu1 %6316  ;;  %v13976_v13 = vld [vmem:[#allocation2 + $0x7c] sm:$0xff] }
 0x7ed   : > { %v6315_v51 = vpop.permute.xlu0 %6314  ;;  %6390 = vst.msk [vmem:[#allocation3 + $0xb8] sm:$0xff] %vm6366_vm6, %v6317_v48  ;;  %v13980_v48 = vld [vmem:[#allocation2 + $0x79] sm:$0xff] }
 0x7ee   : > { %6389 = vst.msk [vmem:[#allocation3 + $0xb0] sm:$0xff] %vm6366_vm6, %v6315_v51  ;;  %6690 = vrot.lane.b32.xlu1 %v6609_v21, %s10461_s26  ;;  %v13978_v21 = vld [vmem:[#allocation2 + $0x78] sm:$0xff] }
 0x7ef   : > { %6688 = vrot.lane.b32.xlu0 %v6608_v17, %s10461_s26  ;;  %v6620_v51 = vld [vmem:[#allocation2 + $0x19b] sm:$0xff]  ;;  %8596 = vst.msk [vmem:[#allocation2 + $0x78] sm:$0xff] %vm366_vm0, %v15846_v16 }
 0x7f0   : > { %v6321_v25 = vpop.permute.xlu1 %6320 }
 0x7f1   : > { %v6319_v6 = vpop.permute.xlu0 %6318  ;;  %6392 = vst.msk [vmem:[#allocation3 + $0xc8] sm:$0xff] %vm6366_vm6, %v6321_v25  ;;  %v6623_v25 = vld [vmem:[#allocation2 + $0x1bb] sm:$0xff] }
 0x7f2   : > { %6391 = vst.msk [vmem:[#allocation3 + $0xc0] sm:$0xff] %vm6366_vm6, %v6319_v6  ;;  %6694 = vrot.lane.b32.xlu1 %v6611_v35, %s10461_s26  ;;  %v13990_v6 = vld [vmem:[#allocation2 + $0x80] sm:$0xff] }
 0x7f3   : > { %6692 = vrot.lane.b32.xlu0 %v6610_v36, %s10461_s26  ;;  %v13988_v36 = vld [vmem:[#allocation2 + $0x84] sm:$0xff] }
 0x7f4   : > { %v6325_v62 = vpop.permute.xlu1 %6324 }
 0x7f5   : > { %v6323_v43 = vpop.permute.xlu0 %6322  ;;  %6394 = vst.msk [vmem:[#allocation3 + $0xd8] sm:$0xff] %vm6366_vm6, %v6325_v62 }
 0x7f6   : > { %6393 = vst.msk [vmem:[#allocation3 + $0xd0] sm:$0xff] %vm6366_vm6, %v6323_v43  ;;  %6698 = vrot.lane.b32.xlu1 %v6613_v22, %s10461_s26  ;;  %v13992_v22 = vld [vmem:[#allocation2 + $0x81] sm:$0xff] }
 0x7f7   : > { %6696 = vrot.lane.b32.xlu0 %v6612_v57, %s10461_s26  ;;  %v6622_v57 = vld [vmem:[#allocation2 + $0x1b3] sm:$0xff]  ;;  %8598 = vst.msk [vmem:[#allocation2 + $0x88] sm:$0xf] %vm832_vm1, %v15846_v16 }
 0x7f8   : > { %v6329_v52 = vpop.permute.xlu1 %6328  ;;  %8597 = vst.msk [vmem:[#allocation2 + $0x80] sm:$0xff] %vm366_vm0, %v15846_v16 }
 0x7f9   : > { %v6327_v11 = vpop.permute.xlu0 %6326  ;;  %6396 = vst.msk [vmem:[#allocation3 + $0xe8] sm:$0xff] %vm6366_vm6, %v6329_v52 }
 0x7fa   : > { %6395 = vst.msk [vmem:[#allocation3 + $0xe0] sm:$0xff] %vm6366_vm6, %v6327_v11  ;;  %6702 = vrot.lane.b32.xlu1 %v6615_v29, %s10461_s26 }
 0x7fb   : > { %6700 = vrot.lane.b32.xlu0 %v6614_v32, %s10461_s26  ;;  %8649 = vst.msk [vmem:[#allocation2 + $0x79] sm:$0xff] %vm366_vm0, %v15825_v58  ;;  %8650 = vst.msk [vmem:[#allocation2 + $0x81] sm:$0xff] %vm366_vm0, %v15826_v26 }
 0x7fc   : > { %v6333_v40 = vpop.permute.xlu1 %6332 }
 0x7fd   : > { %v6331_v19 = vpop.permute.xlu0 %6330  ;;  %6398 = vst.msk [vmem:[#allocation3 + $0xf8] sm:$0xff] %vm6366_vm6, %v6333_v40 }
 0x7fe   : > { %6397 = vst.msk [vmem:[#allocation3 + $0xf0] sm:$0xff] %vm6366_vm6, %v6331_v19  ;;  %6706 = vrot.lane.b32.xlu1 %v6617_v28, %s10461_s26  ;;  %v14026_v28 = vld [vmem:[#allocation2 + $0x94] sm:$0xff] }
 0x7ff   : > { %6704 = vrot.lane.b32.xlu0 %v6616_v39, %s10461_s26  ;;  %v14029_v39 = vld [vmem:[#allocation2 + $0xb4] sm:$0xff] }
 0x800   : > { %v6466_v1 = vpop.permute.xlu1 %6465  ;;  %v14034_v19 = vld [vmem:[#allocation2 + $0x90] sm:$0xff] }
 0x801   : > { %v6464_v63 = vpop.permute.xlu0 %6463  ;;  %6561 = vst.msk [vmem:[#allocation3 + $0x8] sm:$0xff] %vm6559_vm7, %v6466_v1  ;;  %v14038_v1 = vld [vmem:[#allocation2 + $0x92] sm:$0xff] }
 0x802   : > { %6560 = vst.msk [vmem:[#allocation3] sm:$0xff] %vm6559_vm7, %v6464_v63  ;;  %6710 = vrot.lane.b32.xlu1 %v6619_v15, %s10461_s26  ;;  %v14036_v15 = vld [vmem:[#allocation2 + $0x91] sm:$0xff]  ;;  %v14044_v63 = vld [vmem:[#allocation2 + $0x99] sm:$0xff] }
 0x803   : > { %6708 = vrot.lane.b32.xlu0 %v6618_v31, %s10461_s26  ;;  %v14042_v31 = vld [vmem:[#allocation2 + $0x98] sm:$0xff]  ;;  %8599 = vst.msk [vmem:[#allocation2 + $0x90] sm:$0xff] %vm366_vm0, %v15846_v16 }
 0x804   : > { %v6470_v17 = vpop.permute.xlu1 %6469 }
 0x805   : > { %v6468_v35 = vpop.permute.xlu0 %6467  ;;  %6563 = vst.msk [vmem:[#allocation3 + $0x18] sm:$0xff] %vm6559_vm7, %v6470_v17 }
 0x806   : > { %6562 = vst.msk [vmem:[#allocation3 + $0x10] sm:$0xff] %vm6559_vm7, %v6468_v35  ;;  %6714 = vrot.lane.b32.xlu1 %v6621_v47, %s10461_s26  ;;  %v14046_v47 = vld [vmem:[#allocation2 + $0x9a] sm:$0xff] }
 0x807   : > { %6712 = vrot.lane.b32.xlu0 %v6620_v51, %s10461_s26  ;;  %v14050_v51 = vld [vmem:[#allocation2 + $0xac] sm:$0xff] }
 0x808   : > { %v6474_v62 = vpop.permute.xlu1 %6473 }
 0x809   : > { %v6472_v43 = vpop.permute.xlu0 %6471  ;;  %6565 = vst.msk [vmem:[#allocation3 + $0x28] sm:$0xff] %vm6559_vm7, %v6474_v62 }
 0x80a   : > { %6564 = vst.msk [vmem:[#allocation3 + $0x20] sm:$0xff] %vm6559_vm7, %v6472_v43  ;;  %6718 = vrot.lane.b32.xlu1 %v6623_v25, %s10461_s26  ;;  %v14066_v25 = vld [vmem:[#allocation2 + $0xcc] sm:$0xff] }
 0x80b   : > { %6716 = vrot.lane.b32.xlu0 %v6622_v57, %s10461_s26  ;;  %15850 = vst [vmem:[#allocation35_spill] sm:$0xff] %v14066_v25  ;;  %v14068_v57 = vld [vmem:[#allocation2 + $0xc4] sm:$0xff] }
 0x80c   : > { %v6478_v29 = vpop.permute.xlu1 %6477  ;;  %15851 = vst [vmem:[#allocation46_spill] sm:$0xff] %v14068_v57 }
 0x80d   : > { %v6476_v52 = vpop.permute.xlu0 %6475  ;;  %6567 = vst.msk [vmem:[#allocation3 + $0x38] sm:$0xff] %vm6559_vm7, %v6478_v29  ;;  %v14078_v29 = vld [vmem:[#allocation2 + $0xdc] sm:$0xff] }
 0x80e   : > { %6566 = vst.msk [vmem:[#allocation3 + $0x30] sm:$0xff] %vm6559_vm7, %v6476_v52  ;;  %6851 = vrot.lane.b32.xlu1 %v13780_v3, %s10462_s27  ;;  %15853 = vst [vmem:[#allocation47_spill] sm:$0xff] %v14078_v29 }
 0x80f   : > { %6849 = vrot.lane.b32.xlu0 %v13771_v49, %s10462_s27  ;;  %v14024_v49 = vld [vmem:[#allocation2 + $0x9c] sm:$0xff] }
 0x810   : > { %v6482_v58 = vpop.permute.xlu1 %6481  ;;  %8601 = vst.msk [vmem:[#allocation2 + $0xa0] sm:$0xf] %vm832_vm1, %v15846_v16 }
 0x811   : > { %v6480_v26 = vpop.permute.xlu0 %6479  ;;  %6569 = vst.msk [vmem:[#allocation3 + $0x48] sm:$0xff] %vm6559_vm7, %v6482_v58  ;;  %v14086_v58 = vld [vmem:[#allocation2 + $0xfc] sm:$0xff] }
 0x812   : > { %6568 = vst.msk [vmem:[#allocation3 + $0x40] sm:$0xff] %vm6559_vm7, %v6480_v26  ;;  %6855 = vrot.lane.b32.xlu1 %v13948_v5, %s10462_s27  ;;  %15854 = vst [vmem:[#allocation48_spill] sm:$0xff] %v14086_v58 }
 0x813   : > { %6853 = vrot.lane.b32.xlu0 %v13941_v7, %s10462_s27  ;;  %8600 = vst.msk [vmem:[#allocation2 + $0x98] sm:$0xff] %vm366_vm0, %v15846_v16 }
 0x814   : > { %v6486_v32 = vpop.permute.xlu1 %6485  ;;  %8651 = vst.msk [vmem:[#allocation2 + $0x91] sm:$0xff] %vm366_vm0, %v15827_v2  ;;  %8652 = vst.msk [vmem:[#allocation2 + $0x99] sm:$0xff] %vm366_vm0, %v15828_v12  ;;  %v14076_v2 = vld [vmem:[#allocation2 + $0xe4] sm:$0xff] }
 0x815   : > { %v6484_v11 = vpop.permute.xlu0 %6483  ;;  %6571 = vst.msk [vmem:[#allocation3 + $0x58] sm:$0xff] %vm6559_vm7, %v6486_v32  ;;  %15852 = vst [vmem:[#allocation34_spill] sm:$0xff] %v14076_v2  ;;  %v14088_v32 = vld [vmem:[#allocation2 + $0xf4] sm:$0xff] }
 0x816   : > { %6570 = vst.msk [vmem:[#allocation3 + $0x50] sm:$0xff] %vm6559_vm7, %v6484_v11  ;;  %6859 = vrot.lane.b32.xlu1 %v13988_v36, %s10462_s27  ;;  %15855 = vst [vmem:[#allocation49_spill] sm:$0xff] %v14088_v32 }
 0x817   : > { %6857 = vrot.lane.b32.xlu0 %v13976_v13, %s10462_s27 }
 0x818   : > { %v6490_v3 = vpop.permute.xlu1 %6489 }
 0x819   : > { %v6488_v40 = vpop.permute.xlu0 %6487  ;;  %6573 = vst.msk [vmem:[#allocation3 + $0x68] sm:$0xff] %vm6559_vm7, %v6490_v3  ;;  %v14091_v3 = vld [vmem:[#allocation2 + $0x114] sm:$0xff] }
 0x81a   : > { %6572 = vst.msk [vmem:[#allocation3 + $0x60] sm:$0xff] %vm6559_vm7, %v6488_v40  ;;  %6863 = vrot.lane.b32.xlu1 %v14024_v49, %s10462_s27  ;;  %15856 = vst [vmem:[#allocation50_spill] sm:$0xff] %v14091_v3  ;;  %v14096_v40 = vld [vmem:[#allocation2 + $0xa8] sm:$0xff] }
 0x81b   : > { %6861 = vrot.lane.b32.xlu0 %v14026_v28, %s10462_s27 }
 0x81c   : > { %v6494_v17 = vpop.permute.xlu1 %6493 }
 0x81d   : > { %v6492_v35 = vpop.permute.xlu0 %6491  ;;  %6575 = vst.msk [vmem:[#allocation3 + $0x78] sm:$0xff] %vm6559_vm7, %v6494_v17  ;;  %v14098_v17 = vld [vmem:[#allocation2 + $0xa9] sm:$0xff] }
 0x81e   : > { %6574 = vst.msk [vmem:[#allocation3 + $0x70] sm:$0xff] %vm6559_vm7, %v6492_v35  ;;  %6867 = vrot.lane.b32.xlu1 %v14029_v39, %s10462_s27  ;;  %v14100_v35 = vld [vmem:[#allocation2 + $0xaa] sm:$0xff] }
 0x81f   : > { %6865 = vrot.lane.b32.xlu0 %v14050_v51, %s10462_s27  ;;  %8602 = vst.msk [vmem:[#allocation2 + $0xa8] sm:$0xff] %vm366_vm0, %v15846_v16 }
 0x820   : > { %v6498_v62 = vpop.permute.xlu1 %6497 }
 0x821   : > { %v6496_v43 = vpop.permute.xlu0 %6495  ;;  %6577 = vst.msk [vmem:[#allocation3 + $0x88] sm:$0xff] %vm6559_vm7, %v6498_v62  ;;  %v14104_v62 = vld [vmem:[#allocation2 + $0xb0] sm:$0xff] }
 0x822   : > { %6576 = vst.msk [vmem:[#allocation3 + $0x80] sm:$0xff] %vm6559_vm7, %v6496_v43  ;;  %6871 = vrot.lane.b32.xlu1 %v14066_v25, %s10462_s27  ;;  %v14106_v43 = vld [vmem:[#allocation2 + $0xb1] sm:$0xff]  ;;  %v6811_v25 = vld [vmem:[#allocation2 + $0x184] sm:$0xff] }
 0x823   : > { %6869 = vrot.lane.b32.xlu0 %v14068_v57, %s10462_s27 }
 0x824   : > { %v6502_v12 = vpop.permute.xlu1 %6501 }
 0x825   : > { %v6500_v52 = vpop.permute.xlu0 %6499  ;;  %6579 = vst.msk [vmem:[#allocation3 + $0x98] sm:$0xff] %vm6559_vm7, %v6502_v12  ;;  %v14108_v12 = vld [vmem:[#allocation2 + $0xb2] sm:$0xff] }
 0x826   : > { %6578 = vst.msk [vmem:[#allocation3 + $0x90] sm:$0xff] %vm6559_vm7, %v6500_v52  ;;  %6875 = vrot.lane.b32.xlu1 %v14076_v2, %s10462_s27  ;;  %v14128_v2 = vld [vmem:[#allocation2 + $0x124] sm:$0xff] }
 0x827   : > { %6873 = vrot.lane.b32.xlu0 %v14078_v29, %s10462_s27  ;;  %8604 = vst.msk [vmem:[#allocation2 + $0xb8] sm:$0xf] %vm832_vm1, %v15846_v16  ;;  %15858 = vst [vmem:[#allocation52_spill] sm:$0xff] %v14128_v2 }
 0x828   : > { %v6506_v26 = vpop.permute.xlu1 %6505  ;;  %8603 = vst.msk [vmem:[#allocation2 + $0xb0] sm:$0xff] %vm366_vm0, %v15846_v16 }
 0x829   : > { %v6504_v11 = vpop.permute.xlu0 %6503  ;;  %6581 = vst.msk [vmem:[#allocation3 + $0xa8] sm:$0xff] %vm6559_vm7, %v6506_v26  ;;  %v14112_v26 = vld [vmem:[#allocation2 + $0x10c] sm:$0xff] }
 0x82a   : > { %6580 = vst.msk [vmem:[#allocation3 + $0xa0] sm:$0xff] %vm6559_vm7, %v6504_v11  ;;  %6879 = vrot.lane.b32.xlu1 %v14086_v58, %s10462_s27  ;;  %15857 = vst [vmem:[#allocation51_spill] sm:$0xff] %v14112_v26  ;;  %v6804_v58 = vld [vmem:[#allocation2 + $0x12c] sm:$0xff] }
 0x82b   : > { %6877 = vrot.lane.b32.xlu0 %v14088_v32, %s10462_s27  ;;  %8653 = vst.msk [vmem:[#allocation2 + $0xa9] sm:$0xff] %vm366_vm0, %v15829_v46  ;;  %8654 = vst.msk [vmem:[#allocation2 + $0xb1] sm:$0xff] %vm366_vm0, %v15830_v45  ;;  %v6806_v46 = vld [vmem:[#allocation2 + $0x144] sm:$0xff] }
 0x82c   : > { %v6510_v52 = vpop.permute.xlu1 %6509 }
 0x82d   : > { %v6508_v11 = vpop.permute.xlu0 %6507  ;;  %6583 = vst.msk [vmem:[#allocation3 + $0xb8] sm:$0xff] %vm6559_vm7, %v6510_v52  ;;  %v6805_v52 = vld [vmem:[#allocation2 + $0x13c] sm:$0xff] }
 0x82e   : > { %6582 = vst.msk [vmem:[#allocation3 + $0xb0] sm:$0xff] %vm6559_vm7, %v6508_v11  ;;  %6883 = vrot.lane.b32.xlu1 %v14091_v3, %s10462_s27 }
 0x82f   : > { %6881 = vrot.lane.b32.xlu0 %v14112_v26, %s10462_s27 }
 0x830   : > { %v6514_v32 = vpop.permute.xlu1 %6513 }
 0x831   : > { %v6512_v29 = vpop.permute.xlu0 %6511  ;;  %6585 = vst.msk [vmem:[#allocation3 + $0xc8] sm:$0xff] %vm6559_vm7, %v6514_v32  ;;  %v6808_v32 = vld [vmem:[#allocation2 + $0x15c] sm:$0xff] }
 0x832   : > { %6584 = vst.msk [vmem:[#allocation3 + $0xc0] sm:$0xff] %vm6559_vm7, %v6512_v29  ;;  %6887 = vrot.lane.b32.xlu1 %v6804_v58, %s10462_s27  ;;  %v6807_v29 = vld [vmem:[#allocation2 + $0x154] sm:$0xff] }
 0x833   : > { %6885 = vrot.lane.b32.xlu0 %v14128_v2, %s10462_s27  ;;  %v6810_v58 = vld [vmem:[#allocation2 + $0x174] sm:$0xff]  ;;  %v14142_v2 = vld [vmem:[#allocation2 + $0xc0] sm:$0xff] }
 0x834   : > { %v6518_v45 = vpop.permute.xlu1 %6517 }
 0x835   : > { %v6516_v11 = vpop.permute.xlu0 %6515  ;;  %6587 = vst.msk [vmem:[#allocation3 + $0xd8] sm:$0xff] %vm6559_vm7, %v6518_v45  ;;  %v14144_v45 = vld [vmem:[#allocation2 + $0xc1] sm:$0xff] }
 0x836   : > { %6586 = vst.msk [vmem:[#allocation3 + $0xd0] sm:$0xff] %vm6559_vm7, %v6516_v11  ;;  %6891 = vrot.lane.b32.xlu1 %v6806_v46, %s10462_s27  ;;  %v14146_v11 = vld [vmem:[#allocation2 + $0xc2] sm:$0xff] }
 0x837   : > { %6889 = vrot.lane.b32.xlu0 %v6805_v52, %s10462_s27  ;;  %v14149_v46 = vld [vmem:[#allocation2 + $0xc8] sm:$0xff]  ;;  %8605 = vst.msk [vmem:[#allocation2 + $0xc0] sm:$0xff] %vm366_vm0, %v15846_v16 }
 0x838   : > { %v6522_v3 = vpop.permute.xlu1 %6521  ;;  %v14151_v52 = vld [vmem:[#allocation2 + $0xc9] sm:$0xff] }
 0x839   : > { %v6520_v26 = vpop.permute.xlu0 %6519  ;;  %6589 = vst.msk [vmem:[#allocation3 + $0xe8] sm:$0xff] %vm6559_vm7, %v6522_v3 }
 0x83a   : > { %6588 = vst.msk [vmem:[#allocation3 + $0xe0] sm:$0xff] %vm6559_vm7, %v6520_v26  ;;  %6895 = vrot.lane.b32.xlu1 %v6808_v32, %s10462_s27  ;;  %v6809_v26 = vld [vmem:[#allocation2 + $0x16c] sm:$0xff] }
 0x83b   : > { %6893 = vrot.lane.b32.xlu0 %v6807_v29, %s10462_s27  ;;  %8607 = vst.msk [vmem:[#allocation2 + $0xd0] sm:$0xf] %vm832_vm1, %v15846_v16  ;;  %v6812_v29 = vld [vmem:[#allocation2 + $0x18c] sm:$0xff] }
 0x83c   : > { %v6526_v3 = vpop.permute.xlu1 %6525  ;;  %8606 = vst.msk [vmem:[#allocation2 + $0xc8] sm:$0xff] %vm366_vm0, %v15846_v16 }
 0x83d   : > { %v6524_v32 = vpop.permute.xlu0 %6523  ;;  %6591 = vst.msk [vmem:[#allocation3 + $0xf8] sm:$0xff] %vm6559_vm7, %v6526_v3  ;;  %v6813_v3 = vld [vmem:[#allocation2 + $0x19c] sm:$0xff] }
 0x83e   : > { %8655 = vst.msk [vmem:[#allocation2 + $0xc1] sm:$0xff] %vm366_vm0, %v15831_v59  ;;  %8656 = vst.msk [vmem:[#allocation2 + $0xc9] sm:$0xff] %vm366_vm0, %v15832_v55  ;;  %6899 = vrot.lane.b32.xlu1 %v6810_v58, %s10462_s27  ;;  %v6814_v59 = vld [vmem:[#allocation2 + $0x1a4] sm:$0xff]  ;;  %v6816_v58 = vld [vmem:[#allocation2 + $0x1bc] sm:$0xff] }
 0x83f   : > { %6590 = vst.msk [vmem:[#allocation3 + $0xf0] sm:$0xff] %vm6559_vm7, %v6524_v32  ;;  %6897 = vrot.lane.b32.xlu0 %v6809_v26, %s10462_s27  ;;  %v6815_v26 = vld [vmem:[#allocation2 + $0x1b4] sm:$0xff] }
 0x840   : > { %v6659_v60 = vpop.permute.xlu1 %6658 }
 0x841   : > { %v6657_v57 = vpop.permute.xlu0 %6656  ;;  %6754 = vst.msk [vmem:[#allocation3 + $0x8] sm:$0xff] %vm6752_vm9, %v6659_v60 }
 0x842   : > { %6753 = vst.msk [vmem:[#allocation3] sm:$0xff] %vm6752_vm9, %v6657_v57  ;;  %6903 = vrot.lane.b32.xlu1 %v6812_v29, %s10462_s27  ;;  %v14180_v29 = vld [vmem:[#allocation2 + $0xd9] sm:$0xff] }
 0x843   : > { %6901 = vrot.lane.b32.xlu0 %v6811_v25, %s10462_s27  ;;  %v6989_v25 = vld [vmem:[#allocation2 + $0xd8] sm:$0xff] }
 0x844   : > { %v6663_v55 = vpop.permute.xlu1 %6662 }
 0x845   : > { %v6661_v32 = vpop.permute.xlu0 %6660  ;;  %6756 = vst.msk [vmem:[#allocation3 + $0x18] sm:$0xff] %vm6752_vm9, %v6663_v55  ;;  %v14182_v55 = vld [vmem:[#allocation2 + $0xda] sm:$0xff] }
 0x846   : > { %6755 = vst.msk [vmem:[#allocation3 + $0x10] sm:$0xff] %vm6752_vm9, %v6661_v32  ;;  %6907 = vrot.lane.b32.xlu1 %v6814_v59, %s10462_s27  ;;  %v6990_v59 = vld [vmem:[#allocation2 + $0xe0] sm:$0xff] }
 0x847   : > { %6905 = vrot.lane.b32.xlu0 %v6813_v3, %s10462_s27  ;;  %v14185_v32 = vld [vmem:[#allocation2 + $0xe1] sm:$0xff]  ;;  %8608 = vst.msk [vmem:[#allocation2 + $0xd8] sm:$0xff] %vm366_vm0, %v15846_v16 }
 0x848   : > { %v6667_v60 = vpop.permute.xlu1 %6666  ;;  %v14187_v3 = vld [vmem:[#allocation2 + $0xe2] sm:$0xff] }
 0x849   : > { %v6665_v57 = vpop.permute.xlu0 %6664  ;;  %6758 = vst.msk [vmem:[#allocation3 + $0x28] sm:$0xff] %vm6752_vm9, %v6667_v60 }
 0x84a   : > { %6757 = vst.msk [vmem:[#allocation3 + $0x20] sm:$0xff] %vm6752_vm9, %v6665_v57  ;;  %6911 = vrot.lane.b32.xlu1 %v6816_v58, %s10462_s27 }
 0x84b   : > { %6909 = vrot.lane.b32.xlu0 %v6815_v26, %s10462_s27  ;;  %8610 = vst.msk [vmem:[#allocation2 + $0xe8] sm:$0xf] %vm832_vm1, %v15846_v16 }
 0x84c   : > { %v6671_v60 = vpop.permute.xlu1 %6670  ;;  %8609 = vst.msk [vmem:[#allocation2 + $0xe0] sm:$0xff] %vm366_vm0, %v15846_v16 }
 0x84d   : > { %v6669_v58 = vpop.permute.xlu0 %6668  ;;  %6760 = vst.msk [vmem:[#allocation3 + $0x38] sm:$0xff] %vm6752_vm9, %v6671_v60  ;;  %v6992_v60 = vld [vmem:[#allocation2 + $0xf8] sm:$0xff] }
 0x84e   : > { %8657 = vst.msk [vmem:[#allocation2 + $0xd9] sm:$0xff] %vm366_vm0, %v15833_v18  ;;  %8658 = vst.msk [vmem:[#allocation2 + $0xe1] sm:$0xff] %vm366_vm0, %v15834_v50  ;;  %7045 = vrot.lane.b32.xlu1 %v13950_v34, %s10463_s28 }
 0x84f   : > { %6759 = vst.msk [vmem:[#allocation3 + $0x30] sm:$0xff] %vm6752_vm9, %v6669_v58  ;;  %7043 = vrot.lane.b32.xlu0 %v13943_v54, %s10463_s28  ;;  %v14229_v58 = vld [vmem:[#allocation2 + $0xf2] sm:$0xff] }
 0x850   : > { %v6675_v26 = vpop.permute.xlu1 %6674 }
 0x851   : > { %v6673_v57 = vpop.permute.xlu0 %6672  ;;  %6762 = vst.msk [vmem:[#allocation3 + $0x48] sm:$0xff] %vm6752_vm9, %v6675_v26  ;;  %v14231_v26 = vld [vmem:[#allocation2 + $0xf3] sm:$0xff] }
 0x852   : > { %6761 = vst.msk [vmem:[#allocation3 + $0x40] sm:$0xff] %vm6752_vm9, %v6673_v57  ;;  %7049 = vrot.lane.b32.xlu1 %v13990_v6, %s10463_s28  ;;  %v14239_v57 = vld [vmem:[#allocation2 + $0xfb] sm:$0xff] }
 0x853   : > { %7047 = vrot.lane.b32.xlu0 %v13978_v21, %s10463_s28 }
 0x854   : > { %v6679_v18 = vpop.permute.xlu1 %6678 }
 0x855   : > { %v6677_v50 = vpop.permute.xlu0 %6676  ;;  %6764 = vst.msk [vmem:[#allocation3 + $0x58] sm:$0xff] %vm6752_vm9, %v6679_v18 }
 0x856   : > { %6763 = vst.msk [vmem:[#allocation3 + $0x50] sm:$0xff] %vm6752_vm9, %v6677_v50  ;;  %7053 = vrot.lane.b32.xlu1 %v14042_v31, %s10463_s28  ;;  %v6991_v31 = vld [vmem:[#allocation2 + $0xf0] sm:$0xff] }
 0x857   : > { %7051 = vrot.lane.b32.xlu0 %v14034_v19, %s10463_s28  ;;  %v14227_v19 = vld [vmem:[#allocation2 + $0xf1] sm:$0xff] }
 0x858   : > { %v6683_v54 = vpop.permute.xlu1 %6682  ;;  %8611 = vst.msk [vmem:[#allocation2 + $0xf0] sm:$0xff] %vm366_vm0, %v15846_v16 }
 0x859   : > { %v6681_v34 = vpop.permute.xlu0 %6680  ;;  %6766 = vst.msk [vmem:[#allocation3 + $0x68] sm:$0xff] %vm6752_vm9, %v6683_v54  ;;  %v7976_v54 = vld [vmem:[%s15545_s5] sm:$0xff] }
 0x85a   : > { %6765 = vst.msk [vmem:[#allocation3 + $0x60] sm:$0xff] %vm6752_vm9, %v6681_v34  ;;  %7057 = vrot.lane.b32.xlu1 %v14104_v62, %s10463_s28  ;;  %v14237_v62 = vld [vmem:[#allocation2 + $0xfa] sm:$0xff]  ;;  %v6993_v34 = vld [vmem:[#allocation2 + $0x108] sm:$0xff] }
 0x85b   : > { %7055 = vrot.lane.b32.xlu0 %v14096_v40, %s10463_s28  ;;  %v14235_v40 = vld [vmem:[#allocation2 + $0xf9] sm:$0xff] }
 0x85c   : > { %v6687_v21 = vpop.permute.xlu1 %6686  ;;  %8613 = vst.msk [vmem:[#allocation2 + $0x100] sm:$0xf] %vm832_vm1, %v15846_v16 }
 0x85d   : > { %v6685_v6 = vpop.permute.xlu0 %6684  ;;  %6768 = vst.msk [vmem:[#allocation3 + $0x78] sm:$0xff] %vm6752_vm9, %v6687_v21 }
 0x85e   : > { %6767 = vst.msk [vmem:[#allocation3 + $0x70] sm:$0xff] %vm6752_vm9, %v6685_v6  ;;  %7061 = vrot.lane.b32.xlu1 %v14149_v46, %s10463_s28  ;;  %v7978_v6 = vld [vmem:[%s15545_s5 + $0x10] sm:$0xff] }
 0x85f   : > { %7059 = vrot.lane.b32.xlu0 %v14142_v2, %s10463_s28  ;;  %8612 = vst.msk [vmem:[#allocation2 + $0xf8] sm:$0xff] %vm366_vm0, %v15846_v16 }
 0x860   : > { %v6691_v18 = vpop.permute.xlu1 %6690  ;;  %8659 = vst.msk [vmem:[#allocation2 + $0xf1] sm:$0xff] %vm366_vm0, %v15835_v9  ;;  %8660 = vst.msk [vmem:[#allocation2 + $0xf9] sm:$0xff] %vm366_vm0, %v15836_v41  ;;  %v7977_v9 = vld [vmem:[%s15545_s5 + $0x8] sm:$0xff] }
 0x861   : > { %v6689_v46 = vpop.permute.xlu0 %6688  ;;  %6770 = vst.msk [vmem:[#allocation3 + $0x88] sm:$0xff] %vm6752_vm9, %v6691_v18  ;;  %v10373_v41 = vpack.c.bf16 %v7977_v9, %v7976_v54  ;;  %v7979_v18 = vld [vmem:[%s15545_s5 + $0x18] sm:$0xff]  ;;  %v6998_v54 = vld [vmem:[#allocation2 + $0x140] sm:$0xff] }
 0x862   : > { %6769 = vst.msk [vmem:[#allocation3 + $0x80] sm:$0xff] %vm6752_vm9, %v6689_v46  ;;  %7065 = vrot.lane.b32.xlu1 %v6990_v59, %s10463_s28  ;;  %v7980_v9 = vld [vmem:[%s15545_s5 + $0x20] sm:$0xff] }
 0x863   : > { %7063 = vrot.lane.b32.xlu0 %v6989_v25, %s10463_s28  ;;  %v6994_v25 = vld [vmem:[#allocation2 + $0x110] sm:$0xff]  ;;  %10374 = vmatprep.subr.bf16.mxu0 %v10373_v41 }
 0x864   : > { %v6695_v2 = vpop.permute.xlu1 %6694  ;;  %10376 = vmatpush3.bf16.msra.mxu0 %v10373_v41  ;;  %v7981_v41 = vld [vmem:[%s15545_s5 + $0x28] sm:$0xff] }
 0x865   : > { %v6693_v50 = vpop.permute.xlu0 %6692  ;;  %6772 = vst.msk [vmem:[#allocation3 + $0x98] sm:$0xff] %vm6752_vm9, %v6695_v2  ;;  %v6995_v2 = vld [vmem:[#allocation2 + $0x120] sm:$0xff] }
 0x866   : > { %6771 = vst.msk [vmem:[#allocation3 + $0x90] sm:$0xff] %vm6752_vm9, %v6693_v50  ;;  %7069 = vrot.lane.b32.xlu1 %v6992_v60, %s10463_s28  ;;  %v6996_v60 = vld [vmem:[#allocation2 + $0x128] sm:$0xff] }
 0x867   : > { %7067 = vrot.lane.b32.xlu0 %v6991_v31, %s10463_s28  ;;  %v10377_v31 = vpack.c.bf16 %v7979_v18, %v7978_v6  ;;  %v14291_v6 = vld [vmem:[#allocation2 + $0x111] sm:$0xff] }
 0x868   : > { %v6699_v59 = vpop.permute.xlu1 %6698  ;;  %v14293_v18 = vld [vmem:[#allocation2 + $0x112] sm:$0xff] }
 0x869   : > { %v6697_v21 = vpop.permute.xlu0 %6696  ;;  %6774 = vst.msk [vmem:[#allocation3 + $0xa8] sm:$0xff] %vm6752_vm9, %v6699_v59  ;;  %10378 = vmatprep.subr.bf16.mxu0 %v10377_v31  ;;  %v14286_v59 = vld [vmem:[#allocation2 + $0x10a] sm:$0xff] }
 0x86a   : > { %6773 = vst.msk [vmem:[#allocation3 + $0xa0] sm:$0xff] %vm6752_vm9, %v6697_v21  ;;  %7073 = vrot.lane.b32.xlu1 %v6994_v25, %s10463_s28  ;;  %10380 = vmatpush3.bf16.msra.mxu0 %v10377_v31  ;;  %v14284_v25 = vld [vmem:[#allocation2 + $0x109] sm:$0xff]  ;;  %v10381_v21 = vpack.c.bf16 %v7981_v41, %v7980_v9  ;;  %v14295_v31 = vld [vmem:[#allocation2 + $0x113] sm:$0xff] }
 0x86b   : > { %7071 = vrot.lane.b32.xlu0 %v6993_v34, %s10463_s28  ;;  %v14288_v34 = vld [vmem:[#allocation2 + $0x10b] sm:$0xff]  ;;  %8616 = vst.msk [vmem:[#allocation2 + $0x118] sm:$0xf] %vm832_vm1, %v15846_v16  ;;  %v7983_v9 = vld [vmem:[%s15545_s5 + $0x38] sm:$0xff] }
 0x86c   : > { %v6703_v46 = vpop.permute.xlu1 %6702  ;;  %15859 = vst [vmem:[#allocation53_spill] sm:$0xff] %v14288_v34  ;;  %8614 = vst.msk [vmem:[#allocation2 + $0x108] sm:$0xff] %vm366_vm0, %v15846_v16  ;;  %10382 = vmatprep.subr.bf16.mxu0 %v10381_v21  ;;  %v15860_v41 = vld [vmem:[#allocation25_spill] sm:$0xff] }
 0x86d   : > { %v6701_v50 = vpop.permute.xlu0 %6700  ;;  %6776 = vst.msk [vmem:[#allocation3 + $0xb8] sm:$0xff] %vm6752_vm9, %v6703_v46 }
 0x86e   : > { %6775 = vst.msk [vmem:[#allocation3 + $0xb0] sm:$0xff] %vm6752_vm9, %v6701_v50  ;;  %7077 = vrot.lane.b32.xlu1 %v6996_v60, %s10463_s28  ;;  %v6997_v60 = vld [vmem:[#allocation2 + $0x138] sm:$0xff]  ;;  %10384 = vmatpush3.bf16.msra.mxu0 %v10381_v21 }
 0x86f   : > { %7075 = vrot.lane.b32.xlu0 %v6995_v2, %s10463_s28  ;;  %8615 = vst.msk [vmem:[#allocation2 + $0x110] sm:$0xff] %vm366_vm0, %v15846_v16  ;;  %v7982_v2 = vld [vmem:[%s15545_s5 + $0x30] sm:$0xff] }
 0x870   : > { %v6707_v46 = vpop.permute.xlu1 %6706  ;;  %8661 = vst.msk [vmem:[#allocation2 + $0x109] sm:$0xff] %vm366_vm0, %v15837_v27  ;;  %8662 = vst.msk [vmem:[#allocation2 + $0x111] sm:$0xff] %vm366_vm0, %v15860_v41  ;;  %v7984_v27 = vld [vmem:[%s15545_s5 + $0x40] sm:$0xff]  ;;  %v7985_v41 = vld [vmem:[%s15545_s5 + $0x48] sm:$0xff] }
 0x871   : > { %v6705_v50 = vpop.permute.xlu0 %6704  ;;  %6778 = vst.msk [vmem:[#allocation3 + $0xc8] sm:$0xff] %vm6752_vm9, %v6707_v46  ;;  %v10385_v46 = vpack.c.bf16 %v7983_v9, %v7982_v2  ;;  %v7986_v2 = vld [vmem:[%s15545_s5 + $0x50] sm:$0xff] }
 0x872   : > { %6777 = vst.msk [vmem:[#allocation3 + $0xc0] sm:$0xff] %vm6752_vm9, %v6705_v50  ;;  %7081 = vrot.lane.b32.xlu1 %v6998_v54, %s10463_s28  ;;  %v10389_v54 = vpack.c.bf16 %v7985_v41, %v7984_v27 }
 0x873   : > { %7079 = vrot.lane.b32.xlu0 %v6997_v60, %s10463_s28  ;;  %10386 = vmatprep.subr.bf16.mxu0 %v10385_v46 }
 0x874   : > { %v6711_v21 = vpop.permute.xlu1 %6710  ;;  %10388 = vmatpush3.bf16.msra.mxu0 %v10385_v46  ;;  %v14345_v46 = vld [vmem:[#allocation2 + $0x121] sm:$0xff] }
 0x875   : > { %v6709_v34 = vpop.permute.xlu0 %6708  ;;  %6780 = vst.msk [vmem:[#allocation3 + $0xd8] sm:$0xff] %vm6752_vm9, %v6711_v21  ;;  %10390 = vmatprep.subr.bf16.mxu0 %v10389_v54  ;;  %v14349_v21 = vld [vmem:[#allocation2 + $0x123] sm:$0xff] }
 0x876   : > { %6779 = vst.msk [vmem:[#allocation3 + $0xd0] sm:$0xff] %vm6752_vm9, %v6709_v34  ;;  %7238 = vrot.lane.b32.xlu1 %v13952_v44, %s10464_s12  ;;  %v7987_v34 = vld [vmem:[%s15545_s5 + $0x58] sm:$0xff] }
 0x877   : > { %7236 = vrot.lane.b32.xlu0 %v13945_v53, %s10464_s12  ;;  %v10393_v53 = vpack.c.bf16 %v7987_v34, %v7986_v2  ;;  %v15861_v2 = vld [vmem:[#allocation26_spill] sm:$0xff] }
 0x878   : > { %v6715_v60 = vpop.permute.xlu1 %6714  ;;  %10392 = vmatpush3.bf16.msra.mxu0 %v10389_v54  ;;  %v14367_v54 = vld [vmem:[#allocation2 + $0x129] sm:$0xff] }
 0x879   : > { %v6713_v50 = vpop.permute.xlu0 %6712  ;;  %6782 = vst.msk [vmem:[#allocation3 + $0xe8] sm:$0xff] %vm6752_vm9, %v6715_v60  ;;  %10394 = vmatprep.subr.bf16.mxu0 %v10393_v53  ;;  %v14372_v60 = vld [vmem:[#allocation2 + $0x12a] sm:$0xff] }
 0x87a   : > { %6781 = vst.msk [vmem:[#allocation3 + $0xe0] sm:$0xff] %vm6752_vm9, %v6713_v50  ;;  %7431 = vrot.lane.b32.xlu1 %v13774_v37, %s10465_s19  ;;  %v14347_v37 = vld [vmem:[#allocation2 + $0x122] sm:$0xff]  ;;  %v14374_v50 = vld [vmem:[#allocation2 + $0x12b] sm:$0xff] }
 0x87b   : > { %7429 = vrot.lane.b32.xlu0 %v13782_v8, %s10465_s19  ;;  %v7988_v8 = vld [vmem:[%s15545_s5 + $0x60] sm:$0xf]  ;;  %8617 = vst.msk [vmem:[#allocation2 + $0x120] sm:$0xff] %vm366_vm0, %v15846_v16 }
 0x87c   : > { %v6719_v44 = vpop.permute.xlu1 %6718  ;;  %10396 = vmatpush3.bf16.msra.mxu0 %v10393_v53 }
 0x87d   : > { %v6717_v9 = vpop.permute.xlu0 %6716  ;;  %6784 = vst.msk [vmem:[#allocation3 + $0xf8] sm:$0xff] %vm6752_vm9, %v6719_v44  ;;  %10265 = vmatprep.subr.msk.mxu0 %vm463_vm8, %v7988_v8 }
 0x87e   : > { %6783 = vst.msk [vmem:[#allocation3 + $0xf0] sm:$0xff] %vm6752_vm9, %v6717_v9  ;;  %7624 = vrot.lane.b32.xlu1 %v13866_v30, %s10466_s20 }
 0x87f   : > { %7622 = vrot.lane.b32.xlu0 %v13868_v56, %s10466_s20 }
 0x880   : > { %v6852_v27 = vpop.permute.xlu1 %6851  ;;  %10266 = vmatpush3.msk.msra.mxu0 %vm463_vm8, %v7988_v8  ;;  %v14412_v8 = vld [vmem:[#allocation2 + $0x13c] sm:$0xff] }
 0x881   : > { %v6850_v30 = vpop.permute.xlu0 %6849  ;;  %6947 = vst.msk [vmem:[#allocation3 + $0x8] sm:$0xff] %vm6945_vm10, %v6852_v27 }
 0x882   : > { %6946 = vst.msk [vmem:[#allocation3] sm:$0xff] %vm6945_vm10, %v6850_v30  ;;  %7240 = vrot.lane.b32.xlu1 %v13980_v48, %s10464_s12  ;;  %v14376_v48 = vld [vmem:[#allocation2 + $0x12c] sm:$0xff]  ;;  %v14423_v30 = vld [vmem:[#allocation2 + $0x141] sm:$0xff] }
 0x883   : > { %7815 = vrot.lane.b32.xlu0 %v13941_v7, %s10467_s15  ;;  %8619 = vst.msk [vmem:[#allocation2 + $0x130] sm:$0xf] %vm832_vm1, %v15846_v16 }
 0x884   : > { %v6856_v56 = vpop.permute.xlu1 %6855  ;;  %8618 = vst.msk [vmem:[#allocation2 + $0x128] sm:$0xff] %vm366_vm0, %v15846_v16 }
 0x885   : > { %v6854_v41 = vpop.permute.xlu0 %6853  ;;  %6949 = vst.msk [vmem:[#allocation3 + $0x18] sm:$0xff] %vm6945_vm10, %v6856_v56  ;;  %v14428_v56 = vld [vmem:[#allocation2 + $0x142] sm:$0xff] }
 0x886   : > { %6948 = vst.msk [vmem:[#allocation3 + $0x10] sm:$0xff] %vm6945_vm10, %v6854_v41  ;;  %7242 = vrot.lane.b32.xlu1 %v13992_v22, %s10464_s12  ;;  %v15862_v22 = vld [vmem:[#allocation27_spill] sm:$0xff]  ;;  %v14430_v41 = vld [vmem:[#allocation2 + $0x143] sm:$0xff] }
 0x887   : > { %7817 = vrot.lane.b32.xlu0 %v13948_v5, %s10467_s15  ;;  %8663 = vst.msk [vmem:[#allocation2 + $0x121] sm:$0xff] %vm366_vm0, %v15861_v2  ;;  %8664 = vst.msk [vmem:[#allocation2 + $0x129] sm:$0xff] %vm366_vm0, %v15862_v22 }
 0x888   : > { %v6860_v7 = vpop.permute.xlu1 %6859 }
 0x889   : > { %v6858_v34 = vpop.permute.xlu0 %6857  ;;  %6951 = vst.msk [vmem:[#allocation3 + $0x28] sm:$0xff] %vm6945_vm10, %v6860_v7  ;;  %v14432_v7 = vld [vmem:[#allocation2 + $0x144] sm:$0xff] }
 0x88a   : > { %6950 = vst.msk [vmem:[#allocation3 + $0x20] sm:$0xff] %vm6945_vm10, %v6858_v34  ;;  %7435 = vrot.lane.b32.xlu1 %v13798_v61, %s10465_s19  ;;  %v14404_v61 = vld [vmem:[#allocation2 + $0x139] sm:$0xff] }
 0x88b   : > { %7433 = vrot.lane.b32.xlu0 %v13800_v38, %s10465_s19  ;;  %v14408_v38 = vld [vmem:[#allocation2 + $0x13a] sm:$0xff]  ;;  %8622 = vst.msk [vmem:[#allocation2 + $0x148] sm:$0xf] %vm832_vm1, %v15846_v16 }
 0x88c   : > { %v6864_v5 = vpop.permute.xlu1 %6863 }
 0x88d   : > { %v6862_v53 = vpop.permute.xlu0 %6861  ;;  %6953 = vst.msk [vmem:[#allocation3 + $0x38] sm:$0xff] %vm6945_vm10, %v6864_v5 }
 0x88e   : > { %6952 = vst.msk [vmem:[#allocation3 + $0x30] sm:$0xff] %vm6945_vm10, %v6862_v53  ;;  %7628 = vrot.lane.b32.xlu1 %v13876_v0, %s10466_s20  ;;  %v14410_v0 = vld [vmem:[#allocation2 + $0x13b] sm:$0xff]  ;;  %v14468_v53 = vld [vmem:[#allocation2 + $0x153] sm:$0xff] }
 0x88f   : > { %7626 = vrot.lane.b32.xlu0 %v13878_v24, %s10466_s20  ;;  %8620 = vst.msk [vmem:[#allocation2 + $0x138] sm:$0xff] %vm366_vm0, %v15846_v16  ;;  %8621 = vst.msk [vmem:[#allocation2 + $0x140] sm:$0xff] %vm366_vm0, %v15846_v16 }
 0x890   : > { %v6868_v44 = vpop.permute.xlu1 %6867 }
 0x891   : > { %v6866_v9 = vpop.permute.xlu0 %6865  ;;  %6955 = vst.msk [vmem:[#allocation3 + $0x48] sm:$0xff] %vm6945_vm10, %v6868_v44 }
 0x892   : > { %6954 = vst.msk [vmem:[#allocation3 + $0x40] sm:$0xff] %vm6945_vm10, %v6866_v9  ;;  %7244 = vrot.lane.b32.xlu1 %v14036_v15, %s10464_s12 }
 0x893   : > { %7819 = vrot.lane.b32.xlu0 %v13976_v13, %s10467_s15 }
 0x894   : > { %v6872_v24 = vpop.permute.xlu1 %6871 }
 0x895   : > { %v6870_v27 = vpop.permute.xlu0 %6869  ;;  %6957 = vst.msk [vmem:[#allocation3 + $0x58] sm:$0xff] %vm6945_vm10, %v6872_v24  ;;  %v14481_v24 = vld [vmem:[#allocation2 + $0x158] sm:$0xff] }
 0x896   : > { %6956 = vst.msk [vmem:[#allocation3 + $0x50] sm:$0xff] %vm6945_vm10, %v6870_v27  ;;  %7246 = vrot.lane.b32.xlu1 %v14044_v63, %s10464_s12  ;;  %v15863_v63 = vld [vmem:[#allocation28_spill] sm:$0xff] }
 0x897   : > { %7821 = vrot.lane.b32.xlu0 %v13988_v36, %s10467_s15  ;;  %8665 = vst.msk [vmem:[#allocation2 + $0x139] sm:$0xff] %vm366_vm0, %v15863_v63  ;;  %v14483_v27 = vld [vmem:[#allocation2 + $0x159] sm:$0xff] }
 0x898   : > { %v6876_v13 = vpop.permute.xlu1 %6875 }
 0x899   : > { %v6874_v15 = vpop.permute.xlu0 %6873  ;;  %6959 = vst.msk [vmem:[#allocation3 + $0x68] sm:$0xff] %vm6945_vm10, %v6876_v13  ;;  %v14488_v13 = vld [vmem:[#allocation2 + $0x15a] sm:$0xff] }
 0x89a   : > { %6958 = vst.msk [vmem:[#allocation3 + $0x60] sm:$0xff] %vm6945_vm10, %v6874_v15  ;;  %7439 = vrot.lane.b32.xlu1 %v14046_v47, %s10465_s19  ;;  %v15864_v47 = vld [vmem:[#allocation29_spill] sm:$0xff]  ;;  %v14490_v15 = vld [vmem:[#allocation2 + $0x15b] sm:$0xff] }
 0x89b   : > { %7437 = vrot.lane.b32.xlu0 %v14038_v1, %s10465_s19  ;;  %8666 = vst.msk [vmem:[#allocation2 + $0x141] sm:$0xff] %vm366_vm0, %v15864_v47 }
 0x89c   : > { %v6880_v36 = vpop.permute.xlu1 %6879 }
 0x89d   : > { %v6878_v2 = vpop.permute.xlu0 %6877  ;;  %6961 = vst.msk [vmem:[#allocation3 + $0x78] sm:$0xff] %vm6945_vm10, %v6880_v36  ;;  %v15865_v36 = vld [vmem:[#allocation30_spill] sm:$0xff] }
 0x89e   : > { %6960 = vst.msk [vmem:[#allocation3 + $0x70] sm:$0xff] %vm6945_vm10, %v6878_v2  ;;  %7632 = vrot.lane.b32.xlu1 %v13886_v10, %s10466_s20  ;;  %v14460_v10 = vld [vmem:[#allocation2 + $0x150] sm:$0xff] }
 0x89f   : > { %7630 = vrot.lane.b32.xlu0 %v13888_v14, %s10466_s20  ;;  %v14462_v14 = vld [vmem:[#allocation2 + $0x151] sm:$0xff] }
 0x8a0   : > { %v6884_v1 = vpop.permute.xlu1 %6883 }
 0x8a1   : > { %v6882_v22 = vpop.permute.xlu0 %6881  ;;  %6963 = vst.msk [vmem:[#allocation3 + $0x88] sm:$0xff] %vm6945_vm10, %v6884_v1 }
 0x8a2   : > { %6962 = vst.msk [vmem:[#allocation3 + $0x80] sm:$0xff] %vm6945_vm10, %v6882_v22  ;;  %7248 = vrot.lane.b32.xlu1 %v14098_v17, %s10464_s12  ;;  %v14466_v17 = vld [vmem:[#allocation2 + $0x152] sm:$0xff] }
 0x8a3   : > { %7823 = vrot.lane.b32.xlu0 %v14026_v28, %s10467_s15  ;;  %v14470_v28 = vld [vmem:[#allocation2 + $0x154] sm:$0xff]  ;;  %v14528_v22 = vld [vmem:[#allocation2 + $0x16b] sm:$0xff] }
 0x8a4   : > { %v6888_v34 = vpop.permute.xlu1 %6887  ;;  %8623 = vst.msk [vmem:[#allocation2 + $0x150] sm:$0xff] %vm366_vm0, %v15846_v16 }
 0x8a5   : > { %v6886_v5 = vpop.permute.xlu0 %6885  ;;  %6965 = vst.msk [vmem:[#allocation3 + $0x98] sm:$0xff] %vm6945_vm10, %v6888_v34 }
 0x8a6   : > { %6964 = vst.msk [vmem:[#allocation3 + $0x90] sm:$0xff] %vm6945_vm10, %v6886_v5  ;;  %7250 = vrot.lane.b32.xlu1 %v14106_v43, %s10464_s12 }
 0x8a7   : > { %7825 = vrot.lane.b32.xlu0 %v14024_v49, %s10467_s15 }
 0x8a8   : > { %v6892_v44 = vpop.permute.xlu1 %6891 }
 0x8a9   : > { %v6890_v9 = vpop.permute.xlu0 %6889  ;;  %6967 = vst.msk [vmem:[#allocation3 + $0xa8] sm:$0xff] %vm6945_vm10, %v6892_v44  ;;  %v14541_v44 = vld [vmem:[#allocation2 + $0x170] sm:$0xff] }
 0x8aa   : > { %6966 = vst.msk [vmem:[#allocation3 + $0xa0] sm:$0xff] %vm6945_vm10, %v6890_v9  ;;  %7443 = vrot.lane.b32.xlu1 %v14108_v12, %s10465_s19  ;;  %v14492_v12 = vld [vmem:[#allocation2 + $0x15c] sm:$0xff]  ;;  %v14543_v9 = vld [vmem:[#allocation2 + $0x171] sm:$0xff] }
 0x8ab   : > { %7441 = vrot.lane.b32.xlu0 %v14100_v35, %s10465_s19  ;;  %8625 = vst.msk [vmem:[#allocation2 + $0x160] sm:$0xf] %vm832_vm1, %v15846_v16 }
 0x8ac   : > { %v6896_v49 = vpop.permute.xlu1 %6895  ;;  %8624 = vst.msk [vmem:[#allocation2 + $0x158] sm:$0xff] %vm366_vm0, %v15846_v16 }
 0x8ad   : > { %v6894_v43 = vpop.permute.xlu0 %6893  ;;  %6969 = vst.msk [vmem:[#allocation3 + $0xb8] sm:$0xff] %vm6945_vm10, %v6896_v49  ;;  %v14548_v49 = vld [vmem:[#allocation2 + $0x172] sm:$0xff] }
 0x8ae   : > { %6968 = vst.msk [vmem:[#allocation3 + $0xb0] sm:$0xff] %vm6945_vm10, %v6894_v43  ;;  %7636 = vrot.lane.b32.xlu1 %v13896_v42, %s10466_s20  ;;  %v15866_v42 = vld [vmem:[#allocation31_spill] sm:$0xff] }
 0x8af   : > { %7634 = vrot.lane.b32.xlu0 %v13898_v33, %s10466_s20  ;;  %8667 = vst.msk [vmem:[#allocation2 + $0x151] sm:$0xff] %vm366_vm0, %v15865_v36  ;;  %8668 = vst.msk [vmem:[#allocation2 + $0x159] sm:$0xff] %vm366_vm0, %v15866_v42  ;;  %v14552_v43 = vld [vmem:[#allocation2 + $0x174] sm:$0xff]  ;;  %v15868_v36 = vld [vmem:[#allocation32_spill] sm:$0xff] }
 0x8b0   : > { %v6900_v35 = vpop.permute.xlu1 %6899 }
 0x8b1   : > { %v6898_v63 = vpop.permute.xlu0 %6897  ;;  %6971 = vst.msk [vmem:[#allocation3 + $0xc8] sm:$0xff] %vm6945_vm10, %v6900_v35 }
 0x8b2   : > { %6970 = vst.msk [vmem:[#allocation3 + $0xc0] sm:$0xff] %vm6945_vm10, %v6898_v63  ;;  %7252 = vrot.lane.b32.xlu1 %v14144_v45, %s10464_s12  ;;  %v14522_v45 = vld [vmem:[#allocation2 + $0x169] sm:$0xff]  ;;  %v15870_v63 = vld [vmem:[#allocation35_spill] sm:$0xff] }
 0x8b3   : > { %7827 = vrot.lane.b32.xlu0 %v14050_v51, %s10467_s15  ;;  %v14520_v51 = vld [vmem:[#allocation2 + $0x168] sm:$0xff] }
 0x8b4   : > { %v6904_v33 = vpop.permute.xlu1 %6903 }
 0x8b5   : > { %v6902_v47 = vpop.permute.xlu0 %6901  ;;  %6973 = vst.msk [vmem:[#allocation3 + $0xd8] sm:$0xff] %vm6945_vm10, %v6904_v33 }
 0x8b6   : > { %6972 = vst.msk [vmem:[#allocation3 + $0xd0] sm:$0xff] %vm6945_vm10, %v6902_v47  ;;  %7254 = vrot.lane.b32.xlu1 %v14151_v52, %s10464_s12  ;;  %v14526_v52 = vld [vmem:[#allocation2 + $0x16a] sm:$0xff] }
 0x8b7   : > { %7829 = vrot.lane.b32.xlu0 %v14029_v39, %s10467_s15  ;;  %v14530_v39 = vld [vmem:[#allocation2 + $0x16c] sm:$0xff] }
 0x8b8   : > { %v6908_v2 = vpop.permute.xlu1 %6907  ;;  %8626 = vst.msk [vmem:[#allocation2 + $0x168] sm:$0xff] %vm366_vm0, %v15846_v16 }
 0x8b9   : > { %v6906_v1 = vpop.permute.xlu0 %6905  ;;  %6975 = vst.msk [vmem:[#allocation3 + $0xe8] sm:$0xff] %vm6945_vm10, %v6908_v2 }
 0x8ba   : > { %6974 = vst.msk [vmem:[#allocation3 + $0xe0] sm:$0xff] %vm6945_vm10, %v6906_v1  ;;  %7447 = vrot.lane.b32.xlu1 %v14153_v23, %s10465_s19 }
 0x8bb   : > { %7445 = vrot.lane.b32.xlu0 %v14146_v11, %s10465_s19 }
 0x8bc   : > { %v6912_v34 = vpop.permute.xlu1 %6911 }
 0x8bd   : > { %v6910_v5 = vpop.permute.xlu0 %6909  ;;  %6977 = vst.msk [vmem:[#allocation3 + $0xf8] sm:$0xff] %vm6945_vm10, %v6912_v34  ;;  %v14580_v34 = vld [vmem:[#allocation2 + $0x180] sm:$0xff] }
 0x8be   : > { %6976 = vst.msk [vmem:[#allocation3 + $0xf0] sm:$0xff] %vm6945_vm10, %v6910_v5  ;;  %7640 = vrot.lane.b32.xlu1 %v13906_v20, %s10466_s20  ;;  %v14550_v20 = vld [vmem:[#allocation2 + $0x173] sm:$0xff]  ;;  %v14582_v5 = vld [vmem:[#allocation2 + $0x181] sm:$0xff] }
 0x8bf   : > { %7638 = vrot.lane.b32.xlu0 %v13908_v4, %s10466_s20  ;;  %v15867_v4 = vld [vmem:[#allocation46_spill] sm:$0xff]  ;;  %8628 = vst.msk [vmem:[#allocation2 + $0x178] sm:$0xf] %vm832_vm1, %v15846_v16 }
 0x8c0   : > { %v7046_v23 = vpop.permute.xlu1 %7045  ;;  %8627 = vst.msk [vmem:[#allocation2 + $0x170] sm:$0xff] %vm366_vm0, %v15846_v16 }
 0x8c1   : > { %v7044_v11 = vpop.permute.xlu0 %7043  ;;  %7141 = vst.msk [vmem:[#allocation3 + $0x8] sm:$0xff] %vm7139_vm11, %v7046_v23  ;;  %v15872_v23 = vld [vmem:[#allocation45_spill] sm:$0xff] }
 0x8c2   : > { %7140 = vst.msk [vmem:[#allocation3] sm:$0xff] %vm7139_vm11, %v7044_v11  ;;  %7256 = vrot.lane.b32.xlu1 %v14180_v29, %s10464_s12  ;;  %v15869_v29 = vld [vmem:[#allocation33_spill] sm:$0xff] }
 0x8c3   : > { %7831 = vrot.lane.b32.xlu0 %v15867_v4, %s10467_s15  ;;  %8669 = vst.msk [vmem:[#allocation2 + $0x169] sm:$0xff] %vm366_vm0, %v15868_v36  ;;  %8670 = vst.msk [vmem:[#allocation2 + $0x171] sm:$0xff] %vm366_vm0, %v15869_v29  ;;  %v14588_v11 = vld [vmem:[#allocation2 + $0x183] sm:$0xff]  ;;  %v15873_v36 = vld [vmem:[#allocation47_spill] sm:$0xff] }
 0x8c4   : > { %v7050_v35 = vpop.permute.xlu1 %7049 }
 0x8c5   : > { %v7048_v42 = vpop.permute.xlu0 %7047  ;;  %7143 = vst.msk [vmem:[#allocation3 + $0x18] sm:$0xff] %vm7139_vm11, %v7050_v35 }
 0x8c6   : > { %7142 = vst.msk [vmem:[#allocation3 + $0x10] sm:$0xff] %vm7139_vm11, %v7048_v42  ;;  %7258 = vrot.lane.b32.xlu1 %v14185_v32, %s10464_s12  ;;  %v15871_v32 = vld [vmem:[#allocation44_spill] sm:$0xff] }
 0x8c7   : > { %7833 = vrot.lane.b32.xlu0 %v15870_v63, %s10467_s15  ;;  %v14601_v63 = vld [vmem:[#allocation2 + $0x188] sm:$0xff] }
 0x8c8   : > { %v7054_v33 = vpop.permute.xlu1 %7053 }
 0x8c9   : > { %v7052_v47 = vpop.permute.xlu0 %7051  ;;  %7145 = vst.msk [vmem:[#allocation3 + $0x28] sm:$0xff] %vm7139_vm11, %v7054_v33  ;;  %v14603_v33 = vld [vmem:[#allocation2 + $0x189] sm:$0xff] }
 0x8ca   : > { %7144 = vst.msk [vmem:[#allocation3 + $0x20] sm:$0xff] %vm7139_vm11, %v7052_v47  ;;  %7451 = vrot.lane.b32.xlu1 %v14187_v3, %s10465_s19  ;;  %v14586_v3 = vld [vmem:[#allocation2 + $0x182] sm:$0xff]  ;;  %v14608_v47 = vld [vmem:[#allocation2 + $0x18a] sm:$0xff] }
 0x8cb   : > { %7449 = vrot.lane.b32.xlu0 %v14182_v55, %s10465_s19  ;;  %v14590_v55 = vld [vmem:[#allocation2 + $0x184] sm:$0xff] }
 0x8cc   : > { %v7058_v2 = vpop.permute.xlu1 %7057  ;;  %8629 = vst.msk [vmem:[#allocation2 + $0x180] sm:$0xff] %vm366_vm0, %v15846_v16 }
 0x8cd   : > { %v7056_v1 = vpop.permute.xlu0 %7055  ;;  %7147 = vst.msk [vmem:[#allocation3 + $0x38] sm:$0xff] %vm7139_vm11, %v7058_v2  ;;  %v14610_v2 = vld [vmem:[#allocation2 + $0x18b] sm:$0xff] }
 0x8ce   : > { %7146 = vst.msk [vmem:[#allocation3 + $0x30] sm:$0xff] %vm7139_vm11, %v7056_v1  ;;  %7644 = vrot.lane.b32.xlu1 %v15871_v32, %s10466_s20  ;;  %v15874_v1 = vld [vmem:[#allocation34_spill] sm:$0xff] }
 0x8cf   : > { %7642 = vrot.lane.b32.xlu0 %v15872_v23, %s10466_s20  ;;  %v15875_v23 = vld [vmem:[#allocation42_spill] sm:$0xff] }
 0x8d0   : > { %v7062_v4 = vpop.permute.xlu1 %7061 }
 0x8d1   : > { %v7060_v35 = vpop.permute.xlu0 %7059  ;;  %7149 = vst.msk [vmem:[#allocation3 + $0x48] sm:$0xff] %vm7139_vm11, %v7062_v4 }
 0x8d2   : > { %7148 = vst.msk [vmem:[#allocation3 + $0x40] sm:$0xff] %vm7139_vm11, %v7060_v35  ;;  %7260 = vrot.lane.b32.xlu1 %v14227_v19, %s10464_s12  ;;  %v14612_v19 = vld [vmem:[#allocation2 + $0x18c] sm:$0xff] }
 0x8d3   : > { %7835 = vrot.lane.b32.xlu0 %v15873_v36, %s10467_s15  ;;  %8631 = vst.msk [vmem:[#allocation2 + $0x190] sm:$0xf] %vm832_vm1, %v15846_v16 }
 0x8d4   : > { %v7066_v29 = vpop.permute.xlu1 %7065  ;;  %8630 = vst.msk [vmem:[#allocation2 + $0x188] sm:$0xff] %vm366_vm0, %v15846_v16 }
 0x8d5   : > { %v7064_v42 = vpop.permute.xlu0 %7063  ;;  %7151 = vst.msk [vmem:[#allocation3 + $0x58] sm:$0xff] %vm7139_vm11, %v7066_v29 }
 0x8d6   : > { %7150 = vst.msk [vmem:[#allocation3 + $0x50] sm:$0xff] %vm7139_vm11, %v7064_v42  ;;  %7262 = vrot.lane.b32.xlu1 %v14235_v40, %s10464_s12  ;;  %v15876_v40 = vld [vmem:[#allocation43_spill] sm:$0xff] }
 0x8d7   : > { %7837 = vrot.lane.b32.xlu0 %v15874_v1, %s10467_s15  ;;  %8671 = vst.msk [vmem:[#allocation2 + $0x181] sm:$0xff] %vm366_vm0, %v15875_v23  ;;  %8672 = vst.msk [vmem:[#allocation2 + $0x189] sm:$0xff] %vm366_vm0, %v15876_v40  ;;  %v15877_v1 = vld [vmem:[#allocation49_spill] sm:$0xff] }
 0x8d8   : > { %v7070_v32 = vpop.permute.xlu1 %7069 }
 0x8d9   : > { %v7068_v4 = vpop.permute.xlu0 %7067  ;;  %7153 = vst.msk [vmem:[#allocation3 + $0x68] sm:$0xff] %vm7139_vm11, %v7070_v32  ;;  %v14648_v32 = vld [vmem:[#allocation2 + $0x19b] sm:$0xff] }
 0x8da   : > { %7152 = vst.msk [vmem:[#allocation3 + $0x60] sm:$0xff] %vm7139_vm11, %v7068_v4  ;;  %7455 = vrot.lane.b32.xlu1 %v14237_v62, %s10465_s19  ;;  %v14642_v62 = vld [vmem:[#allocation2 + $0x199] sm:$0xff] }
 0x8db   : > { %7453 = vrot.lane.b32.xlu0 %v14229_v58, %s10465_s19  ;;  %v14640_v58 = vld [vmem:[#allocation2 + $0x198] sm:$0xff] }
 0x8dc   : > { %v7074_v35 = vpop.permute.xlu1 %7073 }
 0x8dd   : > { %v7072_v36 = vpop.permute.xlu0 %7071  ;;  %7155 = vst.msk [vmem:[#allocation3 + $0x78] sm:$0xff] %vm7139_vm11, %v7074_v35 }
 0x8de   : > { %7154 = vst.msk [vmem:[#allocation3 + $0x70] sm:$0xff] %vm7139_vm11, %v7072_v36  ;;  %7648 = vrot.lane.b32.xlu1 %v14239_v57, %s10466_s20  ;;  %v14646_v57 = vld [vmem:[#allocation2 + $0x19a] sm:$0xff] }
 0x8df   : > { %7646 = vrot.lane.b32.xlu0 %v14231_v26, %s10466_s20  ;;  %v14650_v26 = vld [vmem:[#allocation2 + $0x19c] sm:$0xff] }
 0x8e0   : > { %v7078_v29 = vpop.permute.xlu1 %7077  ;;  %8632 = vst.msk [vmem:[#allocation2 + $0x198] sm:$0xff] %vm366_vm0, %v15846_v16  ;;  %v14661_v36 = vld [vmem:[#allocation2 + $0x1a0] sm:$0xff] }
 0x8e1   : > { %v7076_v42 = vpop.permute.xlu0 %7075  ;;  %7157 = vst.msk [vmem:[#allocation3 + $0x88] sm:$0xff] %vm7139_vm11, %v7078_v29  ;;  %v14663_v29 = vld [vmem:[#allocation2 + $0x1a1] sm:$0xff] }
 0x8e2   : > { %7156 = vst.msk [vmem:[#allocation3 + $0x80] sm:$0xff] %vm7139_vm11, %v7076_v42  ;;  %7264 = vrot.lane.b32.xlu1 %v14284_v25, %s10464_s12  ;;  %v15878_v25 = vld [vmem:[#allocation48_spill] sm:$0xff] }
 0x8e3   : > { %7839 = vrot.lane.b32.xlu0 %v15877_v1, %s10467_s15  ;;  %v14668_v42 = vld [vmem:[#allocation2 + $0x1a2] sm:$0xff] }
 0x8e4   : > { %v7082_v23 = vpop.permute.xlu1 %7081  ;;  %v14672_v1 = vld [vmem:[#allocation2 + $0x1a4] sm:$0xff] }
 0x8e5   : > { %v7080_v40 = vpop.permute.xlu0 %7079  ;;  %7159 = vst.msk [vmem:[#allocation3 + $0x98] sm:$0xff] %vm7139_vm11, %v7082_v23 }
 0x8e6   : > { %7158 = vst.msk [vmem:[#allocation3 + $0x90] sm:$0xff] %vm7139_vm11, %v7080_v40  ;;  %7266 = vrot.lane.b32.xlu1 %v14291_v6, %s10464_s12  ;;  %v14670_v6 = vld [vmem:[#allocation2 + $0x1a3] sm:$0xff] }
 0x8e7   : > { %7841 = vrot.lane.b32.xlu0 %v15878_v25, %s10467_s15  ;;  %8633 = vst.msk [vmem:[#allocation2 + $0x1a0] sm:$0xff] %vm366_vm0, %v15846_v16 }
 0x8e8   : > { %v7239_v4 = vpop.permute.xlu1 %7238  ;;  %8634 = vst.msk [vmem:[#allocation2 + $0x1a8] sm:$0xf] %vm832_vm1, %v15846_v16 }
 0x8e9   : > { %v7237_v35 = vpop.permute.xlu0 %7236  ;;  %7334 = vst.msk [vmem:[#allocation3 + $0x8] sm:$0xff] %vm7332_vm12, %v7239_v4  ;;  %v15880_v4 = vld [vmem:[#allocation51_spill] sm:$0xff] }
 0x8ea   : > { %7333 = vst.msk [vmem:[#allocation3] sm:$0xff] %vm7332_vm12, %v7237_v35  ;;  %7459 = vrot.lane.b32.xlu1 %v14293_v18, %s10465_s19  ;;  %v15879_v18 = vld [vmem:[#allocation53_spill] sm:$0xff] }
 0x8eb   : > { %7457 = vrot.lane.b32.xlu0 %v14286_v59, %s10465_s19 }
 0x8ec   : > { %v7432_v23 = vpop.permute.xlu1 %7431 }
 0x8ed   : > { %v7430_v40 = vpop.permute.xlu0 %7429  ;;  %7527 = vst.msk [vmem:[#allocation3 + $0x8] sm:$0xff] %vm7525_vm13, %v7432_v23 }
 0x8ee   : > { %7526 = vst.msk [vmem:[#allocation3] sm:$0xff] %vm7525_vm13, %v7430_v40  ;;  %7652 = vrot.lane.b32.xlu1 %v14295_v31, %s10466_s20  ;;  %v14696_v31 = vld [vmem:[#allocation2 + $0x1b0] sm:$0xff] }
 0x8ef   : > { %7650 = vrot.lane.b32.xlu0 %v15879_v18, %s10466_s20  ;;  %v14698_v40 = vld [vmem:[#allocation2 + $0x1b1] sm:$0xff] }
 0x8f0   : > { %v7625_v59 = vpop.permute.xlu1 %7624  ;;  %v15881_v18 = vld [vmem:[#allocation50_spill] sm:$0xff] }
 0x8f1   : > { %v7623_v25 = vpop.permute.xlu0 %7622  ;;  %7720 = vst.msk [vmem:[#allocation3 + $0x8] sm:$0xff] %vm7718_vm14, %v7625_v59  ;;  %v14704_v59 = vld [vmem:[#allocation2 + $0x1b3] sm:$0xff] }
 0x8f2   : > { %7719 = vst.msk [vmem:[#allocation3] sm:$0xff] %vm7718_vm14, %v7623_v25  ;;  %7268 = vrot.lane.b32.xlu1 %v14345_v46, %s10464_s12  ;;  %v14702_v46 = vld [vmem:[#allocation2 + $0x1b2] sm:$0xff]  ;;  %15882 = vst [vmem:[#allocation54_spill] sm:$0xff] %v14704_v59 }
 0x8f3   : > { %7843 = vrot.lane.b32.xlu0 %v15880_v4, %s10467_s15  ;;  %v14706_v25 = vld [vmem:[#allocation2 + $0x1b4] sm:$0xff] }
 0x8f4   : > { %v7241_v35 = vpop.permute.xlu1 %7240  ;;  %15883 = vst [vmem:[#allocation55_spill] sm:$0xff] %v14706_v25  ;;  %8635 = vst.msk [vmem:[#allocation2 + $0x1b0] sm:$0xff] %vm366_vm0, %v15846_v16  ;;  %v14717_v25 = vld [vmem:[#allocation2 + $0x1b8] sm:$0xff] }
 0x8f5   : > { %v7816_v23 = vpop.permute.xlu0 %7815  ;;  %7335 = vst.msk [vmem:[#allocation3 + $0x10] sm:$0xff] %vm7332_vm12, %v7241_v35  ;;  %v14719_v59 = vld [vmem:[#allocation2 + $0x1b9] sm:$0xff] }
 0x8f6   : > { %7912 = vst.msk [vmem:[#allocation3] sm:$0xff] %vm7911_vm15, %v7816_v23  ;;  %7270 = vrot.lane.b32.xlu1 %v14367_v54, %s10464_s12 }
 0x8f7   : > { %7845 = vrot.lane.b32.xlu0 %v15881_v18, %s10467_s15 }
 0x8f8   : > { %v7243_v4 = vpop.permute.xlu1 %7242 }
 0x8f9   : > { %v7818_v35 = vpop.permute.xlu0 %7817  ;;  %7336 = vst.msk [vmem:[#allocation3 + $0x18] sm:$0xff] %vm7332_vm12, %v7243_v4  ;;  %v14729_v4 = vld [vmem:[#allocation2 + $0x1bc] sm:$0xff] }
 0x8fa   : > { %7913 = vst.msk [vmem:[#allocation3 + $0x8] sm:$0xff] %vm7911_vm15, %v7818_v35  ;;  %7463 = vrot.lane.b32.xlu1 %v14372_v60, %s10465_s19  ;;  %v14725_v60 = vld [vmem:[#allocation2 + $0x1ba] sm:$0xff]  ;;  %15884 = vst [vmem:[#allocation56_spill] sm:$0xff] %v14729_v4  ;;  %v14757_v4 = vld [vmem:[#allocation2 + $0x1d1] sm:$0xff] }
 0x8fb   : > { %7461 = vrot.lane.b32.xlu0 %v14347_v37, %s10465_s19  ;;  %v14727_v37 = vld [vmem:[#allocation2 + $0x1bb] sm:$0xff]  ;;  %15886 = vst [vmem:[#allocation57_spill] sm:$0xff] %v14757_v4 }
 0x8fc   : > { %v7436_v54 = vpop.permute.xlu1 %7435  ;;  %8636 = vst.msk [vmem:[#allocation2 + $0x1b8] sm:$0xff] %vm366_vm0, %v15846_v16 }
 0x8fd   : > { %v7434_v23 = vpop.permute.xlu0 %7433  ;;  %7529 = vst.msk [vmem:[#allocation3 + $0x18] sm:$0xff] %vm7525_vm13, %v7436_v54  ;;  %v7944_v18 = vld [vmem:[#allocation3] sm:$0xff] }
 0x8fe   : > { %7528 = vst.msk [vmem:[#allocation3 + $0x10] sm:$0xff] %vm7525_vm13, %v7434_v23  ;;  %10267 = vmatprep.mubr.msk.f32.mxu0 %vm7989_vm2, %v7944_v18  ;;  %7656 = vrot.lane.b32.xlu1 %v14374_v50, %s10466_s20 }
 0x8ff   : > { %7654 = vrot.lane.b32.xlu0 %v14349_v21, %s10466_s20  ;;  %8637 = vst.msk [vmem:[#allocation2 + $0x1c0] sm:$0xf] %vm832_vm1, %v15846_v16  ;;  %v15885_v21 = vld [vmem:[#allocation52_spill] sm:$0xff] }
 0x900   : > { %v7629_v35 = vpop.permute.xlu1 %7628 }
 0x901   : > { %v7627_v54 = vpop.permute.xlu0 %7626  ;;  %7722 = vst.msk [vmem:[#allocation3 + $0x18] sm:$0xff] %vm7718_vm14, %v7629_v35  ;;  %v7945_v50 = vld [vmem:[#allocation3 + $0x8] sm:$0xff] }
 0x902   : > { %7721 = vst.msk [vmem:[#allocation3 + $0x10] sm:$0xff] %vm7718_vm14, %v7627_v54  ;;  %10268 = vmatmul.mubr.msk.f32.vlgmr.msra.gmra.mrb[32].mxu0 %vm7989_vm2, %v7945_v50  ;;  %7272 = vrot.lane.b32.xlu1 %v14404_v61, %s10464_s12  ;;  %v14750_v54 = vld [vmem:[#allocation2 + $0x1c8] sm:$0xff]  ;;  %v14753_v61 = vld [vmem:[#allocation2 + $0x1d0] sm:$0xff] }
 0x903   : > { %7847 = vrot.lane.b32.xlu0 %v15885_v21, %s10467_s15  ;;  %v14755_v21 = vld [vmem:[#allocation2 + $0x1c9] sm:$0xff] }
 0x904   : > { %v7245_v23 = vpop.permute.xlu1 %7244 }
 0x905   : > { %v7820_v18 = vpop.permute.xlu0 %7819  ;;  %7337 = vst.msk [vmem:[#allocation3 + $0x20] sm:$0xff] %vm7332_vm12, %v7245_v23  ;;  %v14766_v23 = vld [vmem:[#allocation2 + $0x1cc] sm:$0xff] }
 0x906   : > { %7914 = vst.msk [vmem:[#allocation3 + $0x10] sm:$0xff] %vm7911_vm15, %v7820_v18  ;;  %7274 = vrot.lane.b32.xlu1 %v14423_v30, %s10464_s12  ;;  %v14762_v30 = vld [vmem:[#allocation2 + $0x1ca] sm:$0xff]  ;;  %15888 = vst [vmem:[#allocation59_spill] sm:$0xff] %v14766_v23  ;;  %v14770_v18 = vld [vmem:[#allocation2 + $0x1d2] sm:$0xff] }
 0x907   : > { %7849 = vrot.lane.b32.xlu0 %v14376_v48, %s10467_s15  ;;  %v14764_v48 = vld [vmem:[#allocation2 + $0x1cb] sm:$0xff] }
 0x908   : > { %v7247_v35 = vpop.permute.xlu1 %7246  ;;  %15887 = vst [vmem:[#allocation58_spill] sm:$0xff] %v14764_v48  ;;  %8638 = vst.msk [vmem:[#allocation2 + $0x1c8] sm:$0xff] %vm366_vm0, %v15846_v16 }
 0x909   : > { %v7822_v50 = vpop.permute.xlu0 %7821  ;;  %7338 = vst.msk [vmem:[#allocation3 + $0x28] sm:$0xff] %vm7332_vm12, %v7247_v35  ;;  %v14772_v35 = vld [vmem:[#allocation2 + $0x1d3] sm:$0xff] }
 0x90a   : > { %7915 = vst.msk [vmem:[#allocation3 + $0x18] sm:$0xff] %vm7911_vm15, %v7822_v50  ;;  %7467 = vrot.lane.b32.xlu1 %v14428_v56, %s10465_s19  ;;  %v14776_v50 = vld [vmem:[#allocation2 + $0x1d4] sm:$0xff] }
 0x90b   : > { %7465 = vrot.lane.b32.xlu0 %v14408_v38, %s10465_s19  ;;  %15889 = vst [vmem:[#allocation60_spill] sm:$0xff] %v14776_v50  ;;  %8639 = vst.msk [vmem:[#allocation2 + $0x1d0] sm:$0xff] %vm366_vm0, %v15846_v16 }
 0x90c   : > { %v7440_v4 = vpop.permute.xlu1 %7439  ;;  %8640 = vst.msk [vmem:[#allocation2 + $0x1d8] sm:$0xf] %vm832_vm1, %v15846_v16  ;;  %vm9744_vm1 = vcmask 130160  }
 0x90d   : > { %v7438_v56 = vpop.permute.xlu0 %7437  ;;  %7531 = vst.msk [vmem:[#allocation3 + $0x28] sm:$0xff] %vm7525_vm13, %v7440_v4  ;;  %v7946_v38 = vld [vmem:[#allocation3 + $0x10] sm:$0xff] }
 0x90e   : > { %7530 = vst.msk [vmem:[#allocation3 + $0x20] sm:$0xff] %vm7525_vm13, %v7438_v56  ;;  %10270 = vmatprep.mubr.msk.f32.mxu0 %vm7989_vm2, %v7946_v38  ;;  %7083 = vrot.lane.b32.xlu1 %v14460_v10, %s10463_s28 }
 0x90f   : > { %7658 = vrot.lane.b32.xlu0 %v14410_v0, %s10466_s20 }
 0x910   : > { %v7633_v23 = vpop.permute.xlu1 %7632 }
 0x911   : > { %v7631_v50 = vpop.permute.xlu0 %7630  ;;  %7724 = vst.msk [vmem:[#allocation3 + $0x28] sm:$0xff] %vm7718_vm14, %v7633_v23  ;;  %v7947_v48 = vld [vmem:[#allocation3 + $0x18] sm:$0xff] }
 0x912   : > { %7723 = vst.msk [vmem:[#allocation3 + $0x20] sm:$0xff] %vm7718_vm14, %v7631_v50  ;;  %10271 = vmatmul.mubr.msk.f32.gmra.mrb[34].mxu0 %vm7989_vm2, %v7947_v48  ;;  %7851 = vrot.lane.b32.xlu1 %v14412_v8, %s10467_s15 }
 0x913   : > { %7660 = vrot.lane.b32.xlu0 %v14430_v41, %s10466_s20 }
 0x914   : > { %v7249_v16 = vpop.permute.xlu1 %7248 }
 0x915   : > { %v7824_v10 = vpop.permute.xlu0 %7823  ;;  %7339 = vst.msk [vmem:[#allocation3 + $0x30] sm:$0xff] %vm7332_vm12, %v7249_v16 }
 0x916   : > { %7916 = vst.msk [vmem:[#allocation3 + $0x20] sm:$0xff] %vm7911_vm15, %v7824_v10  ;;  %7276 = vrot.lane.b32.xlu1 %v14462_v14, %s10464_s12 }
 0x917   : > { %7085 = vrot.lane.b32.xlu0 %v14481_v24, %s10463_s28 }
 0x918   : > { %v7251_v0 = vpop.permute.xlu1 %7250 }
 0x919   : > { %v7826_v4 = vpop.permute.xlu0 %7825  ;;  %7340 = vst.msk [vmem:[#allocation3 + $0x38] sm:$0xff] %vm7332_vm12, %v7251_v0 }
 0x91a   : > { %7917 = vst.msk [vmem:[#allocation3 + $0x28] sm:$0xff] %vm7911_vm15, %v7826_v4  ;;  %7278 = vrot.lane.b32.xlu1 %v14483_v27, %s10464_s12 }
 0x91b   : > { %7853 = vrot.lane.b32.xlu0 %v14432_v7, %s10467_s15 }
 0x91c   : > { %v7444_v8 = vpop.permute.xlu1 %7443 }
 0x91d   : > { %v7442_v41 = vpop.permute.xlu0 %7441  ;;  %7533 = vst.msk [vmem:[#allocation3 + $0x38] sm:$0xff] %vm7525_vm13, %v7444_v8  ;;  %v7948_v14 = vld [vmem:[#allocation3 + $0x20] sm:$0xff] }
 0x91e   : > { %7532 = vst.msk [vmem:[#allocation3 + $0x30] sm:$0xff] %vm7525_vm13, %v7442_v41  ;;  %10273 = vmatprep.mubr.msk.f32.mxu0 %vm7989_vm2, %v7948_v14  ;;  %7471 = vrot.lane.b32.xlu1 %v14488_v13, %s10465_s19  ;;  %v15890_v14 = vld [vmem:[#allocation54_spill] sm:$0xff] }
 0x91f   : > { %7469 = vrot.lane.b32.xlu0 %v14466_v17, %s10465_s19 }
 0x920   : > { %v7637_v24 = vpop.permute.xlu1 %7636 }
 0x921   : > { %v7635_v27 = vpop.permute.xlu0 %7634  ;;  %7726 = vst.msk [vmem:[#allocation3 + $0x38] sm:$0xff] %vm7718_vm14, %v7637_v24  ;;  %v7949_v7 = vld [vmem:[#allocation3 + $0x28] sm:$0xff] }
 0x922   : > { %7725 = vst.msk [vmem:[#allocation3 + $0x30] sm:$0xff] %vm7718_vm14, %v7635_v27  ;;  %10274 = vmatmul.mubr.msk.f32.gmra.mrb[36].mxu0 %vm7989_vm2, %v7949_v7  ;;  %7087 = vrot.lane.b32.xlu1 %v14520_v51, %s10463_s28 }
 0x923   : > { %7662 = vrot.lane.b32.xlu0 %v14468_v53, %s10466_s20 }
 0x924   : > { %v7253_v48 = vpop.permute.xlu1 %7252 }
 0x925   : > { %v7828_v13 = vpop.permute.xlu0 %7827  ;;  %7341 = vst.msk [vmem:[#allocation3 + $0x40] sm:$0xff] %vm7332_vm12, %v7253_v48  ;;  %v8705_v48 = vld [vmem:[#allocation2 + $0x1] sm:$0xff] }
 0x926   : > { %7918 = vst.msk [vmem:[#allocation3 + $0x30] sm:$0xff] %vm7911_vm15, %v7828_v13  ;;  %7855 = vrot.lane.b32.xlu1 %v14470_v28, %s10467_s15 }
 0x927   : > { %7664 = vrot.lane.b32.xlu0 %v14490_v15, %s10466_s20 }
 0x928   : > { %v7255_v17 = vpop.permute.xlu1 %7254 }
 0x929   : > { %v7830_v23 = vpop.permute.xlu0 %7829  ;;  %7342 = vst.msk [vmem:[#allocation3 + $0x48] sm:$0xff] %vm7332_vm12, %v7255_v17  ;;  %v8674_v17 = vld [vmem:[#allocation2 + $0x8] sm:$0xff] }
 0x92a   : > { %7919 = vst.msk [vmem:[#allocation3 + $0x38] sm:$0xff] %vm7911_vm15, %v7830_v23  ;;  %7280 = vrot.lane.b32.xlu1 %v14522_v45, %s10464_s12  ;;  %v8706_v23 = vld [vmem:[#allocation2 + $0x9] sm:$0xff] }
 0x92b   : > { %7089 = vrot.lane.b32.xlu0 %v14541_v44, %s10463_s28 }
 0x92c   : > { %v7448_v53 = vpop.permute.xlu1 %7447 }
 0x92d   : > { %v7446_v51 = vpop.permute.xlu0 %7445  ;;  %7535 = vst.msk [vmem:[#allocation3 + $0x48] sm:$0xff] %vm7525_vm13, %v7448_v53  ;;  %v7950_v28 = vld [vmem:[#allocation3 + $0x30] sm:$0xff] }
 0x92e   : > { %7534 = vst.msk [vmem:[#allocation3 + $0x40] sm:$0xff] %vm7525_vm13, %v7446_v51  ;;  %10276 = vmatprep.mubr.msk.f32.mxu0 %vm7989_vm2, %v7950_v28  ;;  %7282 = vrot.lane.b32.xlu1 %v14543_v9, %s10464_s12  ;;  %v8769_v51 = vld [vmem:[#allocation2 + $0x2] sm:$0xff] }
 0x92f   : > { %7857 = vrot.lane.b32.xlu0 %v14492_v12, %s10467_s15 }
 0x930   : > { %v7641_v15 = vpop.permute.xlu1 %7640 }
 0x931   : > { %v7639_v45 = vpop.permute.xlu0 %7638  ;;  %7728 = vst.msk [vmem:[#allocation3 + $0x48] sm:$0xff] %vm7718_vm14, %v7641_v15  ;;  %v7951_v44 = vld [vmem:[#allocation3 + $0x38] sm:$0xff] }
 0x932   : > { %7727 = vst.msk [vmem:[#allocation3 + $0x40] sm:$0xff] %vm7718_vm14, %v7639_v45  ;;  %10277 = vmatmul.mubr.msk.f32.gmra.mrb[38].mxu0 %vm7989_vm2, %v7951_v44  ;;  %7475 = vrot.lane.b32.xlu1 %v14548_v49, %s10465_s19  ;;  %v8770_v44 = vld [vmem:[#allocation2 + $0xa] sm:$0xff] }
 0x933   : > { %7473 = vrot.lane.b32.xlu0 %v14526_v52, %s10465_s19 }
 0x934   : > { %v7257_v50 = vpop.permute.xlu1 %7256 }
 0x935   : > { %v7832_v9 = vpop.permute.xlu0 %7831  ;;  %7343 = vst.msk [vmem:[#allocation3 + $0x50] sm:$0xff] %vm7332_vm12, %v7257_v50  ;;  %v8897_v50 = vld [vmem:[#allocation2 + $0x19] sm:$0xff] }
 0x936   : > { %7920 = vst.msk [vmem:[#allocation3 + $0x40] sm:$0xff] %vm7911_vm15, %v7832_v9  ;;  %7091 = vrot.lane.b32.xlu1 %v14580_v34, %s10463_s28 }
 0x937   : > { %7666 = vrot.lane.b32.xlu0 %v14528_v22, %s10466_s20 }
 0x938   : > { %v7259_v12 = vpop.permute.xlu1 %7258 }
 0x939   : > { %v7834_v56 = vpop.permute.xlu0 %7833  ;;  %7344 = vst.msk [vmem:[#allocation3 + $0x58] sm:$0xff] %vm7332_vm12, %v7259_v12  ;;  %v15893_v12 = vld [vmem:[#allocation56_spill] sm:$0xff] }
 0x93a   : > { %7921 = vst.msk [vmem:[#allocation3 + $0x48] sm:$0xff] %vm7911_vm15, %v7834_v56  ;;  %7859 = vrot.lane.b32.xlu1 %v14530_v39, %s10467_s15 }
 0x93b   : > { %7668 = vrot.lane.b32.xlu0 %v14550_v20, %s10466_s20 }
 0x93c   : > { %v7452_v52 = vpop.permute.xlu1 %7451 }
 0x93d   : > { %v7450_v49 = vpop.permute.xlu0 %7449  ;;  %7537 = vst.msk [vmem:[#allocation3 + $0x58] sm:$0xff] %vm7525_vm13, %v7452_v52  ;;  %v7952_v34 = vld [vmem:[#allocation3 + $0x40] sm:$0xff] }
 0x93e   : > { %7536 = vst.msk [vmem:[#allocation3 + $0x50] sm:$0xff] %vm7525_vm13, %v7450_v49  ;;  %10279 = vmatprep.mubr.msk.f32.mxu0 %vm7989_vm2, %v7952_v34  ;;  %7284 = vrot.lane.b32.xlu1 %v14582_v5, %s10464_s12  ;;  %v8834_v52 = vld [vmem:[#allocation2 + $0x20] sm:$0xff] }
 0x93f   : > { %7093 = vrot.lane.b32.xlu0 %v14601_v63, %s10463_s28  ;;  %v8898_v49 = vld [vmem:[#allocation2 + $0x21] sm:$0xff] }
 0x940   : > { %v7645_v22 = vpop.permute.xlu1 %7644 }
 0x941   : > { %v7643_v39 = vpop.permute.xlu0 %7642  ;;  %7730 = vst.msk [vmem:[#allocation3 + $0x58] sm:$0xff] %vm7718_vm14, %v7645_v22  ;;  %v7953_v20 = vld [vmem:[#allocation3 + $0x48] sm:$0xff] }
 0x942   : > { %7729 = vst.msk [vmem:[#allocation3 + $0x50] sm:$0xff] %vm7718_vm14, %v7643_v39  ;;  %10280 = vmatmul.mubr.msk.f32.gmra.mrb[40].mxu0 %vm7989_vm2, %v7953_v20  ;;  %7286 = vrot.lane.b32.xlu1 %v14603_v33, %s10464_s12  ;;  %v8961_v39 = vld [vmem:[#allocation2 + $0x1a] sm:$0xff] }
 0x943   : > { %7861 = vrot.lane.b32.xlu0 %v14552_v43, %s10467_s15  ;;  %v9217_v43 = vld [vmem:[%s15547_s7] sm:$0xf] }
 0x944   : > { %v7261_v38 = vpop.permute.xlu1 %7260  ;;  %10315 = vmatprep.subr.msk.mxu0 %vm463_vm8, %v9217_v43  ;;  %10397 = vmatprep.subr.msk.mxu1 %vm463_vm8, %v9217_v43 }
 0x945   : > { %v7836_v5 = vpop.permute.xlu0 %7835  ;;  %7345 = vst.msk [vmem:[#allocation3 + $0x60] sm:$0xff] %vm7332_vm12, %v7261_v38  ;;  %10316 = vmatpush3.msk.msra.mxu0 %vm463_vm8, %v9217_v43  ;;  %10398 = vmatpush3.msk.msra.mxu1 %vm463_vm8, %v9217_v43  ;;  %v8740_v38 = vmax.f32 %v8834_v52, %v8898_v49  ;;  %v8962_v43 = vld [vmem:[#allocation2 + $0x22] sm:$0xff] }
 0x946   : > { %7922 = vst.msk [vmem:[#allocation3 + $0x50] sm:$0xff] %vm7911_vm15, %v7836_v5  ;;  %7479 = vrot.lane.b32.xlu1 %v14608_v47, %s10465_s19 }
 0x947   : > { %7477 = vrot.lane.b32.xlu0 %v14586_v3, %s10465_s19 }
 0x948   : > { %v7263_v63 = vpop.permute.xlu1 %7262 }
 0x949   : > { %v7838_v16 = vpop.permute.xlu0 %7837  ;;  %7346 = vst.msk [vmem:[#allocation3 + $0x68] sm:$0xff] %vm7332_vm12, %v7263_v63 }
 0x94a   : > { %7923 = vst.msk [vmem:[#allocation3 + $0x58] sm:$0xff] %vm7911_vm15, %v7838_v16  ;;  %7095 = vrot.lane.b32.xlu1 %v14640_v58, %s10463_s28 }
 0x94b   : > { %7670 = vrot.lane.b32.xlu0 %v14588_v11, %s10466_s20 }
 0x94c   : > { %v7456_v33 = vpop.permute.xlu1 %7455 }
 0x94d   : > { %v7454_v3 = vpop.permute.xlu0 %7453  ;;  %7539 = vst.msk [vmem:[#allocation3 + $0x68] sm:$0xff] %vm7525_vm13, %v7456_v33  ;;  %v7954_v47 = vld [vmem:[#allocation3 + $0x50] sm:$0xff] }
 0x94e   : > { %7538 = vst.msk [vmem:[#allocation3 + $0x60] sm:$0xff] %vm7525_vm13, %v7454_v3  ;;  %10282 = vmatprep.mubr.msk.f32.mxu0 %vm7989_vm2, %v7954_v47  ;;  %7863 = vrot.lane.b32.xlu1 %v14590_v55, %s10467_s15  ;;  %v9025_v3 = vld [vmem:[#allocation2 + $0x30] sm:$0xff] }
 0x94f   : > { %7672 = vrot.lane.b32.xlu0 %v14610_v2, %s10466_s20  ;;  %v9089_v47 = vld [vmem:[#allocation2 + $0x31] sm:$0xff] }
 0x950   : > { %v7649_v11 = vpop.permute.xlu1 %7648 }
 0x951   : > { %v7647_v58 = vpop.permute.xlu0 %7646  ;;  %7732 = vst.msk [vmem:[#allocation3 + $0x68] sm:$0xff] %vm7718_vm14, %v7649_v11  ;;  %v7955_v10 = vld [vmem:[#allocation3 + $0x58] sm:$0xff] }
 0x952   : > { %7731 = vst.msk [vmem:[#allocation3 + $0x60] sm:$0xff] %vm7718_vm14, %v7647_v58  ;;  %10283 = vmatmul.mubr.msk.f32.gmra.mrb[42].mxu0 %vm7989_vm2, %v7955_v10  ;;  %7288 = vrot.lane.b32.xlu1 %v14642_v62, %s10464_s12  ;;  %v8804_v58 = vmax.f32 %v8740_v38, %v8962_v43 }
 0x953   : > { %7097 = vrot.lane.b32.xlu0 %v14661_v36, %s10463_s28 }
 0x954   : > { %v7265_v0 = vpop.permute.xlu1 %7264 }
 0x955   : > { %v7840_v55 = vpop.permute.xlu0 %7839  ;;  %7347 = vst.msk [vmem:[#allocation3 + $0x70] sm:$0xff] %vm7332_vm12, %v7265_v0  ;;  %v9026_v0 = vld [vmem:[#allocation2 + $0x38] sm:$0xff] }
 0x956   : > { %7924 = vst.msk [vmem:[#allocation3 + $0x60] sm:$0xff] %vm7911_vm15, %v7840_v55  ;;  %7290 = vrot.lane.b32.xlu1 %v14663_v29, %s10464_s12  ;;  %v9090_v55 = vld [vmem:[#allocation2 + $0x39] sm:$0xff] }
 0x957   : > { %7865 = vrot.lane.b32.xlu0 %v14612_v19, %s10467_s15 }
 0x958   : > { %v7267_v2 = vpop.permute.xlu1 %7266 }
 0x959   : > { %v7842_v4 = vpop.permute.xlu0 %7841  ;;  %7348 = vst.msk [vmem:[#allocation3 + $0x78] sm:$0xff] %vm7332_vm12, %v7267_v2 }
 0x95a   : > { %7925 = vst.msk [vmem:[#allocation3 + $0x68] sm:$0xff] %vm7911_vm15, %v7842_v4  ;;  %7483 = vrot.lane.b32.xlu1 %v14668_v42, %s10465_s19  ;;  %v8741_v4 = vmax.f32 %v9025_v3, %v9089_v47 }
 0x95b   : > { %7481 = vrot.lane.b32.xlu0 %v14646_v57, %s10465_s19 }
 0x95c   : > { %v7460_v62 = vpop.permute.xlu1 %7459 }
 0x95d   : > { %v7458_v36 = vpop.permute.xlu0 %7457  ;;  %7541 = vst.msk [vmem:[#allocation3 + $0x78] sm:$0xff] %vm7525_vm13, %v7460_v62  ;;  %v7956_v29 = vld [vmem:[#allocation3 + $0x60] sm:$0xff] }
 0x95e   : > { %7540 = vst.msk [vmem:[#allocation3 + $0x70] sm:$0xff] %vm7525_vm13, %v7458_v36  ;;  %10285 = vmatprep.mubr.msk.f32.mxu0 %vm7989_vm2, %v7956_v29  ;;  %7099 = vrot.lane.b32.xlu1 %v14696_v31, %s10463_s28  ;;  %v9153_v36 = vld [vmem:[#allocation2 + $0x32] sm:$0xff] }
 0x95f   : > { %7674 = vrot.lane.b32.xlu0 %v14648_v32, %s10466_s20 }
 0x960   : > { %v7653_v19 = vpop.permute.xlu1 %7652 }
 0x961   : > { %v7651_v42 = vpop.permute.xlu0 %7650  ;;  %7734 = vst.msk [vmem:[#allocation3 + $0x78] sm:$0xff] %vm7718_vm14, %v7653_v19  ;;  %v7957_v57 = vld [vmem:[#allocation3 + $0x68] sm:$0xff]  ;;  %v8868_v19 = vmax.f32 %v8804_v58, %v9026_v0 }
 0x962   : > { %7733 = vst.msk [vmem:[#allocation3 + $0x70] sm:$0xff] %vm7718_vm14, %v7651_v42  ;;  %10286 = vmatmul.mubr.msk.f32.gmra.mrb[44].mxu0 %vm7989_vm2, %v7957_v57  ;;  %7867 = vrot.lane.b32.xlu1 %v14650_v26, %s10467_s15  ;;  %v8742_v42 = vmax.f32 %v9026_v0, %v9090_v55  ;;  %v9158_v58 = vld [vmem:[#allocation2 + $0x6a] sm:$0xff] }
 0x963   : > { %7676 = vrot.lane.b32.xlu0 %v14670_v6, %s10466_s20 }
 0x964   : > { %v7269_v8 = vpop.permute.xlu1 %7268 }
 0x965   : > { %v7844_v31 = vpop.permute.xlu0 %7843  ;;  %7349 = vst.msk [vmem:[#allocation3 + $0x80] sm:$0xff] %vm7332_vm12, %v7269_v8  ;;  %v9154_v8 = vld [vmem:[#allocation2 + $0x3a] sm:$0xff] }
 0x966   : > { %7926 = vst.msk [vmem:[#allocation3 + $0x70] sm:$0xff] %vm7911_vm15, %v7844_v31  ;;  %7292 = vrot.lane.b32.xlu1 %v14698_v40, %s10464_s12 }
 0x967   : > { %7101 = vrot.lane.b32.xlu0 %v14717_v25, %s10463_s28 }
 0x968   : > { %v7271_v32 = vpop.permute.xlu1 %7270 }
 0x969   : > { %v7846_v41 = vpop.permute.xlu0 %7845  ;;  %7350 = vst.msk [vmem:[#allocation3 + $0x88] sm:$0xff] %vm7332_vm12, %v7271_v32  ;;  %v8805_v32 = vmax.f32 %v8741_v4, %v9153_v36  ;;  %v9031_v4 = vld [vmem:[#allocation2 + $0x78] sm:$0xff] }
 0x96a   : > { %7927 = vst.msk [vmem:[#allocation3 + $0x78] sm:$0xff] %vm7911_vm15, %v7846_v41  ;;  %7294 = vrot.lane.b32.xlu1 %v14719_v59, %s10464_s12  ;;  %v9027_v41 = vld [vmem:[#allocation2 + $0x48] sm:$0xff] }
 0x96b   : > { %7869 = vrot.lane.b32.xlu0 %v14672_v1, %s10467_s15 }
 0x96c   : > { %v7464_v26 = vpop.permute.xlu1 %7463 }
 0x96d   : > { %v7462_v6 = vpop.permute.xlu0 %7461  ;;  %7543 = vst.msk [vmem:[#allocation3 + $0x88] sm:$0xff] %vm7525_vm13, %v7464_v26  ;;  %v7958_v40 = vld [vmem:[#allocation3 + $0x70] sm:$0xff] }
 0x96e   : > { %7542 = vst.msk [vmem:[#allocation3 + $0x80] sm:$0xff] %vm7525_vm13, %v7462_v6  ;;  %10288 = vmatprep.mubr.msk.f32.mxu0 %vm7989_vm2, %v7958_v40  ;;  %7487 = vrot.lane.b32.xlu1 %v14725_v60, %s10465_s19  ;;  %v9091_v26 = vld [vmem:[#allocation2 + $0x49] sm:$0xff]  ;;  %v8932_v6 = vmax.f32 %v8868_v19, %v9090_v55  ;;  %v8806_v40 = vmax.f32 %v8742_v42, %v9154_v8 }
 0x96f   : > { %7485 = vrot.lane.b32.xlu0 %v14702_v46, %s10465_s19  ;;  %v15891_v46 = vld [vmem:[#allocation55_spill] sm:$0xff] }
 0x970   : > { %v7657_v25 = vpop.permute.xlu1 %7656 }
 0x971   : > { %v7655_v59 = vpop.permute.xlu0 %7654  ;;  %7736 = vst.msk [vmem:[#allocation3 + $0x88] sm:$0xff] %vm7718_vm14, %v7657_v25  ;;  %v7959_v1 = vld [vmem:[#allocation3 + $0x78] sm:$0xff]  ;;  %v15894_v25 = vld [vmem:[#allocation58_spill] sm:$0xff] }
 0x972   : > { %7735 = vst.msk [vmem:[#allocation3 + $0x80] sm:$0xff] %vm7718_vm14, %v7655_v59  ;;  %10289 = vmatmul.mubr.msk.f32.gmra.mrb[46].mxu0 %vm7989_vm2, %v7959_v1  ;;  %7103 = vrot.lane.b32.xlu1 %v14750_v54, %s10463_s28  ;;  %v8673_v54 = vld [vmem:[#allocation2] sm:$0xff] }
 0x973   : > { %7678 = vrot.lane.b32.xlu0 %v15890_v14, %s10466_s20  ;;  %v8737_v13 = vmax.f32 %v8673_v54, %v8705_v48  ;;  %v9028_v14 = vld [vmem:[#allocation2 + $0x50] sm:$0xff]  ;;  %v8996_v48 = vmax.f32 %v8932_v6, %v9154_v8 }
 0x974   : > { %v7273_v24 = vpop.permute.xlu1 %7272  ;;  %v9155_v54 = vld [vmem:[#allocation2 + $0x4a] sm:$0xff] }
 0x975   : > { %v7848_v60 = vpop.permute.xlu0 %7847  ;;  %7351 = vst.msk [vmem:[#allocation3 + $0x90] sm:$0xff] %vm7332_vm12, %v7273_v24  ;;  %v8801_v45 = vmax.f32 %v8737_v13, %v8769_v51  ;;  %v9092_v24 = vld [vmem:[#allocation2 + $0x51] sm:$0xff]  ;;  %v8870_v13 = vmax.f32 %v8806_v40, %v9028_v14 }
 0x976   : > { %7928 = vst.msk [vmem:[#allocation3 + $0x80] sm:$0xff] %vm7911_vm15, %v7848_v60  ;;  %7871 = vrot.lane.b32.xlu1 %v15891_v46, %s10467_s15  ;;  %v8869_v60 = vmax.f32 %v8805_v32, %v9027_v41  ;;  %v8743_v46 = vmax.f32 %v9027_v41, %v9091_v26  ;;  %v9156_v51 = vld [vmem:[#allocation2 + $0x52] sm:$0xff] }
 0x977   : > { %7680 = vrot.lane.b32.xlu0 %v14727_v37, %s10466_s20  ;;  %v8738_v37 = vmax.f32 %v8674_v17, %v8706_v23 }
 0x978   : > { %v7275_v27 = vpop.permute.xlu1 %7274 }
 0x979   : > { %v7850_v7 = vpop.permute.xlu0 %7849  ;;  %7352 = vst.msk [vmem:[#allocation3 + $0x98] sm:$0xff] %vm7332_vm12, %v7275_v27  ;;  %v8802_v9 = vmax.f32 %v8738_v37, %v8770_v44  ;;  %v8933_v37 = vmax.f32 %v8869_v60, %v9091_v26  ;;  %v9060_v44 = vmax.f32 %v8996_v48, %v9028_v14 }
 0x97a   : > { %7929 = vst.msk [vmem:[#allocation3 + $0x88] sm:$0xff] %vm7911_vm15, %v7850_v7  ;;  %7296 = vrot.lane.b32.xlu1 %v14755_v21, %s10464_s12  ;;  %v15892_v21 = vld [vmem:[#allocation57_spill] sm:$0xff] }
 0x97b   : > { %7105 = vrot.lane.b32.xlu0 %v14753_v61, %s10463_s28  ;;  %v8833_v61 = vld [vmem:[#allocation2 + $0x18] sm:$0xff]  ;;  %v8866_v20 = vmax.f32 %v8802_v9, %v8834_v52  ;;  %v8997_v52 = vmax.f32 %v8933_v37, %v9155_v54 }
 0x97c   : > { %v7468_v53 = vpop.permute.xlu1 %7467  ;;  %v8865_v56 = vmax.f32 %v8801_v45, %v8833_v61  ;;  %v8739_v34 = vmax.f32 %v8833_v61, %v8897_v50  ;;  %v9093_v61 = vld [vmem:[#allocation2 + $0x61] sm:$0xff] }
 0x97d   : > { %v7466_v28 = vpop.permute.xlu0 %7465  ;;  %7545 = vst.msk [vmem:[#allocation3 + $0x98] sm:$0xff] %vm7525_vm13, %v7468_v53  ;;  %v7960_v15 = vld [vmem:[#allocation3 + $0x80] sm:$0xff]  ;;  %v8930_v11 = vmax.f32 %v8866_v20, %v8898_v49  ;;  %v9030_v49 = vld [vmem:[#allocation2 + $0x68] sm:$0xff] }
 0x97e   : > { %7544 = vst.msk [vmem:[#allocation3 + $0x90] sm:$0xff] %vm7525_vm13, %v7466_v28  ;;  %10291 = vmatprep.mubr.msk.f32.mxu0 %vm7989_vm2, %v7960_v15  ;;  %7298 = vrot.lane.b32.xlu1 %v15892_v21, %s10464_s12  ;;  %v8929_v16 = vmax.f32 %v8865_v56, %v8897_v50  ;;  %v8803_v33 = vmax.f32 %v8739_v34, %v8961_v39  ;;  %v15895_v15 = vld [vmem:[#allocation60_spill] sm:$0xff]  ;;  %v9094_v34 = vld [vmem:[#allocation2 + $0x69] sm:$0xff] }
 0x97f   : > { %7873 = vrot.lane.b32.xlu0 %v15893_v12, %s10467_s15  ;;  %v8994_v29 = vmax.f32 %v8930_v11, %v8962_v43  ;;  %v8807_v28 = vmax.f32 %v8743_v46, %v9155_v54  ;;  %v9029_v21 = vld [vmem:[#allocation2 + $0x60] sm:$0xff]  ;;  %v8934_v50 = vmax.f32 %v8870_v13, %v9092_v24  ;;  %v15896_v12 = vld [vmem:[#allocation59_spill] sm:$0xff] }
 0x980   : > { %v7084_v22 = vpop.permute.xlu1 %7083  ;;  %v8993_v10 = vmax.f32 %v8929_v16, %v8961_v39  ;;  %v8867_v2 = vmax.f32 %v8803_v33, %v9025_v3  ;;  %v8745_v39 = vmax.f32 %v9029_v21, %v9093_v61  ;;  %v8746_v33 = vmax.f32 %v9030_v49, %v9094_v34 }
 0x981   : > { %v7659_v5 = vpop.permute.xlu0 %7658  ;;  %7160 = vst.msk [vmem:[#allocation3 + $0xa0] sm:$0xff] %vm7139_vm11, %v7084_v22  ;;  %v7961_v63 = vld [vmem:[#allocation3 + $0x88] sm:$0xff]  ;;  %v8871_v22 = vmax.f32 %v8807_v28, %v9029_v21  ;;  %v8998_v16 = vmax.f32 %v8934_v50, %v9156_v51  ;;  %v9061_v11 = vmax.f32 %v8997_v52, %v9029_v21  ;;  %v9161_v21 = vld [vmem:[#allocation2 + $0x92] sm:$0xff] }
 0x982   : > { %7737 = vst.msk [vmem:[#allocation3 + $0x90] sm:$0xff] %vm7718_vm14, %v7659_v5  ;;  %10292 = vmatmul.mubr.msk.f32.gmra.mrb[48].mxu0 %vm7989_vm2, %v7961_v63  ;;  %7491 = vrot.lane.b32.xlu1 %v14770_v18, %s10465_s19  ;;  %v9057_v18 = vmax.f32 %v8993_v10, %v9025_v3  ;;  %v8931_v31 = vmax.f32 %v8867_v2, %v9089_v47  ;;  %v9157_v63 = vld [vmem:[#allocation2 + $0x62] sm:$0xff] }
 0x983   : > { %7489 = vrot.lane.b32.xlu0 %v14762_v30, %s10465_s19  ;;  %v9058_v30 = vmax.f32 %v8994_v29, %v9026_v0  ;;  %v9124_v5 = vmax.f32 %v9060_v44, %v9092_v24  ;;  %v8935_v10 = vmax.f32 %v8871_v22, %v9093_v61  ;;  %v8809_v0 = vmax.f32 %v8745_v39, %v9157_v63 }
 0x984   : > { %v7852_v62 = vpop.permute.xlu1 %7851  ;;  %v9121_v59 = vmax.f32 %v9057_v18, %v9089_v47  ;;  %v8995_v1 = vmax.f32 %v8931_v31, %v9153_v36  ;;  %v9062_v2 = vmax.f32 %v8998_v16, %v9030_v49  ;;  %v8810_v29 = vmax.f32 %v8746_v33, %v9158_v58  ;;  %v9096_v18 = vld [vmem:[#allocation2 + $0x81] sm:$0xff] }
 0x985   : > { %v7661_v57 = vpop.permute.xlu0 %7660  ;;  %7930 = vst.msk [vmem:[#allocation3 + $0x90] sm:$0xff] %vm7911_vm15, %v7852_v62  ;;  %v9122_v7 = vmax.f32 %v9058_v30, %v9090_v55  ;;  %v9188_v55 = vmax.f32 %v9124_v5, %v9156_v51  ;;  %v9095_v62 = vld [vmem:[#allocation2 + $0x79] sm:$0xff]  ;;  %v9125_v19 = vmax.f32 %v9061_v11, %v9093_v61  ;;  %v8999_v42 = vmax.f32 %v8935_v10, %v9157_v63  ;;  %v9035_v5 = vld [vmem:[#allocation2 + $0xa8] sm:$0xff]  ;;  %v9100_v11 = vld [vmem:[#allocation2 + $0xb1] sm:$0xff] }
 0x986   : > { %7738 = vst.msk [vmem:[#allocation3 + $0x98] sm:$0xff] %vm7718_vm14, %v7661_v57  ;;  %7684 = vrot.lane.b32.xlu1 %v14772_v35, %s10466_s20  ;;  %v8744_v35 = vmax.f32 %v9028_v14, %v9092_v24  ;;  %v14992_v23 = vmax.f32 %v9121_v59, %v9153_v36  ;;  %v9059_v53 = vmax.f32 %v8995_v1, %v9027_v41  ;;  %v9032_v57 = vld [vmem:[#allocation2 + $0x80] sm:$0xff] }
 0x987   : > { %7682 = vrot.lane.b32.xlu0 %v15894_v25, %s10466_s20  ;;  %v14997_v45 = vmax.f32 %v9122_v7, %v9154_v8  ;;  %v8873_v8 = vmax.f32 %v8809_v0, %v9031_v4  ;;  %v8747_v31 = vmax.f32 %v9031_v4, %v9095_v62  ;;  %v9126_v30 = vmax.f32 %v9062_v2, %v9094_v34  ;;  %v9159_v41 = vld [vmem:[#allocation2 + $0x7a] sm:$0xff]  ;;  %v9160_v14 = vld [vmem:[#allocation2 + $0x82] sm:$0xff]  ;;  %v9033_v7 = vld [vmem:[#allocation2 + $0x90] sm:$0xff] }
 0x988   : > { %v7277_v27 = vpop.permute.xlu1 %7276  ;;  %v8808_v9 = vmax.f32 %v8744_v35, %v9156_v51  ;;  %v9123_v56 = vmax.f32 %v9059_v53, %v9091_v26  ;;  %v8874_v6 = vmax.f32 %v8810_v29, %v9032_v57  ;;  %v8748_v40 = vmax.f32 %v9032_v57, %v9096_v18  ;;  %v9034_v53 = vld [vmem:[#allocation2 + $0x98] sm:$0xff]  ;;  %v9163_v2 = vld [vmem:[#allocation2 + $0xaa] sm:$0xff] }
 0x989   : > { %v7086_v17 = vpop.permute.xlu0 %7085  ;;  %7353 = vst.msk [vmem:[#allocation3 + $0xa0] sm:$0xff] %vm7332_vm12, %v7277_v27  ;;  %v9189_v59 = vmax.f32 %v9125_v19, %v9157_v63  ;;  %v9063_v1 = vmax.f32 %v8999_v42, %v9031_v4  ;;  %v8937_v24 = vmax.f32 %v8873_v8, %v9095_v62  ;;  %v8811_v60 = vmax.f32 %v8747_v31, %v9159_v41  ;;  %v9098_v51 = vld [vmem:[#allocation2 + $0x99] sm:$0xff]  ;;  %v9099_v63 = vld [vmem:[#allocation2 + $0xa9] sm:$0xff] }
 0x98a   : > { %7161 = vst.msk [vmem:[#allocation3 + $0xa8] sm:$0xff] %vm7139_vm11, %v7086_v17  ;;  %7877 = vrot.lane.b32.xlu1 %v15895_v15, %s10467_s15  ;;  %v8872_v43 = vmax.f32 %v8808_v9, %v9030_v49  ;;  %v9187_v47 = vmax.f32 %v9123_v56, %v9155_v54  ;;  %v9190_v46 = vmax.f32 %v9126_v30, %v9158_v58  ;;  %v9097_v54 = vld [vmem:[#allocation2 + $0x91] sm:$0xff]  ;;  %v9037_v30 = vld [vmem:[#allocation2 + $0xc0] sm:$0xff] }
 0x98b   : > { %7875 = vrot.lane.b32.xlu0 %v15896_v12, %s10467_s15  ;;  %v8938_v48 = vmax.f32 %v8874_v6, %v9096_v18  ;;  %v8812_v13 = vmax.f32 %v8748_v40, %v9160_v14  ;;  %v9127_v35 = vmax.f32 %v9063_v1, %v9095_v62  ;;  %v9001_v17 = vmax.f32 %v8937_v24, %v9159_v41  ;;  %v9102_v1 = vld [vmem:[#allocation2 + $0xc9] sm:$0xff] }
 0x98c   : > { %v7279_v20 = vpop.permute.xlu1 %7278  ;;  %v7962_v38 = vld [vmem:[#allocation3 + $0x90] sm:$0xff]  ;;  %v8936_v36 = vmax.f32 %v8872_v43, %v9094_v34  ;;  %10320 = vmatprep.mubr.msk.f32.mxu1 %vm366_vm0, %v9187_v47  ;;  %v8875_v37 = vmax.f32 %v8811_v60, %v9033_v7  ;;  %v8749_v28 = vmax.f32 %v9033_v7, %v9097_v54  ;;  %v8750_v9 = vmax.f32 %v9034_v53, %v9098_v51  ;;  %v9162_v34 = vld [vmem:[#allocation2 + $0x9a] sm:$0xff] }
 0x98d   : > { %v7854_v3 = vpop.permute.xlu0 %7853  ;;  %7354 = vst.msk [vmem:[#allocation3 + $0xa8] sm:$0xff] %vm7332_vm12, %v7279_v20  ;;  %10294 = vmatprep.mubr.msk.f32.mxu0 %vm7989_vm2, %v7962_v38  ;;  %10321 = vmatmul.mubr.msk.f32.vlgmr.msra.gmra.mrb[32].mxu1 %vm366_vm0, %v9188_v55  ;;  %v9002_v61 = vmax.f32 %v8938_v48, %v9160_v14  ;;  %v8876_v50 = vmax.f32 %v8812_v13, %v9034_v53  ;;  %v9036_v47 = vld [vmem:[#allocation2 + $0xb0] sm:$0xff] }
 0x98e   : > { %7931 = vst.msk [vmem:[#allocation3 + $0x98] sm:$0xff] %vm7911_vm15, %v7854_v3  ;;  %v9000_v26 = vmax.f32 %v8936_v36, %v9158_v58  ;;  %10323 = vmatprep.mubr.msk.f32.mxu1 %vm366_vm0, %v9189_v59  ;;  %v9191_v52 = vmax.f32 %v9127_v35, %v9159_v41  ;;  %v9065_v49 = vmax.f32 %v9001_v17, %v9033_v7  ;;  %v9101_v41 = vld [vmem:[#allocation2 + $0xc1] sm:$0xff] }
 0x98f   : > { %v8939_v22 = vmax.f32 %v8875_v37, %v9097_v54  ;;  %v8813_v39 = vmax.f32 %v8749_v28, %v9161_v21  ;;  %v9066_v38 = vmax.f32 %v9002_v61, %v9034_v53  ;;  %v8940_v16 = vmax.f32 %v8876_v50, %v9098_v51  ;;  %v9038_v59 = vld [vmem:[#allocation2 + $0xc8] sm:$0xff] }
 0x990   : > { %v7472_v32 = vpop.permute.xlu1 %7471  ;;  %v9064_v27 = vmax.f32 %v9000_v26, %v9032_v57  ;;  %v8814_v43 = vmax.f32 %v8750_v9, %v9162_v34  ;;  %v9129_v33 = vmax.f32 %v9065_v49, %v9097_v54  ;;  %v8751_v10 = vmax.f32 %v9035_v5, %v9099_v63  ;;  %v9164_v57 = vld [vmem:[#allocation2 + $0xb2] sm:$0xff]  ;;  %v9166_v53 = vld [vmem:[#allocation2 + $0xca] sm:$0xff] }
 0x991   : > { %v7470_v25 = vpop.permute.xlu0 %7469  ;;  %7547 = vst.msk [vmem:[#allocation3 + $0xa8] sm:$0xff] %vm7525_vm13, %v7472_v32  ;;  %10324 = vmatmul.mubr.msk.f32.gmra.mrb[34].mxu1 %vm366_vm0, %v9190_v46  ;;  %v9003_v3 = vmax.f32 %v8939_v22, %v9161_v21  ;;  %v8877_v58 = vmax.f32 %v8813_v39, %v9035_v5  ;;  %v9130_v55 = vmax.f32 %v9066_v38, %v9098_v51  ;;  %v9167_v38 = vld [vmem:[#allocation2 + $0xda] sm:$0xff] }
 0x992   : > { %7546 = vst.msk [vmem:[#allocation3 + $0xa0] sm:$0xff] %vm7525_vm13, %v7470_v25  ;;  %v9128_v44 = vmax.f32 %v9064_v27, %v9096_v18  ;;  %10326 = vmatprep.mubr.msk.f32.mxu1 %vm366_vm0, %v9191_v52  ;;  %v9004_v4 = vmax.f32 %v8940_v16, %v9162_v34  ;;  %v8878_v62 = vmax.f32 %v8814_v43, %v9036_v47  ;;  %v9165_v27 = vld [vmem:[#allocation2 + $0xc2] sm:$0xff] }
 0x993   : > { %v8752_v36 = vmax.f32 %v9036_v47, %v9100_v11  ;;  %v9193_v19 = vmax.f32 %v9129_v33, %v9161_v21  ;;  %v9067_v42 = vmax.f32 %v9003_v3, %v9035_v5  ;;  %v8941_v18 = vmax.f32 %v8877_v58, %v9099_v63  ;;  %v9103_v21 = vld [vmem:[#allocation2 + $0xd9] sm:$0xff]  ;;  %v9104_v52 = vld [vmem:[#allocation2 + $0xe1] sm:$0xff] }
 0x994   : > { %v7088_v15 = vpop.permute.xlu1 %7087  ;;  %v9192_v20 = vmax.f32 %v9128_v44, %v9160_v14  ;;  %v8815_v8 = vmax.f32 %v8751_v10, %v9163_v2  ;;  %v9194_v31 = vmax.f32 %v9130_v55, %v9162_v34  ;;  %v9068_v32 = vmax.f32 %v9004_v4, %v9036_v47  ;;  %v9039_v44 = vld [vmem:[#allocation2 + $0xd8] sm:$0xff]  ;;  %v9168_v47 = vld [vmem:[#allocation2 + $0xe2] sm:$0xff]  ;;  %v9041_v55 = vld [vmem:[#allocation2 + $0xf0] sm:$0xff] }
 0x995   : > { %v7663_v12 = vpop.permute.xlu0 %7662  ;;  %7162 = vst.msk [vmem:[#allocation3 + $0xb0] sm:$0xff] %vm7139_vm11, %v7088_v15  ;;  %v7963_v56 = vld [vmem:[#allocation3 + $0x98] sm:$0xff]  ;;  %v8942_v26 = vmax.f32 %v8878_v62, %v9100_v11  ;;  %v8816_v6 = vmax.f32 %v8752_v36, %v9164_v57  ;;  %v9131_v40 = vmax.f32 %v9067_v42, %v9099_v63  ;;  %v9005_v25 = vmax.f32 %v8941_v18, %v9163_v2 }
 0x996   : > { %7739 = vst.msk [vmem:[#allocation3 + $0xa0] sm:$0xff] %vm7718_vm14, %v7663_v12  ;;  %10295 = vmatmul.mubr.msk.f32.gmra.mrb[50].mxu0 %vm7989_vm2, %v7963_v56  ;;  %10327 = vmatmul.mubr.msk.f32.gmra.mrb[36].mxu1 %vm366_vm0, %v9192_v20  ;;  %v8879_v14 = vmax.f32 %v8815_v8, %v9037_v30  ;;  %v8753_v24 = vmax.f32 %v9037_v30, %v9101_v41  ;;  %v9040_v56 = vld [vmem:[#allocation2 + $0xe0] sm:$0xff] }
 0x997   : > { %10329 = vmatprep.mubr.msk.f32.mxu1 %vm366_vm0, %v9193_v19  ;;  %v9132_v46 = vmax.f32 %v9068_v32, %v9100_v11  ;;  %v9006_v7 = vmax.f32 %v8942_v26, %v9164_v57  ;;  %v8880_v54 = vmax.f32 %v8816_v6, %v9038_v59  ;;  %v8754_v48 = vmax.f32 %v9038_v59, %v9102_v1  ;;  %v9042_v19 = vld [vmem:[#allocation2 + $0xf8] sm:$0xff] }
 0x998   : > { %v7856_v0 = vpop.permute.xlu1 %7855  ;;  %v9195_v35 = vmax.f32 %v9131_v40, %v9163_v2  ;;  %v9069_v17 = vmax.f32 %v9005_v25, %v9037_v30  ;;  %v8943_v51 = vmax.f32 %v8879_v14, %v9101_v41  ;;  %v8817_v37 = vmax.f32 %v8753_v24, %v9165_v27  ;;  %v9105_v2 = vld [vmem:[#allocation2 + $0xf1] sm:$0xff]  ;;  %v9106_v42 = vld [vmem:[#allocation2 + $0xf9] sm:$0xff] }
 0x999   : > { %v7665_v29 = vpop.permute.xlu0 %7664  ;;  %7932 = vst.msk [vmem:[#allocation3 + $0xa0] sm:$0xff] %vm7911_vm15, %v7856_v0  ;;  %v9196_v28 = vmax.f32 %v9132_v46, %v9164_v57  ;;  %v9070_v15 = vmax.f32 %v9006_v7, %v9038_v59  ;;  %v8944_v61 = vmax.f32 %v8880_v54, %v9102_v1  ;;  %v8818_v50 = vmax.f32 %v8754_v48, %v9166_v53  ;;  %v9169_v32 = vld [vmem:[#allocation2 + $0xf2] sm:$0xff]  ;;  %v9170_v59 = vld [vmem:[#allocation2 + $0xfa] sm:$0xff]  ;;  %v9043_v46 = vld [vmem:[#allocation2 + $0x108] sm:$0xff] }
 0x99a   : > { %7740 = vst.msk [vmem:[#allocation3 + $0xa8] sm:$0xff] %vm7718_vm14, %v7665_v29  ;;  %10330 = vmatmul.mubr.msk.f32.gmra.mrb[38].mxu1 %vm366_vm0, %v9194_v31  ;;  %v9133_v9 = vmax.f32 %v9069_v17, %v9101_v41  ;;  %v9007_v12 = vmax.f32 %v8943_v51, %v9165_v27  ;;  %v8881_v49 = vmax.f32 %v8817_v37, %v9039_v44  ;;  %v9108_v17 = vld [vmem:[#allocation2 + $0x111] sm:$0xff] }
 0x99b   : > { %10332 = vmatprep.mubr.msk.f32.mxu1 %vm366_vm0, %v9195_v35  ;;  %v8755_v34 = vmax.f32 %v9039_v44, %v9103_v21  ;;  %v9134_v20 = vmax.f32 %v9070_v15, %v9102_v1  ;;  %v9008_v5 = vmax.f32 %v8944_v61, %v9166_v53  ;;  %v8882_v63 = vmax.f32 %v8818_v50, %v9040_v56  ;;  %v9044_v35 = vld [vmem:[#allocation2 + $0x110] sm:$0xff] }
 0x99c   : > { %v7281_v60 = vpop.permute.xlu1 %7280  ;;  %v8756_v16 = vmax.f32 %v9040_v56, %v9104_v52  ;;  %v9197_v33 = vmax.f32 %v9133_v9, %v9165_v27  ;;  %v9071_v3 = vmax.f32 %v9007_v12, %v9039_v44  ;;  %v8945_v11 = vmax.f32 %v8881_v49, %v9103_v21  ;;  %v9107_v27 = vld [vmem:[#allocation2 + $0x109] sm:$0xff] }
 0x99d   : > { %v7090_v13 = vpop.permute.xlu0 %7089  ;;  %7355 = vst.msk [vmem:[#allocation3 + $0xb0] sm:$0xff] %vm7332_vm12, %v7281_v60  ;;  %v8819_v58 = vmax.f32 %v8755_v34, %v9167_v38  ;;  %v9198_v10 = vmax.f32 %v9134_v20, %v9166_v53  ;;  %v9072_v0 = vmax.f32 %v9008_v5, %v9040_v56  ;;  %v8946_v4 = vmax.f32 %v8882_v63, %v9104_v52  ;;  %v9171_v15 = vld [vmem:[#allocation2 + $0x10a] sm:$0xff]  ;;  %v9045_v20 = vld [vmem:[#allocation2 + $0x120] sm:$0xff] }
 0x99e   : > { %7163 = vst.msk [vmem:[#allocation3 + $0xb8] sm:$0xff] %vm7139_vm11, %v7090_v13  ;;  %10333 = vmatmul.mubr.msk.f32.gmra.mrb[40].mxu1 %vm366_vm0, %v9196_v28  ;;  %v8820_v62 = vmax.f32 %v8756_v16, %v9168_v47  ;;  %v9135_v36 = vmax.f32 %v9071_v3, %v9103_v21  ;;  %v9009_v29 = vmax.f32 %v8945_v11, %v9167_v38  ;;  %v9110_v3 = vld [vmem:[#allocation2 + $0x129] sm:$0xff] }
 0x99f   : > { %10335 = vmatprep.mubr.msk.f32.mxu1 %vm366_vm0, %v9197_v33  ;;  %v8883_v57 = vmax.f32 %v8819_v58, %v9041_v55  ;;  %v8757_v18 = vmax.f32 %v9041_v55, %v9105_v2  ;;  %v9136_v31 = vmax.f32 %v9072_v0, %v9104_v52  ;;  %v9010_v30 = vmax.f32 %v8946_v4, %v9168_v47  ;;  %v9172_v52 = vld [vmem:[#allocation2 + $0x112] sm:$0xff]  ;;  %v9046_v33 = vld [vmem:[#allocation2 + $0x128] sm:$0xff] }
 0x9a0   : > { %v7283_v22 = vpop.permute.xlu1 %7282  ;;  %v7964_v39 = vld [vmem:[#allocation3 + $0xa0] sm:$0xff]  ;;  %v8884_v41 = vmax.f32 %v8820_v62, %v9042_v19  ;;  %v8758_v26 = vmax.f32 %v9042_v19, %v9106_v42  ;;  %v9199_v40 = vmax.f32 %v9135_v36, %v9167_v38  ;;  %v9073_v25 = vmax.f32 %v9009_v29, %v9041_v55 }
 0x9a1   : > { %v7858_v43 = vpop.permute.xlu0 %7857  ;;  %7356 = vst.msk [vmem:[#allocation3 + $0xb8] sm:$0xff] %vm7332_vm12, %v7283_v22  ;;  %10297 = vmatprep.mubr.msk.f32.mxu0 %vm7989_vm2, %v7964_v39  ;;  %v8947_v1 = vmax.f32 %v8883_v57, %v9105_v2  ;;  %v8821_v14 = vmax.f32 %v8757_v18, %v9169_v32  ;;  %v9200_v24 = vmax.f32 %v9136_v31, %v9168_v47  ;;  %v9109_v38 = vld [vmem:[#allocation2 + $0x121] sm:$0xff]  ;;  %v9047_v31 = vld [vmem:[#allocation2 + $0x138] sm:$0xff] }
 0x9a2   : > { %7933 = vst.msk [vmem:[#allocation3 + $0xa8] sm:$0xff] %vm7911_vm15, %v7858_v43  ;;  %10336 = vmatmul.mubr.msk.f32.gmra.mrb[42].mxu1 %vm366_vm0, %v9198_v10  ;;  %v9074_v60 = vmax.f32 %v9010_v30, %v9042_v19  ;;  %v8948_v7 = vmax.f32 %v8884_v41, %v9106_v42  ;;  %v8822_v54 = vmax.f32 %v8758_v26, %v9170_v59  ;;  %v9173_v0 = vld [vmem:[#allocation2 + $0x122] sm:$0xff]  ;;  %v9174_v19 = vld [vmem:[#allocation2 + $0x12a] sm:$0xff] }
 0x9a3   : > { %10338 = vmatprep.mubr.msk.f32.mxu1 %vm366_vm0, %v9199_v40  ;;  %v9137_v48 = vmax.f32 %v9073_v25, %v9105_v2  ;;  %v9011_v13 = vmax.f32 %v8947_v1, %v9169_v32  ;;  %v8885_v53 = vmax.f32 %v8821_v14, %v9043_v46  ;;  %v8759_v51 = vmax.f32 %v9043_v46, %v9107_v27  ;;  %v9048_v40 = vld [vmem:[#allocation2 + $0x140] sm:$0xff] }
 0x9a4   : > { %v7476_v8 = vpop.permute.xlu1 %7475  ;;  %v9138_v28 = vmax.f32 %v9074_v60, %v9106_v42  ;;  %v9012_v44 = vmax.f32 %v8948_v7, %v9170_v59  ;;  %v8886_v21 = vmax.f32 %v8822_v54, %v9044_v35  ;;  %v8760_v61 = vmax.f32 %v9044_v35, %v9108_v17  ;;  %v9112_v25 = vld [vmem:[#allocation2 + $0x141] sm:$0xff] }
 0x9a5   : > { %v7474_v6 = vpop.permute.xlu0 %7473  ;;  %7549 = vst.msk [vmem:[#allocation3 + $0xb8] sm:$0xff] %vm7525_vm13, %v7476_v8  ;;  %v9201_v12 = vmax.f32 %v9137_v48, %v9169_v32  ;;  %v9075_v56 = vmax.f32 %v9011_v13, %v9043_v46  ;;  %v8949_v49 = vmax.f32 %v8885_v53, %v9107_v27  ;;  %v8823_v34 = vmax.f32 %v8759_v51, %v9171_v15  ;;  %v9111_v32 = vld [vmem:[#allocation2 + $0x139] sm:$0xff] }
 0x9a6   : > { %7548 = vst.msk [vmem:[#allocation3 + $0xb0] sm:$0xff] %vm7525_vm13, %v7474_v6  ;;  %10339 = vmatmul.mubr.msk.f32.gmra.mrb[44].mxu1 %vm366_vm0, %v9200_v24  ;;  %v9202_v22 = vmax.f32 %v9138_v28, %v9170_v59  ;;  %v9076_v39 = vmax.f32 %v9012_v44, %v9044_v35  ;;  %v8950_v5 = vmax.f32 %v8886_v21, %v9108_v17  ;;  %v9175_v60 = vld [vmem:[#allocation2 + $0x13a] sm:$0xff]  ;;  %v9176_v35 = vld [vmem:[#allocation2 + $0x142] sm:$0xff]  ;;  %v9049_v28 = vld [vmem:[#allocation2 + $0x150] sm:$0xff] }
 0x9a7   : > { %v8824_v63 = vmax.f32 %v8760_v61, %v9172_v52  ;;  %10341 = vmatprep.mubr.msk.f32.mxu1 %vm366_vm0, %v9201_v12  ;;  %v9139_v16 = vmax.f32 %v9075_v56, %v9107_v27  ;;  %v9013_v43 = vmax.f32 %v8949_v49, %v9171_v15  ;;  %v8887_v47 = vmax.f32 %v8823_v34, %v9045_v20  ;;  %v9114_v12 = vld [vmem:[#allocation2 + $0x159] sm:$0xff] }
 0x9a8   : > { %v7092_v37 = vpop.permute.xlu1 %7091  ;;  %v8761_v11 = vmax.f32 %v9045_v20, %v9109_v38  ;;  %v9140_v10 = vmax.f32 %v9076_v39, %v9108_v17  ;;  %v9014_v55 = vmax.f32 %v8950_v5, %v9172_v52  ;;  %v8762_v4 = vmax.f32 %v9046_v33, %v9110_v3  ;;  %v9177_v39 = vld [vmem:[#allocation2 + $0x152] sm:$0xff] }
 0x9a9   : > { %v7667_v50 = vpop.permute.xlu0 %7666  ;;  %7164 = vst.msk [vmem:[#allocation3 + $0xc0] sm:$0xff] %vm7139_vm11, %v7092_v37  ;;  %v7965_v9 = vld [vmem:[#allocation3 + $0xa8] sm:$0xff]  ;;  %v8888_v2 = vmax.f32 %v8824_v63, %v9046_v33  ;;  %v9203_v36 = vmax.f32 %v9139_v16, %v9171_v15  ;;  %v9077_v29 = vmax.f32 %v9013_v43, %v9045_v20  ;;  %v8951_v42 = vmax.f32 %v8887_v47, %v9109_v38  ;;  %v9113_v15 = vld [vmem:[#allocation2 + $0x151] sm:$0xff] }
 0x9aa   : > { %7741 = vst.msk [vmem:[#allocation3 + $0xb0] sm:$0xff] %vm7718_vm14, %v7667_v50  ;;  %10298 = vmatmul.mubr.msk.f32.gmra.mrb[52].mxu0 %vm7989_vm2, %v7965_v9  ;;  %10342 = vmatmul.mubr.msk.f32.gmra.mrb[46].mxu1 %vm366_vm0, %v9202_v22  ;;  %v8825_v57 = vmax.f32 %v8761_v11, %v9173_v0  ;;  %v9204_v18 = vmax.f32 %v9140_v10, %v9172_v52  ;;  %v9050_v9 = vld [vmem:[#allocation2 + $0x158] sm:$0xff]  ;;  %v9051_v10 = vld [vmem:[#allocation2 + $0x168] sm:$0xff] }
 0x9ab   : > { %v9078_v8 = vmax.f32 %v9014_v55, %v9046_v33  ;;  %v8952_v30 = vmax.f32 %v8888_v2, %v9110_v3  ;;  %v8826_v41 = vmax.f32 %v8762_v4, %v9174_v19  ;;  %10344 = vmatprep.mubr.msk.f32.mxu1 %vm366_vm0, %v9203_v36  ;;  %v9141_v26 = vmax.f32 %v9077_v29, %v9109_v38  ;;  %v9178_v33 = vld [vmem:[#allocation2 + $0x15a] sm:$0xff]  ;;  %v9052_v36 = vld [vmem:[#allocation2 + $0x170] sm:$0xff] }
 0x9ac   : > { %v7860_v58 = vpop.permute.xlu1 %7859  ;;  %v9015_v6 = vmax.f32 %v8951_v42, %v9173_v0  ;;  %v8889_v59 = vmax.f32 %v8825_v57, %v9047_v31  ;;  %v8763_v1 = vmax.f32 %v9047_v31, %v9111_v32  ;;  %v8764_v7 = vmax.f32 %v9048_v40, %v9112_v25  ;;  %v9116_v29 = vld [vmem:[#allocation2 + $0x171] sm:$0xff] }
 0x9ad   : > { %v7669_v62 = vpop.permute.xlu0 %7668  ;;  %7934 = vst.msk [vmem:[#allocation3 + $0xb0] sm:$0xff] %vm7911_vm15, %v7860_v58  ;;  %v9142_v24 = vmax.f32 %v9078_v8, %v9110_v3  ;;  %v9016_v46 = vmax.f32 %v8952_v30, %v9174_v19  ;;  %v8890_v27 = vmax.f32 %v8826_v41, %v9048_v40  ;;  %v9205_v48 = vmax.f32 %v9141_v26, %v9173_v0  ;;  %v9115_v0 = vld [vmem:[#allocation2 + $0x169] sm:$0xff] }
 0x9ae   : > { %7742 = vst.msk [vmem:[#allocation3 + $0xb8] sm:$0xff] %vm7718_vm14, %v7669_v62  ;;  %10345 = vmatmul.mubr.msk.f32.gmra.mrb[48].mxu1 %vm366_vm0, %v9204_v18  ;;  %v9079_v13 = vmax.f32 %v9015_v6, %v9047_v31  ;;  %v8953_v17 = vmax.f32 %v8889_v59, %v9111_v32  ;;  %v8827_v53 = vmax.f32 %v8763_v1, %v9175_v60  ;;  %v9179_v8 = vld [vmem:[#allocation2 + $0x16a] sm:$0xff] }
 0x9af   : > { %v9206_v51 = vmax.f32 %v9142_v24, %v9174_v19  ;;  %v9080_v37 = vmax.f32 %v9016_v46, %v9048_v40  ;;  %v8954_v44 = vmax.f32 %v8890_v27, %v9112_v25  ;;  %v8828_v21 = vmax.f32 %v8764_v7, %v9176_v35  ;;  %10347 = vmatprep.mubr.msk.f32.mxu1 %vm366_vm0, %v9205_v48  ;;  %v9180_v40 = vld [vmem:[#allocation2 + $0x172] sm:$0xff]  ;;  %v9053_v24 = vld [vmem:[#allocation2 + $0x180] sm:$0xff] }
 0x9b0   : > { %v7285_v14 = vpop.permute.xlu1 %7284  ;;  %v9143_v61 = vmax.f32 %v9079_v13, %v9111_v32  ;;  %v9017_v50 = vmax.f32 %v8953_v17, %v9175_v60  ;;  %v8891_v56 = vmax.f32 %v8827_v53, %v9049_v28  ;;  %v8765_v52 = vmax.f32 %v9049_v28, %v9113_v15  ;;  %v9117_v17 = vld [vmem:[#allocation2 + $0x181] sm:$0xff] }
 0x9b1   : > { %v7094_v54 = vpop.permute.xlu0 %7093  ;;  %7357 = vst.msk [vmem:[#allocation3 + $0xc0] sm:$0xff] %vm7332_vm12, %v7285_v14  ;;  %v9144_v22 = vmax.f32 %v9080_v37, %v9112_v25  ;;  %v9018_v20 = vmax.f32 %v8954_v44, %v9176_v35  ;;  %v8892_v38 = vmax.f32 %v8828_v21, %v9050_v9  ;;  %v8766_v5 = vmax.f32 %v9050_v9, %v9114_v12  ;;  %v9181_v21 = vld [vmem:[#allocation2 + $0x182] sm:$0xff] }
 0x9b2   : > { %7165 = vst.msk [vmem:[#allocation3 + $0xc8] sm:$0xff] %vm7139_vm11, %v7094_v54  ;;  %10348 = vmatmul.mubr.msk.f32.gmra.mrb[50].mxu1 %vm366_vm0, %v9206_v51  ;;  %v9207_v16 = vmax.f32 %v9143_v61, %v9175_v60  ;;  %v9081_v43 = vmax.f32 %v9017_v50, %v9049_v28  ;;  %v8955_v3 = vmax.f32 %v8891_v56, %v9113_v15  ;;  %v9054_v54 = vld [vmem:[#allocation2 + $0x188] sm:$0xff] }
 0x9b3   : > { %v8829_v47 = vmax.f32 %v8765_v52, %v9177_v39  ;;  %v9208_v11 = vmax.f32 %v9144_v22, %v9176_v35  ;;  %v9082_v58 = vmax.f32 %v9018_v20, %v9050_v9  ;;  %v8956_v55 = vmax.f32 %v8892_v38, %v9114_v12  ;;  %v9118_v61 = vld [vmem:[#allocation2 + $0x189] sm:$0xff]  ;;  %v9055_v20 = vld [vmem:[#allocation2 + $0x198] sm:$0xff] }
 0x9b4   : > { %v7287_v49 = vpop.permute.xlu1 %7286  ;;  %v7966_v34 = vld [vmem:[#allocation3 + $0xb0] sm:$0xff]  ;;  %v8830_v2 = vmax.f32 %v8766_v5, %v9178_v33  ;;  %10350 = vmatprep.mubr.msk.f32.mxu1 %vm366_vm0, %v9207_v16  ;;  %v9145_v4 = vmax.f32 %v9081_v43, %v9113_v15  ;;  %v9019_v62 = vmax.f32 %v8955_v3, %v9177_v39  ;;  %v8767_v42 = vmax.f32 %v9051_v10, %v9115_v0  ;;  %v9056_v43 = vld [vmem:[#allocation2 + $0x1a0] sm:$0xff] }
 0x9b5   : > { %v7862_v63 = vpop.permute.xlu0 %7861  ;;  %7358 = vst.msk [vmem:[#allocation3 + $0xc8] sm:$0xff] %vm7332_vm12, %v7287_v49  ;;  %10300 = vmatprep.mubr.msk.f32.mxu0 %vm7989_vm2, %v7966_v34  ;;  %v8893_v19 = vmax.f32 %v8829_v47, %v9051_v10  ;;  %v9146_v18 = vmax.f32 %v9082_v58, %v9114_v12  ;;  %v9020_v31 = vmax.f32 %v8956_v55, %v9178_v33  ;;  %v9182_v56 = vld [vmem:[#allocation2 + $0x18a] sm:$0xff]  ;;  %v9119_v3 = vld [vmem:[#allocation2 + $0x199] sm:$0xff]  ;;  %v9120_v58 = vld [vmem:[#allocation2 + $0x1a1] sm:$0xff] }
 0x9b6   : > { %7935 = vst.msk [vmem:[#allocation3 + $0xb8] sm:$0xff] %vm7911_vm15, %v7862_v63  ;;  %10351 = vmatmul.mubr.msk.f32.gmra.mrb[52].mxu1 %vm366_vm0, %v9208_v11  ;;  %v8894_v32 = vmax.f32 %v8830_v2, %v9052_v36  ;;  %v8768_v30 = vmax.f32 %v9052_v36, %v9116_v29  ;;  %v9209_v26 = vmax.f32 %v9145_v4, %v9177_v39 }
 0x9b7   : > { %v9083_v6 = vmax.f32 %v9019_v62, %v9051_v10  ;;  %v8957_v25 = vmax.f32 %v8893_v19, %v9115_v0  ;;  %v8831_v59 = vmax.f32 %v8767_v42, %v9179_v8  ;;  %v9210_v1 = vmax.f32 %v9146_v18, %v9178_v33  ;;  %v9184_v62 = vld [vmem:[#allocation2 + $0x1a2] sm:$0xff] }
 0x9b8   : > { %v7480_v57 = vpop.permute.xlu1 %7479  ;;  %v9084_v14 = vmax.f32 %v9020_v31, %v9052_v36  ;;  %v8958_v60 = vmax.f32 %v8894_v32, %v9116_v29  ;;  %v8832_v46 = vmax.f32 %v8768_v30, %v9180_v40  ;;  %10353 = vmatprep.mubr.msk.f32.mxu1 %vm366_vm0, %v9209_v26  ;;  %v15078_v30 = vld [vmem:[%s15546_s6] ss:$0 sm:$0xff] }
 0x9b9   : > { %v7478_v41 = vpop.permute.xlu0 %7477  ;;  %7551 = vst.msk [vmem:[#allocation3 + $0xc8] sm:$0xff] %vm7525_vm13, %v7480_v57  ;;  %v9147_v27 = vmax.f32 %v9083_v6, %v9115_v0  ;;  %v9021_v7 = vmax.f32 %v8957_v25, %v9179_v8  ;;  %v8895_v48 = vmax.f32 %v8831_v59, %v9053_v24  ;;  %v9183_v0 = vld [vmem:[#allocation2 + $0x19a] sm:$0xff] }
 0x9ba   : > { %7550 = vst.msk [vmem:[#allocation3 + $0xc0] sm:$0xff] %vm7525_vm13, %v7478_v41  ;;  %10354 = vmatmul.mubr.msk.f32.gmra.mrb[54].mxu1 %vm366_vm0, %v9210_v1  ;;  %v9148_v35 = vmax.f32 %v9084_v14, %v9116_v29  ;;  %v9022_v53 = vmax.f32 %v8958_v60, %v9180_v40  ;;  %v8896_v51 = vmax.f32 %v8832_v46, %v9054_v54 }
 0x9bb   : > { %v9211_v15 = vmax.f32 %v9147_v27, %v9179_v8  ;;  %v9085_v44 = vmax.f32 %v9021_v7, %v9053_v24  ;;  %v8959_v50 = vmax.f32 %v8895_v48, %v9117_v17 }
 0x9bc   : > { %v7096_v13 = vpop.permute.xlu1 %7095  ;;  %v9212_v9 = vmax.f32 %v9148_v35, %v9180_v40  ;;  %v9086_v12 = vmax.f32 %v9022_v53, %v9054_v54  ;;  %v8960_v52 = vmax.f32 %v8896_v51, %v9118_v61  ;;  %v15083_v40 = vld [vmem:[%s15546_s6 + $0x1] ss:$0 sm:$0xff] }
 0x9bd   : > { %v7671_v37 = vpop.permute.xlu0 %7670  ;;  %7166 = vst.msk [vmem:[#allocation3 + $0xd0] sm:$0xff] %vm7139_vm11, %v7096_v13  ;;  %v7967_v28 = vld [vmem:[#allocation3 + $0xb8] sm:$0xff]  ;;  %10356 = vmatprep.mubr.msk.f32.mxu1 %vm366_vm0, %v9211_v15  ;;  %v9149_v49 = vmax.f32 %v9085_v44, %v9117_v17  ;;  %v9023_v34 = vmax.f32 %v8959_v50, %v9181_v21 }
 0x9be   : > { %7743 = vst.msk [vmem:[#allocation3 + $0xc0] sm:$0xff] %vm7718_vm14, %v7671_v37  ;;  %10301 = vmatmul.mubr.msk.f32.gmra.mrb[54].mxu0 %vm7989_vm2, %v7967_v28  ;;  %10357 = vmatmul.mubr.msk.f32.gmra.mrb[56].mxu1 %vm366_vm0, %v9212_v9  ;;  %v9150_v39 = vmax.f32 %v9086_v12, %v9118_v61  ;;  %v9024_v38 = vmax.f32 %v8960_v52, %v9182_v56 }
 0x9bf   : > { %v9213_v63 = vmax.f32 %v9149_v49, %v9181_v21  ;;  %v9087_v16 = vmax.f32 %v9023_v34, %v9055_v20 }
 0x9c0   : > { %v7864_v22 = vpop.permute.xlu1 %7863  ;;  %v9214_v33 = vmax.f32 %v9150_v39, %v9182_v56  ;;  %v9088_v47 = vmax.f32 %v9024_v38, %v9056_v43 }
 0x9c1   : > { %v7673_v5 = vpop.permute.xlu0 %7672  ;;  %7936 = vst.msk [vmem:[#allocation3 + $0xc0] sm:$0xff] %vm7911_vm15, %v7864_v22  ;;  %10359 = vmatprep.mubr.msk.f32.mxu1 %vm366_vm0, %v9213_v63  ;;  %v9151_v11 = vmax.f32 %v9087_v16, %v9119_v3 }
 0x9c2   : > { %7744 = vst.msk [vmem:[#allocation3 + $0xc8] sm:$0xff] %vm7718_vm14, %v7673_v5  ;;  %10360 = vmatmul.mubr.msk.f32.gmra.mrb[58].mxu1 %vm366_vm0, %v9214_v33  ;;  %v9152_v55 = vmax.f32 %v9088_v47, %v9120_v58 }
 0x9c3   : > { %v9215_v4 = vmax.f32 %v9151_v11, %v9183_v0 }
 0x9c4   : > { %v7289_v10 = vpop.permute.xlu1 %7288  ;;  %v9216_v36 = vmax.f32 %v9152_v55, %v9184_v62 }
 0x9c5   : > { %v7098_v2 = vpop.permute.xlu0 %7097  ;;  %7359 = vst.msk [vmem:[#allocation3 + $0xd0] sm:$0xff] %vm7332_vm12, %v7289_v10  ;;  %10362 = vmatprep.mubr.msk.f32.mxu1 %vm366_vm0, %v9215_v4 }
 0x9c6   : > { %7167 = vst.msk [vmem:[#allocation3 + $0xd8] sm:$0xff] %vm7139_vm11, %v7098_v2  ;;  %10363 = vmatmul.mubr.msk.f32.gmra.mrb[60].mxu1 %vm366_vm0, %v9216_v36 }
 0x9c8   : > { %v7291_v29 = vpop.permute.xlu1 %7290  ;;  %v7968_v19 = vld [vmem:[#allocation3 + $0xc0] sm:$0xff] }
 0x9c9   : > { %v7866_v42 = vpop.permute.xlu0 %7865  ;;  %7360 = vst.msk [vmem:[#allocation3 + $0xd8] sm:$0xff] %vm7332_vm12, %v7291_v29  ;;  %10303 = vmatprep.mubr.msk.f32.mxu0 %vm7989_vm2, %v7968_v19 }
 0x9ca   : > { %7937 = vst.msk [vmem:[#allocation3 + $0xc8] sm:$0xff] %vm7911_vm15, %v7866_v42 }
 0x9cc   : > { %v7484_v57 = vpop.permute.xlu1 %7483 }
 0x9cd   : > { %v7482_v18 = vpop.permute.xlu0 %7481  ;;  %7553 = vst.msk [vmem:[#allocation3 + $0xd8] sm:$0xff] %vm7525_vm13, %v7484_v57 }
 0x9ce   : > { %7552 = vst.msk [vmem:[#allocation3 + $0xd0] sm:$0xff] %vm7525_vm13, %v7482_v18 }
 0x9d0   : > { %v7100_v8 = vpop.permute.xlu1 %7099 }
 0x9d1   : > { %v7675_v31 = vpop.permute.xlu0 %7674  ;;  %7168 = vst.msk [vmem:[#allocation3 + $0xe0] sm:$0xff] %vm7139_vm11, %v7100_v8  ;;  %v7969_v32 = vld [vmem:[#allocation3 + $0xc8] sm:$0xff] }
 0x9d2   : > { %7745 = vst.msk [vmem:[#allocation3 + $0xd0] sm:$0xff] %vm7718_vm14, %v7675_v31  ;;  %10304 = vmatmul.mubr.msk.f32.gmra.mrb[56].mxu0 %vm7989_vm2, %v7969_v32 }
 0x9d4   : > { %v7868_v41 = vpop.permute.xlu1 %7867 }
 0x9d5   : > { %v7677_v26 = vpop.permute.xlu0 %7676  ;;  %v10269_v6 = vpop.f32.mrb[32].mxu0  ;;  %7938 = vst.msk [vmem:[#allocation3 + $0xd0] sm:$0xff] %vm7911_vm15, %v7868_v41 }
 0x9d6   : > { %7746 = vst.msk [vmem:[#allocation3 + $0xd8] sm:$0xff] %vm7718_vm14, %v7677_v26  ;;  %v8320_v25 = vmul.f32 %v10269_v6, %v15078_v30  ;;  %v8155_v59 = vpop.f32.mrb[33].mxu0 }
 0x9d7   : > { %v8319_v1 = vmul.f32 %v15078_v30, %v8155_v59 }
 0x9d8   : > { %v8357_v14 = vadd.f32 %v15083_v40, %v8320_v25  ;;  %v7293_v24 = vpop.permute.xlu1 %7292 }
 0x9d9   : > { %v8356_v60 = vadd.f32 %v15083_v40, %v8319_v1  ;;  %v7102_v46 = vpop.permute.xlu0 %7101  ;;  %7361 = vst.msk [vmem:[#allocation3 + $0xe0] sm:$0xff] %vm7332_vm12, %v7293_v24 }
 0x9da   : > { %v8389_v27 = vmax.f32 %v8357_v14, 0.0  ;;  %7169 = vst.msk [vmem:[#allocation3 + $0xe8] sm:$0xff] %vm7139_vm11, %v7102_v46 }
 0x9db   : > { %v8388_v7 = vmax.f32 %v8356_v60, 0.0 }
 0x9dc   : > { %8454 = vrot.lane.b32.xlu1 %v8389_v27, %s10445_s18  ;;  %v7295_v54 = vpop.permute.xlu1 %7294  ;;  %v7970_v48 = vld [vmem:[#allocation3 + $0xd0] sm:$0xff] }
 0x9dd   : > { %v7870_v13 = vpop.permute.xlu0 %7869  ;;  %8452 = vrot.lane.b32.xlu0 %v8388_v7, %s10445_s18  ;;  %7362 = vst.msk [vmem:[#allocation3 + $0xe8] sm:$0xff] %vm7332_vm12, %v7295_v54  ;;  %10306 = vmatprep.mubr.msk.f32.mxu0 %vm7989_vm2, %v7970_v48 }
 0x9de   : > { %7939 = vst.msk [vmem:[#allocation3 + $0xd8] sm:$0xff] %vm7911_vm15, %v7870_v13 }
 0x9e0   : > { %v7488_v35 = vpop.permute.xlu1 %7487 }
 0x9e1   : > { %v7486_v17 = vpop.permute.xlu0 %7485  ;;  %7555 = vst.msk [vmem:[#allocation3 + $0xe8] sm:$0xff] %vm7525_vm13, %v7488_v35 }
 0x9e2   : > { %7554 = vst.msk [vmem:[#allocation3 + $0xe0] sm:$0xff] %vm7525_vm13, %v7486_v17 }
 0x9e4   : > { %v7104_v53 = vpop.permute.xlu1 %7103 }
 0x9e5   : > { %v7679_v51 = vpop.permute.xlu0 %7678  ;;  %v10272_v37 = vpop.f32.mrb[34].mxu0  ;;  %7170 = vst.msk [vmem:[#allocation3 + $0xf0] sm:$0xff] %vm7139_vm11, %v7104_v53  ;;  %v7971_v28 = vld [vmem:[#allocation3 + $0xd8] sm:$0xff] }
 0x9e6   : > { %7747 = vst.msk [vmem:[#allocation3 + $0xe0] sm:$0xff] %vm7718_vm14, %v7679_v51  ;;  %v8322_v15 = vmul.f32 %v10272_v37, %v15078_v30  ;;  %v8165_v44 = vpop.f32.mrb[35].mxu0  ;;  %10307 = vmatmul.mubr.msk.f32.gmra.mrb[58].mxu0 %vm7989_vm2, %v7971_v28 }
 0x9e7   : > { %v8321_v21 = vmul.f32 %v15078_v30, %v8165_v44 }
 0x9e8   : > { %v8359_v61 = vadd.f32 %v15083_v40, %v8322_v15  ;;  %v7872_v50 = vpop.permute.xlu1 %7871 }
 0x9e9   : > { %v8358_v9 = vadd.f32 %v15083_v40, %v8321_v21  ;;  %v7681_v12 = vpop.permute.xlu0 %7680  ;;  %7940 = vst.msk [vmem:[#allocation3 + $0xe0] sm:$0xff] %vm7911_vm15, %v7872_v50 }
 0x9ea   : > { %v8391_v56 = vmax.f32 %v8359_v61, 0.0  ;;  %7748 = vst.msk [vmem:[#allocation3 + $0xe8] sm:$0xff] %vm7718_vm14, %v7681_v12 }
 0x9eb   : > { %v8390_v52 = vmax.f32 %v8358_v9, 0.0 }
 0x9ec   : > { %8458 = vrot.lane.b32.xlu1 %v8391_v56, %s10445_s18  ;;  %v7297_v49 = vpop.permute.xlu1 %7296 }
 0x9ed   : > { %v7106_v34 = vpop.permute.xlu0 %7105  ;;  %8456 = vrot.lane.b32.xlu0 %v8390_v52, %s10445_s18  ;;  %7363 = vst.msk [vmem:[#allocation3 + $0xf0] sm:$0xff] %vm7332_vm12, %v7297_v49 }
 0x9ee   : > { %7171 = vst.msk [vmem:[#allocation3 + $0xf8] sm:$0xff] %vm7139_vm11, %v7106_v34 }
 0x9f0   : > { %v7299_v22 = vpop.permute.xlu1 %7298  ;;  %v7972_v39 = vld [vmem:[#allocation3 + $0xe0] sm:$0xff] }
 0x9f1   : > { %v7874_v20 = vpop.permute.xlu0 %7873  ;;  %7364 = vst.msk [vmem:[#allocation3 + $0xf8] sm:$0xff] %vm7332_vm12, %v7299_v22  ;;  %10309 = vmatprep.mubr.msk.f32.mxu0 %vm7989_vm2, %v7972_v39 }
 0x9f2   : > { %7941 = vst.msk [vmem:[#allocation3 + $0xe8] sm:$0xff] %vm7911_vm15, %v7874_v20 }
 0x9f4   : > { %v7492_v38 = vpop.permute.xlu1 %7491 }
 0x9f5   : > { %v7490_v5 = vpop.permute.xlu0 %7489  ;;  %v10275_v63 = vpop.f32.mrb[36].mxu0  ;;  %7557 = vst.msk [vmem:[#allocation3 + $0xf8] sm:$0xff] %vm7525_vm13, %v7492_v38 }
 0x9f6   : > { %7556 = vst.msk [vmem:[#allocation3 + $0xf0] sm:$0xff] %vm7525_vm13, %v7490_v5  ;;  %v8324_v16 = vmul.f32 %v10275_v63, %v15078_v30  ;;  %v8175_v43 = vpop.f32.mrb[37].mxu0 }
 0x9f7   : > { %v8323_v33 = vmul.f32 %v15078_v30, %v8175_v43 }
 0x9f8   : > { %v8361_v3 = vadd.f32 %v15083_v40, %v8324_v16  ;;  %v7685_v47 = vpop.permute.xlu1 %7684 }
 0x9f9   : > { %v8360_v11 = vadd.f32 %v15083_v40, %v8323_v33  ;;  %v7683_v58 = vpop.permute.xlu0 %7682  ;;  %7750 = vst.msk [vmem:[#allocation3 + $0xf8] sm:$0xff] %vm7718_vm14, %v7685_v47  ;;  %v7973_v10 = vld [vmem:[#allocation3 + $0xe8] sm:$0xff] }
 0x9fa   : > { %v8393_v0 = vmax.f32 %v8361_v3, 0.0  ;;  %7749 = vst.msk [vmem:[#allocation3 + $0xf0] sm:$0xff] %vm7718_vm14, %v7683_v58  ;;  %10310 = vmatmul.mubr.msk.f32.gmra.mrb[60].mxu0 %vm7989_vm2, %v7973_v10 }
 0x9fb   : > { %v8392_v55 = vmax.f32 %v8360_v11, 0.0 }
 0x9fc   : > { %8462 = vrot.lane.b32.xlu1 %v8393_v0, %s10445_s18  ;;  %v7878_v2 = vpop.permute.xlu1 %7877 }
 0x9fd   : > { %v7876_v4 = vpop.permute.xlu0 %7875  ;;  %8460 = vrot.lane.b32.xlu0 %v8392_v55, %s10445_s18  ;;  %7943 = vst.msk [vmem:[#allocation3 + $0xf8] sm:$0xff] %vm7911_vm15, %v7878_v2 }
 0x9fe   : > { %7942 = vst.msk [vmem:[#allocation3 + $0xf0] sm:$0xff] %vm7911_vm15, %v7876_v4 }
 0xa04   : > { %v7975_v62 = vld [vmem:[#allocation3 + $0xf8] sm:$0xff] }
 0xa05   : > { %v10278_v36 = vpop.f32.mrb[38].mxu0  ;;  %v7974_v29 = vld [vmem:[#allocation3 + $0xf0] sm:$0xff] }
 0xa06   : > { %v8326_v19 = vmul.f32 %v10278_v36, %v15078_v30  ;;  %v8185_v42 = vpop.f32.mrb[39].mxu0  ;;  %10312 = vmatprep.mubr.msk.f32.mxu0 %vm7989_vm2, %v7974_v29 }
 0xa07   : > { %v8325_v57 = vmul.f32 %v15078_v30, %v8185_v42  ;;  %10313 = vmatmul.mubr.msk.f32.gmra.mrb[62].mxu0 %vm7989_vm2, %v7975_v62 }
 0xa08   : > { %v8363_v18 = vadd.f32 %v15083_v40, %v8326_v19  ;;  %10317 = vmatprep.mubr.msk.f32.mxu0 %vm366_vm0, %v14992_v23 }
 0xa09   : > { %v8362_v8 = vadd.f32 %v15083_v40, %v8325_v57 }
 0xa0a   : > { %v8395_v31 = vmax.f32 %v8363_v18, 0.0 }
 0xa0b   : > { %v8394_v32 = vmax.f32 %v8362_v8, 0.0  ;;  %10318 = vmatmul.mubr.msk.f32.vlgmr.msra.gmra.mrb[64].mxu0 %vm366_vm0, %v14997_v45  ;;  %vm8548_vm0 = vcmask 113760  }
 0xa0c   : > { %8466 = vrot.lane.b32.xlu1 %v8395_v31, %s10445_s18 }
 0xa0d   : > { %8464 = vrot.lane.b32.xlu0 %v8394_v32, %s10445_s18 }
 0xa15   : > { %v10281_v41 = vpop.f32.mrb[40].mxu0 }
 0xa16   : > { %v8328_v26 = vmul.f32 %v10281_v41, %v15078_v30  ;;  %v8195_v6 = vpop.f32.mrb[41].mxu0 }
 0xa17   : > { %v8327_v25 = vmul.f32 %v15078_v30, %v8195_v6 }
 0xa18   : > { %v8365_v59 = vadd.f32 %v15083_v40, %v8328_v26 }
 0xa19   : > { %v8364_v23 = vadd.f32 %v15083_v40, %v8327_v25 }
 0xa1a   : > { %v8397_v1 = vmax.f32 %v8365_v59, 0.0 }
 0xa1b   : > { %v8396_v14 = vmax.f32 %v8364_v23, 0.0 }
 0xa1c   : > { %8470 = vrot.lane.b32.xlu1 %v8397_v1, %s10445_s18 }
 0xa1d   : > { %8468 = vrot.lane.b32.xlu0 %v8396_v14, %s10445_s18 }
 0xa25   : > { %v10284_v45 = vpop.f32.mrb[42].mxu0 }
 0xa26   : > { %v8330_v24 = vmul.f32 %v10284_v45, %v15078_v30  ;;  %v8205_v60 = vpop.f32.mrb[43].mxu0 }
 0xa27   : > { %v8329_v46 = vmul.f32 %v15078_v30, %v8205_v60 }
 0xa28   : > { %v8367_v27 = vadd.f32 %v15083_v40, %v8330_v24 }
 0xa29   : > { %v8366_v7 = vadd.f32 %v15083_v40, %v8329_v46 }
 0xa2a   : > { %v8399_v54 = vmax.f32 %v8367_v27, 0.0 }
 0xa2b   : > { %v8398_v48 = vmax.f32 %v8366_v7, 0.0 }
 0xa2c   : > { %8474 = vrot.lane.b32.xlu1 %v8399_v54, %s10445_s18 }
 0xa2d   : > { %8472 = vrot.lane.b32.xlu0 %v8398_v48, %s10445_s18 }
 0xa35   : > { %v10287_v13 = vpop.f32.mrb[44].mxu0 }
 0xa36   : > { %v8332_v35 = vmul.f32 %v10287_v13, %v15078_v30  ;;  %v8215_v17 = vpop.f32.mrb[45].mxu0 }
 0xa37   : > { %v8331_v53 = vmul.f32 %v15078_v30, %v8215_v17 }
 0xa38   : > { %v8369_v51 = vadd.f32 %v15083_v40, %v8332_v35 }
 0xa39   : > { %v8368_v37 = vadd.f32 %v15083_v40, %v8331_v53 }
 0xa3a   : > { %v8401_v28 = vmax.f32 %v8369_v51, 0.0 }
 0xa3b   : > { %v8400_v15 = vmax.f32 %v8368_v37, 0.0 }
 0xa3c   : > { %8478 = vrot.lane.b32.xlu1 %v8401_v28, %s10445_s18 }
 0xa3d   : > { %8476 = vrot.lane.b32.xlu0 %v8400_v15, %s10445_s18 }
 0xa45   : > { %v10290_v44 = vpop.f32.mrb[46].mxu0 }
 0xa46   : > { %v8334_v21 = vmul.f32 %v10290_v44, %v15078_v30  ;;  %v8225_v61 = vpop.f32.mrb[47].mxu0 }
 0xa47   : > { %v8333_v50 = vmul.f32 %v15078_v30, %v8225_v61 }
 0xa48   : > { %v8371_v9 = vadd.f32 %v15083_v40, %v8334_v21 }
 0xa49   : > { %v8370_v12 = vadd.f32 %v15083_v40, %v8333_v50 }
 0xa4a   : > { %v8403_v56 = vmax.f32 %v8371_v9, 0.0 }
 0xa4b   : > { %v8402_v52 = vmax.f32 %v8370_v12, 0.0 }
 0xa4c   : > { %8482 = vrot.lane.b32.xlu1 %v8403_v56, %s10445_s18 }
 0xa4d   : > { %8480 = vrot.lane.b32.xlu0 %v8402_v52, %s10445_s18 }
 0xa4e   : > { %v8455_v49 = vpop.permute.xlu1 %8454 }
 0xa4f   : > { %8550 = vst.msk [vmem:[%s12289_s13 + $0x8] sm:$0xff] %vm8548_vm0, %v8455_v49  ;;  %v8453_v34 = vpop.permute.xlu0 %8452 }
 0xa50   : > { %8549 = vst.msk [vmem:[%s12289_s13] sm:$0xff] %vm8548_vm0, %v8453_v34 }
 0xa55   : > { %v10293_v22 = vpop.f32.mrb[48].mxu0 }
 0xa56   : > { %v8336_v39 = vmul.f32 %v10293_v22, %v15078_v30  ;;  %v8235_v20 = vpop.f32.mrb[49].mxu0 }
 0xa57   : > { %v8335_v38 = vmul.f32 %v15078_v30, %v8235_v20 }
 0xa58   : > { %v8373_v5 = vadd.f32 %v15083_v40, %v8336_v39 }
 0xa59   : > { %v8372_v63 = vadd.f32 %v15083_v40, %v8335_v38 }
 0xa5a   : > { %v8405_v16 = vmax.f32 %v8373_v5, 0.0 }
 0xa5b   : > { %v8404_v43 = vmax.f32 %v8372_v63, 0.0 }
 0xa5c   : > { %8486 = vrot.lane.b32.xlu1 %v8405_v16, %s10445_s18 }
 0xa5d   : > { %8484 = vrot.lane.b32.xlu0 %v8404_v43, %s10445_s18 }
 0xa5e   : > { %v8459_v33 = vpop.permute.xlu1 %8458 }
 0xa5f   : > { %8552 = vst.msk [vmem:[%s12289_s13 + $0x18] sm:$0xff] %vm8548_vm0, %v8459_v33  ;;  %v8457_v3 = vpop.permute.xlu0 %8456 }
 0xa60   : > { %8551 = vst.msk [vmem:[%s12289_s13 + $0x10] sm:$0xff] %vm8548_vm0, %v8457_v3  ;;  %v15179_v47 = vpop.f32.mrb[32].mxu1 }
 0xa61   : > { %v15181_v11 = vpop.f32.mrb[33].mxu1 }
 0xa64   : > { %v15183_v58 = vpop.f32.mrb[34].mxu1 }
 0xa65   : > { %v15185_v10 = vpop.f32.mrb[35].mxu1 }
 0xa69   : > { %v10296_v0 = vpop.f32.mrb[50].mxu0  ;;  %v15189_v62 = vpop.f32.mrb[36].mxu1 }
 0xa6a   : > { %v8338_v55 = vmul.f32 %v10296_v0, %v15078_v30  ;;  %v8245_v2 = vpop.f32.mrb[51].mxu0  ;;  %v15192_v29 = vpop.f32.mrb[37].mxu1 }
 0xa6b   : > { %v8337_v4 = vmul.f32 %v15078_v30, %v8245_v2 }
 0xa6c   : > { %v8375_v36 = vadd.f32 %v15083_v40, %v8338_v55 }
 0xa6d   : > { %v8374_v19 = vadd.f32 %v15083_v40, %v8337_v4  ;;  %v15197_v31 = vpop.f32.mrb[38].mxu1 }
 0xa6e   : > { %v8407_v42 = vmax.f32 %v8375_v36, 0.0  ;;  %v8463_v57 = vpop.permute.xlu1 %8462  ;;  %v15202_v32 = vpop.f32.mrb[39].mxu1 }
 0xa6f   : > { %v8406_v18 = vmax.f32 %v8374_v19, 0.0  ;;  %8554 = vst.msk [vmem:[%s12289_s13 + $0x28] sm:$0xff] %vm8548_vm0, %v8463_v57  ;;  %v8461_v8 = vpop.permute.xlu0 %8460 }
 0xa70   : > { %8553 = vst.msk [vmem:[%s12289_s13 + $0x20] sm:$0xff] %vm8548_vm0, %v8461_v8  ;;  %8490 = vrot.lane.b32.xlu1 %v8407_v42, %s10445_s18 }
 0xa71   : > { %8488 = vrot.lane.b32.xlu0 %v8406_v18, %s10445_s18  ;;  %v15205_v41 = vpop.f32.mrb[40].mxu1 }
 0xa72   : > { %v15207_v26 = vpop.f32.mrb[41].mxu1 }
 0xa75   : > { %v15209_v6 = vpop.f32.mrb[42].mxu1 }
 0xa76   : > { %v15211_v25 = vpop.f32.mrb[43].mxu1 }
 0xa79   : > { %v15213_v59 = vpop.f32.mrb[44].mxu1 }
 0xa7a   : > { %v15215_v23 = vpop.f32.mrb[45].mxu1 }
 0xa7d   : > { %v10299_v1 = vpop.f32.mrb[52].mxu0  ;;  %v15221_v27 = vpop.f32.mrb[46].mxu1 }
 0xa7e   : > { %v8340_v14 = vmul.f32 %v10299_v1, %v15078_v30  ;;  %v8467_v45 = vpop.permute.xlu1 %8466  ;;  %v8255_v24 = vpop.f32.mrb[53].mxu0 }
 0xa7f   : > { %8556 = vst.msk [vmem:[%s12289_s13 + $0x38] sm:$0xff] %vm8548_vm0, %v8467_v45  ;;  %v8339_v60 = vmul.f32 %v15078_v30, %v8255_v24  ;;  %v8465_v46 = vpop.permute.xlu0 %8464  ;;  %v15226_v54 = vpop.f32.mrb[47].mxu1 }
 0xa80   : > { %v8377_v7 = vadd.f32 %v15083_v40, %v8340_v14  ;;  %8555 = vst.msk [vmem:[%s12289_s13 + $0x30] sm:$0xff] %vm8548_vm0, %v8465_v46 }
 0xa81   : > { %v8376_v48 = vadd.f32 %v15083_v40, %v8339_v60  ;;  %v15229_v17 = vpop.f32.mrb[48].mxu1 }
 0xa82   : > { %v8409_v13 = vmax.f32 %v8377_v7, 0.0  ;;  %v15232_v53 = vpop.f32.mrb[49].mxu1 }
 0xa83   : > { %v8408_v35 = vmax.f32 %v8376_v48, 0.0 }
 0xa84   : > { %8494 = vrot.lane.b32.xlu1 %v8409_v13, %s10445_s18 }
 0xa85   : > { %8492 = vrot.lane.b32.xlu0 %v8408_v35, %s10445_s18  ;;  %v15235_v51 = vpop.f32.mrb[50].mxu1 }
 0xa86   : > { %v15237_v37 = vpop.f32.mrb[51].mxu1 }
 0xa89   : > { %v15239_v28 = vpop.f32.mrb[52].mxu1 }
 0xa8a   : > { %v15241_v15 = vpop.f32.mrb[53].mxu1 }
 0xa8d   : > { %v15245_v61 = vpop.f32.mrb[54].mxu1 }
 0xa8e   : > { %v8471_v44 = vpop.permute.xlu1 %8470  ;;  %v15249_v50 = vpop.f32.mrb[55].mxu1 }
 0xa8f   : > { %8558 = vst.msk [vmem:[%s12289_s13 + $0x48] sm:$0xff] %vm8548_vm0, %v8471_v44  ;;  %v8469_v21 = vpop.permute.xlu0 %8468 }
 0xa90   : > { %8557 = vst.msk [vmem:[%s12289_s13 + $0x40] sm:$0xff] %vm8548_vm0, %v8469_v21 }
 0xa91   : > { %v10302_v9 = vpop.f32.mrb[54].mxu0  ;;  %v15253_v49 = vpop.f32.mrb[56].mxu1 }
 0xa92   : > { %v8342_v12 = vmul.f32 %v10302_v9, %v15078_v30  ;;  %v8265_v56 = vpop.f32.mrb[55].mxu0  ;;  %v15256_v22 = vpop.f32.mrb[57].mxu1 }
 0xa93   : > { %v8341_v52 = vmul.f32 %v15078_v30, %v8265_v56 }
 0xa94   : > { %v8379_v34 = vadd.f32 %v15083_v40, %v8342_v12 }
 0xa95   : > { %v8378_v39 = vadd.f32 %v15083_v40, %v8341_v52  ;;  %v15259_v5 = vpop.f32.mrb[58].mxu1 }
 0xa96   : > { %v8411_v20 = vmax.f32 %v8379_v34, 0.0  ;;  %v15262_v63 = vpop.f32.mrb[59].mxu1 }
 0xa97   : > { %v8410_v38 = vmax.f32 %v8378_v39, 0.0 }
 0xa98   : > { %8498 = vrot.lane.b32.xlu1 %v8411_v20, %s10445_s18 }
 0xa99   : > { %8496 = vrot.lane.b32.xlu0 %v8410_v38, %s10445_s18  ;;  %v15265_v16 = vpop.f32.mrb[60].mxu1 }
 0xa9a   : > { %v15267_v43 = vpop.f32.mrb[61].mxu1 }
 0xa9e   : > { %v8475_v33 = vpop.permute.xlu1 %8474 }
 0xa9f   : > { %8560 = vst.msk [vmem:[%s12289_s13 + $0x58] sm:$0xff] %vm8548_vm0, %v8475_v33  ;;  %v8473_v3 = vpop.permute.xlu0 %8472 }
 0xaa0   : > { %8559 = vst.msk [vmem:[%s12289_s13 + $0x50] sm:$0xff] %vm8548_vm0, %v8473_v3 }
 0xaa5   : > { %v10305_v0 = vpop.f32.mrb[56].mxu0 }
 0xaa6   : > { %v8344_v55 = vmul.f32 %v10305_v0, %v15078_v30  ;;  %v8275_v2 = vpop.f32.mrb[57].mxu0 }
 0xaa7   : > { %v8343_v4 = vmul.f32 %v15078_v30, %v8275_v2  ;;  %v15308_v2 = vld [vmem:[%s15548_s8] ss:$0 sm:$0xff] }
 0xaa8   : > { %v8381_v36 = vadd.f32 %v15083_v40, %v8344_v55 }
 0xaa9   : > { %v8380_v19 = vadd.f32 %v15083_v40, %v8343_v4 }
 0xaaa   : > { %v8413_v42 = vmax.f32 %v8381_v36, 0.0 }
 0xaab   : > { %v8412_v57 = vmax.f32 %v8380_v19, 0.0 }
 0xaac   : > { %8502 = vrot.lane.b32.xlu1 %v8413_v42, %s10445_s18  ;;  %v15315_v42 = vld [vmem:[%s15548_s8 + $0x1] ss:$0 sm:$0xff] }
 0xaad   : > { %8500 = vrot.lane.b32.xlu0 %v8412_v57, %s10445_s18 }
 0xaae   : > { %v8479_v18 = vpop.permute.xlu1 %8478 }
 0xaaf   : > { %8562 = vst.msk [vmem:[%s12289_s13 + $0x68] sm:$0xff] %vm8548_vm0, %v8479_v18  ;;  %v8477_v8 = vpop.permute.xlu0 %8476 }
 0xab0   : > { %8561 = vst.msk [vmem:[%s12289_s13 + $0x60] sm:$0xff] %vm8548_vm0, %v8477_v8 }
 0xab9   : > { %v10308_v1 = vpop.f32.mrb[58].mxu0 }
 0xaba   : > { %v8346_v14 = vmul.f32 %v10308_v1, %v15078_v30  ;;  %v8285_v45 = vpop.f32.mrb[59].mxu0 }
 0xabb   : > { %v8345_v24 = vmul.f32 %v15078_v30, %v8285_v45 }
 0xabc   : > { %v8383_v60 = vadd.f32 %v15083_v40, %v8346_v14 }
 0xabd   : > { %v8382_v46 = vadd.f32 %v15083_v40, %v8345_v24 }
 0xabe   : > { %v8415_v7 = vmax.f32 %v8383_v60, 0.0  ;;  %v8483_v48 = vpop.permute.xlu1 %8482  ;;  %v9549_v60 = vmul.f32 %v15308_v2, %v15181_v11  ;;  %v9551_v11 = vmul.f32 %v15308_v2, %v15185_v10  ;;  %v9556_v10 = vmul.f32 %v15197_v31, %v15308_v2 }
 0xabf   : > { %v8414_v13 = vmax.f32 %v8382_v46, 0.0  ;;  %8564 = vst.msk [vmem:[%s12289_s13 + $0x78] sm:$0xff] %vm8548_vm0, %v8483_v48  ;;  %v8481_v35 = vpop.permute.xlu0 %8480  ;;  %v9557_v31 = vmul.f32 %v15308_v2, %v15207_v26 }
 0xac0   : > { %8563 = vst.msk [vmem:[%s12289_s13 + $0x70] sm:$0xff] %vm8548_vm0, %v8481_v35  ;;  %8506 = vrot.lane.b32.xlu1 %v8415_v7, %s10445_s18  ;;  %v9586_v48 = vadd.f32 %v15315_v42, %v9549_v60  ;;  %v9554_v35 = vmul.f32 %v15189_v62, %v15308_v2  ;;  %v9555_v62 = vmul.f32 %v15308_v2, %v15202_v32 }
 0xac1   : > { %8504 = vrot.lane.b32.xlu0 %v8414_v13, %s10445_s18  ;;  %v9560_v32 = vmul.f32 %v15209_v6, %v15308_v2  ;;  %v9562_v6 = vmul.f32 %v15213_v59, %v15308_v2  ;;  %v9563_v59 = vmul.f32 %v15308_v2, %v15226_v54  ;;  %v9568_v54 = vmul.f32 %v15235_v51, %v15308_v2 }
 0xac2   : > { %v9569_v51 = vmul.f32 %v15308_v2, %v15241_v15 }
 0xac3   : > { %v9597_v26 = vadd.f32 %v15315_v42, %v9560_v32 }
 0xacd   : > { %v10311_v44 = vpop.f32.mrb[60].mxu0 }
 0xace   : > { %v8348_v21 = vmul.f32 %v10311_v44, %v15078_v30  ;;  %v8487_v9 = vpop.permute.xlu1 %8486  ;;  %v8295_v12 = vpop.f32.mrb[61].mxu0  ;;  %v9588_v44 = vadd.f32 %v15315_v42, %v9551_v11 }
 0xacf   : > { %8566 = vst.msk [vmem:[%s12289_s13 + $0x88] sm:$0xff] %vm8548_vm0, %v8487_v9  ;;  %v8347_v56 = vmul.f32 %v15078_v30, %v8295_v12  ;;  %v8485_v52 = vpop.permute.xlu0 %8484  ;;  %v9593_v12 = vadd.f32 %v15315_v42, %v9556_v10 }
 0xad0   : > { %v8385_v34 = vadd.f32 %v15083_v40, %v8348_v21  ;;  %8565 = vst.msk [vmem:[%s12289_s13 + $0x80] sm:$0xff] %vm8548_vm0, %v8485_v52  ;;  %v9591_v21 = vadd.f32 %v15315_v42, %v9554_v35 }
 0xad1   : > { %v8384_v39 = vadd.f32 %v15083_v40, %v8347_v56  ;;  %v9592_v56 = vadd.f32 %v15315_v42, %v9555_v62 }
 0xad2   : > { %v8417_v20 = vmax.f32 %v8385_v34, 0.0  ;;  %v9594_v34 = vadd.f32 %v15315_v42, %v9557_v31 }
 0xad3   : > { %v8416_v38 = vmax.f32 %v8384_v39, 0.0 }
 0xad4   : > { %8510 = vrot.lane.b32.xlu1 %v8417_v20, %s10445_s18 }
 0xad5   : > { %8508 = vrot.lane.b32.xlu0 %v8416_v38, %s10445_s18 }
 0xada   : > { %v10314_v33 = vpop.f32.mrb[62].mxu0 }
 0xadb   : > { %v8350_v3 = vmul.f32 %v10314_v33, %v15078_v30  ;;  %v8305_v0 = vpop.f32.mrb[63].mxu0  ;;  %v9561_v33 = vmul.f32 %v15308_v2, %v15215_v23  ;;  %v9566_v23 = vmul.f32 %v15229_v17, %v15308_v2  ;;  %v9567_v17 = vmul.f32 %v15308_v2, %v15237_v37 }
 0xadc   : > { %v8349_v55 = vmul.f32 %v15078_v30, %v8305_v0 }
 0xadd   : > { %v8387_v4 = vadd.f32 %v15083_v40, %v8350_v3  ;;  %v9564_v3 = vmul.f32 %v15221_v27, %v15308_v2  ;;  %v9598_v0 = vadd.f32 %v15315_v42, %v9561_v33  ;;  %v9565_v27 = vmul.f32 %v15308_v2, %v15232_v53 }
 0xade   : > { %v8386_v36 = vadd.f32 %v15083_v40, %v8349_v55  ;;  %v10319_v19 = vpop.f32.mrb[64].mxu0  ;;  %v9550_v40 = vmul.f32 %v15179_v47, %v15308_v2  ;;  %v9552_v47 = vmul.f32 %v15183_v58, %v15308_v2  ;;  %v9553_v58 = vmul.f32 %v15308_v2, %v15192_v29 }
 0xadf   : > { %v8419_v57 = vmax.f32 %v8387_v4, 0.0  ;;  %v9548_v30 = vmul.f32 %v10319_v19, %v15308_v2  ;;  %v9383_v18 = vpop.f32.mrb[65].mxu0  ;;  %v9558_v29 = vmul.f32 %v15205_v41, %v15308_v2  ;;  %v9559_v41 = vmul.f32 %v15308_v2, %v15211_v25 }
 0xae0   : > { %v8418_v8 = vmax.f32 %v8386_v36, 0.0  ;;  %v9547_v1 = vmul.f32 %v15308_v2, %v9383_v18  ;;  %v9587_v7 = vadd.f32 %v15315_v42, %v9550_v40  ;;  %v9589_v13 = vadd.f32 %v15315_v42, %v9552_v47 }
 0xae1   : > { %v9585_v14 = vadd.f32 %v15315_v42, %v9548_v30  ;;  %8514 = vrot.lane.b32.xlu1 %v8419_v57, %s10445_s18  ;;  %v9590_v9 = vadd.f32 %v15315_v42, %v9553_v58  ;;  %v9595_v52 = vadd.f32 %v15315_v42, %v9558_v29  ;;  %v9596_v38 = vadd.f32 %v15315_v42, %v9559_v41 }
 0xae2   : > { %v9584_v45 = vadd.f32 %v15315_v42, %v9547_v1  ;;  %v8491_v24 = vpop.permute.xlu1 %8490  ;;  %8512 = vrot.lane.b32.xlu0 %v8418_v8, %s10445_s18  ;;  %v9599_v25 = vadd.f32 %v15315_v42, %v9562_v6  ;;  %v9601_v55 = vadd.f32 %v15315_v42, %v9564_v3  ;;  %v9600_v4 = vadd.f32 %v15315_v42, %v9563_v59 }
 0xae3   : > { %8568 = vst.msk [vmem:[%s12289_s13 + $0x98] sm:$0xff] %vm8548_vm0, %v8491_v24  ;;  %v8489_v46 = vpop.permute.xlu0 %8488  ;;  %v9603_v36 = vadd.f32 %v15315_v42, %v9566_v23  ;;  %v9602_v19 = vadd.f32 %v15315_v42, %v9565_v27  ;;  %v9605_v57 = vadd.f32 %v15315_v42, %v9568_v54  ;;  %v9570_v53 = vmul.f32 %v15239_v28, %v15308_v2 }
 0xae4   : > { %8567 = vst.msk [vmem:[%s12289_s13 + $0x90] sm:$0xff] %vm8548_vm0, %v8489_v46  ;;  %v9604_v30 = vadd.f32 %v15315_v42, %v9567_v17  ;;  %v9572_v28 = vmul.f32 %v15245_v61, %v15308_v2  ;;  %v9606_v1 = vadd.f32 %v15315_v42, %v9569_v51  ;;  %v9574_v40 = vmul.f32 %v15253_v49, %v15308_v2 }
 0xae5   : > { %9650 = vrot.lane.b32.xlu1 %v9585_v14, %s10468_s23  ;;  %v9607_v37 = vadd.f32 %v15315_v42, %v9570_v53  ;;  %v9571_v14 = vmul.f32 %v15308_v2, %v15249_v50  ;;  %v9573_v61 = vmul.f32 %v15308_v2, %v15256_v22  ;;  %v9576_v50 = vmul.f32 %v15259_v5, %v15308_v2 }
 0xae6   : > { %9648 = vrot.lane.b32.xlu0 %v9584_v45, %s10468_s23  ;;  %v9609_v15 = vadd.f32 %v15315_v42, %v9572_v28  ;;  %v9611_v24 = vadd.f32 %v15315_v42, %v9574_v40  ;;  %v9575_v49 = vmul.f32 %v15308_v2, %v15262_v63  ;;  %v9578_v22 = vmul.f32 %v15265_v16, %v15308_v2 }
 0xae7   : > { %v9608_v45 = vadd.f32 %v15315_v42, %v9571_v14  ;;  %v9610_v60 = vadd.f32 %v15315_v42, %v9573_v61  ;;  %v9613_v46 = vadd.f32 %v15315_v42, %v9576_v50  ;;  %v9577_v5 = vmul.f32 %v15308_v2, %v15267_v43 }
 0xae8   : > { %v9615_v47 = vadd.f32 %v15315_v42, %v9578_v22 }
 0xae9   : > { %9654 = vrot.lane.b32.xlu1 %v9587_v7, %s10468_s23  ;;  %v9612_v7 = vadd.f32 %v15315_v42, %v9575_v49  ;;  %v9614_v63 = vadd.f32 %v15315_v42, %v9577_v5 }
 0xaea   : > { %9652 = vrot.lane.b32.xlu0 %v9586_v48, %s10468_s23 }
 0xaed   : > { %9658 = vrot.lane.b32.xlu1 %v9589_v13, %s10468_s23 }
 0xaee   : > { %9656 = vrot.lane.b32.xlu0 %v9588_v44, %s10468_s23 }
 0xaf1   : > { %9662 = vrot.lane.b32.xlu1 %v9591_v21, %s10468_s23 }
 0xaf2   : > { %9660 = vrot.lane.b32.xlu0 %v9590_v9, %s10468_s23 }
 0xaf5   : > { %9666 = vrot.lane.b32.xlu1 %v9593_v12, %s10468_s23 }
 0xaf6   : > { %v8495_v39 = vpop.permute.xlu1 %8494  ;;  %9664 = vrot.lane.b32.xlu0 %v9592_v56, %s10468_s23 }
 0xaf7   : > { %8570 = vst.msk [vmem:[%s12289_s13 + $0xa8] sm:$0xff] %vm8548_vm0, %v8495_v39  ;;  %v8493_v20 = vpop.permute.xlu0 %8492 }
 0xaf8   : > { %8569 = vst.msk [vmem:[%s12289_s13 + $0xa0] sm:$0xff] %vm8548_vm0, %v8493_v20 }
 0xaf9   : > { %9670 = vrot.lane.b32.xlu1 %v9595_v52, %s10468_s23 }
 0xafa   : > { %9668 = vrot.lane.b32.xlu0 %v9594_v34, %s10468_s23 }
 0xafd   : > { %9674 = vrot.lane.b32.xlu1 %v9597_v26, %s10468_s23 }
 0xafe   : > { %9672 = vrot.lane.b32.xlu0 %v9596_v38, %s10468_s23 }
 0xb01   : > { %9678 = vrot.lane.b32.xlu1 %v9599_v25, %s10468_s23 }
 0xb02   : > { %9676 = vrot.lane.b32.xlu0 %v9598_v0, %s10468_s23 }
 0xb05   : > { %9682 = vrot.lane.b32.xlu1 %v9601_v55, %s10468_s23 }
 0xb06   : > { %9680 = vrot.lane.b32.xlu0 %v9600_v4, %s10468_s23 }
 0xb09   : > { %9686 = vrot.lane.b32.xlu1 %v9603_v36, %s10468_s23 }
 0xb0a   : > { %v8499_v18 = vpop.permute.xlu1 %8498  ;;  %9684 = vrot.lane.b32.xlu0 %v9602_v19, %s10468_s23 }
 0xb0b   : > { %8572 = vst.msk [vmem:[%s12289_s13 + $0xb8] sm:$0xff] %vm8548_vm0, %v8499_v18  ;;  %v8497_v8 = vpop.permute.xlu0 %8496 }
 0xb0c   : > { %8571 = vst.msk [vmem:[%s12289_s13 + $0xb0] sm:$0xff] %vm8548_vm0, %v8497_v8 }
 0xb0d   : > { %9690 = vrot.lane.b32.xlu1 %v9605_v57, %s10468_s23 }
 0xb0e   : > { %9688 = vrot.lane.b32.xlu0 %v9604_v30, %s10468_s23 }
 0xb11   : > { %9694 = vrot.lane.b32.xlu1 %v9607_v37, %s10468_s23 }
 0xb12   : > { %9692 = vrot.lane.b32.xlu0 %v9606_v1, %s10468_s23 }
 0xb15   : > { %9698 = vrot.lane.b32.xlu1 %v9609_v15, %s10468_s23 }
 0xb16   : > { %9696 = vrot.lane.b32.xlu0 %v9608_v45, %s10468_s23 }
 0xb19   : > { %9702 = vrot.lane.b32.xlu1 %v9611_v24, %s10468_s23 }
 0xb1a   : > { %9700 = vrot.lane.b32.xlu0 %v9610_v60, %s10468_s23 }
 0xb1d   : > { %9706 = vrot.lane.b32.xlu1 %v9613_v46, %s10468_s23 }
 0xb1e   : > { %v8503_v48 = vpop.permute.xlu1 %8502  ;;  %9704 = vrot.lane.b32.xlu0 %v9612_v7, %s10468_s23 }
 0xb1f   : > { %8574 = vst.msk [vmem:[%s12289_s13 + $0xc8] sm:$0xff] %vm8548_vm0, %v8503_v48  ;;  %v8501_v16 = vpop.permute.xlu0 %8500 }
 0xb20   : > { %8573 = vst.msk [vmem:[%s12289_s13 + $0xc0] sm:$0xff] %vm8548_vm0, %v8501_v16 }
 0xb21   : > { %9710 = vrot.lane.b32.xlu1 %v9615_v47, %s10468_s23 }
 0xb22   : > { %9708 = vrot.lane.b32.xlu0 %v9614_v63, %s10468_s23 }
 0xb32   : > { %v8507_v43 = vpop.permute.xlu1 %8506 }
 0xb33   : > { %8576 = vst.msk [vmem:[%s12289_s13 + $0xd8] sm:$0xff] %vm8548_vm0, %v8507_v43  ;;  %v8505_v2 = vpop.permute.xlu0 %8504 }
 0xb34   : > { %8575 = vst.msk [vmem:[%s12289_s13 + $0xd0] sm:$0xff] %vm8548_vm0, %v8505_v2 }
 0xb46   : > { %v8511_v42 = vpop.permute.xlu1 %8510 }
 0xb47   : > { %8578 = vst.msk [vmem:[%s12289_s13 + $0xe8] sm:$0xff] %vm8548_vm0, %v8511_v42  ;;  %v8509_v11 = vpop.permute.xlu0 %8508 }
 0xb48   : > { %8577 = vst.msk [vmem:[%s12289_s13 + $0xe0] sm:$0xff] %vm8548_vm0, %v8509_v11 }
 0xb53   : > { %v8515_v13 = vpop.permute.xlu1 %8514 }
 0xb54   : > { %8580 = vst.msk [vmem:[%s12289_s13 + $0xf8] sm:$0xff] %vm8548_vm0, %v8515_v13  ;;  %v8513_v35 = vpop.permute.xlu0 %8512 }
 0xb55   : > { %8579 = vst.msk [vmem:[%s12289_s13 + $0xf0] sm:$0xff] %vm8548_vm0, %v8513_v35 }
 0xb57   : > { %v9651_v44 = vpop.permute.xlu1 %9650 }
 0xb58   : > { %9746 = vst.msk [vmem:[%s12289_s13 + $0x8] sm:$0xff] %vm9744_vm1, %v9651_v44  ;;  %v9649_v58 = vpop.permute.xlu0 %9648 }
 0xb59   : > { %9745 = vst.msk [vmem:[%s12289_s13] sm:$0xff] %vm9744_vm1, %v9649_v58 }
 0xb5b   : > { %v9655_v21 = vpop.permute.xlu1 %9654 }
 0xb5c   : > { %9748 = vst.msk [vmem:[%s12289_s13 + $0x18] sm:$0xff] %vm9744_vm1, %v9655_v21  ;;  %v9653_v10 = vpop.permute.xlu0 %9652 }
 0xb5d   : > { %9747 = vst.msk [vmem:[%s12289_s13 + $0x10] sm:$0xff] %vm9744_vm1, %v9653_v10 }
 0xb5f   : > { %v9659_v9 = vpop.permute.xlu1 %9658 }
 0xb60   : > { %9750 = vst.msk [vmem:[%s12289_s13 + $0x28] sm:$0xff] %vm9744_vm1, %v9659_v9  ;;  %v9657_v62 = vpop.permute.xlu0 %9656 }
 0xb61   : > { %9749 = vst.msk [vmem:[%s12289_s13 + $0x20] sm:$0xff] %vm9744_vm1, %v9657_v62 }
 0xb63   : > { %v9663_v12 = vpop.permute.xlu1 %9662 }
 0xb64   : > { %9752 = vst.msk [vmem:[%s12289_s13 + $0x38] sm:$0xff] %vm9744_vm1, %v9663_v12  ;;  %v9661_v29 = vpop.permute.xlu0 %9660 }
 0xb65   : > { %9751 = vst.msk [vmem:[%s12289_s13 + $0x30] sm:$0xff] %vm9744_vm1, %v9661_v29 }
 0xb67   : > { %v9667_v56 = vpop.permute.xlu1 %9666 }
 0xb68   : > { %9754 = vst.msk [vmem:[%s12289_s13 + $0x48] sm:$0xff] %vm9744_vm1, %v9667_v56  ;;  %v9665_v31 = vpop.permute.xlu0 %9664 }
 0xb69   : > { %9753 = vst.msk [vmem:[%s12289_s13 + $0x40] sm:$0xff] %vm9744_vm1, %v9665_v31 }
 0xb6b   : > { %v9671_v52 = vpop.permute.xlu1 %9670 }
 0xb6c   : > { %9756 = vst.msk [vmem:[%s12289_s13 + $0x58] sm:$0xff] %vm9744_vm1, %v9671_v52  ;;  %v9669_v32 = vpop.permute.xlu0 %9668 }
 0xb6d   : > { %9755 = vst.msk [vmem:[%s12289_s13 + $0x50] sm:$0xff] %vm9744_vm1, %v9669_v32 }
 0xb6f   : > { %v9675_v34 = vpop.permute.xlu1 %9674 }
 0xb70   : > { %9758 = vst.msk [vmem:[%s12289_s13 + $0x68] sm:$0xff] %vm9744_vm1, %v9675_v34  ;;  %v9673_v39 = vpop.permute.xlu0 %9672 }
 0xb71   : > { %9757 = vst.msk [vmem:[%s12289_s13 + $0x60] sm:$0xff] %vm9744_vm1, %v9673_v39 }
 0xb73   : > { %v9679_v41 = vpop.permute.xlu1 %9678 }
 0xb74   : > { %9760 = vst.msk [vmem:[%s12289_s13 + $0x78] sm:$0xff] %vm9744_vm1, %v9679_v41  ;;  %v9677_v20 = vpop.permute.xlu0 %9676 }
 0xb75   : > { %9759 = vst.msk [vmem:[%s12289_s13 + $0x70] sm:$0xff] %vm9744_vm1, %v9677_v20 }
 0xb77   : > { %v9683_v26 = vpop.permute.xlu1 %9682 }
 0xb78   : > { %9762 = vst.msk [vmem:[%s12289_s13 + $0x88] sm:$0xff] %vm9744_vm1, %v9683_v26  ;;  %v9681_v6 = vpop.permute.xlu0 %9680 }
 0xb79   : > { %9761 = vst.msk [vmem:[%s12289_s13 + $0x80] sm:$0xff] %vm9744_vm1, %v9681_v6 }
 0xb7b   : > { %v9687_v38 = vpop.permute.xlu1 %9686 }
 0xb7c   : > { %9764 = vst.msk [vmem:[%s12289_s13 + $0x98] sm:$0xff] %vm9744_vm1, %v9687_v38  ;;  %v9685_v33 = vpop.permute.xlu0 %9684 }
 0xb7d   : > { %9763 = vst.msk [vmem:[%s12289_s13 + $0x90] sm:$0xff] %vm9744_vm1, %v9685_v33 }
 0xb7f   : > { %v9691_v25 = vpop.permute.xlu1 %9690 }
 0xb80   : > { %9766 = vst.msk [vmem:[%s12289_s13 + $0xa8] sm:$0xff] %vm9744_vm1, %v9691_v25  ;;  %v9689_v3 = vpop.permute.xlu0 %9688 }
 0xb81   : > { %9765 = vst.msk [vmem:[%s12289_s13 + $0xa0] sm:$0xff] %vm9744_vm1, %v9689_v3 }
 0xb83   : > { %v9695_v0 = vpop.permute.xlu1 %9694 }
 0xb84   : > { %9768 = vst.msk [vmem:[%s12289_s13 + $0xb8] sm:$0xff] %vm9744_vm1, %v9695_v0  ;;  %v9693_v59 = vpop.permute.xlu0 %9692 }
 0xb85   : > { %9767 = vst.msk [vmem:[%s12289_s13 + $0xb0] sm:$0xff] %vm9744_vm1, %v9693_v59 }
 0xb87   : > { %v9699_v55 = vpop.permute.xlu1 %9698 }
 0xb88   : > { %9770 = vst.msk [vmem:[%s12289_s13 + $0xc8] sm:$0xff] %vm9744_vm1, %v9699_v55  ;;  %v9697_v23 = vpop.permute.xlu0 %9696 }
 0xb89   : > { %9769 = vst.msk [vmem:[%s12289_s13 + $0xc0] sm:$0xff] %vm9744_vm1, %v9697_v23 }
 0xb8b   : > { %v9703_v4 = vpop.permute.xlu1 %9702 }
 0xb8c   : > { %9772 = vst.msk [vmem:[%s12289_s13 + $0xd8] sm:$0xff] %vm9744_vm1, %v9703_v4  ;;  %v9701_v27 = vpop.permute.xlu0 %9700 }
 0xb8d   : > { %9771 = vst.msk [vmem:[%s12289_s13 + $0xd0] sm:$0xff] %vm9744_vm1, %v9701_v27 }
 0xb8f   : > { %v9707_v36 = vpop.permute.xlu1 %9706 }
 0xb90   : > { %9774 = vst.msk [vmem:[%s12289_s13 + $0xe8] sm:$0xff] %vm9744_vm1, %v9707_v36  ;;  %v9705_v54 = vpop.permute.xlu0 %9704 }
 0xb91   : > { %9773 = vst.msk [vmem:[%s12289_s13 + $0xe0] sm:$0xff] %vm9744_vm1, %v9705_v54 }
 0xb93   : > { %v9711_v19 = vpop.permute.xlu1 %9710 }
 0xb94   : > { %9776 = vst.msk [vmem:[%s12289_s13 + $0xf8] sm:$0xff] %vm9744_vm1, %v9711_v19  ;;  %v9709_v17 = vpop.permute.xlu0 %9708 }
 0xb95   : > { %9775 = vst.msk [vmem:[%s12289_s13 + $0xf0] sm:$0xff] %vm9744_vm1, %v9709_v17 }
 0xb96 PF: > { %s19_s30 = sadd.s32 1, %s10440_s30  }
 0xb97   : > { %p16_p4 = scmp.ge.s32.totalorder %s19_s30, 4  }
 0xb99   :  { %18 = sbr.rel (!%p16_p4) target bundleno = 1 (0x1), region = 90 }

</bundles_post_ra>
